<compile_context>
chip_gen: v5e
topology: v5e:2x2
jax: 0.10.0
libtpu: 0.0.40
codegen_flags: <defaults>
</compile_context>

<pallas_src>
import functools
import math

import jax
import jax.numpy as jnp
from jax import lax
from jax.experimental import pallas as pl
from jax.experimental.pallas import tpu as pltpu

C_MID = 128     # head/body hidden width
C_TAIL = 48     # tail conv output channels (before pixel shuffle)
C_PAD = 128     # tail channels zero-padded to 128 for lane-dense output stores


# ------------------------------ fused kernel ------------------------------- #

def testnet5_fused_kernel(x_ref, head_w_ref, head_b_ref,
                          body_w_ref, body_b_ref,
                          tail_w_ref, tail_b_ref, alpha_ref,
                          o_ref, buf_a, buf_b):
    """head -> NB x (3x3 conv + PReLU) -> tail for one batch block (NHWC)."""
    BB, H, W, Cin = x_ref.shape
    C = head_w_ref.shape[1]
    NB = body_w_ref.shape[0]
    CPAD = o_ref.shape[3]
    M = BB * H * W

    # --- halo-only zeroing: rows 0 and H+1 of every image in the block.  The
    # interiors are fully overwritten by write_shifted each layer and the column
    # halos are baked into the masked taps, so this is megacore-safe and cheap.
    if NB > 0:
        zero_row = jnp.zeros((BB, 1, W, 3 * C), jnp.bfloat16)
        buf_a[:, 0:1, :, :] = zero_row
        buf_a[:, H + 1:H + 2, :, :] = zero_row
        if NB > 1:
            buf_b[:, 0:1, :, :] = zero_row
            buf_b[:, H + 1:H + 2, :, :] = zero_row

    # Column masks for the W-shifted taps (hoisted once; JAX does not CSE
    # broadcast_in_dim, so don't rebuild these per layer).
    w_idx = lax.broadcasted_iota(jnp.int32, (BB, H, W, C), 2).reshape(M, C)
    left_ok = w_idx >= 1          # kx=0 tap is zero at w == 0
    right_ok = w_idx <= W - 2     # kx=2 tap is zero at w == W-1

    def write_shifted(dst, y2d):
        # y2d: (M, C) f32 layer output (M = BB*H*W, row-major over (b, h, w)).
        # Build the left/right taps with an XLU sublane roll + VPU mask (the
        # wrap-around rows are exactly the masked ones, including across image
        # boundaries), then store three fully aligned bf16 slabs.
        left = jnp.where(left_ok, pltpu.roll(y2d, 1, axis=0), 0.0)
        right = jnp.where(right_ok, pltpu.roll(y2d, M - 1, axis=0), 0.0)
        dst[:, 1:H + 1, :, 0:C] = left.astype(jnp.bfloat16).reshape(BB, H, W, C)
        dst[:, 1:H + 1, :, C:2 * C] = y2d.astype(jnp.bfloat16).reshape(BB, H, W, C)
        dst[:, 1:H + 1, :, 2 * C:3 * C] = right.astype(jnp.bfloat16).reshape(BB, H, W, C)

    # ----------------- head: 1x1 conv (Cin -> C) + PReLU -------------------- #
    x2d = x_ref[...].reshape(M, Cin).astype(jnp.bfloat16)
    h = jnp.dot(x2d, head_w_ref[...], preferred_element_type=jnp.float32)
    h = h + head_b_ref[...]
    h = jnp.where(h > 0, h, alpha_ref[0] * h)

    # --------------- body: NB x (3x3 'same' conv + PReLU) ------------------- #
    # TODO(synk): for NB >= 8 switch the Python unroll to lax.fori_loop with a
    # dynamic body_w_ref[i] index; for large H*W add a row-strip loop so the
    # bf16 scratch stays inside v7x's 64 MiB / v5e's scoped VMEM.
    bufs = [buf_a, buf_b]
    cur = 0
    y = h
    if NB > 0:
        write_shifted(buf_a, h)
    for i in range(NB):
        src = bufs[cur]
        # 3 dots with K = 3*C (kx taps folded into the contraction axis);
        # accumulator is initialized by the ky=0 dot (no explicit zeros).
        acc = jnp.dot(src[:, 0:H, :, :].reshape(M, 3 * C), body_w_ref[i, 0],
                      preferred_element_type=jnp.float32)
        for ky in (1, 2):
            acc = acc + jnp.dot(src[:, ky:ky + H, :, :].reshape(M, 3 * C),
                                body_w_ref[i, ky],
                                preferred_element_type=jnp.float32)
        acc = acc + body_b_ref[i:i + 1, :]
        ai = alpha_ref[1 + i]
        y = jnp.where(acc > 0, acc, ai * acc)
        if i + 1 < NB:
            cur = 1 - cur
            write_shifted(bufs[cur], y)

    # --- tail: 1x1 conv (C -> 48, zero-padded to CPAD lanes) + tanh ---------- #
    t = jnp.dot(y.astype(jnp.bfloat16), tail_w_ref[...],
                preferred_element_type=jnp.float32)
    t = jnp.tanh(t + tail_b_ref[...])
    o_ref[...] = t.reshape(BB, H, W, CPAD)


# --------------------------------- wrapper --------------------------------- #

def testnet5_forward(x_nchw, params, *, is_with_res):
    N, Cin, H, W = x_nchw.shape
    C = params["head_w"].shape[1]
    NB = params["body_w"].shape[0]
    CPAD = params["tail_w"].shape[1]

    # Batch blocking: fold the batch into the dot M dimension but keep >= 2
    # 'parallel' grid steps when N >= 2, so both v7x TensorCores are fed while
    # single-TC chips (v5e/v6e) pay at most 2 pipeline steps of overhead.
    BB = N // 2 if (N >= 2 and N % 2 == 0) else 1
    steps = N // BB

    x_nhwc = jnp.transpose(x_nchw, (0, 2, 3, 1))            # NCHW -> NHWC (tiny)

    t_pad = pl.pallas_call(
        testnet5_fused_kernel,
        out_shape=jax.ShapeDtypeStruct((N, H, W, CPAD), jnp.float32),
        grid=(steps,),
        in_specs=[
            pl.BlockSpec((BB, H, W, Cin), lambda n: (n, 0, 0, 0)),     # x
            pl.BlockSpec((Cin, C), lambda n: (0, 0)),                  # head_w
            pl.BlockSpec((1, C), lambda n: (0, 0)),                    # head_b
            pl.BlockSpec((NB, 3, 3 * C, C), lambda n: (0, 0, 0, 0)),   # body_w
            pl.BlockSpec((NB, C), lambda n: (0, 0)),                   # body_b
            pl.BlockSpec((C, CPAD), lambda n: (0, 0)),                 # tail_w
            pl.BlockSpec((1, CPAD), lambda n: (0, 0)),                 # tail_b
            pl.BlockSpec(memory_space=pltpu.MemorySpace.SMEM),         # alphas
        ],
        out_specs=pl.BlockSpec((BB, H, W, CPAD), lambda n: (n, 0, 0, 0)),
        scratch_shapes=[
            pltpu.VMEM((BB, H + 2, W, 3 * C), jnp.bfloat16),  # shifted act ping
            pltpu.VMEM((BB, H + 2, W, 3 * C), jnp.bfloat16),  # shifted act pong
        ],
        compiler_params=pltpu.CompilerParams(
            dimension_semantics=("parallel",),
            vmem_limit_bytes=32 * 1024 * 1024),
    )(x_nhwc, params["head_w"], params["head_b"], params["body_w"],
      params["body_b"], params["tail_w"], params["tail_b"], params["alphas"])

    # Drop lane padding, then apply both PixelShuffle(2) steps as a single fused
    # NHWC -> NCHW permutation:
    #   out[n, c2, 4h+2*i1+i2, 4w+2*j1+j2] = t[n, h, w, 16*c2 + 8*i2 + 4*j2 + 2*i1 + j1]
    t = t_pad[..., :C_TAIL]
    Cout = C_TAIL // 16
    t = t.reshape(N, H, W, Cout, 2, 2, 2, 2)             # (n,h,w,c2,i2,j2,i1,j1)
    t = jnp.transpose(t, (0, 3, 1, 6, 4, 2, 7, 5))       # (n,c2,h,i1,i2,w,j1,j2)
    y = t.reshape(N, Cout, 4 * H, 4 * W)

    if is_with_res:
        # F.interpolate(x, scale_factor=4, mode='bilinear', align_corners=False)
        up = jax.image.resize(x_nchw, (N, Cin, 4 * H, 4 * W), method="bilinear")
        y = y + up
    return y


# --------------------------- deterministic init ----------------------------- #

def _xavier_uniform(key, shape, fan_in, fan_out):
    bound = math.sqrt(6.0 / (fan_in + fan_out))
    return jax.random.uniform(key, shape, jnp.float32, -bound, bound)


def _bias_uniform(key, shape, fan_in):
    bound = 1.0 / math.sqrt(fan_in)
    return jax.random.uniform(key, shape, jnp.float32, -bound, bound)


def init_params(key, in_channels, n_basic_blocks):
    C, COUT, CPAD = C_MID, C_TAIL, C_PAD
    keys = jax.random.split(key, 4 + 2 * n_basic_blocks)

    # head: torch weight (128, Cin, 1, 1) -> matmul layout (Cin, 128); Xavier
    # matches the module's explicit xavier_uniform_ init, biases torch-default.
    head_w = _xavier_uniform(keys[0], (in_channels, C), in_channels, C)
    head_b = _bias_uniform(keys[1], (1, C), in_channels)

    # body: torch weight (128, 128, 3, 3) -> (ky, kx*Cin, Cout); (kx, cin) folded
    # into the contraction axis to match the shifted-im2col activation layout.
    body_w, body_b = [], []
    for i in range(n_basic_blocks):
        kw, kb = keys[4 + 2 * i], keys[5 + 2 * i]
        w = _xavier_uniform(kw, (3, 3, C, C), C * 9, C * 9)  # (ky, kx, cin, cout)
        body_w.append(w.reshape(3, 3 * C, C))
        body_b.append(_bias_uniform(kb, (C,), C * 9))
    body_w = jnp.stack(body_w).astype(jnp.bfloat16)          # (NB, 3, 3C, C)
    body_b = jnp.stack(body_b)                               # (NB, C)

    # tail: torch weight (48, 128, 1, 1) -> (128, 48), zero-padded to 128 lanes.
    tail_w = _xavier_uniform(keys[2], (C, COUT), C, COUT)
    tail_b = _bias_uniform(keys[3], (COUT,), C)
    tail_w_pad = jnp.zeros((C, CPAD), jnp.float32).at[:, :COUT].set(tail_w)
    tail_b_pad = jnp.zeros((1, CPAD), jnp.float32).at[0, :COUT].set(tail_b)

    return {
        "head_w": head_w.astype(jnp.bfloat16),
        "head_b": head_b,
        "body_w": body_w,
        "body_b": body_b,
        "tail_w": tail_w_pad.astype(jnp.bfloat16),
        "tail_b": tail_b_pad,
        "alphas": jnp.full((n_basic_blocks + 1,), 0.25, jnp.float32),  # PReLU init
    }


# ----------------------------------- main ----------------------------------- #

if __name__ == "__main__":
    N, Cin, H, W = 2, 3, 16, 16          # Cin=3 so the residual path shape-matches
    n_basic_blocks = 2
    is_with_res = True

    key = jax.random.PRNGKey(0)
    kx, kp = jax.random.split(key)
    x = jax.random.normal(kx, (N, Cin, H, W), jnp.float32)
    params = init_params(kp, Cin, n_basic_blocks)

    fwd = jax.jit(functools.partial(testnet5_forward, is_with_res=is_with_res))
    y = jax.block_until_ready(fwd(x, params))

    assert y.shape == (N, 3, 4 * H, 4 * W), y.shape
    assert bool(jnp.all(jnp.isfinite(y)))
    print("KERNEL_OK")
</pallas_src>

<mosaic_0001>
module attributes {stable_mosaic.version = 11 : i64} {
  func.func @testnet5_fused_kernel(%arg0: i32, %arg1: memref<1x16x16x3xf32, #tpu.memory_space<vmem>>, %arg2: memref<3x128xbf16, #tpu.memory_space<vmem>>, %arg3: memref<1x128xf32, #tpu.memory_space<vmem>>, %arg4: memref<2x3x384x128xbf16, #tpu.memory_space<vmem>>, %arg5: memref<2x128xf32, #tpu.memory_space<vmem>>, %arg6: memref<128x128xbf16, #tpu.memory_space<vmem>>, %arg7: memref<1x128xf32, #tpu.memory_space<vmem>>, %arg8: memref<3xf32, #tpu.memory_space<smem>>, %arg9: memref<1x16x16x128xf32, #tpu.memory_space<vmem>>, %arg10: memref<1x18x16x384xbf16, #tpu.memory_space<vmem>>, %arg11: memref<1x18x16x384xbf16, #tpu.memory_space<vmem>>) attributes {dimension_semantics = [#tpu.dimension_semantics<parallel>], iteration_bounds = array<i64: 2>, scalar_prefetch = 0 : i64, scratch_operands = 2 : i64, tpu.core_type = #tpu.core_type<tc>, window_params = [{transform_indices = @transform_0, window_bounds = array<i64: 1, 16, 16, 3>}, {pipeline_mode = #tpu.pipeline_mode<synchronous>, transform_indices = @transform_1, window_bounds = array<i64: 3, 128>}, {pipeline_mode = #tpu.pipeline_mode<synchronous>, transform_indices = @transform_2, window_bounds = array<i64: 1, 128>}, {pipeline_mode = #tpu.pipeline_mode<synchronous>, transform_indices = @transform_3, window_bounds = array<i64: 2, 3, 384, 128>}, {pipeline_mode = #tpu.pipeline_mode<synchronous>, transform_indices = @transform_4, window_bounds = array<i64: 2, 128>}, {pipeline_mode = #tpu.pipeline_mode<synchronous>, transform_indices = @transform_5, window_bounds = array<i64: 128, 128>}, {pipeline_mode = #tpu.pipeline_mode<synchronous>, transform_indices = @transform_6, window_bounds = array<i64: 1, 128>}, {transform_indices = @transform_7, window_bounds = array<i64: 3>}, {transform_indices = @transform_8, window_bounds = array<i64: 1, 16, 16, 128>}]} {
    %cst = arith.constant 0.000000e+00 : bf16
    %0 = vector.broadcast %cst : bf16 to vector<1x1x16x384xbf16>
    %c0 = arith.constant 0 : index
    %c0_0 = arith.constant 0 : index
    %c0_1 = arith.constant 0 : index
    %c0_2 = arith.constant 0 : index
    %1 = vector.load %arg10[%c0, %c0_0, %c0_1, %c0_2] : memref<1x18x16x384xbf16, #tpu.memory_space<vmem>>, vector<1x1x16x384xbf16>
    tpu.vector_store %arg10[%c0, %c0_0, %c0_1, %c0_2], %0 {strides = array<i32>} : memref<1x18x16x384xbf16, #tpu.memory_space<vmem>>, vector<1x1x16x384xbf16>,
    %c0_3 = arith.constant 0 : index
    %c17 = arith.constant 17 : index
    %c0_4 = arith.constant 0 : index
    %c0_5 = arith.constant 0 : index
    %2 = vector.load %arg10[%c0_3, %c17, %c0_4, %c0_5] : memref<1x18x16x384xbf16, #tpu.memory_space<vmem>>, vector<1x1x16x384xbf16>
    tpu.vector_store %arg10[%c0_3, %c17, %c0_4, %c0_5], %0 {strides = array<i32>} : memref<1x18x16x384xbf16, #tpu.memory_space<vmem>>, vector<1x1x16x384xbf16>,
    %c0_6 = arith.constant 0 : index
    %c0_7 = arith.constant 0 : index
    %c0_8 = arith.constant 0 : index
    %c0_9 = arith.constant 0 : index
    %3 = vector.load %arg11[%c0_6, %c0_7, %c0_8, %c0_9] : memref<1x18x16x384xbf16, #tpu.memory_space<vmem>>, vector<1x1x16x384xbf16>
    tpu.vector_store %arg11[%c0_6, %c0_7, %c0_8, %c0_9], %0 {strides = array<i32>} : memref<1x18x16x384xbf16, #tpu.memory_space<vmem>>, vector<1x1x16x384xbf16>,
    %c0_10 = arith.constant 0 : index
    %c17_11 = arith.constant 17 : index
    %c0_12 = arith.constant 0 : index
    %c0_13 = arith.constant 0 : index
    %4 = vector.load %arg11[%c0_10, %c17_11, %c0_12, %c0_13] : memref<1x18x16x384xbf16, #tpu.memory_space<vmem>>, vector<1x1x16x384xbf16>
    tpu.vector_store %arg11[%c0_10, %c17_11, %c0_12, %c0_13], %0 {strides = array<i32>} : memref<1x18x16x384xbf16, #tpu.memory_space<vmem>>, vector<1x1x16x384xbf16>,
    %5 = tpu.iota {dimensions = array<i32: 2>} : vector<1x16x16x128xi32>
    %6 = vector.shape_cast %5 : vector<1x16x16x128xi32> to vector<256x128xi32>
    %c1_i32 = arith.constant 1 : i32
    %7 = vector.broadcast %c1_i32 : i32 to vector<256x128xi32>
    %8 = arith.cmpi sge, %6, %7 : vector<256x128xi32>
    %c14_i32 = arith.constant 14 : i32
    %9 = vector.broadcast %c14_i32 : i32 to vector<256x128xi32>
    %10 = arith.cmpi sle, %6, %9 : vector<256x128xi32>
    %c0_14 = arith.constant 0 : index
    %c0_15 = arith.constant 0 : index
    %c0_16 = arith.constant 0 : index
    %c0_17 = arith.constant 0 : index
    %11 = vector.load %arg1[%c0_14, %c0_15, %c0_16, %c0_17] : memref<1x16x16x3xf32, #tpu.memory_space<vmem>>, vector<1x16x16x3xf32>
    %12 = vector.shape_cast %11 : vector<1x16x16x3xf32> to vector<256x3xf32>
    %13 = arith.truncf %12 : vector<256x3xf32> to vector<256x3xbf16>
    %c0_18 = arith.constant 0 : index
    %c0_19 = arith.constant 0 : index
    %14 = vector.load %arg2[%c0_18, %c0_19] : memref<3x128xbf16, #tpu.memory_space<vmem>>, vector<3x128xbf16>
    %cst_20 = arith.constant dense<0.000000e+00> : vector<256x128xf32>
    %15 = tpu.matmul %13, %14, %cst_20 {dimension_numbers = #tpu.dot_dimension_numbers<[1], [0], [0], [1], [0, 0, 1, 1], [], []>} : vector<256x3xbf16>, vector<3x128xbf16>, vector<256x128xf32> -> vector<256x128xf32>
    %c0_21 = arith.constant 0 : index
    %c0_22 = arith.constant 0 : index
    %16 = vector.load %arg3[%c0_21, %c0_22] : memref<1x128xf32, #tpu.memory_space<vmem>>, vector<1x128xf32>
    %17 = vector.broadcast %16 : vector<1x128xf32> to vector<256x128xf32>
    %18 = arith.addf %15, %17 : vector<256x128xf32>
    %cst_23 = arith.constant 0.000000e+00 : f32
    %19 = vector.broadcast %cst_23 : f32 to vector<256x128xf32>
    %20 = arith.cmpf ogt, %18, %19 : vector<256x128xf32>
    %c0_24 = arith.constant 0 : index
    %21 = memref.load %arg8[%c0_24] : memref<3xf32, #tpu.memory_space<smem>>
    %22 = vector.broadcast %21 : f32 to vector<256x128xf32>
    %23 = arith.mulf %22, %18 : vector<256x128xf32>
    %24 = arith.select %20, %18, %23 : vector<256x128xi1>, vector<256x128xf32>
    %c1_i32_25 = arith.constant 1 : i32
    %25 = tpu.dynamic_rotate %24 by %c1_i32_25 dim 0 : vector<256x128xf32>, i32 -> vector<256x128xf32>
    %cst_26 = arith.constant 0.000000e+00 : f32
    %26 = vector.broadcast %cst_26 : f32 to vector<256x128xf32>
    %27 = arith.select %8, %25, %26 : vector<256x128xi1>, vector<256x128xf32>
    %c255_i32 = arith.constant 255 : i32
    %28 = tpu.dynamic_rotate %24 by %c255_i32 dim 0 : vector<256x128xf32>, i32 -> vector<256x128xf32>
    %cst_27 = arith.constant 0.000000e+00 : f32
    %29 = vector.broadcast %cst_27 : f32 to vector<256x128xf32>
    %30 = arith.select %10, %28, %29 : vector<256x128xi1>, vector<256x128xf32>
    %31 = arith.truncf %27 : vector<256x128xf32> to vector<256x128xbf16>
    %32 = vector.shape_cast %31 : vector<256x128xbf16> to vector<1x16x16x128xbf16>
    %c0_28 = arith.constant 0 : index
    %c1 = arith.constant 1 : index
    %c0_29 = arith.constant 0 : index
    %c0_30 = arith.constant 0 : index
    %33 = vector.load %arg10[%c0_28, %c1, %c0_29, %c0_30] : memref<1x18x16x384xbf16, #tpu.memory_space<vmem>>, vector<1x16x16x128xbf16>
    tpu.vector_store %arg10[%c0_28, %c1, %c0_29, %c0_30], %32 {strides = array<i32>} : memref<1x18x16x384xbf16, #tpu.memory_space<vmem>>, vector<1x16x16x128xbf16>,
    %34 = arith.truncf %24 : vector<256x128xf32> to vector<256x128xbf16>
    %35 = vector.shape_cast %34 : vector<256x128xbf16> to vector<1x16x16x128xbf16>
    %c0_31 = arith.constant 0 : index
    %c1_32 = arith.constant 1 : index
    %c0_33 = arith.constant 0 : index
    %c128 = arith.constant 128 : index
    %36 = vector.load %arg10[%c0_31, %c1_32, %c0_33, %c128] : memref<1x18x16x384xbf16, #tpu.memory_space<vmem>>, vector<1x16x16x128xbf16>
    tpu.vector_store %arg10[%c0_31, %c1_32, %c0_33, %c128], %35 {strides = array<i32>} : memref<1x18x16x384xbf16, #tpu.memory_space<vmem>>, vector<1x16x16x128xbf16>,
    %37 = arith.truncf %30 : vector<256x128xf32> to vector<256x128xbf16>
    %38 = vector.shape_cast %37 : vector<256x128xbf16> to vector<1x16x16x128xbf16>
    %c0_34 = arith.constant 0 : index
    %c1_35 = arith.constant 1 : index
    %c0_36 = arith.constant 0 : index
    %c256 = arith.constant 256 : index
    %39 = vector.load %arg10[%c0_34, %c1_35, %c0_36, %c256] : memref<1x18x16x384xbf16, #tpu.memory_space<vmem>>, vector<1x16x16x128xbf16>
    tpu.vector_store %arg10[%c0_34, %c1_35, %c0_36, %c256], %38 {strides = array<i32>} : memref<1x18x16x384xbf16, #tpu.memory_space<vmem>>, vector<1x16x16x128xbf16>,
    %c0_37 = arith.constant 0 : index
    %c0_38 = arith.constant 0 : index
    %c0_39 = arith.constant 0 : index
    %c0_40 = arith.constant 0 : index
    %40 = vector.load %arg10[%c0_37, %c0_38, %c0_39, %c0_40] : memref<1x18x16x384xbf16, #tpu.memory_space<vmem>>, vector<1x16x16x384xbf16>
    %41 = vector.shape_cast %40 : vector<1x16x16x384xbf16> to vector<256x384xbf16>
    %c0_41 = arith.constant 0 : index
    %c0_42 = arith.constant 0 : index
    %c0_43 = arith.constant 0 : index
    %c0_44 = arith.constant 0 : index
    %42 = vector.load %arg4[%c0_41, %c0_42, %c0_43, %c0_44] : memref<2x3x384x128xbf16, #tpu.memory_space<vmem>>, vector<1x1x384x128xbf16>
    %43 = vector.shape_cast %42 : vector<1x1x384x128xbf16> to vector<384x128xbf16>
    %cst_45 = arith.constant dense<0.000000e+00> : vector<256x128xf32>
    %44 = tpu.matmul %41, %43, %cst_45 {dimension_numbers = #tpu.dot_dimension_numbers<[1], [0], [0], [1], [0, 0, 1, 1], [], []>} : vector<256x384xbf16>, vector<384x128xbf16>, vector<256x128xf32> -> vector<256x128xf32>
    %c0_46 = arith.constant 0 : index
    %c1_47 = arith.constant 1 : index
    %c0_48 = arith.constant 0 : index
    %c0_49 = arith.constant 0 : index
    %45 = vector.load %arg10[%c0_46, %c1_47, %c0_48, %c0_49] : memref<1x18x16x384xbf16, #tpu.memory_space<vmem>>, vector<1x16x16x384xbf16>
    %46 = vector.shape_cast %45 : vector<1x16x16x384xbf16> to vector<256x384xbf16>
    %c0_50 = arith.constant 0 : index
    %c1_51 = arith.constant 1 : index
    %c0_52 = arith.constant 0 : index
    %c0_53 = arith.constant 0 : index
    %47 = vector.load %arg4[%c0_50, %c1_51, %c0_52, %c0_53] : memref<2x3x384x128xbf16, #tpu.memory_space<vmem>>, vector<1x1x384x128xbf16>
    %48 = vector.shape_cast %47 : vector<1x1x384x128xbf16> to vector<384x128xbf16>
    %cst_54 = arith.constant dense<0.000000e+00> : vector<256x128xf32>
    %49 = tpu.matmul %46, %48, %cst_54 {dimension_numbers = #tpu.dot_dimension_numbers<[1], [0], [0], [1], [0, 0, 1, 1], [], []>} : vector<256x384xbf16>, vector<384x128xbf16>, vector<256x128xf32> -> vector<256x128xf32>
    %50 = arith.addf %44, %49 : vector<256x128xf32>
    %c0_55 = arith.constant 0 : index
    %c2 = arith.constant 2 : index
    %c0_56 = arith.constant 0 : index
    %c0_57 = arith.constant 0 : index
    %51 = vector.load %arg10[%c0_55, %c2, %c0_56, %c0_57] : memref<1x18x16x384xbf16, #tpu.memory_space<vmem>>, vector<1x16x16x384xbf16>
    %52 = vector.shape_cast %51 : vector<1x16x16x384xbf16> to vector<256x384xbf16>
    %c0_58 = arith.constant 0 : index
    %c2_59 = arith.constant 2 : index
    %c0_60 = arith.constant 0 : index
    %c0_61 = arith.constant 0 : index
    %53 = vector.load %arg4[%c0_58, %c2_59, %c0_60, %c0_61] : memref<2x3x384x128xbf16, #tpu.memory_space<vmem>>, vector<1x1x384x128xbf16>
    %54 = vector.shape_cast %53 : vector<1x1x384x128xbf16> to vector<384x128xbf16>
    %cst_62 = arith.constant dense<0.000000e+00> : vector<256x128xf32>
    %55 = tpu.matmul %52, %54, %cst_62 {dimension_numbers = #tpu.dot_dimension_numbers<[1], [0], [0], [1], [0, 0, 1, 1], [], []>} : vector<256x384xbf16>, vector<384x128xbf16>, vector<256x128xf32> -> vector<256x128xf32>
    %56 = arith.addf %50, %55 : vector<256x128xf32>
    %c0_63 = arith.constant 0 : index
    %c0_64 = arith.constant 0 : index
    %57 = vector.load %arg5[%c0_63, %c0_64] : memref<2x128xf32, #tpu.memory_space<vmem>>, vector<1x128xf32>
    %58 = vector.broadcast %57 : vector<1x128xf32> to vector<256x128xf32>
    %59 = arith.addf %56, %58 : vector<256x128xf32>
    %c1_65 = arith.constant 1 : index
    %60 = memref.load %arg8[%c1_65] : memref<3xf32, #tpu.memory_space<smem>>
    %cst_66 = arith.constant 0.000000e+00 : f32
    %61 = vector.broadcast %cst_66 : f32 to vector<256x128xf32>
    %62 = arith.cmpf ogt, %59, %61 : vector<256x128xf32>
    %63 = vector.broadcast %60 : f32 to vector<256x128xf32>
    %64 = arith.mulf %63, %59 : vector<256x128xf32>
    %65 = arith.select %62, %59, %64 : vector<256x128xi1>, vector<256x128xf32>
    %c1_i32_67 = arith.constant 1 : i32
    %66 = tpu.dynamic_rotate %65 by %c1_i32_67 dim 0 : vector<256x128xf32>, i32 -> vector<256x128xf32>
    %cst_68 = arith.constant 0.000000e+00 : f32
    %67 = vector.broadcast %cst_68 : f32 to vector<256x128xf32>
    %68 = arith.select %8, %66, %67 : vector<256x128xi1>, vector<256x128xf32>
    %c255_i32_69 = arith.constant 255 : i32
    %69 = tpu.dynamic_rotate %65 by %c255_i32_69 dim 0 : vector<256x128xf32>, i32 -> vector<256x128xf32>
    %cst_70 = arith.constant 0.000000e+00 : f32
    %70 = vector.broadcast %cst_70 : f32 to vector<256x128xf32>
    %71 = arith.select %10, %69, %70 : vector<256x128xi1>, vector<256x128xf32>
    %72 = arith.truncf %68 : vector<256x128xf32> to vector<256x128xbf16>
    %73 = vector.shape_cast %72 : vector<256x128xbf16> to vector<1x16x16x128xbf16>
    %c0_71 = arith.constant 0 : index
    %c1_72 = arith.constant 1 : index
    %c0_73 = arith.constant 0 : index
    %c0_74 = arith.constant 0 : index
    %74 = vector.load %arg11[%c0_71, %c1_72, %c0_73, %c0_74] : memref<1x18x16x384xbf16, #tpu.memory_space<vmem>>, vector<1x16x16x128xbf16>
    tpu.vector_store %arg11[%c0_71, %c1_72, %c0_73, %c0_74], %73 {strides = array<i32>} : memref<1x18x16x384xbf16, #tpu.memory_space<vmem>>, vector<1x16x16x128xbf16>,
    %75 = arith.truncf %65 : vector<256x128xf32> to vector<256x128xbf16>
    %76 = vector.shape_cast %75 : vector<256x128xbf16> to vector<1x16x16x128xbf16>
    %c0_75 = arith.constant 0 : index
    %c1_76 = arith.constant 1 : index
    %c0_77 = arith.constant 0 : index
    %c128_78 = arith.constant 128 : index
    %77 = vector.load %arg11[%c0_75, %c1_76, %c0_77, %c128_78] : memref<1x18x16x384xbf16, #tpu.memory_space<vmem>>, vector<1x16x16x128xbf16>
    tpu.vector_store %arg11[%c0_75, %c1_76, %c0_77, %c128_78], %76 {strides = array<i32>} : memref<1x18x16x384xbf16, #tpu.memory_space<vmem>>, vector<1x16x16x128xbf16>,
    %78 = arith.truncf %71 : vector<256x128xf32> to vector<256x128xbf16>
    %79 = vector.shape_cast %78 : vector<256x128xbf16> to vector<1x16x16x128xbf16>
    %c0_79 = arith.constant 0 : index
    %c1_80 = arith.constant 1 : index
    %c0_81 = arith.constant 0 : index
    %c256_82 = arith.constant 256 : index
    %80 = vector.load %arg11[%c0_79, %c1_80, %c0_81, %c256_82] : memref<1x18x16x384xbf16, #tpu.memory_space<vmem>>, vector<1x16x16x128xbf16>
    tpu.vector_store %arg11[%c0_79, %c1_80, %c0_81, %c256_82], %79 {strides = array<i32>} : memref<1x18x16x384xbf16, #tpu.memory_space<vmem>>, vector<1x16x16x128xbf16>,
    %c0_83 = arith.constant 0 : index
    %c0_84 = arith.constant 0 : index
    %c0_85 = arith.constant 0 : index
    %c0_86 = arith.constant 0 : index
    %81 = vector.load %arg11[%c0_83, %c0_84, %c0_85, %c0_86] : memref<1x18x16x384xbf16, #tpu.memory_space<vmem>>, vector<1x16x16x384xbf16>
    %82 = vector.shape_cast %81 : vector<1x16x16x384xbf16> to vector<256x384xbf16>
    %c1_87 = arith.constant 1 : index
    %c0_88 = arith.constant 0 : index
    %c0_89 = arith.constant 0 : index
    %c0_90 = arith.constant 0 : index
    %83 = vector.load %arg4[%c1_87, %c0_88, %c0_89, %c0_90] : memref<2x3x384x128xbf16, #tpu.memory_space<vmem>>, vector<1x1x384x128xbf16>
    %84 = vector.shape_cast %83 : vector<1x1x384x128xbf16> to vector<384x128xbf16>
    %cst_91 = arith.constant dense<0.000000e+00> : vector<256x128xf32>
    %85 = tpu.matmul %82, %84, %cst_91 {dimension_numbers = #tpu.dot_dimension_numbers<[1], [0], [0], [1], [0, 0, 1, 1], [], []>} : vector<256x384xbf16>, vector<384x128xbf16>, vector<256x128xf32> -> vector<256x128xf32>
    %c0_92 = arith.constant 0 : index
    %c1_93 = arith.constant 1 : index
    %c0_94 = arith.constant 0 : index
    %c0_95 = arith.constant 0 : index
    %86 = vector.load %arg11[%c0_92, %c1_93, %c0_94, %c0_95] : memref<1x18x16x384xbf16, #tpu.memory_space<vmem>>, vector<1x16x16x384xbf16>
    %87 = vector.shape_cast %86 : vector<1x16x16x384xbf16> to vector<256x384xbf16>
    %c1_96 = arith.constant 1 : index
    %c1_97 = arith.constant 1 : index
    %c0_98 = arith.constant 0 : index
    %c0_99 = arith.constant 0 : index
    %88 = vector.load %arg4[%c1_96, %c1_97, %c0_98, %c0_99] : memref<2x3x384x128xbf16, #tpu.memory_space<vmem>>, vector<1x1x384x128xbf16>
    %89 = vector.shape_cast %88 : vector<1x1x384x128xbf16> to vector<384x128xbf16>
    %cst_100 = arith.constant dense<0.000000e+00> : vector<256x128xf32>
    %90 = tpu.matmul %87, %89, %cst_100 {dimension_numbers = #tpu.dot_dimension_numbers<[1], [0], [0], [1], [0, 0, 1, 1], [], []>} : vector<256x384xbf16>, vector<384x128xbf16>, vector<256x128xf32> -> vector<256x128xf32>
    %91 = arith.addf %85, %90 : vector<256x128xf32>
    %c0_101 = arith.constant 0 : index
    %c2_102 = arith.constant 2 : index
    %c0_103 = arith.constant 0 : index
    %c0_104 = arith.constant 0 : index
    %92 = vector.load %arg11[%c0_101, %c2_102, %c0_103, %c0_104] : memref<1x18x16x384xbf16, #tpu.memory_space<vmem>>, vector<1x16x16x384xbf16>
    %93 = vector.shape_cast %92 : vector<1x16x16x384xbf16> to vector<256x384xbf16>
    %c1_105 = arith.constant 1 : index
    %c2_106 = arith.constant 2 : index
    %c0_107 = arith.constant 0 : index
    %c0_108 = arith.constant 0 : index
    %94 = vector.load %arg4[%c1_105, %c2_106, %c0_107, %c0_108] : memref<2x3x384x128xbf16, #tpu.memory_space<vmem>>, vector<1x1x384x128xbf16>
    %95 = vector.shape_cast %94 : vector<1x1x384x128xbf16> to vector<384x128xbf16>
    %cst_109 = arith.constant dense<0.000000e+00> : vector<256x128xf32>
    %96 = tpu.matmul %93, %95, %cst_109 {dimension_numbers = #tpu.dot_dimension_numbers<[1], [0], [0], [1], [0, 0, 1, 1], [], []>} : vector<256x384xbf16>, vector<384x128xbf16>, vector<256x128xf32> -> vector<256x128xf32>
    %97 = arith.addf %91, %96 : vector<256x128xf32>
    %c1_110 = arith.constant 1 : index
    %c0_111 = arith.constant 0 : index
    %98 = vector.load %arg5[%c1_110, %c0_111] : memref<2x128xf32, #tpu.memory_space<vmem>>, vector<1x128xf32>
    %99 = vector.broadcast %98 : vector<1x128xf32> to vector<256x128xf32>
    %100 = arith.addf %97, %99 : vector<256x128xf32>
    %c2_112 = arith.constant 2 : index
    %101 = memref.load %arg8[%c2_112] : memref<3xf32, #tpu.memory_space<smem>>
    %cst_113 = arith.constant 0.000000e+00 : f32
    %102 = vector.broadcast %cst_113 : f32 to vector<256x128xf32>
    %103 = arith.cmpf ogt, %100, %102 : vector<256x128xf32>
    %104 = vector.broadcast %101 : f32 to vector<256x128xf32>
    %105 = arith.mulf %104, %100 : vector<256x128xf32>
    %106 = arith.select %103, %100, %105 : vector<256x128xi1>, vector<256x128xf32>
    %107 = arith.truncf %106 : vector<256x128xf32> to vector<256x128xbf16>
    %c0_114 = arith.constant 0 : index
    %c0_115 = arith.constant 0 : index
    %108 = vector.load %arg6[%c0_114, %c0_115] : memref<128x128xbf16, #tpu.memory_space<vmem>>, vector<128x128xbf16>
    %cst_116 = arith.constant dense<0.000000e+00> : vector<256x128xf32>
    %109 = tpu.matmul %107, %108, %cst_116 {dimension_numbers = #tpu.dot_dimension_numbers<[1], [0], [0], [1], [0, 0, 1, 1], [], []>} : vector<256x128xbf16>, vector<128x128xbf16>, vector<256x128xf32> -> vector<256x128xf32>
    %c0_117 = arith.constant 0 : index
    %c0_118 = arith.constant 0 : index
    %110 = vector.load %arg7[%c0_117, %c0_118] : memref<1x128xf32, #tpu.memory_space<vmem>>, vector<1x128xf32>
    %111 = vector.broadcast %110 : vector<1x128xf32> to vector<256x128xf32>
    %112 = arith.addf %109, %111 : vector<256x128xf32>
    %113 = math.tanh %112 : vector<256x128xf32>
    %114 = vector.shape_cast %113 : vector<256x128xf32> to vector<1x16x16x128xf32>
    %c0_119 = arith.constant 0 : index
    %c0_120 = arith.constant 0 : index
    %c0_121 = arith.constant 0 : index
    %c0_122 = arith.constant 0 : index
    %115 = vector.load %arg9[%c0_119, %c0_120, %c0_121, %c0_122] : memref<1x16x16x128xf32, #tpu.memory_space<vmem>>, vector<1x16x16x128xf32>
    tpu.vector_store %arg9[%c0_119, %c0_120, %c0_121, %c0_122], %114 {strides = array<i32>} : memref<1x16x16x128xf32, #tpu.memory_space<vmem>>, vector<1x16x16x128xf32>,
    return
  }
  func.func @transform_0(%arg0: i32) -> (i32, i32, i32, i32) {
    %c0_i32 = arith.constant 0 : i32
    %c0_i32_0 = arith.constant 0 : i32
    %c0_i32_1 = arith.constant 0 : i32
    %c0_i32_2 = arith.constant 0 : i32
    return %arg0, %c0_i32, %c0_i32_0, %c0_i32_1 : i32, i32, i32, i32
  }
  func.func @transform_1(%arg0: i32) -> (i32, i32) {
    %c0_i32 = arith.constant 0 : i32
    %c0_i32_0 = arith.constant 0 : i32
    %c0_i32_1 = arith.constant 0 : i32
    return %c0_i32, %c0_i32_0 : i32, i32
  }
  func.func @transform_2(%arg0: i32) -> (i32, i32) {
    %c0_i32 = arith.constant 0 : i32
    %c0_i32_0 = arith.constant 0 : i32
    %c0_i32_1 = arith.constant 0 : i32
    return %c0_i32, %c0_i32_0 : i32, i32
  }
  func.func @transform_3(%arg0: i32) -> (i32, i32, i32, i32) {
    %c0_i32 = arith.constant 0 : i32
    %c0_i32_0 = arith.constant 0 : i32
    %c0_i32_1 = arith.constant 0 : i32
    %c0_i32_2 = arith.constant 0 : i32
    %c0_i32_3 = arith.constant 0 : i32
    return %c0_i32, %c0_i32_0, %c0_i32_1, %c0_i32_2 : i32, i32, i32, i32
  }
  func.func @transform_4(%arg0: i32) -> (i32, i32) {
    %c0_i32 = arith.constant 0 : i32
    %c0_i32_0 = arith.constant 0 : i32
    %c0_i32_1 = arith.constant 0 : i32
    return %c0_i32, %c0_i32_0 : i32, i32
  }
  func.func @transform_5(%arg0: i32) -> (i32, i32) {
    %c0_i32 = arith.constant 0 : i32
    %c0_i32_0 = arith.constant 0 : i32
    %c0_i32_1 = arith.constant 0 : i32
    return %c0_i32, %c0_i32_0 : i32, i32
  }
  func.func @transform_6(%arg0: i32) -> (i32, i32) {
    %c0_i32 = arith.constant 0 : i32
    %c0_i32_0 = arith.constant 0 : i32
    %c0_i32_1 = arith.constant 0 : i32
    return %c0_i32, %c0_i32_0 : i32, i32
  }
  func.func @transform_7(%arg0: i32) -> i32 {
    %c0_i32 = arith.constant 0 : i32
    %c0_i32_0 = arith.constant 0 : i32
    return %c0_i32 : i32
  }
  func.func @transform_8(%arg0: i32) -> (i32, i32, i32, i32) {
    %c0_i32 = arith.constant 0 : i32
    %c0_i32_0 = arith.constant 0 : i32
    %c0_i32_1 = arith.constant 0 : i32
    %c0_i32_2 = arith.constant 0 : i32
    return %arg0, %c0_i32, %c0_i32_0, %c0_i32_1 : i32, i32, i32, i32
  }
}

</mosaic_0001>

<bundles_post_ra>
// kernel: testnet5_forward.1
= control target key start
LH: loop header
LB: loop body
LE: loop exit
PB: predicated region body
PF: predicated region fallthrough
CT: control target
= control target key end

     0   :  { %13 = vsyncpa [#allocation5], 0  ;;  %s11638_s0 = inlined_call_operand.vmem [shape: f32[2,16,16,3], index: 0, kind: input, shape index: {}]   ;;  %s11639_s1 = inlined_call_operand.hbm [shape: bf16[3,128], index: 1, kind: input, shape index: {}]   ;;  %s11640_s2 = inlined_call_operand.hbm [shape: f32[1,128], index: 2, kind: input, shape index: {}]   ;;  %s11641_s3 = inlined_call_operand.hbm [shape: bf16[2,3,384,128], index: 3, kind: input, shape index: {}]   ;;  %s11642_s4 = inlined_call_operand.hbm [shape: f32[2,128], index: 4, kind: input, shape index: {}]   ;;  %s11643_s5 = inlined_call_operand.hbm [shape: bf16[128,128], index: 5, kind: input, shape index: {}]   ;;  %s11644_s6 = inlined_call_operand.hbm [shape: f32[1,128], index: 6, kind: input, shape index: {}]   ;;  %s11645_s7 = inlined_call_operand.hbm [shape: f32[3], index: 7, kind: input, shape index: {}]   ;;  %s11646_s8 = inlined_call_operand.vmem [shape: f32[2,16,16,128], index: 8, kind: output, shape index: {}]  }
   0x1   :  { %14 = vsyncpa [#allocation8], 0 }
   0x2   :  { %15 = vsyncpa [#allocation11], 0 }
   0x3   :  { %16 = vsyncpa [#allocation14], 0 }
   0x4   :  { %17 = vsyncpa [#allocation6], 0  ;;  %s9556_s27 = smov 0  }
   0x5 LB: > { %s251_s30 = sshll.u32 %s11640_s2, 4  ;;  %s9565_s9 = sadd.s32 4294967295, %s9498_s27   ;;  %s9498_s27 = sphi %s9556_s27, %s23_s27   ;;  %s252_s30 = int_to_ptr.hbm [resolvable:$true] %s251_s30 }
   0x6   : > { %p6881_p0 = scmp.ge.s32.totalorder %s9498_s27, 1  ;;  %p227_p1 = scmp.lt.s32.totalorder %s9498_s27, 3 }
   0x7   : > { %p9174_p2 = scmp.eq.s32.totalorder %s9565_s9, 0  ;;  %s9500_s11 = smov [#allocation7]  }
   0x8   : > { %p9570_p3 = pnand %p6881_p0, %p227_p1  ;;  %s253_s12 = sshll.u32 %s9500_s11, 4  ;;  %s254_s12 = int_to_ptr.vmem [resolvable:$true] %s253_s12 }
   0x9   : > { %s277_s15 = sshll.u32 %s11642_s4, 4  ;;  %s239_s18 = sshll.u32 %s11639_s1, 4  ;;  %s278_s15 = int_to_ptr.hbm [resolvable:$true] %s277_s15  ;;  %s240_s18 = int_to_ptr.hbm [resolvable:$true] %s239_s18 }
   0xa   : > { %p9152_p4 = pneg %p9570_p3  ;;  %s9501_s20 = smov [#allocation10]  }
   0xb   : > { %s279_s21 = sshll.u32 %s9501_s20, 4  ;;  %s9502_s22 = smov [#allocation4]   ;;  %s280_s21 = int_to_ptr.vmem [resolvable:$true] %s279_s21 }
   0xc   : > { %p9584_p5 = pnand %p9174_p2, %p9152_p4  ;;  %s241_s23 = sshll.u32 %s9502_s22, 4  ;;  %s242_s23 = int_to_ptr.vmem [resolvable:$true] %s241_s23 }
   0xd   : > { %s262_s26 = sshll.u32 %s11641_s3, 4  ;;  %s9503_s28 = smov [#allocation9]   ;;  %s263_s26 = int_to_ptr.hbm [resolvable:$true] %s262_s26 }
   0xe   : > { %9158 = dma.hbm_to_vmem [thread:$0]  (!%p9584_p5), %s252_s30, 16, %s254_s12, [#allocation8]  }
   0xf   : > { %9164 = dma.hbm_to_vmem [thread:$0]  (!%p9584_p5), %s278_s15, 32, %s280_s21, [#allocation11]  }
  0x10   : > { %9155 = dma.hbm_to_vmem [thread:$0]  (!%p9584_p5), %s240_s18, 32, %s242_s23, [#allocation5]  }
  0x11   : > { %s264_s29 = sshll.u32 %s9503_s28, 4  ;;  %s288_s30 = sshll.u32 %s11643_s5, 4  ;;  %s265_s29 = int_to_ptr.vmem [resolvable:$true] %s264_s29  ;;  %s289_s30 = int_to_ptr.hbm [resolvable:$true] %s288_s30 }
  0x12   : > { %s9504_s12 = smov 64   ;;  %s9505_s14 = smov 4  }
  0x13   : > { %9161 = dma.hbm_to_vmem [thread:$0]  (!%p9584_p5), %s263_s26, 18432, %s265_s29, [#allocation8], %s9504_s12, %s9504_s12, %s9505_s14  }
  0x14   : > { %s9506_s15 = smov [#allocation12]   ;;  %s303_s18 = sshll.u32 %s11644_s6, 4  ;;  %s304_s18 = int_to_ptr.hbm [resolvable:$true] %s303_s18 }
  0x15   : > { %s290_s16 = sshll.u32 %s9506_s15, 4  ;;  %s315_s23 = sshll.u32 %s11645_s7, 4  ;;  %s291_s16 = int_to_ptr.vmem [resolvable:$true] %s290_s16  ;;  %s316_s23 = int_to_ptr.hbm [resolvable:$true] %s315_s23 }
  0x16   : > { %9167 = dma.hbm_to_vmem [thread:$0]  (!%p9584_p5), %s289_s30, 1024, %s291_s16, [#allocation11], %s9504_s12, %s9504_s12, %s9505_s14  }
  0x17   : > { %s9507_s24 = smov [#allocation13]   ;;  %s9508_s26 = smov [#allocation15]  }
  0x18   : > { %s305_s25 = sshll.u32 %s9507_s24, 4  ;;  %336 = sbr.rel (%p9570_p3) target bundleno = 2407 (0x967), region = 52  ;;  %s306_s25 = int_to_ptr.vmem [resolvable:$true] %s305_s25 }
  0x19   : > { %9170 = dma.hbm_to_vmem [thread:$0]  (!%p9584_p5), %s304_s18, 16, %s306_s25, [#allocation14]  }
  0x1a   : > { %9173 = dma.hbm_to_smem (!%p9584_p5), %s316_s23, 16, %s9508_s26, [#allocation6]  }
  0x1d   : > { %9477 = dma.done.wait (%p9174_p2), [#allocation5], 32  }
  0x1e   : > { %9479 = vsyncadd (%p9174_p2), [#allocation5], 4294967264 }
  0x1f   : > { %9481 = dma.done.wait (%p9174_p2), [#allocation8], 18448  }
  0x20   : > { %9483 = vsyncadd (%p9174_p2), [#allocation8], 4294948848 }
  0x21   : > { %9485 = dma.done.wait (%p9174_p2), [#allocation11], 1056  }
  0x22   : > { %9487 = vsyncadd (%p9174_p2), [#allocation11], 4294966240 }
  0x23   : > { %9489 = dma.done.wait (%p9174_p2), [#allocation14], 16  }
  0x24   : > { %9491 = vsyncadd (%p9174_p2), [#allocation14], 4294967280 }
  0x25   : > { %9493 = dma.done.wait (%p9174_p2), [#allocation6], 16  }
  0x26   : > { %9495 = vsyncadd (%p9174_p2), [#allocation6], 4294967280 }
  0x27   : > { %373 = sfence }
  0x28   : > { %v486_v0 = vld [vmem:[#allocation4] sm:$0x3]  ;;  %vm540_vm0 = vcmask 1040384   ;;  %vm541_vm1 = vcmask 1041408   ;;  %p402_p6 = scmp.lt.s32.totalorder %s9565_s9, 1  ;;  %v9509_v1 = vmov 65535   ;;  %v431_v54 = vlaneseq }
  0x29   : > { %v542_v2 = vsel %vm540_vm0, 4294967295, %v9509_v1  ;;  %vm491_vm2 = vcmask 23552   ;;  %v8819_v23 = vld [vmem:[#allocation9 + $0x138] sm:$0xff]  ;;  %v8818_v24 = vld [vmem:[#allocation9 + $0x130] sm:$0xff]  ;;  %v8817_v28 = vld [vmem:[#allocation9 + $0x128] sm:$0xff]  ;;  %s668_s11 = sld [smem:[#allocation15]] }
  0x2a   : > { %v543_v3 = vsel %vm541_vm1, %v542_v2, 0  ;;  %s11812_s9 = smov (!%p402_p6, %s9565_s9), 1  ;;  %1835 = vmatpush.bf16.msra.mxu2 %v8819_v23  ;;  %v8816_v29 = vld [vmem:[#allocation9 + $0x120] sm:$0xff]  ;;  %v8827_v30 = vld [vmem:[#allocation9 + $0x178] sm:$0xff]  ;;  %v8826_v32 = vld [vmem:[#allocation9 + $0x170] sm:$0xff]  ;;  %v9685_v57 = vshrl.u32 %v431_v54, 7 }
  0x2b   : > { %v545_v4 = vand.u32 %v543_v3, %v486_v0  ;;  %s8682_s10 = sshll.u32 %s11812_s9, 8  ;;  %1924 = vmatpush.bf16.msra.mxu3 %v8827_v30  ;;  %v8815_v31 = vld [vmem:[#allocation9 + $0x118] sm:$0xff]  ;;  %v8814_v35 = vld [vmem:[#allocation9 + $0x110] sm:$0xff]  ;;  %v8825_v36 = vld [vmem:[#allocation9 + $0x168] sm:$0xff]  ;;  %s7782_s13 = sld [smem:[#allocation15 + $0x1]] }
  0x2c   : > { %s9646_s29 = scalar_lea.vmem %s11638_s0, %s8682_s10  ;;  %v8813_v38 = vld [vmem:[#allocation9 + $0x108] sm:$0xff]  ;;  %v8824_v39 = vld [vmem:[#allocation9 + $0x160] sm:$0xff]  ;;  %v8823_v41 = vld [vmem:[#allocation9 + $0x158] sm:$0xff]  ;;  %11657 = vst [vmem:[#allocation21_spill] sm:$0xff] %v9685_v57  ;;  %vm766_vm5 = vcmp.lt.s32.totalorder %v9685_v57, 1  ;;  %vm863_vm6 = vcmp.lt.s32.totalorder %v9685_v57, 7  ;;  %s11521_s15 = scalar_lea.vmem %s11646_s8, %s8682_s10 }
  0x2d   : > { %554 = vmatpush.bf16.msra.mxu0 %v545_v4  ;;  %v438_v5 = vld [vmem:[%s9646_s29] sm:$0xff]  ;;  %v439_v6 = vld [vmem:[%s9646_s29 + $0x8] sm:$0xff]  ;;  %v440_v8 = vld [vmem:[%s9646_s29 + $0x10] sm:$0xff]  ;;  %vm434_vm8 = vcmp.ge.s32.totalorder %v9685_v57, 1  ;;  %s8647_s30 = sld [smem:[#allocation15 + $0x2]] }
  0x2e   : > { %v470_v7 = vpack.c.bf16 %v439_v6, %v438_v5  ;;  %v441_v9 = vld [vmem:[%s9646_s29 + $0x18] sm:$0xff]  ;;  %v442_v11 = vld [vmem:[%s9646_s29 + $0x20] sm:$0xff]  ;;  %v443_v12 = vld [vmem:[%s9646_s29 + $0x28] sm:$0xff]  ;;  %1836 = vmatpush.bf16.msra.mxu2 %v8818_v24 }
  0x2f   : > { %v471_v10 = vpack.c.bf16 %v441_v9, %v440_v8  ;;  %v472_v13 = vpack.c.bf16 %v443_v12, %v442_v11  ;;  %v444_v14 = vld [vmem:[%s9646_s29 + $0x30] sm:$0xff]  ;;  %v445_v15 = vld [vmem:[%s9646_s29 + $0x38] sm:$0xff]  ;;  %v446_v17 = vld [vmem:[%s9646_s29 + $0x40] sm:$0xff]  ;;  %1925 = vmatpush.bf16.msra.mxu3 %v8826_v32  ;;  %v9676_v49 = vstv %s668_s11  ;;  %v9705_v11 = vadd.s32 8, %v9685_v57 }
  0x30   : > { %6902 = vmatmul.msk.bf16.vlgmr.msra.gmra.mxu0 %vm491_vm2, %v470_v7  ;;  %v473_v16 = vpack.c.bf16 %v445_v15, %v444_v14  ;;  %v447_v18 = vld [vmem:[%s9646_s29 + $0x48] sm:$0xff]  ;;  %v448_v20 = vld [vmem:[%s9646_s29 + $0x50] sm:$0xff]  ;;  %v449_v21 = vld [vmem:[%s9646_s29 + $0x58] sm:$0xff] }
  0x31   : > { %v474_v19 = vpack.c.bf16 %v447_v18, %v446_v17  ;;  %v475_v22 = vpack.c.bf16 %v449_v21, %v448_v20  ;;  %v450_v25 = vld [vmem:[%s9646_s29 + $0x60] sm:$0xff]  ;;  %v451_v26 = vld [vmem:[%s9646_s29 + $0x68] sm:$0xff]  ;;  %v452_v33 = vld [vmem:[%s9646_s29 + $0x70] sm:$0xff]  ;;  %11658 = vst [vmem:[#allocation22_spill] sm:$0xff] %v9705_v11  ;;  %vm437_vm9 = vcmp.le.s32.totalorder %v9705_v11, 14 }
  0x32   : > { %v476_v27 = vpack.c.bf16 %v451_v26, %v450_v25  ;;  %1837 = vmatpush.bf16.msra.mxu2 %v8817_v28  ;;  %v453_v34 = vld [vmem:[%s9646_s29 + $0x78] sm:$0xff]  ;;  %v8812_v40 = vld [vmem:[#allocation9 + $0x100] sm:$0xff]  ;;  %v9674_v45 = vld [vmem:[#allocation7] ss:$0 sm:$0xff] }
  0x33   : > { %v477_v37 = vpack.c.bf16 %v453_v34, %v452_v33  ;;  %1926 = vmatpush.bf16.msra.mxu3 %v8825_v36  ;;  %v8822_v42 = vld [vmem:[#allocation9 + $0x150] sm:$0xff]  ;;  %v454_v43 = vld [vmem:[%s9646_s29 + $0x80] sm:$0xff]  ;;  %v455_v44 = vld [vmem:[%s9646_s29 + $0x88] sm:$0xff] }
  0x34   : > { %v8821_v46 = vld [vmem:[#allocation9 + $0x148] sm:$0xff]  ;;  %v478_v47 = vpack.c.bf16 %v455_v44, %v454_v43  ;;  %v8820_v51 = vld [vmem:[#allocation9 + $0x140] sm:$0xff]  ;;  %v457_v61 = vld [vmem:[%s9646_s29 + $0x98] sm:$0xff] }
  0x35   : > { %v456_v60 = vld [vmem:[%s9646_s29 + $0x90] sm:$0xff]  ;;  %v459_v30 = vld [vmem:[%s9646_s29 + $0xa8] sm:$0xff] }
  0x36   : > { %1838 = vmatpush.bf16.msra.mxu2 %v8816_v29  ;;  %v479_v4 = vpack.c.bf16 %v457_v61, %v456_v60  ;;  %v458_v29 = vld [vmem:[%s9646_s29 + $0xa0] sm:$0xff] }
  0x37   : > { %1927 = vmatpush.bf16.msra.mxu3 %v8824_v39 }
  0x3a   : > { %1839 = vmatpush.bf16.msra.mxu2 %v8815_v31 }
  0x3b   : > { %1928 = vmatpush.bf16.msra.mxu3 %v8823_v41 }
  0x3e   : > { %1840 = vmatpush.bf16.msra.mxu2 %v8814_v35  ;;  %v480_v35 = vpack.c.bf16 %v459_v30, %v458_v29 }
  0x3f   : > { %1929 = vmatpush.bf16.msra.mxu3 %v8822_v42 }
  0x40   : > { %6903 = vmatmul.msk.bf16.gmra.mxu0 %vm491_vm2, %v471_v10 }
  0x42   : > { %1841 = vmatpush.bf16.msra.mxu2 %v8813_v38 }
  0x43   : > { %1930 = vmatpush.bf16.msra.mxu3 %v8821_v46 }
  0x46   : > { %1842 = vmatpush.bf16.msra.mxu2 %v8812_v40 }
  0x47   : > { %1931 = vmatpush.bf16.msra.mxu3 %v8820_v51 }
  0x50   : > { %6904 = vmatmul.msk.bf16.gmra.mxu0 %vm491_vm2, %v472_v13 }
  0x60   : > { %6905 = vmatmul.msk.bf16.gmra.mxu0 %vm491_vm2, %v473_v16 }
  0x70   : > { %6906 = vmatmul.msk.bf16.gmra.mxu0 %vm491_vm2, %v474_v19 }
  0x80   : > { %6907 = vmatmul.msk.bf16.gmra.mxu0 %vm491_vm2, %v475_v22 }
  0x90   : > { %6908 = vmatmul.msk.bf16.gmra.mxu0 %vm491_vm2, %v476_v27 }
  0xa0   : > { %6909 = vmatmul.msk.bf16.gmra.mxu0 %vm491_vm2, %v477_v37 }
  0xad   : > { %v556_v48 = vpop.f32.mrf.mxu0 }
  0xae   : > { %v557_v50 = vadd.f32 %v9674_v45, %v556_v48 }
  0xb0   : > { %vm636_vm3 = vcmp.gt.f32.partialorder %v557_v50, 0.0  ;;  %v670_v52 = vmul.f32 %v9676_v49, %v557_v50  ;;  %6910 = vmatmul.msk.bf16.gmra.mxu0 %vm491_vm2, %v478_v47 }
  0xb2   : > { %v9681_v53 = vsel %vm636_vm3, %v557_v50, %v670_v52 }
  0xb3   : > { %v993_v55 = vpack.c.bf16 %v9681_v53, %v9681_v53  ;;  %v734_v62 = vrot.slane %v9681_v53, 7  ;;  %v831_v0 = vrot.slane %v9681_v53, 1 }
  0xb5   : > { %1025 = vst [vmem:[#allocation2 + $0x1c] sm:$0xf] %v993_v55  ;;  %v558_v56 = vpop.f32.mrf.mxu0 }
  0xb6   : > { %v559_v58 = vadd.f32 %v9674_v45, %v558_v56 }
  0xb8   : > { %vm637_vm4 = vcmp.gt.f32.partialorder %v559_v58, 0.0  ;;  %v671_v59 = vmul.f32 %v9676_v49, %v559_v58 }
  0xba   : > { %v703_v63 = vsel %vm637_vm4, %v559_v58, %v671_v59 }
  0xbb   : > { %v735_v1 = vrot.slane %v703_v63, 7  ;;  %v832_v2 = vrot.slane %v703_v63, 1  ;;  %v994_v3 = vpack.c.bf16 %v703_v63, %v703_v63 }
  0xbc   : > { %v8756_v17 = vld [vmem:[#allocation2 + $0x1c] sm:$0xf] }
  0xbd   : > { %v797_v5 = vsel %vm766_vm5, %v734_v62, %v735_v1  ;;  %v894_v6 = vsel %vm863_vm6, %v831_v0, %v832_v2  ;;  %1026 = vst [vmem:[#allocation2 + $0x28] sm:$0xf] %v994_v3  ;;  %v561_v7 = vpop.f32.mrf.mxu0 }
  0xbe   : > { %v929_v8 = vpack.c.bf16 %v797_v5, %v797_v5  ;;  %v1057_v9 = vpack.c.bf16 %v894_v6, %v894_v6  ;;  %v562_v10 = vadd.f32 %v9674_v45, %v561_v7  ;;  %v461_v5 = vld [vmem:[%s9646_s29 + $0xb8] sm:$0xff] }
  0xc0   : > { %962 = vst [vmem:[#allocation2 + $0x24] sm:$0xf] %v929_v8  ;;  %vm638_vm7 = vcmp.gt.f32.partialorder %v562_v10, 0.0  ;;  %v672_v12 = vmul.f32 %v9676_v49, %v562_v10  ;;  %6911 = vmatmul.msk.bf16.gmra.mxu0 %vm491_vm2, %v479_v4  ;;  %v460_v4 = vld [vmem:[%s9646_s29 + $0xb0] sm:$0xff] }
  0xc1   : > { %1089 = vst [vmem:[#allocation2 + $0x20] sm:$0xf] %v1057_v9 }
  0xc2   : > { %v704_v13 = vsel %vm638_vm7, %v562_v10, %v672_v12  ;;  %v481_v10 = vpack.c.bf16 %v461_v5, %v460_v4 }
  0xc3   : > { %v736_v14 = vrot.slane %v704_v13, 7  ;;  %v833_v15 = vrot.slane %v704_v13, 1  ;;  %v995_v16 = vpack.c.bf16 %v704_v13, %v704_v13 }
  0xc4   : > { %v6922_v18 = vld [vmem:[#allocation2 + $0x24] sm:$0xf0] }
  0xc5   : > { %v796_v19 = vsel %vm766_vm5, %v735_v1, %v736_v14  ;;  %v893_v20 = vsel %vm863_vm6, %v832_v2, %v833_v15  ;;  %1027 = vst [vmem:[#allocation2 + $0x34] sm:$0xf] %v995_v16  ;;  %v563_v21 = vpop.f32.mrf.mxu0  ;;  %v6925_v22 = vor.u32 %v8756_v17, %v6922_v18 }
  0xc6   : > { %v801_v23 = vsel %vm434_vm8, %v796_v19, 0.0  ;;  %v897_v24 = vsel %vm437_vm9, %v893_v20, 0.0  ;;  %v564_v25 = vadd.f32 %v9674_v45, %v563_v21 }
  0xc7   : > { %v930_v26 = vpack.c.bf16 %v801_v23, %v801_v23  ;;  %v1058_v27 = vpack.c.bf16 %v897_v24, %v897_v24  ;;  %1843 = vmatmul.bf16.vlgmr.msra.gmra.mxu2 %v6925_v22 }
  0xc8   : > { %vm639_vm10 = vcmp.gt.f32.partialorder %v564_v25, 0.0  ;;  %v673_v28 = vmul.f32 %v9676_v49, %v564_v25  ;;  %v6928_v43 = vld [vmem:[#allocation2 + $0x20] sm:$0xf] }
  0xc9   : > { %963 = vst [vmem:[#allocation2 + $0x30] sm:$0xf] %v930_v26 }
  0xca   : > { %1090 = vst [vmem:[#allocation2 + $0x2c] sm:$0xf] %v1058_v27  ;;  %v705_v31 = vsel %vm639_vm10, %v564_v25, %v673_v28 }
  0xcb   : > { %v737_v32 = vrot.slane %v705_v31, 7  ;;  %v834_v33 = vrot.slane %v705_v31, 1  ;;  %v996_v34 = vpack.c.bf16 %v705_v31, %v705_v31 }
  0xcc   : > { %v8759_v52 = vld [vmem:[#allocation2 + $0x34] sm:$0xf] }
  0xcd   : > { %v795_v36 = vsel %vm766_vm5, %v736_v14, %v737_v32  ;;  %v892_v37 = vsel %vm863_vm6, %v833_v15, %v834_v33  ;;  %1028 = vst [vmem:[#allocation2 + $0x40] sm:$0xf] %v996_v34  ;;  %v566_v38 = vpop.f32.mrf.mxu0 }
  0xce   : > { %v931_v39 = vpack.c.bf16 %v795_v36, %v795_v36  ;;  %v1059_v40 = vpack.c.bf16 %v892_v37, %v892_v37  ;;  %v567_v41 = vadd.f32 %v9674_v45, %v566_v38  ;;  %v462_v38 = vld [vmem:[%s9646_s29 + $0xc0] sm:$0xff] }
  0xd0   : > { %964 = vst [vmem:[#allocation2 + $0x3c] sm:$0xf] %v931_v39  ;;  %vm640_vm11 = vcmp.gt.f32.partialorder %v567_v41, 0.0  ;;  %v674_v42 = vmul.f32 %v9676_v49, %v567_v41  ;;  %6912 = vmatmul.msk.bf16.gmra.mxu0 %vm491_vm2, %v480_v35  ;;  %v463_v39 = vld [vmem:[%s9646_s29 + $0xc8] sm:$0xff] }
  0xd1   : > { %1091 = vst [vmem:[#allocation2 + $0x38] sm:$0xf] %v1059_v40  ;;  %v8758_v44 = vld [vmem:[#allocation2 + $0x28] sm:$0xf0] }
  0xd2   : > { %v706_v46 = vsel %vm640_vm11, %v567_v41, %v674_v42  ;;  %v6929_v47 = vor.u32 %v8758_v44, %v6928_v43  ;;  %v482_v44 = vpack.c.bf16 %v463_v39, %v462_v38 }
  0xd3   : > { %v738_v48 = vrot.slane %v706_v46, 7  ;;  %v835_v50 = vrot.slane %v706_v46, 1  ;;  %v997_v51 = vpack.c.bf16 %v706_v46, %v706_v46 }
  0xd4   : > { %1932 = vmatmul.bf16.vlgmr.msra.gmra.mxu3 %v6929_v47  ;;  %v6934_v54 = vld [vmem:[#allocation2 + $0x3c] sm:$0xf0] }
  0xd5   : > { %v794_v55 = vsel %vm766_vm5, %v737_v32, %v738_v48  ;;  %v891_v56 = vsel %vm863_vm6, %v834_v33, %v835_v50  ;;  %1029 = vst [vmem:[#allocation2 + $0x4c] sm:$0xf] %v997_v51  ;;  %v568_v58 = vpop.f32.mrf.mxu0  ;;  %v6937_v59 = vor.u32 %v8759_v52, %v6934_v54 }
  0xd6   : > { %v803_v60 = vsel %vm434_vm8, %v794_v55, 0.0  ;;  %v899_v61 = vsel %vm437_vm9, %v891_v56, 0.0  ;;  %v569_v63 = vadd.f32 %v9674_v45, %v568_v58 }
  0xd7   : > { %v932_v1 = vpack.c.bf16 %v803_v60, %v803_v60  ;;  %v1060_v2 = vpack.c.bf16 %v899_v61, %v899_v61  ;;  %1848 = vmatmul.bf16.gmra.mxu2 %v6937_v59 }
  0xd8   : > { %vm641_vm12 = vcmp.gt.f32.partialorder %v569_v63, 0.0  ;;  %v675_v3 = vmul.f32 %v9676_v49, %v569_v63  ;;  %v6940_v19 = vld [vmem:[#allocation2 + $0x38] sm:$0xf] }
  0xd9   : > { %965 = vst [vmem:[#allocation2 + $0x48] sm:$0xf] %v932_v1 }
  0xda   : > { %1092 = vst [vmem:[#allocation2 + $0x44] sm:$0xf] %v1060_v2  ;;  %v707_v6 = vsel %vm641_vm12, %v569_v63, %v675_v3 }
  0xdb   : > { %v739_v7 = vrot.slane %v707_v6, 7  ;;  %v836_v8 = vrot.slane %v707_v6, 1  ;;  %v998_v9 = vpack.c.bf16 %v707_v6, %v707_v6 }
  0xdc   : > { %v8762_v26 = vld [vmem:[#allocation2 + $0x4c] sm:$0xf] }
  0xdd   : > { %v793_v12 = vsel %vm766_vm5, %v738_v48, %v739_v7  ;;  %v890_v13 = vsel %vm863_vm6, %v835_v50, %v836_v8  ;;  %1030 = vst [vmem:[#allocation2 + $0x58] sm:$0xf] %v998_v9  ;;  %v571_v14 = vpop.f32.mrf.mxu0 }
  0xde   : > { %v933_v15 = vpack.c.bf16 %v793_v12, %v793_v12  ;;  %v1061_v16 = vpack.c.bf16 %v890_v13, %v890_v13  ;;  %v572_v17 = vadd.f32 %v9674_v45, %v571_v14  ;;  %v464_v14 = vld [vmem:[%s9646_s29 + $0xd0] sm:$0xff] }
  0xe0   : > { %966 = vst [vmem:[#allocation2 + $0x54] sm:$0xf] %v933_v15  ;;  %vm642_vm13 = vcmp.gt.f32.partialorder %v572_v17, 0.0  ;;  %v676_v18 = vmul.f32 %v9676_v49, %v572_v17  ;;  %6913 = vmatmul.msk.bf16.gmra.mxu0 %vm491_vm2, %v481_v10  ;;  %v465_v15 = vld [vmem:[%s9646_s29 + $0xd8] sm:$0xff] }
  0xe1   : > { %1093 = vst [vmem:[#allocation2 + $0x50] sm:$0xf] %v1061_v16  ;;  %v8761_v20 = vld [vmem:[#allocation2 + $0x40] sm:$0xf0] }
  0xe2   : > { %v708_v21 = vsel %vm642_vm13, %v572_v17, %v676_v18  ;;  %v6941_v22 = vor.u32 %v8761_v20, %v6940_v19  ;;  %v483_v20 = vpack.c.bf16 %v465_v15, %v464_v14 }
  0xe3   : > { %v740_v23 = vrot.slane %v708_v21, 7  ;;  %v837_v24 = vrot.slane %v708_v21, 1  ;;  %v999_v25 = vpack.c.bf16 %v708_v21, %v708_v21 }
  0xe4   : > { %1937 = vmatmul.bf16.gmra.mxu3 %v6941_v22  ;;  %v6946_v27 = vld [vmem:[#allocation2 + $0x54] sm:$0xf0] }
  0xe5   : > { %v792_v28 = vsel %vm766_vm5, %v739_v7, %v740_v23  ;;  %v889_v29 = vsel %vm863_vm6, %v836_v8, %v837_v24  ;;  %1031 = vst [vmem:[#allocation2 + $0x64] sm:$0xf] %v999_v25  ;;  %v573_v30 = vpop.f32.mrf.mxu0  ;;  %v6949_v31 = vor.u32 %v8762_v26, %v6946_v27 }
  0xe6   : > { %v805_v32 = vsel %vm434_vm8, %v792_v28, 0.0  ;;  %v901_v33 = vsel %vm437_vm9, %v889_v29, 0.0  ;;  %v574_v34 = vadd.f32 %v9674_v45, %v573_v30 }
  0xe7   : > { %v934_v35 = vpack.c.bf16 %v805_v32, %v805_v32  ;;  %v1062_v36 = vpack.c.bf16 %v901_v33, %v901_v33  ;;  %1853 = vmatmul.bf16.gmra.mxu2 %v6949_v31 }
  0xe8   : > { %vm643_vm14 = vcmp.gt.f32.partialorder %v574_v34, 0.0  ;;  %v677_v37 = vmul.f32 %v9676_v49, %v574_v34  ;;  %v6952_v55 = vld [vmem:[#allocation2 + $0x50] sm:$0xf] }
  0xe9   : > { %967 = vst [vmem:[#allocation2 + $0x60] sm:$0xf] %v934_v35 }
  0xea   : > { %1094 = vst [vmem:[#allocation2 + $0x5c] sm:$0xf] %v1062_v36  ;;  %v709_v40 = vsel %vm643_vm14, %v574_v34, %v677_v37 }
  0xeb   : > { %v741_v41 = vrot.slane %v709_v40, 7  ;;  %v838_v42 = vrot.slane %v709_v40, 1  ;;  %v1000_v43 = vpack.c.bf16 %v709_v40, %v709_v40 }
  0xec   : > { %v8765_v1 = vld [vmem:[#allocation2 + $0x64] sm:$0xf] }
  0xed   : > { %v791_v46 = vsel %vm766_vm5, %v740_v23, %v741_v41  ;;  %v888_v47 = vsel %vm863_vm6, %v837_v24, %v838_v42  ;;  %1032 = vst [vmem:[#allocation2 + $0x70] sm:$0xf] %v1000_v43  ;;  %v576_v48 = vpop.f32.mrf.mxu0 }
  0xee   : > { %v935_v50 = vpack.c.bf16 %v791_v46, %v791_v46  ;;  %v1063_v51 = vpack.c.bf16 %v888_v47, %v888_v47  ;;  %v577_v52 = vadd.f32 %v9674_v45, %v576_v48  ;;  %v466_v48 = vld [vmem:[%s9646_s29 + $0xe0] sm:$0xff] }
  0xf0   : > { %968 = vst [vmem:[#allocation2 + $0x6c] sm:$0xf] %v935_v50  ;;  %vm644_vm15 = vcmp.gt.f32.partialorder %v577_v52, 0.0  ;;  %v678_v54 = vmul.f32 %v9676_v49, %v577_v52  ;;  %6914 = vmatmul.msk.bf16.gmra.mxu0 %vm491_vm2, %v482_v44  ;;  %v467_v50 = vld [vmem:[%s9646_s29 + $0xe8] sm:$0xff] }
  0xf1   : > { %1095 = vst [vmem:[#allocation2 + $0x68] sm:$0xf] %v1063_v51  ;;  %v8764_v56 = vld [vmem:[#allocation2 + $0x58] sm:$0xf0] }
  0xf2   : > { %v710_v58 = vsel %vm644_vm15, %v577_v52, %v678_v54  ;;  %v6953_v59 = vor.u32 %v8764_v56, %v6952_v55  ;;  %v484_v56 = vpack.c.bf16 %v467_v50, %v466_v48 }
  0xf3   : > { %v742_v60 = vrot.slane %v710_v58, 7  ;;  %v839_v61 = vrot.slane %v710_v58, 1  ;;  %v1001_v63 = vpack.c.bf16 %v710_v58, %v710_v58 }
  0xf4   : > { %1942 = vmatmul.bf16.gmra.mxu3 %v6953_v59  ;;  %v6958_v2 = vld [vmem:[#allocation2 + $0x6c] sm:$0xf0] }
  0xf5   : > { %v790_v3 = vsel %vm766_vm5, %v741_v41, %v742_v60  ;;  %v887_v4 = vsel %vm863_vm6, %v838_v42, %v839_v61  ;;  %1033 = vst [vmem:[#allocation2 + $0x7c] sm:$0xf] %v1001_v63  ;;  %v578_v5 = vpop.f32.mrf.mxu0  ;;  %v6961_v6 = vor.u32 %v8765_v1, %v6958_v2 }
  0xf6   : > { %v807_v7 = vsel %vm434_vm8, %v790_v3, 0.0  ;;  %v903_v8 = vsel %vm437_vm9, %v887_v4, 0.0  ;;  %v579_v9 = vadd.f32 %v9674_v45, %v578_v5 }
  0xf7   : > { %v936_v10 = vpack.c.bf16 %v807_v7, %v807_v7  ;;  %v1064_v12 = vpack.c.bf16 %v903_v8, %v903_v8  ;;  %1858 = vmatmul.bf16.gmra.mxu2 %v6961_v6 }
  0xf8   : > { %vm645_vm0 = vcmp.gt.f32.partialorder %v579_v9, 0.0  ;;  %v679_v13 = vmul.f32 %v9676_v49, %v579_v9  ;;  %v6964_v28 = vld [vmem:[#allocation2 + $0x68] sm:$0xf] }
  0xf9   : > { %969 = vst [vmem:[#allocation2 + $0x78] sm:$0xf] %v936_v10 }
  0xfa   : > { %1096 = vst [vmem:[#allocation2 + $0x74] sm:$0xf] %v1064_v12  ;;  %v711_v16 = vsel %vm645_vm0, %v579_v9, %v679_v13 }
  0xfb   : > { %v743_v17 = vrot.slane %v711_v16, 7  ;;  %v840_v18 = vrot.slane %v711_v16, 1  ;;  %v1002_v19 = vpack.c.bf16 %v711_v16, %v711_v16 }
  0xfc   : > { %v8768_v35 = vld [vmem:[#allocation2 + $0x7c] sm:$0xf] }
  0xfd   : > { %v789_v21 = vsel %vm766_vm5, %v742_v60, %v743_v17  ;;  %v886_v22 = vsel %vm863_vm6, %v839_v61, %v840_v18  ;;  %1034 = vst [vmem:[#allocation2 + $0x88] sm:$0xf] %v1002_v19  ;;  %v581_v23 = vpop.f32.mrf.mxu0 }
  0xfe   : > { %v937_v24 = vpack.c.bf16 %v789_v21, %v789_v21  ;;  %v1065_v25 = vpack.c.bf16 %v886_v22, %v886_v22  ;;  %v582_v26 = vadd.f32 %v9674_v45, %v581_v23  ;;  %v468_v23 = vld [vmem:[%s9646_s29 + $0xf0] sm:$0xff] }
 0x100   : > { %970 = vst [vmem:[#allocation2 + $0x84] sm:$0xf] %v937_v24  ;;  %vm646_vm1 = vcmp.gt.f32.partialorder %v582_v26, 0.0  ;;  %v680_v27 = vmul.f32 %v9676_v49, %v582_v26  ;;  %6915 = vmatmul.msk.bf16.gmra.mxu0 %vm491_vm2, %v483_v20  ;;  %v469_v24 = vld [vmem:[%s9646_s29 + $0xf8] sm:$0xff] }
 0x101   : > { %1097 = vst [vmem:[#allocation2 + $0x80] sm:$0xf] %v1065_v25  ;;  %v8767_v29 = vld [vmem:[#allocation2 + $0x70] sm:$0xf0] }
 0x102   : > { %v712_v30 = vsel %vm646_vm1, %v582_v26, %v680_v27  ;;  %v6965_v31 = vor.u32 %v8767_v29, %v6964_v28  ;;  %v485_v29 = vpack.c.bf16 %v469_v24, %v468_v23 }
 0x103   : > { %v744_v32 = vrot.slane %v712_v30, 7  ;;  %v841_v33 = vrot.slane %v712_v30, 1  ;;  %v1003_v34 = vpack.c.bf16 %v712_v30, %v712_v30 }
 0x104   : > { %1947 = vmatmul.bf16.gmra.mxu3 %v6965_v31  ;;  %v6970_v36 = vld [vmem:[#allocation2 + $0x84] sm:$0xf0] }
 0x105   : > { %v788_v37 = vsel %vm766_vm5, %v743_v17, %v744_v32  ;;  %v885_v38 = vsel %vm863_vm6, %v840_v18, %v841_v33  ;;  %1035 = vst [vmem:[#allocation2 + $0x94] sm:$0xf] %v1003_v34  ;;  %v583_v39 = vpop.f32.mrf.mxu0  ;;  %v6973_v40 = vor.u32 %v8768_v35, %v6970_v36 }
 0x106   : > { %v809_v41 = vsel %vm434_vm8, %v788_v37, 0.0  ;;  %v905_v42 = vsel %vm437_vm9, %v885_v38, 0.0  ;;  %v584_v43 = vadd.f32 %v9674_v45, %v583_v39 }
 0x107   : > { %v938_v44 = vpack.c.bf16 %v809_v41, %v809_v41  ;;  %v1066_v46 = vpack.c.bf16 %v905_v42, %v905_v42  ;;  %1863 = vmatmul.bf16.gmra.mxu2 %v6973_v40 }
 0x108   : > { %vm647_vm3 = vcmp.gt.f32.partialorder %v584_v43, 0.0  ;;  %v681_v47 = vmul.f32 %v9676_v49, %v584_v43  ;;  %v6976_v3 = vld [vmem:[#allocation2 + $0x80] sm:$0xf] }
 0x109   : > { %971 = vst [vmem:[#allocation2 + $0x90] sm:$0xf] %v938_v44 }
 0x10a   : > { %1098 = vst [vmem:[#allocation2 + $0x8c] sm:$0xf] %v1066_v46  ;;  %v713_v51 = vsel %vm647_vm3, %v584_v43, %v681_v47 }
 0x10b   : > { %v745_v52 = vrot.slane %v713_v51, 7  ;;  %v842_v54 = vrot.slane %v713_v51, 1  ;;  %v1004_v55 = vpack.c.bf16 %v713_v51, %v713_v51 }
 0x10c   : > { %v8771_v10 = vld [vmem:[#allocation2 + $0x94] sm:$0xf] }
 0x10d   : > { %v787_v58 = vsel %vm766_vm5, %v744_v32, %v745_v52  ;;  %v884_v59 = vsel %vm863_vm6, %v841_v33, %v842_v54  ;;  %1036 = vst [vmem:[#allocation2 + $0xa0] sm:$0xf] %v1004_v55  ;;  %v586_v60 = vpop.f32.mrf.mxu0 }
 0x10e   : > { %v939_v61 = vpack.c.bf16 %v787_v58, %v787_v58  ;;  %v1067_v63 = vpack.c.bf16 %v884_v59, %v884_v59  ;;  %v587_v1 = vadd.f32 %v9674_v45, %v586_v60 }
 0x110   : > { %972 = vst [vmem:[#allocation2 + $0x9c] sm:$0xf] %v939_v61  ;;  %vm648_vm4 = vcmp.gt.f32.partialorder %v587_v1, 0.0  ;;  %v682_v2 = vmul.f32 %v9676_v49, %v587_v1  ;;  %6916 = vmatmul.msk.bf16.gmra.mxu0 %vm491_vm2, %v484_v56 }
 0x111   : > { %1099 = vst [vmem:[#allocation2 + $0x98] sm:$0xf] %v1067_v63  ;;  %v8770_v4 = vld [vmem:[#allocation2 + $0x88] sm:$0xf0] }
 0x112   : > { %v714_v5 = vsel %vm648_vm4, %v587_v1, %v682_v2  ;;  %v6977_v6 = vor.u32 %v8770_v4, %v6976_v3 }
 0x113   : > { %v746_v7 = vrot.slane %v714_v5, 7  ;;  %v843_v8 = vrot.slane %v714_v5, 1  ;;  %v1005_v9 = vpack.c.bf16 %v714_v5, %v714_v5 }
 0x114   : > { %1952 = vmatmul.bf16.gmra.mxu3 %v6977_v6  ;;  %v6982_v12 = vld [vmem:[#allocation2 + $0x9c] sm:$0xf0] }
 0x115   : > { %v786_v13 = vsel %vm766_vm5, %v745_v52, %v746_v7  ;;  %v883_v14 = vsel %vm863_vm6, %v842_v54, %v843_v8  ;;  %1037 = vst [vmem:[#allocation2 + $0xac] sm:$0xf] %v1005_v9  ;;  %v588_v15 = vpop.f32.mrf.mxu0  ;;  %v6985_v16 = vor.u32 %v8771_v10, %v6982_v12 }
 0x116   : > { %v811_v17 = vsel %vm434_vm8, %v786_v13, 0.0  ;;  %v907_v18 = vsel %vm437_vm9, %v883_v14, 0.0  ;;  %v589_v19 = vadd.f32 %v9674_v45, %v588_v15 }
 0x117   : > { %v940_v20 = vpack.c.bf16 %v811_v17, %v811_v17  ;;  %v1068_v21 = vpack.c.bf16 %v907_v18, %v907_v18  ;;  %1868 = vmatmul.bf16.gmra.mxu2 %v6985_v16 }
 0x118   : > { %vm649_vm7 = vcmp.gt.f32.partialorder %v589_v19, 0.0  ;;  %v683_v22 = vmul.f32 %v9676_v49, %v589_v19  ;;  %v6988_v37 = vld [vmem:[#allocation2 + $0x98] sm:$0xf] }
 0x119   : > { %973 = vst [vmem:[#allocation2 + $0xa8] sm:$0xf] %v940_v20 }
 0x11a   : > { %1100 = vst [vmem:[#allocation2 + $0xa4] sm:$0xf] %v1068_v21  ;;  %v715_v25 = vsel %vm649_vm7, %v589_v19, %v683_v22 }
 0x11b   : > { %v747_v26 = vrot.slane %v715_v25, 7  ;;  %v844_v27 = vrot.slane %v715_v25, 1  ;;  %v1006_v28 = vpack.c.bf16 %v715_v25, %v715_v25 }
 0x11c   : > { %v8774_v44 = vld [vmem:[#allocation2 + $0xac] sm:$0xf] }
 0x11d   : > { %v785_v30 = vsel %vm766_vm5, %v746_v7, %v747_v26  ;;  %v882_v31 = vsel %vm863_vm6, %v843_v8, %v844_v27  ;;  %1038 = vst [vmem:[#allocation2 + $0xb8] sm:$0xf] %v1006_v28  ;;  %v591_v32 = vpop.f32.mrf.mxu0 }
 0x11e   : > { %v941_v33 = vpack.c.bf16 %v785_v30, %v785_v30  ;;  %v1069_v34 = vpack.c.bf16 %v882_v31, %v882_v31  ;;  %v592_v35 = vadd.f32 %v9674_v45, %v591_v32 }
 0x120   : > { %974 = vst [vmem:[#allocation2 + $0xb4] sm:$0xf] %v941_v33  ;;  %vm650_vm10 = vcmp.gt.f32.partialorder %v592_v35, 0.0  ;;  %v684_v36 = vmul.f32 %v9676_v49, %v592_v35  ;;  %6917 = vmatmul.msk.bf16.gmra.mxu0 %vm491_vm2, %v485_v29 }
 0x121   : > { %1101 = vst [vmem:[#allocation2 + $0xb0] sm:$0xf] %v1069_v34  ;;  %v8773_v38 = vld [vmem:[#allocation2 + $0xa0] sm:$0xf0] }
 0x122   : > { %v716_v39 = vsel %vm650_vm10, %v592_v35, %v684_v36  ;;  %v6989_v40 = vor.u32 %v8773_v38, %v6988_v37 }
 0x123   : > { %v748_v41 = vrot.slane %v716_v39, 7  ;;  %v845_v42 = vrot.slane %v716_v39, 1  ;;  %v1007_v43 = vpack.c.bf16 %v716_v39, %v716_v39 }
 0x124   : > { %1957 = vmatmul.bf16.gmra.mxu3 %v6989_v40  ;;  %v6994_v46 = vld [vmem:[#allocation2 + $0xb4] sm:$0xf0] }
 0x125   : > { %v784_v47 = vsel %vm766_vm5, %v747_v26, %v748_v41  ;;  %v881_v48 = vsel %vm863_vm6, %v844_v27, %v845_v42  ;;  %1039 = vst [vmem:[#allocation2 + $0xc4] sm:$0xf] %v1007_v43  ;;  %v593_v50 = vpop.f32.mrf.mxu0  ;;  %v6997_v51 = vor.u32 %v8774_v44, %v6994_v46 }
 0x126   : > { %v813_v52 = vsel %vm434_vm8, %v784_v47, 0.0  ;;  %v909_v54 = vsel %vm437_vm9, %v881_v48, 0.0  ;;  %v594_v55 = vadd.f32 %v9674_v45, %v593_v50 }
 0x127   : > { %v942_v56 = vpack.c.bf16 %v813_v52, %v813_v52  ;;  %v1070_v58 = vpack.c.bf16 %v909_v54, %v909_v54  ;;  %1873 = vmatmul.bf16.gmra.mxu2 %v6997_v51 }
 0x128   : > { %vm651_vm2 = vcmp.gt.f32.partialorder %v594_v55, 0.0  ;;  %v685_v59 = vmul.f32 %v9676_v49, %v594_v55  ;;  %v7000_v9 = vld [vmem:[#allocation2 + $0xb0] sm:$0xf] }
 0x129   : > { %975 = vst [vmem:[#allocation2 + $0xc0] sm:$0xf] %v942_v56 }
 0x12a   : > { %1102 = vst [vmem:[#allocation2 + $0xbc] sm:$0xf] %v1070_v58  ;;  %v717_v60 = vsel %vm651_vm2, %v594_v55, %v685_v59 }
 0x12b   : > { %v749_v61 = vrot.slane %v717_v60, 7  ;;  %v846_v63 = vrot.slane %v717_v60, 1  ;;  %v1008_v1 = vpack.c.bf16 %v717_v60, %v717_v60 }
 0x12c   : > { %v8777_v17 = vld [vmem:[#allocation2 + $0xc4] sm:$0xf] }
 0x12d   : > { %v783_v2 = vsel %vm766_vm5, %v748_v41, %v749_v61  ;;  %v880_v3 = vsel %vm863_vm6, %v845_v42, %v846_v63  ;;  %1040 = vst [vmem:[#allocation2 + $0xd0] sm:$0xf] %v1008_v1  ;;  %v596_v4 = vpop.f32.mrf.mxu0 }
 0x12e   : > { %v943_v5 = vpack.c.bf16 %v783_v2, %v783_v2  ;;  %v1071_v6 = vpack.c.bf16 %v880_v3, %v880_v3  ;;  %v597_v7 = vadd.f32 %v9674_v45, %v596_v4 }
 0x130   : > { %976 = vst [vmem:[#allocation2 + $0xcc] sm:$0xf] %v943_v5  ;;  %vm652_vm11 = vcmp.gt.f32.partialorder %v597_v7, 0.0  ;;  %v686_v8 = vmul.f32 %v9676_v49, %v597_v7 }
 0x131   : > { %1103 = vst [vmem:[#allocation2 + $0xc8] sm:$0xf] %v1071_v6  ;;  %v8776_v10 = vld [vmem:[#allocation2 + $0xb8] sm:$0xf0] }
 0x132   : > { %v718_v12 = vsel %vm652_vm11, %v597_v7, %v686_v8  ;;  %v7001_v13 = vor.u32 %v8776_v10, %v7000_v9 }
 0x133   : > { %v750_v14 = vrot.slane %v718_v12, 7  ;;  %v847_v15 = vrot.slane %v718_v12, 1  ;;  %v1009_v16 = vpack.c.bf16 %v718_v12, %v718_v12 }
 0x134   : > { %1962 = vmatmul.bf16.gmra.mxu3 %v7001_v13  ;;  %v7006_v18 = vld [vmem:[#allocation2 + $0xcc] sm:$0xf0] }
 0x135   : > { %v782_v19 = vsel %vm766_vm5, %v749_v61, %v750_v14  ;;  %v879_v20 = vsel %vm863_vm6, %v846_v63, %v847_v15  ;;  %1041 = vst [vmem:[#allocation2 + $0xdc] sm:$0xf] %v1009_v16  ;;  %v598_v21 = vpop.f32.mrf.mxu0  ;;  %v7009_v22 = vor.u32 %v8777_v17, %v7006_v18 }
 0x136   : > { %v815_v23 = vsel %vm434_vm8, %v782_v19, 0.0  ;;  %v911_v24 = vsel %vm437_vm9, %v879_v20, 0.0  ;;  %v599_v25 = vadd.f32 %v9674_v45, %v598_v21 }
 0x137   : > { %v944_v26 = vpack.c.bf16 %v815_v23, %v815_v23  ;;  %v1072_v27 = vpack.c.bf16 %v911_v24, %v911_v24  ;;  %1878 = vmatmul.bf16.gmra.mxu2 %v7009_v22  ;;  %v8778_v11 = vld [vmem:[#allocation2 + $0xc8] sm:$0xf0] }
 0x138   : > { %vm653_vm12 = vcmp.gt.f32.partialorder %v599_v25, 0.0  ;;  %v687_v28 = vmul.f32 %v9676_v49, %v599_v25  ;;  %v7012_v40 = vld [vmem:[#allocation2 + $0xc8] sm:$0xf]  ;;  %v8709_v57 = vld [vmem:[#allocation2 + $0xc8] sm:$0xf0] }
 0x139   : > { %977 = vst [vmem:[#allocation2 + $0xd8] sm:$0xf] %v944_v26 }
 0x13a   : > { %1104 = vst [vmem:[#allocation2 + $0xd4] sm:$0xf] %v1072_v27  ;;  %v719_v29 = vsel %vm653_vm12, %v599_v25, %v687_v28 }
 0x13b   : > { %v751_v30 = vrot.slane %v719_v29, 7  ;;  %v848_v31 = vrot.slane %v719_v29, 1  ;;  %v1010_v32 = vpack.c.bf16 %v719_v29, %v719_v29 }
 0x13c   : > { %v8780_v48 = vld [vmem:[#allocation2 + $0xdc] sm:$0xf] }
 0x13d   : > { %v781_v33 = vsel %vm766_vm5, %v750_v14, %v751_v30  ;;  %v878_v34 = vsel %vm863_vm6, %v847_v15, %v848_v31  ;;  %1042 = vst [vmem:[#allocation2 + $0xe8] sm:$0xf] %v1010_v32  ;;  %v601_v35 = vpop.f32.mrf.mxu0 }
 0x13e   : > { %v945_v36 = vpack.c.bf16 %v781_v33, %v781_v33  ;;  %v1073_v37 = vpack.c.bf16 %v878_v34, %v878_v34  ;;  %v602_v38 = vadd.f32 %v9674_v45, %v601_v35 }
 0x140   : > { %978 = vst [vmem:[#allocation2 + $0xe4] sm:$0xf] %v945_v36  ;;  %vm654_vm13 = vcmp.gt.f32.partialorder %v602_v38, 0.0  ;;  %v688_v39 = vmul.f32 %v9676_v49, %v602_v38 }
 0x141   : > { %1105 = vst [vmem:[#allocation2 + $0xe0] sm:$0xf] %v1073_v37  ;;  %v8779_v41 = vld [vmem:[#allocation2 + $0xd0] sm:$0xf0] }
 0x142   : > { %v720_v42 = vsel %vm654_vm13, %v602_v38, %v688_v39  ;;  %v7013_v43 = vor.u32 %v8779_v41, %v7012_v40 }
 0x143   : > { %v752_v44 = vrot.slane %v720_v42, 7  ;;  %v849_v46 = vrot.slane %v720_v42, 1  ;;  %v1011_v47 = vpack.c.bf16 %v720_v42, %v720_v42 }
 0x144   : > { %1967 = vmatmul.bf16.gmra.mxu3 %v7013_v43  ;;  %v7018_v50 = vld [vmem:[#allocation2 + $0xe4] sm:$0xf0] }
 0x145   : > { %v780_v51 = vsel %vm766_vm5, %v751_v30, %v752_v44  ;;  %v877_v52 = vsel %vm863_vm6, %v848_v31, %v849_v46  ;;  %1043 = vst [vmem:[#allocation2 + $0xf4] sm:$0xf] %v1011_v47  ;;  %v603_v54 = vpop.f32.mrf.mxu0  ;;  %v7021_v55 = vor.u32 %v8780_v48, %v7018_v50 }
 0x146   : > { %v817_v56 = vsel %vm434_vm8, %v780_v51, 0.0  ;;  %v913_v58 = vsel %vm437_vm9, %v877_v52, 0.0  ;;  %v604_v59 = vadd.f32 %v9674_v45, %v603_v54 }
 0x147   : > { %v946_v60 = vpack.c.bf16 %v817_v56, %v817_v56  ;;  %v1074_v61 = vpack.c.bf16 %v913_v58, %v913_v58  ;;  %1883 = vmatmul.bf16.gmra.mxu2 %v7021_v55 }
 0x148   : > { %vm655_vm14 = vcmp.gt.f32.partialorder %v604_v59, 0.0  ;;  %v689_v63 = vmul.f32 %v9676_v49, %v604_v59  ;;  %v7024_v14 = vld [vmem:[#allocation2 + $0xe0] sm:$0xf] }
 0x149   : > { %979 = vst [vmem:[#allocation2 + $0xf0] sm:$0xf] %v946_v60 }
 0x14a   : > { %1106 = vst [vmem:[#allocation2 + $0xec] sm:$0xf] %v1074_v61  ;;  %v721_v1 = vsel %vm655_vm14, %v604_v59, %v689_v63  ;;  %v9867_v2 = vpop.f32.mrf.mxu2 }
 0x14b   : > { %v753_v3 = vrot.slane %v721_v1, 7  ;;  %v850_v4 = vrot.slane %v721_v1, 1  ;;  %v1012_v5 = vpack.c.bf16 %v721_v1, %v721_v1 }
 0x14c   : > { %v8783_v22 = vld [vmem:[#allocation2 + $0xf4] sm:$0xf] }
 0x14d   : > { %v779_v6 = vsel %vm766_vm5, %v752_v44, %v753_v3  ;;  %v876_v7 = vsel %vm863_vm6, %v849_v46, %v850_v4  ;;  %1044 = vst [vmem:[#allocation2 + $0x100] sm:$0xf] %v1012_v5  ;;  %v606_v8 = vpop.f32.mrf.mxu0 }
 0x14e   : > { %v947_v9 = vpack.c.bf16 %v779_v6, %v779_v6  ;;  %v1075_v10 = vpack.c.bf16 %v876_v7, %v876_v7  ;;  %v607_v12 = vadd.f32 %v9674_v45, %v606_v8 }
 0x150   : > { %980 = vst [vmem:[#allocation2 + $0xfc] sm:$0xf] %v947_v9  ;;  %vm656_vm15 = vcmp.gt.f32.partialorder %v607_v12, 0.0  ;;  %v690_v13 = vmul.f32 %v9676_v49, %v607_v12 }
 0x151   : > { %1107 = vst [vmem:[#allocation2 + $0xf8] sm:$0xf] %v1075_v10  ;;  %v8782_v15 = vld [vmem:[#allocation2 + $0xe8] sm:$0xf0] }
 0x152   : > { %v722_v16 = vsel %vm656_vm15, %v607_v12, %v690_v13  ;;  %v9875_v17 = vpop.f32.mrf.mxu2  ;;  %v7025_v18 = vor.u32 %v8782_v15, %v7024_v14 }
 0x153   : > { %v754_v19 = vrot.slane %v722_v16, 7  ;;  %v851_v20 = vrot.slane %v722_v16, 1  ;;  %v1013_v21 = vpack.c.bf16 %v722_v16, %v722_v16 }
 0x154   : > { %1972 = vmatmul.bf16.gmra.mxu3 %v7025_v18  ;;  %v7030_v23 = vld [vmem:[#allocation2 + $0xfc] sm:$0xf0] }
 0x155   : > { %v778_v24 = vsel %vm766_vm5, %v753_v3, %v754_v19  ;;  %v875_v25 = vsel %vm863_vm6, %v850_v4, %v851_v20  ;;  %1045 = vst [vmem:[#allocation2 + $0x10c] sm:$0xf] %v1013_v21  ;;  %v608_v26 = vpop.f32.mrf.mxu0  ;;  %v7033_v27 = vor.u32 %v8783_v22, %v7030_v23 }
 0x156   : > { %v819_v28 = vsel %vm434_vm8, %v778_v24, 0.0  ;;  %v915_v29 = vsel %vm437_vm9, %v875_v25, 0.0  ;;  %v609_v30 = vadd.f32 %v9674_v45, %v608_v26  ;;  %v9919_v24 = vld [vmem:[#allocation7] ss:$0 sm:$0xff] }
 0x157   : > { %v948_v31 = vpack.c.bf16 %v819_v28, %v819_v28  ;;  %v1076_v32 = vpack.c.bf16 %v915_v29, %v915_v29  ;;  %v9886_v33 = vpop.f32.mrf.mxu3  ;;  %1888 = vmatmul.bf16.gmra.mxu2 %v7033_v27  ;;  %v8738_v27 = vld [vmem:[#allocation9 + $0x30] sm:$0xff] }
 0x158   : > { %vm657_vm0 = vcmp.gt.f32.partialorder %v609_v30, 0.0  ;;  %v691_v34 = vmul.f32 %v9676_v49, %v609_v30  ;;  %v7036_v50 = vld [vmem:[#allocation2 + $0xf8] sm:$0xf] }
 0x159   : > { %981 = vst [vmem:[#allocation2 + $0x108] sm:$0xf] %v948_v31 }
 0x15a   : > { %1108 = vst [vmem:[#allocation2 + $0x104] sm:$0xf] %v1076_v32  ;;  %v723_v35 = vsel %vm657_vm0, %v609_v30, %v691_v34  ;;  %v9889_v36 = vpop.f32.mrf.mxu2 }
 0x15b   : > { %v755_v37 = vrot.slane %v723_v35, 7  ;;  %v852_v38 = vrot.slane %v723_v35, 1  ;;  %v1014_v39 = vpack.c.bf16 %v723_v35, %v723_v35 }
 0x15c   : > { %v8786_v60 = vld [vmem:[#allocation2 + $0x10c] sm:$0xf] }
 0x15d   : > { %v777_v40 = vsel %vm766_vm5, %v754_v19, %v755_v37  ;;  %v874_v41 = vsel %vm863_vm6, %v851_v20, %v852_v38  ;;  %1046 = vst [vmem:[#allocation2 + $0x118] sm:$0xf] %v1014_v39  ;;  %v611_v42 = vpop.f32.mrf.mxu0  ;;  %v8739_v19 = vld [vmem:[#allocation9 + $0x38] sm:$0xff]  ;;  %v8737_v39 = vld [vmem:[#allocation9 + $0x28] sm:$0xff] }
 0x15e   : > { %v949_v43 = vpack.c.bf16 %v777_v40, %v777_v40  ;;  %v1077_v44 = vpack.c.bf16 %v874_v41, %v874_v41  ;;  %v612_v46 = vadd.f32 %v9674_v45, %v611_v42  ;;  %2413 = vmatpush.bf16.msrb.mxu0 %v8739_v19 }
 0x15f   : > { %v9896_v47 = vpop.f32.mrf.mxu3 }
 0x160   : > { %982 = vst [vmem:[#allocation2 + $0x114] sm:$0xf] %v949_v43  ;;  %vm658_vm1 = vcmp.gt.f32.partialorder %v612_v46, 0.0  ;;  %v692_v48 = vmul.f32 %v9676_v49, %v612_v46 }
 0x161   : > { %1109 = vst [vmem:[#allocation2 + $0x110] sm:$0xf] %v1077_v44  ;;  %v8785_v51 = vld [vmem:[#allocation2 + $0x100] sm:$0xf0] }
 0x162   : > { %v724_v52 = vsel %vm658_vm1, %v612_v46, %v692_v48  ;;  %v9899_v54 = vpop.f32.mrf.mxu2  ;;  %v7037_v55 = vor.u32 %v8785_v51, %v7036_v50  ;;  %2414 = vmatpush.bf16.msrb.mxu0 %v8738_v27 }
 0x163   : > { %v756_v56 = vrot.slane %v724_v52, 7  ;;  %v853_v58 = vrot.slane %v724_v52, 1  ;;  %v1015_v59 = vpack.c.bf16 %v724_v52, %v724_v52 }
 0x164   : > { %1977 = vmatmul.bf16.gmra.mxu3 %v7037_v55  ;;  %v7042_v61 = vld [vmem:[#allocation2 + $0x114] sm:$0xf0] }
 0x165   : > { %v776_v63 = vsel %vm766_vm5, %v755_v37, %v756_v56  ;;  %v873_v1 = vsel %vm863_vm6, %v852_v38, %v853_v58  ;;  %1047 = vst [vmem:[#allocation2 + $0x124] sm:$0xf] %v1015_v59  ;;  %v613_v3 = vpop.f32.mrf.mxu0  ;;  %v7045_v4 = vor.u32 %v8786_v60, %v7042_v61 }
 0x166   : > { %v821_v5 = vsel %vm434_vm8, %v776_v63, 0.0  ;;  %v917_v6 = vsel %vm437_vm9, %v873_v1, 0.0  ;;  %v614_v7 = vadd.f32 %v9674_v45, %v613_v3  ;;  %2415 = vmatpush.bf16.msrb.mxu0 %v8737_v39 }
 0x167   : > { %v950_v8 = vpack.c.bf16 %v821_v5, %v821_v5  ;;  %v1078_v9 = vpack.c.bf16 %v917_v6, %v917_v6  ;;  %v9910_v10 = vpop.f32.mrf.mxu3  ;;  %1893 = vmatmul.bf16.gmra.mxu2 %v7045_v4  ;;  %v8811_v4 = vld [vmem:[#allocation9 + $0xf8] sm:$0xff] }
 0x168   : > { %vm659_vm3 = vcmp.gt.f32.partialorder %v614_v7, 0.0  ;;  %v693_v12 = vmul.f32 %v9676_v49, %v614_v7  ;;  %v7048_v29 = vld [vmem:[#allocation2 + $0x110] sm:$0xf]  ;;  %v8735_v5 = vld [vmem:[#allocation9 + $0x18] sm:$0xff]  ;;  %1746 = vmatpush.bf16.msra.mxu1 %v8811_v4 }
 0x169   : > { %983 = vst [vmem:[#allocation2 + $0x120] sm:$0xf] %v950_v8 }
 0x16a   : > { %1110 = vst [vmem:[#allocation2 + $0x11c] sm:$0xf] %v1078_v9  ;;  %v725_v13 = vsel %vm659_vm3, %v614_v7, %v693_v12  ;;  %v9913_v14 = vpop.f32.mrf.mxu2 }
 0x16b   : > { %v757_v15 = vrot.slane %v725_v13, 7  ;;  %v854_v16 = vrot.slane %v725_v13, 1  ;;  %v1016_v18 = vpack.c.bf16 %v725_v13, %v725_v13 }
 0x16c   : > { %v8789_v40 = vld [vmem:[#allocation2 + $0x124] sm:$0xf] }
 0x16d   : > { %v775_v45 = vsel %vm766_vm5, %v756_v56, %v757_v15  ;;  %v872_v20 = vsel %vm863_vm6, %v853_v58, %v854_v16  ;;  %1048 = vst [vmem:[#allocation2 + $0x130] sm:$0xf] %v1016_v18  ;;  %v616_v21 = vpop.f32.mrf.mxu0  ;;  %v8736_v58 = vld [vmem:[#allocation9 + $0x20] sm:$0xff]  ;;  %v8734_v18 = vld [vmem:[#allocation9 + $0x10] sm:$0xff] }
 0x16e   : > { %v951_v22 = vpack.c.bf16 %v775_v45, %v775_v45  ;;  %v1079_v23 = vpack.c.bf16 %v872_v20, %v872_v20  ;;  %v617_v25 = vadd.f32 %v9919_v24, %v616_v21  ;;  %2416 = vmatpush.bf16.msrb.mxu0 %v8736_v58 }
 0x16f   : > { %v9922_v26 = vpop.f32.mrf.mxu3 }
 0x170   : > { %984 = vst [vmem:[#allocation2 + $0x12c] sm:$0xf] %v951_v22  ;;  %vm660_vm4 = vcmp.gt.f32.partialorder %v617_v25, 0.0  ;;  %v694_v28 = vmul.f32 %v9676_v49, %v617_v25 }
 0x171   : > { %1111 = vst [vmem:[#allocation2 + $0x128] sm:$0xf] %v1079_v23  ;;  %v8788_v30 = vld [vmem:[#allocation2 + $0x118] sm:$0xf0] }
 0x172   : > { %v726_v31 = vsel %vm660_vm4, %v617_v25, %v694_v28  ;;  %v9925_v32 = vpop.f32.mrf.mxu2  ;;  %v7049_v34 = vor.u32 %v8788_v30, %v7048_v29  ;;  %2417 = vmatpush.bf16.msrb.mxu0 %v8735_v5  ;;  %v8809_v29 = vld [vmem:[#allocation9 + $0xe8] sm:$0xff] }
 0x173   : > { %v758_v35 = vrot.slane %v726_v31, 7  ;;  %v855_v37 = vrot.slane %v726_v31, 1  ;;  %v1017_v38 = vpack.c.bf16 %v726_v31, %v726_v31  ;;  %v8733_v30 = vld [vmem:[#allocation9 + $0x8] sm:$0xff]  ;;  %v9510_v31 = vmov 0  }
 0x174   : > { %1982 = vmatmul.bf16.gmra.mxu3 %v7049_v34  ;;  %v7054_v41 = vld [vmem:[#allocation2 + $0x12c] sm:$0xf0]  ;;  %413 = vst [vmem:[#allocation2] sm:$0xff] %v9510_v31 }
 0x175   : > { %v774_v42 = vsel %vm766_vm5, %v757_v15, %v758_v35  ;;  %v871_v43 = vsel %vm863_vm6, %v854_v16, %v855_v37  ;;  %1049 = vst [vmem:[#allocation2 + $0x13c] sm:$0xf] %v1017_v38  ;;  %v618_v44 = vpop.f32.mrf.mxu0  ;;  %v7057_v46 = vor.u32 %v8789_v40, %v7054_v41  ;;  %v8810_v16 = vld [vmem:[#allocation9 + $0xf0] sm:$0xff] }
 0x176   : > { %v823_v48 = vsel %vm434_vm8, %v774_v42, 0.0  ;;  %v919_v50 = vsel %vm437_vm9, %v871_v43, 0.0  ;;  %v619_v51 = vadd.f32 %v9919_v24, %v618_v44  ;;  %1747 = vmatpush.bf16.msra.mxu1 %v8810_v16  ;;  %2418 = vmatpush.bf16.msrb.mxu0 %v8734_v18  ;;  %415 = vst [vmem:[#allocation2 + $0xc] sm:$0xff] %v9510_v31 }
 0x177   : > { %v952_v52 = vpack.c.bf16 %v823_v48, %v823_v48  ;;  %v1080_v55 = vpack.c.bf16 %v919_v50, %v919_v50  ;;  %v9936_v56 = vpop.f32.mrf.mxu3  ;;  %1898 = vmatmul.bf16.gmra.mxu2 %v7057_v46  ;;  %414 = vst [vmem:[#allocation2 + $0x8] sm:$0xf] %v9510_v31 }
 0x178   : > { %vm661_vm7 = vcmp.gt.f32.partialorder %v619_v51, 0.0  ;;  %v695_v59 = vmul.f32 %v9676_v49, %v619_v51  ;;  %v7060_v45 = vld [vmem:[#allocation2 + $0x128] sm:$0xf]  ;;  %416 = vst [vmem:[#allocation2 + $0x14] sm:$0xf] %v9510_v31 }
 0x179   : > { %985 = vst [vmem:[#allocation2 + $0x138] sm:$0xf] %v952_v52  ;;  %v8732_v52 = vld [vmem:[#allocation9] sm:$0xff] }
 0x17a   : > { %1112 = vst [vmem:[#allocation2 + $0x134] sm:$0xf] %v1080_v55  ;;  %v727_v60 = vsel %vm661_vm7, %v619_v51, %v695_v59  ;;  %v9939_v61 = vpop.f32.mrf.mxu2  ;;  %1748 = vmatpush.bf16.msra.mxu1 %v8809_v29  ;;  %2419 = vmatpush.bf16.msrb.mxu0 %v8733_v30  ;;  %v8808_v51 = vld [vmem:[#allocation9 + $0xe0] sm:$0xff]  ;;  %v8755_v55 = vld [vmem:[#allocation9 + $0xb8] sm:$0xff] }
 0x17b   : > { %v759_v63 = vrot.slane %v727_v60, 7  ;;  %v856_v1 = vrot.slane %v727_v60, 1  ;;  %v1018_v3 = vpack.c.bf16 %v727_v60, %v727_v60  ;;  %418 = vst [vmem:[#allocation2 + $0x198] sm:$0xff] %v9510_v31  ;;  %v7208_v60 = vld [vmem:[#allocation2] sm:$0xf]  ;;  %2591 = vmatpush.bf16.msrb.mxu2 %v8755_v55 }
 0x17c   : > { %v8792_v34 = vld [vmem:[#allocation2 + $0x13c] sm:$0xf]  ;;  %419 = vst [vmem:[#allocation2 + $0x1a0] sm:$0xf] %v9510_v31 }
 0x17d   : > { %v773_v6 = vsel %vm766_vm5, %v758_v35, %v759_v63  ;;  %v870_v7 = vsel %vm863_vm6, %v855_v37, %v856_v1  ;;  %1050 = vst [vmem:[#allocation2 + $0x148] sm:$0xf] %v1018_v3  ;;  %v621_v8 = vpop.f32.mrf.mxu0  ;;  %v8685_v4 = vld [vmem:[#allocation2 + $0x8] sm:$0xf0] }
 0x17e   : > { %v953_v9 = vpack.c.bf16 %v773_v6, %v773_v6  ;;  %v1081_v12 = vpack.c.bf16 %v870_v7, %v870_v7  ;;  %v622_v13 = vadd.f32 %v9919_v24, %v621_v8  ;;  %1749 = vmatpush.bf16.msra.mxu1 %v8808_v51  ;;  %2420 = vmatpush.bf16.msrb.mxu0 %v8732_v52  ;;  %v8807_v6 = vld [vmem:[#allocation9 + $0xd8] sm:$0xff]  ;;  %v8754_v7 = vld [vmem:[#allocation9 + $0xb0] sm:$0xff] }
 0x17f   : > { %v9946_v15 = vpop.f32.mrf.mxu3  ;;  %v7209_v5 = vor.u32 %v8685_v4, %v7208_v60  ;;  %420 = vst [vmem:[#allocation2 + $0x1a4] sm:$0xff] %v9510_v31  ;;  %2592 = vmatpush.bf16.msrb.mxu2 %v8754_v7  ;;  %v8751_v4 = vld [vmem:[#allocation9 + $0x98] sm:$0xff] }
 0x180   : > { %986 = vst [vmem:[#allocation2 + $0x144] sm:$0xf] %v953_v9  ;;  %vm662_vm10 = vcmp.gt.f32.partialorder %v622_v13, 0.0  ;;  %v696_v19 = vmul.f32 %v9676_v49, %v622_v13 }
 0x181   : > { %1113 = vst [vmem:[#allocation2 + $0x140] sm:$0xf] %v1081_v12  ;;  %v8791_v20 = vld [vmem:[#allocation2 + $0x130] sm:$0xf0]  ;;  %2421 = vmatmul.bf16.vlgmr.msrb.gmra.mxu0 %v7209_v5 }
 0x182   : > { %v728_v21 = vsel %vm662_vm10, %v622_v13, %v696_v19  ;;  %v9949_v22 = vpop.f32.mrf.mxu2  ;;  %v7061_v23 = vor.u32 %v8791_v20, %v7060_v45  ;;  %421 = vst [vmem:[#allocation2 + $0x1ac] sm:$0xf] %v9510_v31  ;;  %1750 = vmatpush.bf16.msra.mxu1 %v8807_v6  ;;  %v8806_v20 = vld [vmem:[#allocation9 + $0xd0] sm:$0xff] }
 0x183   : > { %v760_v25 = vrot.slane %v728_v21, 7  ;;  %v857_v27 = vrot.slane %v728_v21, 1  ;;  %v1019_v28 = vpack.c.bf16 %v728_v21, %v728_v21  ;;  %422 = vst [vmem:[#allocation3] sm:$0xff] %v9510_v31  ;;  %v8753_v21 = vld [vmem:[#allocation9 + $0xa8] sm:$0xff] }
 0x184   : > { %1987 = vmatmul.bf16.gmra.mxu3 %v7061_v23  ;;  %v7066_v35 = vld [vmem:[#allocation2 + $0x144] sm:$0xf0]  ;;  %423 = vst [vmem:[#allocation3 + $0x8] sm:$0xf] %v9510_v31  ;;  %2593 = vmatpush.bf16.msrb.mxu2 %v8753_v21 }
 0x185   : > { %v772_v37 = vsel %vm766_vm5, %v759_v63, %v760_v25  ;;  %v869_v38 = vsel %vm863_vm6, %v856_v1, %v857_v27  ;;  %1051 = vst [vmem:[#allocation2 + $0x154] sm:$0xf] %v1019_v28  ;;  %v623_v39 = vpop.f32.mrf.mxu0  ;;  %v7069_v40 = vor.u32 %v8792_v34, %v7066_v35 }
 0x186   : > { %v825_v41 = vsel %vm434_vm8, %v772_v37, 0.0  ;;  %v921_v42 = vsel %vm437_vm9, %v869_v38, 0.0  ;;  %v624_v43 = vadd.f32 %v9919_v24, %v623_v39  ;;  %1751 = vmatpush.bf16.msra.mxu1 %v8806_v20  ;;  %424 = vst [vmem:[#allocation3 + $0xc] sm:$0xff] %v9510_v31  ;;  %v8805_v39 = vld [vmem:[#allocation9 + $0xc8] sm:$0xff] }
 0x187   : > { %v954_v44 = vpack.c.bf16 %v825_v41, %v825_v41  ;;  %v1082_v46 = vpack.c.bf16 %v921_v42, %v921_v42  ;;  %v9963_v48 = vpop.f32.mrf.mxu3  ;;  %1903 = vmatmul.bf16.gmra.mxu2 %v7069_v40  ;;  %425 = vst [vmem:[#allocation3 + $0x14] sm:$0xf] %v9510_v31  ;;  %v8752_v40 = vld [vmem:[#allocation9 + $0xa0] sm:$0xff] }
 0x188   : > { %vm663_vm2 = vcmp.gt.f32.partialorder %v624_v43, 0.0  ;;  %v697_v50 = vmul.f32 %v9676_v49, %v624_v43  ;;  %v7072_v23 = vld [vmem:[#allocation2 + $0x140] sm:$0xf]  ;;  %427 = vst [vmem:[#allocation3 + $0x198] sm:$0xff] %v9510_v31  ;;  %2594 = vmatpush.bf16.msrb.mxu2 %v8752_v40 }
 0x189   : > { %987 = vst [vmem:[#allocation2 + $0x150] sm:$0xf] %v954_v44 }
 0x18a   : > { %1114 = vst [vmem:[#allocation2 + $0x14c] sm:$0xf] %v1082_v46  ;;  %v729_v58 = vsel %vm663_vm2, %v624_v43, %v697_v50  ;;  %v9968_v59 = vpop.f32.mrf.mxu2  ;;  %v8883_v46 = vld [vmem:[#allocation9 + $0x1b8] sm:$0xff]  ;;  %1752 = vmatpush.bf16.msra.mxu1 %v8805_v39 }
 0x18b   : > { %v761_v63 = vrot.slane %v729_v58, 7  ;;  %v858_v1 = vrot.slane %v729_v58, 1  ;;  %v1020_v3 = vpack.c.bf16 %v729_v58, %v729_v58  ;;  %428 = vst [vmem:[#allocation3 + $0x1a0] sm:$0xf] %v9510_v31  ;;  %3194 = vmatpush.bf16.msrb.mxu3 %v8883_v46  ;;  %v8748_v46 = vld [vmem:[#allocation9 + $0x80] sm:$0xff] }
 0x18c   : > { %v8795_v37 = vld [vmem:[#allocation2 + $0x154] sm:$0xf]  ;;  %429 = vst [vmem:[#allocation3 + $0x1a4] sm:$0xff] %v9510_v31  ;;  %2595 = vmatpush.bf16.msrb.mxu2 %v8751_v4 }
 0x18d   : > { %v771_v8 = vsel %vm766_vm5, %v760_v25, %v761_v63  ;;  %v868_v9 = vsel %vm863_vm6, %v857_v27, %v858_v1  ;;  %1052 = vst [vmem:[#allocation2 + $0x160] sm:$0xf] %v1020_v3  ;;  %v626_v12 = vpop.f32.mrf.mxu0 }
 0x18e   : > { %v955_v13 = vpack.c.bf16 %v771_v8, %v771_v8  ;;  %v1083_v16 = vpack.c.bf16 %v868_v9, %v868_v9  ;;  %v627_v18 = vadd.f32 %v9919_v24, %v626_v12  ;;  %430 = vst [vmem:[#allocation3 + $0x1ac] sm:$0xf] %v9510_v31  ;;  %v8747_v12 = vld [vmem:[#allocation9 + $0x78] sm:$0xff]  ;;  %v8880_v31 = vld [vmem:[#allocation9 + $0x1a0] sm:$0xff] }
 0x18f   : > { %v9978_v19 = vpop.f32.mrf.mxu3 }
 0x190   : > { %988 = vst [vmem:[#allocation2 + $0x15c] sm:$0xf] %v955_v13  ;;  %vm664_vm11 = vcmp.gt.f32.partialorder %v627_v18, 0.0  ;;  %v698_v45 = vmul.f32 %v9676_v49, %v627_v18  ;;  %v8750_v13 = vld [vmem:[#allocation9 + $0x90] sm:$0xff] }
 0x191   : > { %1115 = vst [vmem:[#allocation2 + $0x158] sm:$0xf] %v1083_v16  ;;  %v8794_v25 = vld [vmem:[#allocation2 + $0x148] sm:$0xf0]  ;;  %2596 = vmatpush.bf16.msrb.mxu2 %v8750_v13 }
 0x192   : > { %v730_v27 = vsel %vm664_vm11, %v627_v18, %v698_v45  ;;  %v9982_v28 = vpop.f32.mrf.mxu2  ;;  %v7073_v29 = vor.u32 %v8794_v25, %v7072_v23  ;;  %v8881_v16 = vld [vmem:[#allocation9 + $0x1a8] sm:$0xff] }
 0x193   : > { %v762_v30 = vrot.slane %v730_v27, 7  ;;  %v859_v34 = vrot.slane %v730_v27, 1  ;;  %v1021_v35 = vpack.c.bf16 %v730_v27, %v730_v27 }
 0x194   : > { %1992 = vmatmul.bf16.gmra.mxu3 %v7073_v29  ;;  %v7078_v38 = vld [vmem:[#allocation2 + $0x15c] sm:$0xf0] }
 0x195   : > { %v770_v41 = vsel %vm766_vm5, %v761_v63, %v762_v30  ;;  %v867_v42 = vsel %vm863_vm6, %v858_v1, %v859_v34  ;;  %1053 = vst [vmem:[#allocation2 + $0x16c] sm:$0xf] %v1021_v35  ;;  %v628_v43 = vpop.f32.mrf.mxu0  ;;  %v7081_v44 = vor.u32 %v8795_v37, %v7078_v38  ;;  %v8804_v63 = vld [vmem:[#allocation9 + $0xc0] sm:$0xff]  ;;  %v8882_v1 = vld [vmem:[#allocation9 + $0x1b0] sm:$0xff] }
 0x196   : > { %v827_v50 = vsel %vm434_vm8, %v770_v41, 0.0  ;;  %v923_v51 = vsel %vm437_vm9, %v867_v42, 0.0  ;;  %v629_v52 = vadd.f32 %v9919_v24, %v628_v43  ;;  %1753 = vmatpush.bf16.msra.mxu1 %v8804_v63  ;;  %3195 = vmatpush.bf16.msrb.mxu3 %v8882_v1 }
 0x197   : > { %v956_v55 = vpack.c.bf16 %v827_v50, %v827_v50  ;;  %v1084_v58 = vpack.c.bf16 %v923_v51, %v923_v51  ;;  %v9997_v60 = vpop.f32.mrf.mxu3  ;;  %1908 = vmatmul.bf16.gmra.mxu2 %v7081_v44  ;;  %v8879_v50 = vld [vmem:[#allocation9 + $0x198] sm:$0xff] }
 0x198   : > { %vm665_vm12 = vcmp.gt.f32.partialorder %v629_v52, 0.0  ;;  %v699_v3 = vmul.f32 %v9676_v49, %v629_v52  ;;  %v7084_v35 = vld [vmem:[#allocation2 + $0x158] sm:$0xf] }
 0x199   : > { %989 = vst [vmem:[#allocation2 + $0x168] sm:$0xf] %v956_v55 }
 0x19a   : > { %1116 = vst [vmem:[#allocation2 + $0x164] sm:$0xf] %v1084_v58  ;;  %v731_v5 = vsel %vm665_vm12, %v629_v52, %v699_v3  ;;  %v10002_v6 = vpop.f32.mrf.mxu2  ;;  %2502 = vmatpush.bf16.msrb.mxu1 %v8747_v12  ;;  %3196 = vmatpush.bf16.msrb.mxu3 %v8881_v16 }
 0x19b   : > { %v763_v7 = vrot.slane %v731_v5, 7  ;;  %v860_v8 = vrot.slane %v731_v5, 1  ;;  %v1022_v9 = vpack.c.bf16 %v731_v5, %v731_v5 }
 0x19c   : > { %v8798_v43 = vld [vmem:[#allocation2 + $0x16c] sm:$0xf] }
 0x19d   : > { %v769_v18 = vsel %vm766_vm5, %v762_v30, %v763_v7  ;;  %v866_v45 = vsel %vm863_vm6, %v859_v34, %v860_v8  ;;  %1054 = vst [vmem:[#allocation2 + $0x178] sm:$0xf] %v1022_v9  ;;  %v631_v20 = vpop.f32.mrf.mxu0  ;;  %v8749_v30 = vld [vmem:[#allocation9 + $0x88] sm:$0xff] }
 0x19e   : > { %v957_v21 = vpack.c.bf16 %v769_v18, %v769_v18  ;;  %v1085_v23 = vpack.c.bf16 %v866_v45, %v866_v45  ;;  %v632_v25 = vadd.f32 %v9919_v24, %v631_v20  ;;  %3197 = vmatpush.bf16.msrb.mxu3 %v8880_v31  ;;  %2597 = vmatpush.bf16.msrb.mxu2 %v8749_v30 }
 0x19f   : > { %v10010_v27 = vpop.f32.mrf.mxu3 }
 0x1a0   : > { %990 = vst [vmem:[#allocation2 + $0x174] sm:$0xf] %v957_v21  ;;  %vm666_vm13 = vcmp.gt.f32.partialorder %v632_v25, 0.0  ;;  %v700_v29 = vmul.f32 %v9676_v49, %v632_v25 }
 0x1a1   : > { %1117 = vst [vmem:[#allocation2 + $0x170] sm:$0xf] %v1085_v23  ;;  %v8797_v34 = vld [vmem:[#allocation2 + $0x160] sm:$0xf0] }
 0x1a2   : > { %v732_v37 = vsel %vm666_vm13, %v632_v25, %v700_v29  ;;  %v10013_v38 = vpop.f32.mrf.mxu2  ;;  %v7085_v39 = vor.u32 %v8797_v34, %v7084_v35  ;;  %3198 = vmatpush.bf16.msrb.mxu3 %v8879_v50  ;;  %2598 = vmatpush.bf16.msrb.mxu2 %v8748_v46 }
 0x1a3   : > { %v764_v40 = vrot.slane %v732_v37, 7  ;;  %v861_v41 = vrot.slane %v732_v37, 1  ;;  %v1023_v42 = vpack.c.bf16 %v732_v37, %v732_v37  ;;  %v8876_v37 = vld [vmem:[#allocation9 + $0x180] sm:$0xff] }
 0x1a4   : > { %1997 = vmatmul.bf16.gmra.mxu3 %v7085_v39  ;;  %v7090_v44 = vld [vmem:[#allocation2 + $0x174] sm:$0xf0] }
 0x1a5   : > { %v768_v51 = vsel %vm766_vm5, %v763_v7, %v764_v40  ;;  %v865_v52 = vsel %vm863_vm6, %v860_v8, %v861_v41  ;;  %1055 = vst [vmem:[#allocation2 + $0x184] sm:$0xf] %v1023_v42  ;;  %v633_v55 = vpop.f32.mrf.mxu0  ;;  %v7093_v58 = vor.u32 %v8798_v43, %v7090_v44  ;;  %v8878_v7 = vld [vmem:[#allocation9 + $0x190] sm:$0xff]  ;;  %v8757_v44 = vld [vmem:[#allocation2 + $0x20] sm:$0xf0] }
 0x1a6   : > { %v829_v63 = vsel %vm434_vm8, %v768_v51, 0.0  ;;  %v925_v1 = vsel %vm437_vm9, %v865_v52, 0.0  ;;  %v634_v3 = vadd.f32 %v9919_v24, %v633_v55  ;;  %3199 = vmatpush.bf16.msrb.mxu3 %v8878_v7  ;;  %v8877_v24 = vld [vmem:[#allocation9 + $0x188] sm:$0xff]  ;;  %v8688_v51 = vld [vmem:[#allocation2 + $0x20] sm:$0xf0] }
 0x1a7   : > { %v958_v4 = vpack.c.bf16 %v829_v63, %v829_v63  ;;  %v1086_v5 = vpack.c.bf16 %v925_v1, %v925_v1  ;;  %v10024_v9 = vpop.f32.mrf.mxu3  ;;  %1913 = vmatmul.bf16.gmra.mxu2 %v7093_v58  ;;  %v8746_v63 = vld [vmem:[#allocation9 + $0x70] sm:$0xff] }
 0x1a8   : > { %vm667_vm14 = vcmp.gt.f32.partialorder %v634_v3, 0.0  ;;  %v701_v8 = vmul.f32 %v9676_v49, %v634_v3  ;;  %v7096_v53 = vld [vmem:[#allocation2 + $0x170] sm:$0xf]  ;;  %2503 = vmatpush.bf16.msrb.mxu1 %v8746_v63  ;;  %v8686_v7 = vld [vmem:[#allocation2 + $0x10] sm:$0xf0] }
 0x1a9   : > { %991 = vst [vmem:[#allocation2 + $0x180] sm:$0xf] %v958_v4  ;;  %v7508_v63 = vld [vmem:[#allocation2 + $0x48] sm:$0xf] }
 0x1aa   : > { %1118 = vst [vmem:[#allocation2 + $0x17c] sm:$0xf] %v1086_v5  ;;  %v733_v12 = vsel %vm667_vm14, %v634_v3, %v701_v8  ;;  %v10027_v13 = vpop.f32.mrf.mxu2  ;;  %3200 = vmatpush.bf16.msrb.mxu3 %v8877_v24  ;;  %v7216_v5 = vld [vmem:[#allocation2 + $0x8] sm:$0xf] }
 0x1ab   : > { %v765_v16 = vrot.slane %v733_v12, 7  ;;  %v862_v18 = vrot.slane %v733_v12, 1  ;;  %v1024_v45 = vpack.c.bf16 %v733_v12, %v733_v12 }
 0x1ad   : > { %v767_v20 = vsel %vm766_vm5, %v764_v40, %v765_v16  ;;  %v798_v21 = vsel %vm766_vm5, %v765_v16, %v734_v62  ;;  %v864_v49 = vsel %vm863_vm6, %v861_v41, %v862_v18  ;;  %v895_v23 = vsel %vm863_vm6, %v862_v18, %v831_v0  ;;  %1056 = vst [vmem:[#allocation2 + $0x190] sm:$0xf] %v1024_v45  ;;  %v8801_v41 = vld [vmem:[#allocation2 + $0x184] sm:$0xf]  ;;  %v8760_v18 = vld [vmem:[#allocation2 + $0x38] sm:$0xf0] }
 0x1ae   : > { %v799_v25 = vsel %vm434_vm8, %v798_v21, 0.0  ;;  %v927_v31 = vsel %vm437_vm9, %v895_v23, 0.0  ;;  %v959_v29 = vpack.c.bf16 %v767_v20, %v767_v20  ;;  %v1087_v30 = vpack.c.bf16 %v864_v49, %v864_v49  ;;  %3201 = vmatpush.bf16.msrb.mxu3 %v8876_v37  ;;  %v8691_v45 = vld [vmem:[#allocation2 + $0x38] sm:$0xf0]  ;;  %v6932_v20 = vld [vmem:[#allocation2 + $0x30] sm:$0xf] }
 0x1af   : > { %v928_v35 = vpack.c.bf16 %v799_v25, %v799_v25  ;;  %v1088_v34 = vpack.c.bf16 %v927_v31, %v927_v31  ;;  %v10045_v62 = vpop.f32.mrf.mxu3  ;;  %v7217_v16 = vor.u32 %v8686_v7, %v7216_v5  ;;  %v7232_v21 = vld [vmem:[#allocation2 + $0x30] sm:$0xf]  ;;  %v6933_v49 = vor.u32 %v8760_v18, %v6932_v20  ;;  %v8829_v31 = vld [vmem:[#allocation2 + $0x38] sm:$0xf0]  ;;  %v7228_v37 = vld [vmem:[#allocation2 + $0x20] sm:$0xf] }
 0x1b0   : > { %992 = vst [vmem:[#allocation2 + $0x18c] sm:$0xf] %v959_v29  ;;  %v7233_v23 = vor.u32 %v8691_v45, %v7232_v21  ;;  %v7240_v5 = vld [vmem:[#allocation2 + $0x38] sm:$0xf]  ;;  %v8697_v18 = vld [vmem:[#allocation2 + $0x68] sm:$0xf0] }
 0x1b1   : > { %961 = vst [vmem:[#allocation2 + $0x18] sm:$0xf] %v928_v35  ;;  %v8800_v39 = vld [vmem:[#allocation2 + $0x178] sm:$0xf0]  ;;  %v6956_v45 = vld [vmem:[#allocation2 + $0x60] sm:$0xf] }
 0x1b2   : > { %1119 = vst [vmem:[#allocation2 + $0x188] sm:$0xf] %v1087_v30  ;;  %v7097_v0 = vor.u32 %v8800_v39, %v7096_v53  ;;  %v10047_v40 = vpop.f32.mrf.mxu2  ;;  %v7496_v30 = vld [vmem:[#allocation2 + $0x30] sm:$0xf]  ;;  %v8763_v39 = vld [vmem:[#allocation2 + $0x50] sm:$0xf0] }
 0x1b3   : > { %1120 = vst [vmem:[#allocation2 + $0x194] sm:$0xf] %v1088_v34  ;;  %v7497_v35 = vor.u32 %v8829_v31, %v7496_v30  ;;  %v8689_v34 = vld [vmem:[#allocation2 + $0x28] sm:$0xf0]  ;;  %v7256_v20 = vld [vmem:[#allocation2 + $0x60] sm:$0xf] }
 0x1b4   : > { %2002 = vmatmul.bf16.gmra.mxu3 %v7097_v0  ;;  %v7102_v42 = vld [vmem:[#allocation2 + $0x18c] sm:$0xf0]  ;;  %v7229_v53 = vor.u32 %v8689_v34, %v7228_v37  ;;  %v8694_v0 = vld [vmem:[#allocation2 + $0x50] sm:$0xf0]  ;;  %v8835_v30 = vld [vmem:[#allocation2 + $0x68] sm:$0xf0] }
 0x1b5   : > { %v7105_v43 = vor.u32 %v8801_v41, %v7102_v42  ;;  %v6944_v42 = vld [vmem:[#allocation2 + $0x48] sm:$0xf]  ;;  %v8695_v37 = vld [vmem:[#allocation2 + $0x58] sm:$0xf0] }
 0x1b7   : > { %1918 = vmatmul.bf16.gmra.mxu2 %v7105_v43  ;;  %v10049_v52 = vpop.f32.mrf.mxu3  ;;  %v7244_v43 = vld [vmem:[#allocation2 + $0x48] sm:$0xf] }
 0x1b8   : > { %v6920_v46 = vld [vmem:[#allocation2 + $0x18] sm:$0xf] }
 0x1b9   : > { %v7220_v50 = vld [vmem:[#allocation2 + $0x18] sm:$0xf]  ;;  %v6921_v55 = vor.u32 %v8757_v44, %v6920_v46  ;;  %v7108_v3 = vld [vmem:[#allocation2 + $0x188] sm:$0xf]  ;;  %v6945_v44 = vor.u32 %v8763_v39, %v6944_v42  ;;  %v7245_v46 = vor.u32 %v8694_v0, %v7244_v43  ;;  %v8769_v42 = vld [vmem:[#allocation2 + $0x80] sm:$0xf0] }
 0x1ba   : > { %v7221_v58 = vor.u32 %v8688_v51, %v7220_v50  ;;  %v10051_v1 = vpop.f32.mrf.mxu2  ;;  %v8803_v4 = vld [vmem:[#allocation2 + $0x190] sm:$0xf0]  ;;  %v8745_v51 = vld [vmem:[#allocation9 + $0x68] sm:$0xff]  ;;  %v8700_v43 = vld [vmem:[#allocation2 + $0x80] sm:$0xf0] }
 0x1bb   : > { %1754 = vmatmul.bf16.vlgmr.msra.gmra.mxu1 %v6921_v55  ;;  %v7109_v8 = vor.u32 %v8803_v4, %v7108_v3  ;;  %v8832_v55 = vld [vmem:[#allocation2 + $0x50] sm:$0xf0]  ;;  %v8692_v4 = vld [vmem:[#allocation2 + $0x40] sm:$0xf0] }
 0x1bc   : > { %2426 = vmatmul.bf16.gmra.mxu0 %v7221_v58  ;;  %2504 = vmatpush.bf16.msrb.mxu1 %v8745_v51  ;;  %v7509_v3 = vor.u32 %v8832_v55, %v7508_v63 }
 0x1bf   : > { %v10053_v12 = vpop.f32.mrf.mxu3 }
 0x1c2   : > { %v10055_v24 = vpop.f32.mrf.mxu2 }
 0x1c4   : > { %2007 = vmatmul.bf16.gmra.mxu3 %v7109_v8  ;;  %v7241_v8 = vor.u32 %v8692_v4, %v7240_v5  ;;  %v8838_v5 = vld [vmem:[#allocation2 + $0x80] sm:$0xf0] }
 0x1c7   : > { %2599 = vmatmul.bf16.vlgmr.msrb.gmra.mxu2 %v7217_v16  ;;  %v10057_v25 = vpop.f32.mrf.mxu3  ;;  %v8766_v16 = vld [vmem:[#allocation2 + $0x68] sm:$0xf0] }
 0x1c8   : > { %v6957_v21 = vor.u32 %v8766_v16, %v6956_v45 }
 0x1ca   : > { %v10059_v29 = vpop.f32.mrf.mxu2 }
 0x1cb   : > { %1759 = vmatmul.bf16.gmra.mxu1 %v6933_v49  ;;  %v7257_v49 = vor.u32 %v8697_v18, %v7256_v20  ;;  %v8698_v18 = vld [vmem:[#allocation2 + $0x70] sm:$0xf0]  ;;  %v7264_v20 = vld [vmem:[#allocation2 + $0x68] sm:$0xf] }
 0x1cc   : > { %2431 = vmatmul.bf16.gmra.mxu0 %v7233_v23 }
 0x1cf   : > { %v10061_v41 = vpop.f32.mrf.mxu3 }
 0x1d2   : > { %v10063_v50 = vpop.f32.mrf.mxu2 }
 0x1d4   : > { %3202 = vmatmul.bf16.vlgmr.msrb.gmra.mxu3 %v7497_v35  ;;  %v7520_v35 = vld [vmem:[#allocation2 + $0x60] sm:$0xf] }
 0x1d5   : > { %v7521_v34 = vor.u32 %v8835_v30, %v7520_v35  ;;  %v8703_v30 = vld [vmem:[#allocation2 + $0x98] sm:$0xf0]  ;;  %v6980_v35 = vld [vmem:[#allocation2 + $0x90] sm:$0xf] }
 0x1d7   : > { %2604 = vmatmul.bf16.gmra.mxu2 %v7229_v53  ;;  %v10065_v58 = vpop.f32.mrf.mxu3  ;;  %v7252_v53 = vld [vmem:[#allocation2 + $0x50] sm:$0xf] }
 0x1d8   : > { %v7253_v0 = vor.u32 %v8695_v37, %v7252_v53 }
 0x1da   : > { %v10067_v7 = vpop.f32.mrf.mxu2 }
 0x1db   : > { %1764 = vmatmul.bf16.gmra.mxu1 %v6945_v44  ;;  %v6968_v44 = vld [vmem:[#allocation2 + $0x78] sm:$0xf] }
 0x1dc   : > { %2436 = vmatmul.bf16.gmra.mxu0 %v7245_v46  ;;  %v7268_v46 = vld [vmem:[#allocation2 + $0x78] sm:$0xf]  ;;  %v6969_v55 = vor.u32 %v8769_v42, %v6968_v44  ;;  %v7544_v44 = vld [vmem:[#allocation2 + $0x90] sm:$0xf] }
 0x1dd   : > { %v7269_v63 = vor.u32 %v8700_v43, %v7268_v46  ;;  %v8841_v43 = vld [vmem:[#allocation2 + $0x98] sm:$0xf0] }
 0x1de   : > { %v7545_v46 = vor.u32 %v8841_v43, %v7544_v44  ;;  %v7556_v43 = vld [vmem:[#allocation2 + $0xa8] sm:$0xf] }
 0x1df   : > { %v10069_v23 = vpop.f32.mrf.mxu3 }
 0x1e2   : > { %v10071_v31 = vpop.f32.mrf.mxu2 }
 0x1e4   : > { %3207 = vmatmul.bf16.gmra.mxu3 %v7509_v3  ;;  %v8744_v3 = vld [vmem:[#allocation9 + $0x60] sm:$0xff] }
 0x1e5   : > { %2505 = vmatpush.bf16.msrb.mxu1 %v8744_v3  ;;  %v7276_v3 = vld [vmem:[#allocation2 + $0x80] sm:$0xf] }
 0x1e7   : > { %2609 = vmatmul.bf16.gmra.mxu2 %v7241_v8  ;;  %v10073_v39 = vpop.f32.mrf.mxu3  ;;  %v7532_v8 = vld [vmem:[#allocation2 + $0x78] sm:$0xf] }
 0x1e8   : > { %v7533_v16 = vor.u32 %v8838_v5, %v7532_v8  ;;  %v8775_v8 = vld [vmem:[#allocation2 + $0xb0] sm:$0xf0] }
 0x1ea   : > { %v10075_v51 = vpop.f32.mrf.mxu2 }
 0x1eb   : > { %1769 = vmatmul.bf16.gmra.mxu1 %v6957_v21  ;;  %v7265_v21 = vor.u32 %v8698_v18, %v7264_v20  ;;  %v6992_v20 = vld [vmem:[#allocation2 + $0xa8] sm:$0xf] }
 0x1ec   : > { %2441 = vmatmul.bf16.gmra.mxu0 %v7257_v49  ;;  %v8772_v49 = vld [vmem:[#allocation2 + $0x98] sm:$0xf0] }
 0x1ed   : > { %v6981_v53 = vor.u32 %v8772_v49, %v6980_v35  ;;  %v6993_v49 = vor.u32 %v8775_v8, %v6992_v20  ;;  %v8743_v35 = vld [vmem:[#allocation9 + $0x58] sm:$0xff] }
 0x1ee   : > { %2506 = vmatpush.bf16.msrb.mxu1 %v8743_v35  ;;  %v7304_v20 = vld [vmem:[#allocation2 + $0xc0] sm:$0xf] }
 0x1ef   : > { %v10077_v4 = vpop.f32.mrf.mxu3 }
 0x1f2   : > { %v10079_v45 = vpop.f32.mrf.mxu2 }
 0x1f4   : > { %3212 = vmatmul.bf16.gmra.mxu3 %v7521_v34  ;;  %v7280_v34 = vld [vmem:[#allocation2 + $0x90] sm:$0xf] }
 0x1f7   : > { %2614 = vmatmul.bf16.gmra.mxu2 %v7253_v0  ;;  %v10081_v37 = vpop.f32.mrf.mxu3  ;;  %v7281_v0 = vor.u32 %v8703_v30, %v7280_v34 }
 0x1fa   : > { %v10083_v42 = vpop.f32.mrf.mxu2 }
 0x1fb   : > { %1774 = vmatmul.bf16.gmra.mxu1 %v6969_v55  ;;  %11659 = vst [vmem:[#allocation23_spill] sm:$0xff] %v10083_v42  ;;  %v8701_v55 = vld [vmem:[#allocation2 + $0x88] sm:$0xf0] }
 0x1fc   : > { %2446 = vmatmul.bf16.gmra.mxu0 %v7269_v63  ;;  %v7277_v5 = vor.u32 %v8701_v55, %v7276_v3  ;;  %v7288_v55 = vld [vmem:[#allocation2 + $0x98] sm:$0xf] }
 0x1fe   : > { %v2422_v3 = vpop.f32.mrf.mxu0 }
 0x1ff   : > { %v10085_v63 = vpop.f32.mrf.mxu3 }
 0x202   : > { %v10087_v18 = vpop.f32.mrf.mxu2 }
 0x203   : > { %11660 = vst [vmem:[#allocation24_spill] sm:$0xff] %v10087_v18 }
 0x204   : > { %3217 = vmatmul.bf16.gmra.mxu3 %v7533_v16  ;;  %v8706_v16 = vld [vmem:[#allocation2 + $0xb0] sm:$0xf0] }
 0x206   : > { %v2424_v35 = vpop.f32.mrf.mxu0 }
 0x207   : > { %2619 = vmatmul.bf16.gmra.mxu2 %v7265_v21  ;;  %v7292_v21 = vld [vmem:[#allocation2 + $0xa8] sm:$0xf]  ;;  %v10089_v34 = vpop.f32.mrf.mxu3 }
 0x208   : > { %v7293_v30 = vor.u32 %v8706_v16, %v7292_v21  ;;  %11661 = vst [vmem:[#allocation25_spill] sm:$0xff] %v10089_v34  ;;  %v7004_v16 = vld [vmem:[#allocation2 + $0xc0] sm:$0xf]  ;;  %v8712_v34 = vld [vmem:[#allocation2 + $0xe0] sm:$0xf0] }
 0x209   : > { %v7005_v21 = vor.u32 %v8778_v11, %v7004_v16  ;;  %v7016_v16 = vld [vmem:[#allocation2 + $0xd8] sm:$0xf] }
 0x20b   : > { %1779 = vmatmul.bf16.gmra.mxu1 %v6981_v53  ;;  %v8844_v53 = vld [vmem:[#allocation2 + $0xb0] sm:$0xf0] }
 0x20c   : > { %2451 = vmatmul.bf16.gmra.mxu0 %v7281_v0  ;;  %v10091_v0 = vpop.f32.mrf.mxu2  ;;  %v7557_v44 = vor.u32 %v8844_v53, %v7556_v43  ;;  %v8847_v53 = vld [vmem:[#allocation2 + $0xc8] sm:$0xf0] }
 0x20d   : > { %11662 = vst [vmem:[#allocation26_spill] sm:$0xff] %v10091_v0 }
 0x20f   : > { %v10093_v8 = vpop.f32.mrf.mxu3 }
 0x210   : > { %11663 = vst [vmem:[#allocation27_spill] sm:$0xff] %v10093_v8  ;;  %v8781_v8 = vld [vmem:[#allocation2 + $0xe0] sm:$0xf0] }
 0x214   : > { %3222 = vmatmul.bf16.gmra.mxu3 %v7545_v46  ;;  %v8704_v46 = vld [vmem:[#allocation2 + $0xa0] sm:$0xf0] }
 0x217   : > { %2624 = vmatmul.bf16.gmra.mxu2 %v7277_v5  ;;  %v7289_v5 = vor.u32 %v8704_v46, %v7288_v55  ;;  %v10097_v43 = vpop.f32.mrf.mxu3  ;;  %v8707_v46 = vld [vmem:[#allocation2 + $0xb8] sm:$0xf0]  ;;  %v7300_v55 = vld [vmem:[#allocation2 + $0xb0] sm:$0xf] }
 0x218   : > { %11665 = vst [vmem:[#allocation29_spill] sm:$0xff] %v10097_v43 }
 0x21b   : > { %1784 = vmatmul.bf16.gmra.mxu1 %v6993_v49  ;;  %v7305_v49 = vor.u32 %v8709_v57, %v7304_v20  ;;  %v7316_v20 = vld [vmem:[#allocation2 + $0xd8] sm:$0xf] }
 0x21c   : > { %2456 = vmatmul.bf16.gmra.mxu0 %v7293_v30  ;;  %v10095_v30 = vpop.f32.mrf.mxu2 }
 0x21d   : > { %11664 = vst [vmem:[#allocation28_spill] sm:$0xff] %v10095_v30  ;;  %v7317_v30 = vor.u32 %v8712_v34, %v7316_v20  ;;  %v8710_v34 = vld [vmem:[#allocation2 + $0xd0] sm:$0xf0] }
 0x21f   : > { %v10102_v43 = vpop.f32.mrf.mxu3 }
 0x224   : > { %3227 = vmatmul.bf16.gmra.mxu3 %v7557_v44  ;;  %v7568_v44 = vld [vmem:[#allocation2 + $0xc0] sm:$0xf]  ;;  %v10099_v18 = vpop.f32.mrf.mxu2 }
 0x225   : > { %v7569_v0 = vor.u32 %v8847_v53, %v7568_v44  ;;  %11666 = vst [vmem:[#allocation30_spill] sm:$0xff] %v10099_v18 }
 0x227   : > { %2629 = vmatmul.bf16.gmra.mxu2 %v7289_v5  ;;  %v7301_v5 = vor.u32 %v8707_v46, %v7300_v55  ;;  %v8850_v55 = vld [vmem:[#allocation2 + $0xe0] sm:$0xf0] }
 0x22b   : > { %1789 = vmatmul.bf16.gmra.mxu1 %v7005_v21 }
 0x22c   : > { %2461 = vmatmul.bf16.gmra.mxu0 %v7305_v49  ;;  %v7017_v49 = vor.u32 %v8781_v8, %v7016_v16  ;;  %v10107_v46 = vpop.f32.mrf.mxu2  ;;  %v10111_v16 = vpop.f32.mrf.mxu3 }
 0x22d   : > { %11668 = vst [vmem:[#allocation32_spill] sm:$0xff] %v10107_v46 }
 0x234   : > { %3232 = vmatmul.bf16.gmra.mxu3 %v7569_v0  ;;  %v8742_v0 = vld [vmem:[#allocation9 + $0x50] sm:$0xff] }
 0x235   : > { %2507 = vmatpush.bf16.msrb.mxu1 %v8742_v0  ;;  %v7028_v0 = vld [vmem:[#allocation2 + $0xf0] sm:$0xf] }
 0x237   : > { %2634 = vmatmul.bf16.gmra.mxu2 %v7301_v5 }
 0x238   : > { %v1755_v57 = vpop.f32.mrf.mxu1 }
 0x239   : > { %v2427_v11 = vpop.f32.mrf.mxu0  ;;  %v1845_v21 = vadd.f32 %v9867_v2, %v1755_v57  ;;  %v7580_v2 = vld [vmem:[#allocation2 + $0xd8] sm:$0xf] }
 0x23a   : > { %v7581_v8 = vor.u32 %v8850_v55, %v7580_v2 }
 0x23b   : > { %v1934_v53 = vadd.f32 %v9886_v33, %v1845_v21  ;;  %1794 = vmatmul.bf16.gmra.mxu1 %v7017_v49  ;;  %v7312_v33 = vld [vmem:[#allocation2 + $0xc8] sm:$0xf]  ;;  %v8715_v21 = vld [vmem:[#allocation2 + $0xf8] sm:$0xf0] }
 0x23c   : > { %2466 = vmatmul.bf16.gmra.mxu0 %v7317_v30  ;;  %v7313_v30 = vor.u32 %v8710_v34, %v7312_v33 }
 0x23d   : > { %v10105_v44 = vadd.f32 %v2422_v3, %v1934_v53  ;;  %v8784_v3 = vld [vmem:[#allocation2 + $0xf8] sm:$0xf0] }
 0x23f   : > { %11667 = vst [vmem:[#allocation31_spill] sm:$0xff] %v10105_v44  ;;  %v7328_v44 = vld [vmem:[#allocation2 + $0xf0] sm:$0xf] }
 0x240   : > { %v1757_v5 = vpop.f32.mrf.mxu1 }
 0x241   : > { %v2429_v18 = vpop.f32.mrf.mxu0  ;;  %v1847_v42 = vadd.f32 %v9875_v17, %v1757_v5  ;;  %v10115_v17 = vpop.f32.mrf.mxu2  ;;  %v7029_v5 = vor.u32 %v8784_v3, %v7028_v0 }
 0x242   : > { %11670 = vst [vmem:[#allocation34_spill] sm:$0xff] %v10115_v17  ;;  %v8713_v17 = vld [vmem:[#allocation2 + $0xe8] sm:$0xf0] }
 0x243   : > { %v1936_v57 = vadd.f32 %v9896_v47, %v1847_v42  ;;  %v7329_v47 = vor.u32 %v8715_v21, %v7328_v44  ;;  %v8718_v21 = vld [vmem:[#allocation2 + $0x110] sm:$0xf0] }
 0x244   : > { %3237 = vmatmul.bf16.gmra.mxu3 %v7581_v8  ;;  %v8853_v8 = vld [vmem:[#allocation2 + $0xf8] sm:$0xf0] }
 0x245   : > { %v10113_v20 = vadd.f32 %v2424_v35, %v1936_v57  ;;  %v10121_v35 = vpop.f32.mrf.mxu3 }
 0x247   : > { %11669 = vst [vmem:[#allocation33_spill] sm:$0xff] %v10113_v20  ;;  %2639 = vmatmul.bf16.gmra.mxu2 %v7313_v30  ;;  %v7592_v30 = vld [vmem:[#allocation2 + $0xf0] sm:$0xf] }
 0x248   : > { %v1760_v49 = vpop.f32.mrf.mxu1  ;;  %v7593_v20 = vor.u32 %v8853_v8, %v7592_v30 }
 0x249   : > { %v2432_v53 = vpop.f32.mrf.mxu0  ;;  %v1850_v55 = vadd.f32 %v9889_v36, %v1760_v49  ;;  %v10124_v46 = vpop.f32.mrf.mxu2 }
 0x24b   : > { %v1939_v42 = vadd.f32 %v9910_v10, %v1850_v55  ;;  %1799 = vmatmul.bf16.gmra.mxu1 %v7029_v5  ;;  %v7324_v10 = vld [vmem:[#allocation2 + $0xe0] sm:$0xf]  ;;  %v7040_v55 = vld [vmem:[#allocation2 + $0x108] sm:$0xf] }
 0x24c   : > { %2471 = vmatmul.bf16.gmra.mxu0 %v7329_v47  ;;  %v7325_v44 = vor.u32 %v8713_v17, %v7324_v10  ;;  %v7340_v5 = vld [vmem:[#allocation2 + $0x108] sm:$0xf] }
 0x24d   : > { %v10119_v2 = vadd.f32 %v2427_v11, %v1939_v42  ;;  %v8787_v11 = vld [vmem:[#allocation2 + $0x110] sm:$0xf0]  ;;  %v7341_v8 = vor.u32 %v8718_v21, %v7340_v5  ;;  %v7604_v10 = vld [vmem:[#allocation2 + $0x108] sm:$0xf]  ;;  %v7336_v21 = vld [vmem:[#allocation2 + $0xf8] sm:$0xf] }
 0x24e   : > { %v7041_v42 = vor.u32 %v8787_v11, %v7040_v55  ;;  %v8790_v5 = vld [vmem:[#allocation2 + $0x128] sm:$0xf0] }
 0x250   : > { %v1762_v34 = vpop.f32.mrf.mxu1 }
 0x251   : > { %v2434_v57 = vpop.f32.mrf.mxu0  ;;  %v1852_v33 = vadd.f32 %v9899_v54, %v1762_v34  ;;  %v10129_v54 = vpop.f32.mrf.mxu3  ;;  %v8856_v34 = vld [vmem:[#allocation2 + $0x110] sm:$0xf0] }
 0x253   : > { %v1941_v36 = vadd.f32 %v9922_v26, %v1852_v33 }
 0x254   : > { %3242 = vmatmul.bf16.gmra.mxu3 %v7593_v20  ;;  %v8741_v20 = vld [vmem:[#allocation9 + $0x48] sm:$0xff] }
 0x255   : > { %v10127_v3 = vadd.f32 %v2429_v18, %v1941_v36  ;;  %v10133_v18 = vpop.f32.mrf.mxu2  ;;  %2508 = vmatpush.bf16.msrb.mxu1 %v8741_v20 }
 0x257   : > { %2644 = vmatmul.bf16.gmra.mxu2 %v7325_v44  ;;  %v7605_v44 = vor.u32 %v8856_v34, %v7604_v10 }
 0x258   : > { %v1765_v49 = vpop.f32.mrf.mxu1 }
 0x259   : > { %v2437_v0 = vpop.f32.mrf.mxu0  ;;  %v1855_v47 = vadd.f32 %v9913_v14, %v1765_v49  ;;  %v8716_v14 = vld [vmem:[#allocation2 + $0x100] sm:$0xf0]  ;;  %v10138_v11 = vpop.f32.mrf.mxu3 }
 0x25a   : > { %v7337_v49 = vor.u32 %v8716_v14, %v7336_v21  ;;  %v8890_v21 = vld [vmem:[#allocation9 + $0x1f0] sm:$0xff] }
 0x25b   : > { %v1944_v26 = vadd.f32 %v9936_v56, %v1855_v47  ;;  %1804 = vmatmul.bf16.gmra.mxu1 %v7041_v42 }
 0x25c   : > { %2476 = vmatmul.bf16.gmra.mxu0 %v7341_v8 }
 0x25d   : > { %v10135_v17 = vadd.f32 %v2432_v53, %v1944_v26  ;;  %v8721_v53 = vld [vmem:[#allocation2 + $0x128] sm:$0xf0]  ;;  %v10143_v47 = vpop.f32.mrf.mxu2  ;;  %v7352_v26 = vld [vmem:[#allocation2 + $0x120] sm:$0xf] }
 0x260   : > { %v1767_v33 = vpop.f32.mrf.mxu1 }
 0x261   : > { %v2439_v30 = vpop.f32.mrf.mxu0  ;;  %v1857_v36 = vadd.f32 %v9925_v32, %v1767_v33  ;;  %v7052_v32 = vld [vmem:[#allocation2 + $0x120] sm:$0xf]  ;;  %v7353_v33 = vor.u32 %v8721_v53, %v7352_v26  ;;  %v8889_v26 = vld [vmem:[#allocation9 + $0x1e8] sm:$0xff] }
 0x262   : > { %v7053_v34 = vor.u32 %v8790_v5, %v7052_v32  ;;  %v7616_v5 = vld [vmem:[#allocation2 + $0x120] sm:$0xf]  ;;  %v7348_v32 = vld [vmem:[#allocation2 + $0x110] sm:$0xf] }
 0x263   : > { %v1946_v56 = vadd.f32 %v9946_v15, %v1857_v36  ;;  %v8891_v36 = vld [vmem:[#allocation9 + $0x1f8] sm:$0xff] }
 0x264   : > { %3247 = vmatmul.bf16.gmra.mxu3 %v7605_v44  ;;  %3283 = vmatpush.bf16.msra.mxu0 %v8891_v36  ;;  %v8859_v44 = vld [vmem:[#allocation2 + $0x128] sm:$0xf0] }
 0x265   : > { %v10141_v55 = vadd.f32 %v2434_v57, %v1946_v56  ;;  %v10147_v57 = vpop.f32.mrf.mxu3  ;;  %v7617_v53 = vor.u32 %v8859_v44, %v7616_v5  ;;  %v7364_v44 = vld [vmem:[#allocation2 + $0x138] sm:$0xf] }
 0x267   : > { %2649 = vmatmul.bf16.gmra.mxu2 %v7337_v49  ;;  %v10151_v49 = vpop.f32.mrf.mxu2 }
 0x268   : > { %v1770_v42 = vpop.f32.mrf.mxu1  ;;  %11671 = vst [vmem:[#allocation35_spill] sm:$0xff] %v10151_v49  ;;  %3284 = vmatpush.bf16.msra.mxu0 %v8890_v21 }
 0x269   : > { %v2442_v8 = vpop.f32.mrf.mxu0  ;;  %v1860_v20 = vadd.f32 %v9939_v61, %v1770_v42  ;;  %v8719_v42 = vld [vmem:[#allocation2 + $0x118] sm:$0xf0] }
 0x26b   : > { %v1949_v15 = vadd.f32 %v9963_v48, %v1860_v20  ;;  %1809 = vmatmul.bf16.gmra.mxu1 %v7053_v34  ;;  %v7349_v20 = vor.u32 %v8719_v42, %v7348_v32  ;;  %v8793_v34 = vld [vmem:[#allocation2 + $0x140] sm:$0xf0] }
 0x26c   : > { %2481 = vmatmul.bf16.gmra.mxu0 %v7353_v33  ;;  %v8724_v33 = vld [vmem:[#allocation2 + $0x140] sm:$0xf0] }
 0x26d   : > { %v10149_v10 = vadd.f32 %v2437_v0, %v1949_v15  ;;  %3285 = vmatpush.bf16.msra.mxu0 %v8889_v26  ;;  %v10157_v15 = vpop.f32.mrf.mxu3  ;;  %v8740_v42 = vld [vmem:[#allocation9 + $0x40] sm:$0xff] }
 0x26e   : > { %2509 = vmatpush.bf16.msrb.mxu1 %v8740_v42  ;;  %v8862_v26 = vld [vmem:[#allocation2 + $0x140] sm:$0xf0]  ;;  %v8727_v42 = vld [vmem:[#allocation2 + $0x158] sm:$0xf0] }
 0x270   : > { %v1772_v14 = vpop.f32.mrf.mxu1 }
 0x271   : > { %v2444_v56 = vpop.f32.mrf.mxu0  ;;  %v1862_v61 = vadd.f32 %v9949_v22, %v1772_v14  ;;  %v7064_v14 = vld [vmem:[#allocation2 + $0x138] sm:$0xf] }
 0x272   : > { %v7065_v5 = vor.u32 %v8793_v34, %v7064_v14 }
 0x273   : > { %v1951_v48 = vadd.f32 %v9978_v19, %v1862_v61  ;;  %v7365_v19 = vor.u32 %v8724_v33, %v7364_v44  ;;  %v8888_v61 = vld [vmem:[#allocation9 + $0x1e0] sm:$0xff]  ;;  %v7628_v33 = vld [vmem:[#allocation2 + $0x138] sm:$0xf] }
 0x274   : > { %3252 = vmatmul.bf16.gmra.mxu3 %v7617_v53  ;;  %v10160_v53 = vpop.f32.mrf.mxu2  ;;  %3286 = vmatpush.bf16.msra.mxu0 %v8888_v61  ;;  %v7629_v14 = vor.u32 %v8862_v26, %v7628_v33  ;;  %v8884_v33 = vld [vmem:[#allocation9 + $0x1c0] sm:$0xff] }
 0x275   : > { %v10155_v0 = vadd.f32 %v2439_v30, %v1951_v48  ;;  %11672 = vst [vmem:[#allocation36_spill] sm:$0xff] %v10160_v53  ;;  %v8887_v48 = vld [vmem:[#allocation9 + $0x1d8] sm:$0xff]  ;;  %v7376_v53 = vld [vmem:[#allocation2 + $0x150] sm:$0xf] }
 0x277   : > { %2654 = vmatmul.bf16.gmra.mxu2 %v7349_v20 }
 0x278   : > { %v1775_v36 = vpop.f32.mrf.mxu1  ;;  %3287 = vmatpush.bf16.msra.mxu0 %v8887_v48 }
 0x279   : > { %v2447_v22 = vpop.f32.mrf.mxu0  ;;  %v1865_v21 = vadd.f32 %v9968_v59, %v1775_v36  ;;  %v10165_v59 = vpop.f32.mrf.mxu3  ;;  %v8886_v36 = vld [vmem:[#allocation9 + $0x1d0] sm:$0xff] }
 0x27b   : > { %v1954_v30 = vadd.f32 %v9997_v60, %v1865_v21  ;;  %1814 = vmatmul.bf16.gmra.mxu1 %v7065_v5  ;;  %v8722_v60 = vld [vmem:[#allocation2 + $0x130] sm:$0xf0]  ;;  %v7360_v21 = vld [vmem:[#allocation2 + $0x128] sm:$0xf]  ;;  %v8885_v5 = vld [vmem:[#allocation9 + $0x1c8] sm:$0xff] }
 0x27c   : > { %2486 = vmatmul.bf16.gmra.mxu0 %v7365_v19  ;;  %v7361_v19 = vor.u32 %v8722_v60, %v7360_v21 }
 0x27d   : > { %v10163_v32 = vadd.f32 %v2442_v8, %v1954_v30  ;;  %3288 = vmatpush.bf16.msra.mxu0 %v8886_v36  ;;  %v10169_v8 = vpop.f32.mrf.mxu2  ;;  %v8796_v30 = vld [vmem:[#allocation2 + $0x158] sm:$0xf0] }
 0x27e   : > { %11673 = vst [vmem:[#allocation37_spill] sm:$0xff] %v10169_v8 }
 0x280   : > { %v1777_v20 = vpop.f32.mrf.mxu1 }
 0x281   : > { %v2449_v49 = vpop.f32.mrf.mxu0  ;;  %v1867_v34 = vadd.f32 %v9982_v28, %v1777_v20  ;;  %v7076_v20 = vld [vmem:[#allocation2 + $0x150] sm:$0xf]  ;;  %3289 = vmatpush.bf16.msra.mxu0 %v8885_v5  ;;  %v10174_v36 = vpop.f32.mrf.mxu3 }
 0x283   : > { %v1956_v44 = vadd.f32 %v10010_v27, %v1867_v34  ;;  %v7077_v27 = vor.u32 %v8796_v30, %v7076_v20  ;;  %v7377_v34 = vor.u32 %v8727_v42, %v7376_v53  ;;  %v8725_v53 = vld [vmem:[#allocation2 + $0x148] sm:$0xf0] }
 0x284   : > { %3257 = vmatmul.bf16.gmra.mxu3 %v7629_v14 }
 0x285   : > { %v10171_v61 = vadd.f32 %v2444_v56, %v1956_v44  ;;  %3290 = vmatpush.bf16.msra.mxu0 %v8884_v33  ;;  %v10179_v60 = vpop.f32.mrf.mxu2  ;;  %v8865_v44 = vld [vmem:[#allocation2 + $0x158] sm:$0xf0] }
 0x286   : > { %11674 = vst [vmem:[#allocation38_spill] sm:$0xff] %v10179_v60  ;;  %v7388_v60 = vld [vmem:[#allocation2 + $0x168] sm:$0xf] }
 0x287   : > { %2659 = vmatmul.bf16.gmra.mxu2 %v7361_v19 }
 0x288   : > { %v1780_v48 = vpop.f32.mrf.mxu1 }
 0x289   : > { %v2452_v28 = vpop.f32.mrf.mxu0  ;;  %v1870_v26 = vadd.f32 %v10002_v6, %v1780_v48  ;;  %v7640_v6 = vld [vmem:[#allocation2 + $0x150] sm:$0xf]  ;;  %v7372_v48 = vld [vmem:[#allocation2 + $0x140] sm:$0xf] }
 0x28a   : > { %v7641_v30 = vor.u32 %v8865_v44, %v7640_v6  ;;  %v7373_v20 = vor.u32 %v8725_v53, %v7372_v48  ;;  %v8899_v6 = vld [vmem:[#allocation9 + $0x238] sm:$0xff]  ;;  %v8868_v53 = vld [vmem:[#allocation2 + $0x170] sm:$0xf0] }
 0x28b   : > { %v1959_v14 = vadd.f32 %v10024_v9, %v1870_v26  ;;  %1819 = vmatmul.bf16.gmra.mxu1 %v7077_v27  ;;  %v10183_v9 = vpop.f32.mrf.mxu3  ;;  %v8730_v27 = vld [vmem:[#allocation2 + $0x170] sm:$0xf0] }
 0x28c   : > { %2491 = vmatmul.bf16.gmra.mxu0 %v7377_v34  ;;  %3372 = vmatpush.bf16.msra.mxu1 %v8899_v6 }
 0x28d   : > { %v10177_v56 = vadd.f32 %v2447_v22, %v1959_v14  ;;  %v8799_v22 = vld [vmem:[#allocation2 + $0x170] sm:$0xf0]  ;;  %v7088_v14 = vld [vmem:[#allocation2 + $0x168] sm:$0xf] }
 0x290   : > { %v1782_v21 = vpop.f32.mrf.mxu1 }
 0x291   : > { %v2454_v19 = vpop.f32.mrf.mxu0  ;;  %v1872_v5 = vadd.f32 %v10013_v38, %v1782_v21  ;;  %v10187_v38 = vpop.f32.mrf.mxu2  ;;  %v7089_v21 = vor.u32 %v8799_v22, %v7088_v14  ;;  %v7498_v14 = vld [vmem:[#allocation2 + $0x3c] sm:$0xf0] }
 0x292   : > { %11675 = vst [vmem:[#allocation39_spill] sm:$0xff] %v10187_v38  ;;  %v7652_v38 = vld [vmem:[#allocation2 + $0x168] sm:$0xf] }
 0x293   : > { %v1961_v42 = vadd.f32 %v10045_v62, %v1872_v5  ;;  %v7389_v62 = vor.u32 %v8730_v27, %v7388_v60  ;;  %v7653_v8 = vor.u32 %v8868_v53, %v7652_v38  ;;  %v7384_v60 = vld [vmem:[#allocation2 + $0x158] sm:$0xf] }
 0x294   : > { %3262 = vmatmul.bf16.gmra.mxu3 %v7641_v30  ;;  %v10193_v30 = vpop.f32.mrf.mxu3 }
 0x295   : > { %v10185_v26 = vadd.f32 %v2449_v49, %v1961_v42 }
 0x297   : > { %2664 = vmatmul.bf16.gmra.mxu2 %v7373_v20 }
 0x298   : > { %v1785_v34 = vpop.f32.mrf.mxu1 }
 0x299   : > { %v2457_v33 = vpop.f32.mrf.mxu0  ;;  %v1875_v44 = vadd.f32 %v10027_v13, %v1785_v34  ;;  %v8728_v13 = vld [vmem:[#allocation2 + $0x160] sm:$0xf0]  ;;  %v10196_v22 = vpop.f32.mrf.mxu2 }
 0x29a   : > { %v7385_v27 = vor.u32 %v8728_v13, %v7384_v60  ;;  %v7664_v60 = vld [vmem:[#allocation2 + $0x180] sm:$0xf] }
 0x29b   : > { %v1964_v5 = vadd.f32 %v10049_v52, %v1875_v44  ;;  %1824 = vmatmul.bf16.gmra.mxu1 %v7089_v21 }
 0x29c   : > { %2496 = vmatmul.bf16.gmra.mxu0 %v7389_v62  ;;  %v7100_v62 = vld [vmem:[#allocation2 + $0x180] sm:$0xf]  ;;  %v10202_v53 = vpop.f32.mrf.mxu3 }
 0x29d   : > { %v10191_v49 = vadd.f32 %v2452_v28, %v1964_v5  ;;  %v8802_v28 = vld [vmem:[#allocation2 + $0x188] sm:$0xf0]  ;;  %v8828_v5 = vld [vmem:[#allocation2 + $0x34] sm:$0xf] }
 0x29e   : > { %v7101_v38 = vor.u32 %v8802_v28, %v7100_v62  ;;  %v7501_v6 = vor.u32 %v8828_v5, %v7498_v14  ;;  %v7210_v62 = vld [vmem:[#allocation2 + $0xc] sm:$0xf0] }
 0x2a0   : > { %v1787_v42 = vpop.f32.mrf.mxu1 }
 0x2a1   : > { %v2459_v48 = vpop.f32.mrf.mxu0  ;;  %v1877_v20 = vadd.f32 %v10047_v40, %v1787_v42  ;;  %v8871_v42 = vld [vmem:[#allocation2 + $0x188] sm:$0xf0] }
 0x2a3   : > { %v1966_v52 = vadd.f32 %v10053_v12, %v1877_v20 }
 0x2a4   : > { %3267 = vmatmul.bf16.gmra.mxu3 %v7653_v8  ;;  %v10205_v8 = vpop.f32.mrf.mxu2  ;;  %v10211_v14 = vpop.f32.mrf.mxu3 }
 0x2a5   : > { %v10199_v34 = vadd.f32 %v2454_v19, %v1966_v52 }
 0x2a7   : > { %2669 = vmatmul.bf16.gmra.mxu2 %v7385_v27  ;;  %v7665_v27 = vor.u32 %v8871_v42, %v7664_v60  ;;  %v8831_v42 = vld [vmem:[#allocation2 + $0x4c] sm:$0xf]  ;;  %v8898_v60 = vld [vmem:[#allocation9 + $0x230] sm:$0xff] }
 0x2a8   : > { %v1790_v44 = vpop.f32.mrf.mxu1  ;;  %3373 = vmatpush.bf16.msra.mxu1 %v8898_v60 }
 0x2a9   : > { %v2462_v21 = vpop.f32.mrf.mxu0  ;;  %v1880_v40 = vadd.f32 %v10051_v1, %v1790_v44  ;;  %v8731_v1 = vld [vmem:[#allocation2 + $0x178] sm:$0xf0]  ;;  %v8684_v44 = vld [vmem:[#allocation2 + $0x4] sm:$0xf] }
 0x2ab   : > { %v1969_v12 = vadd.f32 %v10057_v25, %v1880_v40  ;;  %1829 = vmatmul.bf16.gmra.mxu1 %v7101_v38  ;;  %v7396_v25 = vld [vmem:[#allocation2 + $0x170] sm:$0xf] }
 0x2ac   : > { %3291 = vmatmul.bf16.vlgmr.msra.gmra.mxu0 %v7501_v6  ;;  %v7397_v5 = vor.u32 %v8731_v1, %v7396_v25  ;;  %v10215_v38 = vpop.f32.mrf.mxu2  ;;  %v7213_v6 = vor.u32 %v8684_v44, %v7210_v62  ;;  %v7222_v62 = vld [vmem:[#allocation2 + $0x24] sm:$0xf0] }
 0x2ad   : > { %v10207_v19 = vadd.f32 %v2457_v33, %v1969_v12  ;;  %v7510_v33 = vld [vmem:[#allocation2 + $0x54] sm:$0xf0] }
 0x2b0   : > { %v1792_v20 = vpop.f32.mrf.mxu1 }
 0x2b1   : > { %v2464_v13 = vpop.f32.mrf.mxu0  ;;  %v1882_v52 = vadd.f32 %v10055_v24, %v1792_v20 }
 0x2b3   : > { %v1971_v28 = vadd.f32 %v10061_v41, %v1882_v52  ;;  %v7513_v41 = vor.u32 %v8831_v42, %v7510_v33 }
 0x2b4   : > { %3272 = vmatmul.bf16.gmra.mxu3 %v7665_v27 }
 0x2b5   : > { %v10213_v40 = vadd.f32 %v2459_v48, %v1971_v28 }
 0x2b7   : > { %2674 = vmatmul.bf16.gmra.mxu2 %v7397_v5  ;;  %v7522_v5 = vld [vmem:[#allocation2 + $0x6c] sm:$0xf0] }
 0x2b8   : > { %v1795_v24 = vpop.f32.mrf.mxu1 }
 0x2b9   : > { %v2467_v12 = vpop.f32.mrf.mxu0  ;;  %v1885_v20 = vadd.f32 %v10059_v29, %v1795_v24  ;;  %v8687_v24 = vld [vmem:[#allocation2 + $0x1c] sm:$0xf] }
 0x2ba   : > { %v7225_v42 = vor.u32 %v8687_v24, %v7222_v62  ;;  %v8837_v62 = vld [vmem:[#allocation2 + $0x7c] sm:$0xf] }
 0x2bb   : > { %v1974_v52 = vadd.f32 %v10065_v58, %v1885_v20  ;;  %2510 = vmatmul.bf16.vlgmr.msrb.gmra.mxu1 %v7213_v6  ;;  %v8834_v58 = vld [vmem:[#allocation2 + $0x64] sm:$0xf] }
 0x2bc   : > { %3296 = vmatmul.bf16.gmra.mxu0 %v7513_v41  ;;  %v7525_v20 = vor.u32 %v8834_v58, %v7522_v5  ;;  %v8897_v58 = vld [vmem:[#allocation9 + $0x228] sm:$0xff] }
 0x2bd   : > { %v10219_v27 = vadd.f32 %v2462_v21, %v1974_v52  ;;  %3374 = vmatpush.bf16.msra.mxu1 %v8897_v58  ;;  %v7258_v58 = vld [vmem:[#allocation2 + $0x6c] sm:$0xf0] }
 0x2c0   : > { %v1797_v48 = vpop.f32.mrf.mxu1 }
 0x2c1   : > { %v2469_v1 = vpop.f32.mrf.mxu0  ;;  %v1887_v28 = vadd.f32 %v10063_v50, %v1797_v48  ;;  %v7234_v48 = vld [vmem:[#allocation2 + $0x3c] sm:$0xf0] }
 0x2c3   : > { %v1976_v25 = vadd.f32 %v10069_v23, %v1887_v28  ;;  %v7534_v28 = vld [vmem:[#allocation2 + $0x84] sm:$0xf0] }
 0x2c5   : > { %v10223_v44 = vadd.f32 %v2464_v13, %v1976_v25 }
 0x2c8   : > { %v1800_v29 = vpop.f32.mrf.mxu1 }
 0x2c9   : > { %v2472_v33 = vpop.f32.mrf.mxu0  ;;  %v1890_v6 = vadd.f32 %v10067_v7, %v1800_v29  ;;  %v8690_v7 = vld [vmem:[#allocation2 + $0x34] sm:$0xf]  ;;  %v7537_v29 = vor.u32 %v8837_v62, %v7534_v28 }
 0x2cb   : > { %v1979_v21 = vadd.f32 %v10073_v39, %v1890_v6  ;;  %2515 = vmatmul.bf16.gmra.mxu1 %v7225_v42  ;;  %v7237_v39 = vor.u32 %v8690_v7, %v7234_v48  ;;  %v11677_v7 = vld [vmem:[#allocation25_spill] sm:$0xff] }
 0x2cc   : > { %3301 = vmatmul.bf16.gmra.mxu0 %v7525_v20 }
 0x2cd   : > { %v10227_v41 = vadd.f32 %v2467_v12, %v1979_v21  ;;  %v7546_v21 = vld [vmem:[#allocation2 + $0x9c] sm:$0xf0] }
 0x2d0   : > { %v1802_v50 = vpop.f32.mrf.mxu1 }
 0x2d1   : > { %v2474_v23 = vpop.f32.mrf.mxu0  ;;  %v1892_v13 = vadd.f32 %v10071_v31, %v1802_v50 }
 0x2d3   : > { %v1981_v52 = vadd.f32 %v10077_v4, %v1892_v13  ;;  %v8693_v13 = vld [vmem:[#allocation2 + $0x4c] sm:$0xf] }
 0x2d5   : > { %v10231_v60 = vadd.f32 %v2469_v1, %v1981_v52  ;;  %v8840_v52 = vld [vmem:[#allocation2 + $0x94] sm:$0xf] }
 0x2d8   : > { %v1805_v25 = vpop.f32.mrf.mxu1 }
 0x2d9   : > { %v1895_v5 = vadd.f32 %v10075_v51, %v1805_v25  ;;  %v2477_v24 = vpop.f32.mrf.mxu0  ;;  %v7246_v51 = vld [vmem:[#allocation2 + $0x54] sm:$0xf0]  ;;  %v7549_v25 = vor.u32 %v8840_v52, %v7546_v21  ;;  %v8843_v21 = vld [vmem:[#allocation2 + $0xac] sm:$0xf] }
 0x2da   : > { %v7249_v28 = vor.u32 %v8693_v13, %v7246_v51  ;;  %v8696_v51 = vld [vmem:[#allocation2 + $0x64] sm:$0xf] }
 0x2db   : > { %v1984_v12 = vadd.f32 %v10081_v37, %v1895_v5  ;;  %2520 = vmatmul.bf16.gmra.mxu1 %v7237_v39  ;;  %v11676_v37 = vld [vmem:[#allocation23_spill] sm:$0xff]  ;;  %v11678_v5 = vld [vmem:[#allocation24_spill] sm:$0xff]  ;;  %v7261_v52 = vor.u32 %v8696_v51, %v7258_v58  ;;  %v11683_v51 = vld [vmem:[#allocation30_spill] sm:$0xff] }
 0x2dc   : > { %3306 = vmatmul.bf16.gmra.mxu0 %v7537_v29  ;;  %v11679_v39 = vld [vmem:[#allocation27_spill] sm:$0xff] }
 0x2dd   : > { %v10235_v31 = vadd.f32 %v2472_v33, %v1984_v12 }
 0x2e0   : > { %v1807_v4 = vpop.f32.mrf.mxu1 }
 0x2e1   : > { %v1897_v1 = vadd.f32 %v10079_v45, %v1807_v4  ;;  %v2479_v42 = vpop.f32.mrf.mxu0  ;;  %v7558_v4 = vld [vmem:[#allocation2 + $0xb4] sm:$0xf0] }
 0x2e3   : > { %v1986_v6 = vadd.f32 %v10085_v63, %v1897_v1 }
 0x2e5   : > { %v10239_v20 = vadd.f32 %v2474_v23, %v1986_v6 }
 0x2e8   : > { %v1810_v50 = vpop.f32.mrf.mxu1 }
 0x2e9   : > { %v1900_v48 = vadd.f32 %v11676_v37, %v1810_v50  ;;  %v2482_v45 = vpop.f32.mrf.mxu0  ;;  %v11680_v50 = vld [vmem:[#allocation26_spill] sm:$0xff]  ;;  %v7561_v37 = vor.u32 %v8843_v21, %v7558_v4  ;;  %v8699_v4 = vld [vmem:[#allocation2 + $0x7c] sm:$0xf] }
 0x2eb   : > { %v1989_v33 = vadd.f32 %v11677_v7, %v1900_v48  ;;  %2525 = vmatmul.bf16.gmra.mxu1 %v7249_v28  ;;  %v8896_v28 = vld [vmem:[#allocation9 + $0x220] sm:$0xff] }
 0x2ec   : > { %3311 = vmatmul.bf16.gmra.mxu0 %v7549_v25  ;;  %3375 = vmatpush.bf16.msra.mxu1 %v8896_v28  ;;  %v11682_v7 = vld [vmem:[#allocation28_spill] sm:$0xff] }
 0x2ed   : > { %v10243_v62 = vadd.f32 %v2477_v24, %v1989_v33  ;;  %v11681_v24 = vld [vmem:[#allocation29_spill] sm:$0xff] }
 0x2f0   : > { %v1812_v63 = vpop.f32.mrf.mxu1 }
 0x2f1   : > { %v1902_v23 = vadd.f32 %v11678_v5, %v1812_v63  ;;  %v2484_v1 = vpop.f32.mrf.mxu0 }
 0x2f3   : > { %v1991_v29 = vadd.f32 %v11679_v39, %v1902_v23  ;;  %v7270_v39 = vld [vmem:[#allocation2 + $0x84] sm:$0xf0] }
 0x2f5   : > { %v10247_v12 = vadd.f32 %v2479_v42, %v1991_v29  ;;  %v7570_v29 = vld [vmem:[#allocation2 + $0xcc] sm:$0xf0] }
 0x2f8   : > { %v1815_v6 = vpop.f32.mrf.mxu1 }
 0x2f9   : > { %v1905_v13 = vadd.f32 %v11680_v50, %v1815_v6  ;;  %v2487_v63 = vpop.f32.mrf.mxu0  ;;  %v8846_v6 = vld [vmem:[#allocation2 + $0xc4] sm:$0xf]  ;;  %v7273_v50 = vor.u32 %v8699_v4, %v7270_v39  ;;  %v8702_v39 = vld [vmem:[#allocation2 + $0x94] sm:$0xf] }
 0x2fb   : > { %v1994_v48 = vadd.f32 %v11681_v24, %v1905_v13  ;;  %2530 = vmatmul.bf16.gmra.mxu1 %v7261_v52  ;;  %v7573_v13 = vor.u32 %v8846_v6, %v7570_v29  ;;  %v8849_v29 = vld [vmem:[#allocation2 + $0xdc] sm:$0xf] }
 0x2fc   : > { %3316 = vmatmul.bf16.gmra.mxu0 %v7561_v37 }
 0x2fd   : > { %v10251_v25 = vadd.f32 %v2482_v45, %v1994_v48 }
 0x300   : > { %v1817_v42 = vpop.f32.mrf.mxu1 }
 0x301   : > { %v1907_v33 = vadd.f32 %v11682_v7, %v1817_v42  ;;  %v2489_v52 = vpop.f32.mrf.mxu0  ;;  %v7282_v7 = vld [vmem:[#allocation2 + $0x9c] sm:$0xf0] }
 0x302   : > { %v7285_v4 = vor.u32 %v8702_v39, %v7282_v7  ;;  %v8852_v7 = vld [vmem:[#allocation2 + $0xf4] sm:$0xf] }
 0x303   : > { %v1996_v5 = vadd.f32 %v10102_v43, %v1907_v33  ;;  %v11684_v43 = vld [vmem:[#allocation32_spill] sm:$0xff]  ;;  %v7582_v33 = vld [vmem:[#allocation2 + $0xe4] sm:$0xf0] }
 0x304   : > { %v7585_v6 = vor.u32 %v8849_v29, %v7582_v33 }
 0x305   : > { %v10255_v23 = vadd.f32 %v2484_v1, %v1996_v5 }
 0x308   : > { %v1820_v58 = vpop.f32.mrf.mxu1 }
 0x309   : > { %v1910_v21 = vadd.f32 %v11683_v51, %v1820_v58  ;;  %v2492_v42 = vpop.f32.mrf.mxu0  ;;  %v11685_v58 = vld [vmem:[#allocation34_spill] sm:$0xff]  ;;  %v8895_v51 = vld [vmem:[#allocation9 + $0x218] sm:$0xff] }
 0x30a   : > { %3376 = vmatpush.bf16.msra.mxu1 %v8895_v51  ;;  %v8708_v51 = vld [vmem:[#allocation2 + $0xc4] sm:$0xf] }
 0x30b   : > { %v1999_v45 = vadd.f32 %v10111_v16, %v1910_v21  ;;  %2535 = vmatmul.bf16.gmra.mxu1 %v7273_v50 }
 0x30c   : > { %3321 = vmatmul.bf16.gmra.mxu0 %v7573_v13 }
 0x30d   : > { %v10259_v37 = vadd.f32 %v2487_v63, %v1999_v45 }
 0x310   : > { %v1822_v24 = vpop.f32.mrf.mxu1 }
 0x311   : > { %v1912_v1 = vadd.f32 %v11684_v43, %v1822_v24  ;;  %v7294_v24 = vld [vmem:[#allocation2 + $0xb4] sm:$0xf0]  ;;  %v7594_v43 = vld [vmem:[#allocation2 + $0xfc] sm:$0xf0] }
 0x313   : > { %v2001_v48 = vadd.f32 %v10121_v35, %v1912_v1  ;;  %v2494_v35 = vpop.f32.mrf.mxu0 }
 0x315   : > { %v10263_v28 = vadd.f32 %v2489_v52, %v2001_v48  ;;  %v8705_v48 = vld [vmem:[#allocation2 + $0xac] sm:$0xf] }
 0x316   : > { %v7297_v33 = vor.u32 %v8705_v48, %v7294_v24  ;;  %v8894_v24 = vld [vmem:[#allocation9 + $0x210] sm:$0xff]  ;;  %v7618_v48 = vld [vmem:[#allocation2 + $0x12c] sm:$0xf0] }
 0x317   : > { %3377 = vmatpush.bf16.msra.mxu1 %v8894_v24 }
 0x318   : > { %v1825_v5 = vpop.f32.mrf.mxu1 }
 0x319   : > { %v1915_v16 = vadd.f32 %v11685_v58, %v1825_v5  ;;  %v7597_v5 = vor.u32 %v8852_v7, %v7594_v43  ;;  %v11687_v43 = vld [vmem:[#allocation33_spill] sm:$0xff] }
 0x31b   : > { %v2004_v63 = vadd.f32 %v10129_v54, %v1915_v16  ;;  %2540 = vmatmul.bf16.gmra.mxu1 %v7285_v4  ;;  %v2497_v39 = vpop.f32.mrf.mxu0 }
 0x31c   : > { %3326 = vmatmul.bf16.gmra.mxu0 %v7585_v6  ;;  %v7306_v6 = vld [vmem:[#allocation2 + $0xcc] sm:$0xf0] }
 0x31d   : > { %v10267_v21 = vadd.f32 %v2492_v42, %v2004_v63  ;;  %v7606_v63 = vld [vmem:[#allocation2 + $0x114] sm:$0xf0] }
 0x320   : > { %v1827_v50 = vpop.f32.mrf.mxu1 }
 0x321   : > { %v1917_v13 = vadd.f32 %v10124_v46, %v1827_v50  ;;  %v11686_v50 = vld [vmem:[#allocation31_spill] sm:$0xff] }
 0x323   : > { %v2006_v45 = vadd.f32 %v10138_v11, %v1917_v13  ;;  %v2499_v16 = vpop.f32.mrf.mxu0 }
 0x325   : > { %v10271_v52 = vadd.f32 %v2494_v35, %v2006_v45  ;;  %v8855_v35 = vld [vmem:[#allocation2 + $0x10c] sm:$0xf] }
 0x326   : > { %v7609_v45 = vor.u32 %v8855_v35, %v7606_v63  ;;  %v8714_v63 = vld [vmem:[#allocation2 + $0xf4] sm:$0xf] }
 0x328   : > { %v1830_v1 = vpop.f32.mrf.mxu1 }
 0x329   : > { %v1920_v54 = vadd.f32 %v10133_v18, %v1830_v1  ;;  %v7318_v1 = vld [vmem:[#allocation2 + $0xe4] sm:$0xf0] }
 0x32b   : > { %v2009_v42 = vadd.f32 %v10147_v57, %v1920_v54  ;;  %2545 = vmatmul.bf16.gmra.mxu1 %v7297_v33  ;;  %v7309_v57 = vor.u32 %v8708_v51, %v7306_v6  ;;  %v8711_v54 = vld [vmem:[#allocation2 + $0xdc] sm:$0xf]  ;;  %v8858_v33 = vld [vmem:[#allocation2 + $0x124] sm:$0xf]  ;;  %v10293_v51 = vpop.f32.mrf.mxu0 }
 0x32c   : > { %3331 = vmatmul.bf16.gmra.mxu0 %v7597_v5 }
 0x32d   : > { %v10275_v29 = vadd.f32 %v2497_v39, %v2009_v42  ;;  %v7321_v39 = vor.u32 %v8711_v54, %v7318_v1  ;;  %v7621_v42 = vor.u32 %v8858_v33, %v7618_v48  ;;  %v8717_v48 = vld [vmem:[#allocation2 + $0x10c] sm:$0xf] }
 0x330   : > { %v1832_v46 = vpop.f32.mrf.mxu1 }
 0x331   : > { %v1922_v11 = vadd.f32 %v10143_v47, %v1832_v46 }
 0x333   : > { %v2011_v58 = vadd.f32 %v10157_v15, %v1922_v11  ;;  %v10301_v24 = vpop.f32.mrf.mxu0 }
 0x335   : > { %v10279_v4 = vadd.f32 %v2499_v16, %v2011_v58  ;;  %v7330_v58 = vld [vmem:[#allocation2 + $0xfc] sm:$0xf0]  ;;  %v7630_v16 = vld [vmem:[#allocation2 + $0x144] sm:$0xf0] }
 0x338   : > { %v2511_v18 = vpop.f32.mrf.mxu1 }
 0x339   : > { %v10282_v13 = vadd.f32 %v2511_v18, %v11686_v50  ;;  %v8861_v18 = vld [vmem:[#allocation2 + $0x13c] sm:$0xf] }
 0x33a   : > { %v7633_v50 = vor.u32 %v8861_v18, %v7630_v16  ;;  %v8867_v18 = vld [vmem:[#allocation2 + $0x16c] sm:$0xf] }
 0x33b   : > { %2550 = vmatmul.bf16.gmra.mxu1 %v7309_v57  ;;  %v8893_v57 = vld [vmem:[#allocation9 + $0x208] sm:$0xff] }
 0x33c   : > { %3336 = vmatmul.bf16.gmra.mxu0 %v7609_v45  ;;  %3378 = vmatpush.bf16.msra.mxu1 %v8893_v57  ;;  %v8892_v57 = vld [vmem:[#allocation9 + $0x200] sm:$0xff] }
 0x340   : > { %v2513_v47 = vpop.f32.mrf.mxu1  ;;  %3379 = vmatpush.bf16.msra.mxu1 %v8892_v57 }
 0x341   : > { %v10285_v15 = vadd.f32 %v2513_v47, %v11687_v43  ;;  %v7342_v47 = vld [vmem:[#allocation2 + $0x114] sm:$0xf0]  ;;  %v7642_v43 = vld [vmem:[#allocation2 + $0x15c] sm:$0xf0] }
 0x342   : > { %v7345_v54 = vor.u32 %v8717_v48, %v7342_v47 }
 0x348   : > { %v2516_v7 = vpop.f32.mrf.mxu1 }
 0x349   : > { %v10288_v5 = vadd.f32 %v2516_v7, %v10119_v2  ;;  %v7333_v2 = vor.u32 %v8714_v63, %v7330_v58  ;;  %v8864_v7 = vld [vmem:[#allocation2 + $0x154] sm:$0xf]  ;;  %v7654_v58 = vld [vmem:[#allocation2 + $0x174] sm:$0xf0]  ;;  %v8720_v63 = vld [vmem:[#allocation2 + $0x124] sm:$0xf] }
 0x34a   : > { %v7645_v33 = vor.u32 %v8864_v7, %v7642_v43  ;;  %v7366_v43 = vld [vmem:[#allocation2 + $0x144] sm:$0xf0]  ;;  %v8723_v7 = vld [vmem:[#allocation2 + $0x13c] sm:$0xf] }
 0x34b   : > { %2555 = vmatmul.bf16.gmra.mxu1 %v7321_v39  ;;  %v10306_v39 = vpop.f32.mrf.mxu0 }
 0x34c   : > { %3341 = vmatmul.bf16.gmra.mxu0 %v7621_v42 }
 0x350   : > { %v2518_v46 = vpop.f32.mrf.mxu1 }
 0x351   : > { %v10291_v11 = vadd.f32 %v2518_v46, %v10127_v3  ;;  %v7354_v46 = vld [vmem:[#allocation2 + $0x12c] sm:$0xf0] }
 0x353   : > { %v10311_v16 = vpop.f32.mrf.mxu0 }
 0x358   : > { %v2521_v6 = vpop.f32.mrf.mxu1 }
 0x359   : > { %v10296_v35 = vadd.f32 %v2521_v6, %v10135_v17 }
 0x35b   : > { %2560 = vmatmul.bf16.gmra.mxu1 %v7333_v2  ;;  %v7357_v2 = vor.u32 %v8720_v63, %v7354_v46  ;;  %v10316_v47 = vpop.f32.mrf.mxu0 }
 0x35c   : > { %3346 = vmatmul.bf16.gmra.mxu0 %v7633_v50  ;;  %v7657_v50 = vor.u32 %v8867_v18, %v7654_v58  ;;  %v8726_v18 = vld [vmem:[#allocation2 + $0x154] sm:$0xf] }
 0x360   : > { %v2523_v45 = vpop.f32.mrf.mxu1 }
 0x361   : > { %v10299_v3 = vadd.f32 %v2523_v45, %v10141_v55 }
 0x363   : > { %v10324_v46 = vpop.f32.mrf.mxu0 }
 0x368   : > { %v2526_v1 = vpop.f32.mrf.mxu1 }
 0x369   : > { %v10304_v17 = vadd.f32 %v2526_v1, %v10149_v10  ;;  %v7666_v1 = vld [vmem:[#allocation2 + $0x18c] sm:$0xf0] }
 0x36b   : > { %2565 = vmatmul.bf16.gmra.mxu1 %v7345_v54  ;;  %v8870_v54 = vld [vmem:[#allocation2 + $0x184] sm:$0xf] }
 0x36c   : > { %3351 = vmatmul.bf16.gmra.mxu0 %v7645_v33  ;;  %v7369_v33 = vor.u32 %v8723_v7, %v7366_v43 }
 0x370   : > { %v2528_v42 = vpop.f32.mrf.mxu1 }
 0x371   : > { %v10309_v55 = vadd.f32 %v2528_v42, %v10155_v0  ;;  %v7669_v42 = vor.u32 %v8870_v54, %v7666_v1  ;;  %v8729_v1 = vld [vmem:[#allocation2 + $0x16c] sm:$0xf] }
 0x378   : > { %v2531_v6 = vpop.f32.mrf.mxu1 }
 0x379   : > { %v10314_v10 = vadd.f32 %v2531_v6, %v10163_v32 }
 0x37b   : > { %2570 = vmatmul.bf16.gmra.mxu1 %v7357_v2 }
 0x37c   : > { %3356 = vmatmul.bf16.gmra.mxu0 %v7657_v50 }
 0x380   : > { %v2533_v45 = vpop.f32.mrf.mxu1 }
 0x381   : > { %v10319_v0 = vadd.f32 %v2533_v45, %v10171_v61  ;;  %v7378_v61 = vld [vmem:[#allocation2 + $0x15c] sm:$0xf0]  ;;  %v7390_v45 = vld [vmem:[#allocation2 + $0x174] sm:$0xf0] }
 0x382   : > { %v7381_v50 = vor.u32 %v8726_v18, %v7378_v61 }
 0x388   : > { %v2536_v48 = vpop.f32.mrf.mxu1 }
 0x389   : > { %v10322_v32 = vadd.f32 %v2536_v48, %v10177_v56 }
 0x38b   : > { %2575 = vmatmul.bf16.gmra.mxu1 %v7369_v33 }
 0x38c   : > { %3361 = vmatmul.bf16.gmra.mxu0 %v7669_v42  ;;  %v7504_v42 = vld [vmem:[#allocation2 + $0x38] sm:$0xf] }
 0x390   : > { %v2538_v58 = vpop.f32.mrf.mxu1 }
 0x391   : > { %v10327_v6 = vadd.f32 %v2538_v58, %v10185_v26  ;;  %v7393_v26 = vor.u32 %v8729_v1, %v7390_v45  ;;  %v10353_v1 = vpop.f32.mrf.mxu3 }
 0x398   : > { %v2541_v63 = vpop.f32.mrf.mxu1 }
 0x399   : > { %v10330_v2 = vadd.f32 %v2541_v63, %v10191_v49  ;;  %v8830_v49 = vld [vmem:[#allocation2 + $0x40] sm:$0xf0] }
 0x39b   : > { %2580 = vmatmul.bf16.gmra.mxu1 %v7381_v50  ;;  %v7516_v50 = vld [vmem:[#allocation2 + $0x50] sm:$0xf] }
 0x3a0   : > { %v2543_v56 = vpop.f32.mrf.mxu1 }
 0x3a1   : > { %v10333_v57 = vadd.f32 %v2543_v56, %v10199_v34  ;;  %v7505_v34 = vor.u32 %v8830_v49, %v7504_v42  ;;  %v10360_v42 = vpop.f32.mrf.mxu3 }
 0x3a8   : > { %v2546_v43 = vpop.f32.mrf.mxu1 }
 0x3a9   : > { %v10336_v48 = vadd.f32 %v2546_v43, %v10207_v19  ;;  %v8833_v19 = vld [vmem:[#allocation2 + $0x58] sm:$0xf0] }
 0x3ab   : > { %2585 = vmatmul.bf16.gmra.mxu1 %v7393_v26 }
 0x3b0   : > { %v2548_v7 = vpop.f32.mrf.mxu1 }
 0x3b1   : > { %v10339_v54 = vadd.f32 %v2548_v7, %v10213_v40  ;;  %v7517_v40 = vor.u32 %v8833_v19, %v7516_v50  ;;  %v7528_v7 = vld [vmem:[#allocation2 + $0x68] sm:$0xf] }
 0x3b3   : > { %11688 = vst [vmem:[#allocation23_spill] sm:$0xff] %v10339_v54 }
 0x3b8   : > { %v2551_v33 = vpop.f32.mrf.mxu1 }
 0x3b9   : > { %v10342_v58 = vadd.f32 %v2551_v33, %v10219_v27  ;;  %v8836_v27 = vld [vmem:[#allocation2 + $0x70] sm:$0xf0]  ;;  %v10358_v33 = vpop.f32.mrf.mxu0 }
 0x3ba   : > { %v7529_v49 = vor.u32 %v8836_v27, %v7528_v7  ;;  %v8842_v7 = vld [vmem:[#allocation2 + $0xa0] sm:$0xf0] }
 0x3bb   : > { %11689 = vst [vmem:[#allocation25_spill] sm:$0xff] %v10342_v58  ;;  %3380 = vmatmul.bf16.vlgmr.msra.gmra.mxu1 %v7505_v34  ;;  %v9041_v58 = vld [vmem:[#allocation9 + $0x3a8] sm:$0xff] }
 0x3c0   : > { %v2553_v61 = vpop.f32.mrf.mxu1 }
 0x3c1   : > { %v10345_v63 = vadd.f32 %v2553_v61, %v10223_v44  ;;  %v10365_v61 = vpop.f32.mrf.mxu0 }
 0x3c3   : > { %11690 = vst [vmem:[#allocation24_spill] sm:$0xff] %v10345_v63 }
 0x3c8   : > { %v2556_v18 = vpop.f32.mrf.mxu1 }
 0x3c9   : > { %v10348_v56 = vadd.f32 %v2556_v18, %v10227_v41  ;;  %v7540_v18 = vld [vmem:[#allocation2 + $0x80] sm:$0xf] }
 0x3cb   : > { %11691 = vst [vmem:[#allocation27_spill] sm:$0xff] %v10348_v56  ;;  %3385 = vmatmul.bf16.gmra.mxu1 %v7517_v40  ;;  %v10370_v40 = vpop.f32.mrf.mxu3 }
 0x3d0   : > { %v2558_v45 = vpop.f32.mrf.mxu1 }
 0x3d1   : > { %v10351_v43 = vadd.f32 %v2558_v45, %v10231_v60  ;;  %v8839_v60 = vld [vmem:[#allocation2 + $0x88] sm:$0xf0] }
 0x3d3   : > { %11692 = vst [vmem:[#allocation26_spill] sm:$0xff] %v10351_v43  ;;  %v7576_v43 = vld [vmem:[#allocation2 + $0xc8] sm:$0xf] }
 0x3d8   : > { %v2561_v26 = vpop.f32.mrf.mxu1 }
 0x3d9   : > { %v10356_v44 = vadd.f32 %v2561_v26, %v10235_v31  ;;  %v7541_v31 = vor.u32 %v8839_v60, %v7540_v18  ;;  %v10375_v26 = vpop.f32.mrf.mxu0 }
 0x3db   : > { %11693 = vst [vmem:[#allocation29_spill] sm:$0xff] %v10356_v44  ;;  %3390 = vmatmul.bf16.gmra.mxu1 %v7529_v49 }
 0x3e0   : > { %v2563_v41 = vpop.f32.mrf.mxu1 }
 0x3e1   : > { %v10363_v34 = vadd.f32 %v2563_v41, %v10239_v20  ;;  %v10377_v20 = vpop.f32.mrf.mxu3  ;;  %v7552_v41 = vld [vmem:[#allocation2 + $0x98] sm:$0xf]  ;;  %v10382_v60 = vpop.f32.mrf.mxu0 }
 0x3e3   : > { %11694 = vst [vmem:[#allocation28_spill] sm:$0xff] %v10363_v34 }
 0x3e8   : > { %v2566_v19 = vpop.f32.mrf.mxu1 }
 0x3e9   : > { %v10368_v50 = vadd.f32 %v2566_v19, %v10243_v62  ;;  %v7553_v62 = vor.u32 %v8842_v7, %v7552_v41  ;;  %v10384_v19 = vpop.f32.mrf.mxu3 }
 0x3eb   : > { %11695 = vst [vmem:[#allocation30_spill] sm:$0xff] %v10368_v50  ;;  %3395 = vmatmul.bf16.gmra.mxu1 %v7541_v31  ;;  %v10389_v31 = vpop.f32.mrf.mxu0  ;;  %v7564_v50 = vld [vmem:[#allocation2 + $0xb0] sm:$0xf] }
 0x3f0   : > { %v2568_v45 = vpop.f32.mrf.mxu1 }
 0x3f1   : > { %v10373_v27 = vadd.f32 %v2568_v45, %v10247_v12  ;;  %v8845_v45 = vld [vmem:[#allocation2 + $0xb8] sm:$0xf0]  ;;  %v10391_v44 = vpop.f32.mrf.mxu3 }
 0x3f2   : > { %v7565_v7 = vor.u32 %v8845_v45, %v7564_v50  ;;  %v9034_v45 = vld [vmem:[#allocation9 + $0x370] sm:$0xff] }
 0x3f3   : > { %11696 = vst [vmem:[#allocation32_spill] sm:$0xff] %v10373_v27 }
 0x3f8   : > { %v2571_v49 = vpop.f32.mrf.mxu1 }
 0x3f9   : > { %v10380_v34 = vadd.f32 %v2571_v49, %v10251_v25  ;;  %v10396_v49 = vpop.f32.mrf.mxu0 }
 0x3fb   : > { %11697 = vst [vmem:[#allocation34_spill] sm:$0xff] %v10380_v34  ;;  %3400 = vmatmul.bf16.gmra.mxu1 %v7553_v62 }
 0x400   : > { %v2573_v18 = vpop.f32.mrf.mxu1 }
 0x401   : > { %v10387_v12 = vadd.f32 %v2573_v18, %v10255_v23  ;;  %v10401_v23 = vpop.f32.mrf.mxu3  ;;  %v9035_v18 = vld [vmem:[#allocation9 + $0x378] sm:$0xff] }
 0x402   : > { %4725 = vmatpush.bf16.msra.mxu3 %v9035_v18 }
 0x403   : > { %11698 = vst [vmem:[#allocation31_spill] sm:$0xff] %v10387_v12  ;;  %v8848_v12 = vld [vmem:[#allocation2 + $0xd0] sm:$0xf0] }
 0x406   : > { %4726 = vmatpush.bf16.msra.mxu3 %v9034_v45 }
 0x408   : > { %v2576_v27 = vpop.f32.mrf.mxu1 }
 0x409   : > { %v10394_v25 = vadd.f32 %v2576_v27, %v10259_v37  ;;  %v7577_v37 = vor.u32 %v8848_v12, %v7576_v43  ;;  %v10406_v27 = vpop.f32.mrf.mxu0  ;;  %v10408_v50 = vpop.f32.mrf.mxu3  ;;  %v7676_v43 = vld [vmem:[#allocation2 + $0x198] sm:$0xf]  ;;  %v8874_v12 = vld [vmem:[#allocation2 + $0x1a0] sm:$0xf0] }
 0x40a   : > { %v7677_v45 = vor.u32 %v8874_v12, %v7676_v43  ;;  %v7678_v12 = vld [vmem:[#allocation2 + $0x1a4] sm:$0xf0] }
 0x40b   : > { %11699 = vst [vmem:[#allocation33_spill] sm:$0xff] %v10394_v25  ;;  %3405 = vmatmul.bf16.gmra.mxu1 %v7565_v7  ;;  %v9043_v25 = vld [vmem:[#allocation9 + $0x3b8] sm:$0xff] }
 0x40c   : > { %4814 = vmatpush.bf16.msrb.mxu0 %v9043_v25  ;;  %3277 = vmatmul.bf16.gmra.mxu3 %v7677_v45  ;;  %v9028_v45 = vld [vmem:[#allocation9 + $0x340] sm:$0xff] }
 0x410   : > { %v2578_v41 = vpop.f32.mrf.mxu1 }
 0x411   : > { %v10399_v62 = vadd.f32 %v2578_v41, %v10263_v28  ;;  %v9033_v41 = vld [vmem:[#allocation9 + $0x368] sm:$0xff]  ;;  %v10413_v18 = vpop.f32.mrf.mxu0 }
 0x412   : > { %4727 = vmatpush.bf16.msra.mxu3 %v9033_v41  ;;  %v9042_v41 = vld [vmem:[#allocation9 + $0x3b0] sm:$0xff] }
 0x413   : > { %11700 = vst [vmem:[#allocation40_spill] sm:$0xff] %v10399_v62  ;;  %v9032_v62 = vld [vmem:[#allocation9 + $0x360] sm:$0xff]  ;;  %4815 = vmatpush.bf16.msrb.mxu0 %v9042_v41  ;;  %v7600_v41 = vld [vmem:[#allocation2 + $0xf8] sm:$0xf] }
 0x416   : > { %4728 = vmatpush.bf16.msra.mxu3 %v9032_v62 }
 0x417   : > { %4816 = vmatpush.bf16.msrb.mxu0 %v9041_v58  ;;  %v3293_v58 = vadd.f32 %v10293_v51, %v10165_v59  ;;  %v10437_v59 = vstv %s7782_s13 }
 0x418   : > { %v2581_v34 = vpop.f32.mrf.mxu1 }
 0x419   : > { %v10404_v56 = vadd.f32 %v2581_v34, %v10267_v21  ;;  %v8851_v21 = vld [vmem:[#allocation2 + $0xe8] sm:$0xf0]  ;;  %v10415_v34 = vpop.f32.mrf.mxu3  ;;  %v10420_v54 = vpop.f32.mrf.mxu0 }
 0x41b   : > { %11701 = vst [vmem:[#allocation41_spill] sm:$0xff] %v10404_v56  ;;  %3410 = vmatmul.bf16.gmra.mxu1 %v7577_v37  ;;  %v7588_v56 = vld [vmem:[#allocation2 + $0xe0] sm:$0xf] }
 0x420   : > { %v2583_v28 = vpop.f32.mrf.mxu1 }
 0x421   : > { %v10411_v7 = vadd.f32 %v2583_v28, %v10271_v52  ;;  %v7589_v52 = vor.u32 %v8851_v21, %v7588_v56  ;;  %v9031_v28 = vld [vmem:[#allocation9 + $0x358] sm:$0xff]  ;;  %v10422_v62 = vpop.f32.mrf.mxu3  ;;  %v9040_v56 = vld [vmem:[#allocation9 + $0x3a0] sm:$0xff] }
 0x422   : > { %4729 = vmatpush.bf16.msra.mxu3 %v9031_v28  ;;  %11704 = vst [vmem:[#allocation44_spill] sm:$0xff] %v10422_v62  ;;  %v8873_v21 = vld [vmem:[#allocation2 + $0x19c] sm:$0xf]  ;;  %4817 = vmatpush.bf16.msrb.mxu0 %v9040_v56  ;;  %v8854_v28 = vld [vmem:[#allocation2 + $0x100] sm:$0xf0] }
 0x423   : > { %11702 = vst [vmem:[#allocation42_spill] sm:$0xff] %v10411_v7  ;;  %v9030_v7 = vld [vmem:[#allocation9 + $0x350] sm:$0xff]  ;;  %v7601_v56 = vor.u32 %v8854_v28, %v7600_v41  ;;  %v11708_v28 = vld [vmem:[#allocation36_spill] sm:$0xff]  ;;  %v9037_v41 = vld [vmem:[#allocation9 + $0x388] sm:$0xff] }
 0x426   : > { %4730 = vmatpush.bf16.msra.mxu3 %v9030_v7  ;;  %v10429_v7 = vpop.f32.mrf.mxu0 }
 0x428   : > { %v2586_v37 = vpop.f32.mrf.mxu1 }
 0x429   : > { %v10418_v63 = vadd.f32 %v2586_v37, %v10275_v29  ;;  %v9029_v29 = vld [vmem:[#allocation9 + $0x348] sm:$0xff]  ;;  %v7681_v37 = vor.u32 %v8873_v21, %v7678_v12  ;;  %v9027_v21 = vld [vmem:[#allocation9 + $0x338] sm:$0xff]  ;;  %v9038_v12 = vld [vmem:[#allocation9 + $0x390] sm:$0xff]  ;;  %v10435_v62 = vpop.f32.mrf.mxu3 }
 0x42a   : > { %4731 = vmatpush.bf16.msra.mxu3 %v9029_v29  ;;  %4636 = vmatpush.bf16.msra.mxu2 %v9027_v21  ;;  %v8857_v21 = vld [vmem:[#allocation2 + $0x118] sm:$0xf0] }
 0x42b   : > { %11703 = vst [vmem:[#allocation43_spill] sm:$0xff] %v10418_v63  ;;  %3415 = vmatmul.bf16.gmra.mxu1 %v7589_v52  ;;  %v9039_v52 = vld [vmem:[#allocation9 + $0x398] sm:$0xff]  ;;  %3366 = vmatmul.bf16.gmra.mxu0 %v7681_v37  ;;  %v10433_v63 = vld [vmem:[#allocation10] ss:$0 sm:$0xff] }
 0x42c   : > { %4818 = vmatpush.bf16.msrb.mxu0 %v9039_v52 }
 0x42e   : > { %4732 = vmatpush.bf16.msra.mxu3 %v9028_v45  ;;  %v3295_v45 = vadd.f32 %v10301_v24, %v10174_v36 }
 0x430   : > { %v2588_v25 = vpop.f32.mrf.mxu1  ;;  %4819 = vmatpush.bf16.msrb.mxu0 %v9038_v12  ;;  %v9036_v12 = vld [vmem:[#allocation9 + $0x380] sm:$0xff] }
 0x431   : > { %v10425_v43 = vadd.f32 %v2588_v25, %v10279_v4  ;;  %v11706_v25 = vld [vmem:[#allocation35_spill] sm:$0xff]  ;;  %v10451_v36 = vpop.f32.mrf.mxu3 }
 0x432   : > { %v2601_v29 = vadd.f32 %v11706_v25, %v10282_v13  ;;  %11707 = vst [vmem:[#allocation35_spill] sm:$0xff] %v10435_v62  ;;  %v10447_v25 = vpop.f32.mrf.mxu0 }
 0x433   : > { %11705 = vst [vmem:[#allocation45_spill] sm:$0xff] %v10425_v43 }
 0x434   : > { %11710 = vst [vmem:[#allocation46_spill] sm:$0xff] %v10447_v25  ;;  %4820 = vmatpush.bf16.msrb.mxu0 %v9037_v41 }
 0x435   : > { %11711 = vst [vmem:[#allocation47_spill] sm:$0xff] %v10451_v36 }
 0x438   : > { %v3381_v4 = vpop.f32.mrf.mxu1  ;;  %4821 = vmatpush.bf16.msrb.mxu0 %v9036_v12 }
 0x439   : > { %v3382_v43 = vadd.f32 %v3381_v4, %v3293_v58  ;;  %v2603_v58 = vadd.f32 %v11708_v28, %v10285_v15  ;;  %v3298_v15 = vadd.f32 %v10306_v39, %v10183_v9  ;;  %v11712_v28 = vld [vmem:[#allocation37_spill] sm:$0xff] }
 0x43a   : > { %v10463_v62 = vpop.f32.mrf.mxu0 }
 0x43b   : > { %v3461_v37 = vadd.f32 %v3382_v43, %v2601_v29  ;;  %3420 = vmatmul.bf16.gmra.mxu1 %v7601_v56 }
 0x43d   : > { %v3495_v51 = vadd.f32 %v10433_v63, %v3461_v37 }
 0x43f   : > { %vm3528_vm15 = vcmp.gt.f32.partialorder %v3495_v51, 0.0  ;;  %v3561_v13 = vmul.f32 %v10437_v59, %v3495_v51 }
 0x440   : > { %v3383_v52 = vpop.f32.mrf.mxu1 }
 0x441   : > { %v10445_v4 = vsel %vm3528_vm15, %v3495_v51, %v3561_v13  ;;  %v3384_v43 = vadd.f32 %v3383_v52, %v3295_v45  ;;  %v7612_v51 = vld [vmem:[#allocation2 + $0x110] sm:$0xf]  ;;  %v10457_v52 = vpop.f32.mrf.mxu2 }
 0x442   : > { %11709 = vst [vmem:[#allocation36_spill] sm:$0xff] %v10445_v4  ;;  %v3882_v29 = vpack.c.bf16 %v10445_v4, %v10445_v4  ;;  %v7613_v13 = vor.u32 %v8857_v21, %v7612_v51  ;;  %v10474_v51 = vpop.f32.mrf.mxu3 }
 0x443   : > { %v3462_v56 = vadd.f32 %v3384_v43, %v2603_v58  ;;  %v2606_v58 = vadd.f32 %v11712_v28, %v10288_v5  ;;  %v11652_v43 = vrot.slane %v10445_v4, 7  ;;  %11714 = vst [vmem:[#allocation37_spill] sm:$0xff] %v10474_v51 }
 0x444   : > { %3914 = vst [vmem:[#allocation3 + $0x1c] sm:$0xf] %v3882_v29 }
 0x445   : > { %v3496_v24 = vadd.f32 %v10433_v63, %v3462_v56  ;;  %v11651_v56 = vrot.slane %v10445_v4, 1 }
 0x447   : > { %vm3529_vm0 = vcmp.gt.f32.partialorder %v3496_v24, 0.0  ;;  %v3562_v37 = vmul.f32 %v10437_v59, %v3496_v24 }
 0x448   : > { %v3386_v45 = vpop.f32.mrf.mxu1 }
 0x449   : > { %v3594_v41 = vsel %vm3529_vm0, %v3496_v24, %v3562_v37  ;;  %v3387_v29 = vadd.f32 %v3386_v45, %v3298_v15  ;;  %v3300_v45 = vadd.f32 %v10311_v16, %v10193_v30 }
 0x44a   : > { %v3626_v36 = vrot.slane %v3594_v41, 7  ;;  %v3722_v9 = vrot.slane %v3594_v41, 1  ;;  %v3883_v39 = vpack.c.bf16 %v3594_v41, %v3594_v41 }
 0x44b   : > { %v3463_v25 = vadd.f32 %v3387_v29, %v2606_v58  ;;  %3425 = vmatmul.bf16.gmra.mxu1 %v7613_v13  ;;  %v11715_v58 = vld [vmem:[#allocation38_spill] sm:$0xff]  ;;  %v8972_v4 = vld [vmem:[#allocation3 + $0x1c] sm:$0xf] }
 0x44c   : > { %v3687_v12 = vsel %vm766_vm5, %v11652_v43, %v3626_v36  ;;  %v3783_v5 = vsel %vm863_vm6, %v11651_v56, %v3722_v9  ;;  %3915 = vst [vmem:[#allocation3 + $0x28] sm:$0xf] %v3883_v39  ;;  %v2608_v41 = vadd.f32 %v11715_v58, %v10291_v11 }
 0x44d   : > { %v3818_v24 = vpack.c.bf16 %v3687_v12, %v3687_v12  ;;  %v3946_v15 = vpack.c.bf16 %v3783_v5, %v3783_v5  ;;  %v3497_v37 = vadd.f32 %v10433_v63, %v3463_v25  ;;  %v10481_v25 = vpop.f32.mrf.mxu2 }
 0x44f   : > { %3851 = vst [vmem:[#allocation3 + $0x24] sm:$0xf] %v3818_v24  ;;  %vm3530_vm1 = vcmp.gt.f32.partialorder %v3497_v37, 0.0  ;;  %v3563_v13 = vmul.f32 %v10437_v59, %v3497_v37 }
 0x450   : > { %3978 = vst [vmem:[#allocation3 + $0x20] sm:$0xf] %v3946_v15  ;;  %v3388_v28 = vpop.f32.mrf.mxu1 }
 0x451   : > { %v3595_v29 = vsel %vm3530_vm1, %v3497_v37, %v3563_v13  ;;  %v3389_v39 = vadd.f32 %v3388_v28, %v3300_v45  ;;  %v10492_v13 = vpop.f32.mrf.mxu0 }
 0x452   : > { %v3627_v12 = vrot.slane %v3595_v29, 7  ;;  %v3723_v5 = vrot.slane %v3595_v29, 1  ;;  %v3884_v56 = vpack.c.bf16 %v3595_v29, %v3595_v29  ;;  %11717 = vst [vmem:[#allocation21_spill] sm:$0xff] %v10492_v13  ;;  %v11719_v29 = vld [vmem:[#allocation39_spill] sm:$0xff] }
 0x453   : > { %v3464_v43 = vadd.f32 %v3389_v39, %v2608_v41  ;;  %v7787_v51 = vld [vmem:[#allocation3 + $0x24] sm:$0xf0]  ;;  %v8860_v41 = vld [vmem:[#allocation2 + $0x130] sm:$0xf0] }
 0x454   : > { %v3686_v30 = vsel %vm766_vm5, %v3626_v36, %v3627_v12  ;;  %v3782_v16 = vsel %vm863_vm6, %v3722_v9, %v3723_v5  ;;  %3916 = vst [vmem:[#allocation3 + $0x34] sm:$0xf] %v3884_v56  ;;  %v7790_v24 = vor.u32 %v8972_v4, %v7787_v51  ;;  %v3303_v36 = vadd.f32 %v10316_v47, %v10202_v53  ;;  %v7624_v9 = vld [vmem:[#allocation2 + $0x128] sm:$0xf]  ;;  %v10497_v51 = vpop.f32.mrf.mxu3 }
 0x455   : > { %v3691_v11 = vsel %vm434_vm8, %v3686_v30, 0.0  ;;  %v3786_v37 = vsel %vm437_vm9, %v3782_v16, 0.0  ;;  %v3498_v45 = vadd.f32 %v10433_v63, %v3464_v43  ;;  %11718 = vst [vmem:[#allocation38_spill] sm:$0xff] %v10497_v51  ;;  %v2611_v43 = vadd.f32 %v11719_v29, %v10296_v35  ;;  %v10505_v51 = vpop.f32.mrf.mxu2 }
 0x456   : > { %v3819_v28 = vpack.c.bf16 %v3691_v11, %v3691_v11  ;;  %v3947_v58 = vpack.c.bf16 %v3786_v37, %v3786_v37  ;;  %4733 = vmatmul.bf16.vlgmr.msra.gmra.mxu3 %v7790_v24  ;;  %v7625_v16 = vor.u32 %v8860_v41, %v7624_v9  ;;  %v9026_v24 = vld [vmem:[#allocation9 + $0x330] sm:$0xff]  ;;  %v3305_v41 = vadd.f32 %v10324_v46, %v10211_v14 }
 0x457   : > { %vm3531_vm3 = vcmp.gt.f32.partialorder %v3498_v45, 0.0  ;;  %v3564_v4 = vmul.f32 %v10437_v59, %v3498_v45  ;;  %4637 = vmatpush.bf16.msra.mxu2 %v9026_v24 }
 0x458   : > { %3852 = vst [vmem:[#allocation3 + $0x30] sm:$0xf] %v3819_v28  ;;  %v3391_v56 = vpop.f32.mrf.mxu1 }
 0x459   : > { %3979 = vst [vmem:[#allocation3 + $0x2c] sm:$0xf] %v3947_v58  ;;  %v3596_v39 = vsel %vm3531_vm3, %v3498_v45, %v3564_v4  ;;  %v3392_v30 = vadd.f32 %v3391_v56, %v3303_v36  ;;  %v10511_v4 = vpop.f32.mrf.mxu0  ;;  %v7793_v56 = vld [vmem:[#allocation3 + $0x20] sm:$0xf] }
 0x45a   : > { %v3628_v11 = vrot.slane %v3596_v39, 7  ;;  %v3724_v37 = vrot.slane %v3596_v39, 1  ;;  %v3885_v13 = vpack.c.bf16 %v3596_v39, %v3596_v39 }
 0x45b   : > { %v3465_v53 = vadd.f32 %v3392_v30, %v2611_v43  ;;  %3430 = vmatmul.bf16.gmra.mxu1 %v7625_v16  ;;  %v8975_v24 = vld [vmem:[#allocation3 + $0x34] sm:$0xf] }
 0x45c   : > { %v3685_v47 = vsel %vm766_vm5, %v3627_v12, %v3628_v11  ;;  %v3781_v28 = vsel %vm863_vm6, %v3723_v5, %v3724_v37  ;;  %3917 = vst [vmem:[#allocation3 + $0x40] sm:$0xf] %v3885_v13  ;;  %v2613_v13 = vadd.f32 %v10196_v22, %v10299_v3  ;;  %v10515_v14 = vpop.f32.mrf.mxu3 }
 0x45d   : > { %v3820_v35 = vpack.c.bf16 %v3685_v47, %v3685_v47  ;;  %v3948_v45 = vpack.c.bf16 %v3781_v28, %v3781_v28  ;;  %v3499_v58 = vadd.f32 %v10433_v63, %v3465_v53 }
 0x45f   : > { %3853 = vst [vmem:[#allocation3 + $0x3c] sm:$0xf] %v3820_v35  ;;  %vm3532_vm4 = vcmp.gt.f32.partialorder %v3499_v58, 0.0  ;;  %v3565_v36 = vmul.f32 %v10437_v59, %v3499_v58 }
 0x460   : > { %3980 = vst [vmem:[#allocation3 + $0x38] sm:$0xf] %v3948_v45  ;;  %v3393_v12 = vpop.f32.mrf.mxu1  ;;  %v8974_v5 = vld [vmem:[#allocation3 + $0x28] sm:$0xf0] }
 0x461   : > { %v3597_v9 = vsel %vm3532_vm4, %v3499_v58, %v3565_v36  ;;  %v3394_v29 = vadd.f32 %v3393_v12, %v3305_v41  ;;  %v7794_v43 = vor.u32 %v8974_v5, %v7793_v56  ;;  %v8863_v36 = vld [vmem:[#allocation2 + $0x148] sm:$0xf0]  ;;  %v10526_v12 = vpop.f32.mrf.mxu2  ;;  %v7636_v5 = vld [vmem:[#allocation2 + $0x140] sm:$0xf] }
 0x462   : > { %v3629_v39 = vrot.slane %v3597_v9, 7  ;;  %v3725_v30 = vrot.slane %v3597_v9, 1  ;;  %v3886_v16 = vpack.c.bf16 %v3597_v9, %v3597_v9 }
 0x463   : > { %v3466_v46 = vadd.f32 %v3394_v29, %v2613_v13  ;;  %4822 = vmatmul.bf16.vlgmr.msrb.gmra.mxu0 %v7794_v43  ;;  %v7799_v53 = vld [vmem:[#allocation3 + $0x3c] sm:$0xf0]  ;;  %v2616_v13 = vadd.f32 %v10205_v8, %v10304_v17  ;;  %v7637_v43 = vor.u32 %v8863_v36, %v7636_v5 }
 0x464   : > { %v3684_v47 = vsel %vm766_vm5, %v3628_v11, %v3629_v39  ;;  %v3780_v28 = vsel %vm863_vm6, %v3724_v37, %v3725_v30  ;;  %3918 = vst [vmem:[#allocation3 + $0x4c] sm:$0xf] %v3886_v16  ;;  %v7802_v22 = vor.u32 %v8975_v24, %v7799_v53  ;;  %v3308_v11 = vadd.f32 %v10358_v33, %v10353_v1  ;;  %v10533_v16 = vpop.f32.mrf.mxu0 }
 0x465   : > { %v3693_v3 = vsel %vm434_vm8, %v3684_v47, 0.0  ;;  %v3788_v35 = vsel %vm437_vm9, %v3780_v28, 0.0  ;;  %v3500_v45 = vadd.f32 %v10433_v63, %v3466_v46  ;;  %v10539_v28 = vpop.f32.mrf.mxu3 }
 0x466   : > { %v3821_v58 = vpack.c.bf16 %v3693_v3, %v3693_v3  ;;  %v3949_v41 = vpack.c.bf16 %v3788_v35, %v3788_v35  ;;  %4738 = vmatmul.bf16.gmra.mxu3 %v7802_v22  ;;  %v3310_v3 = vadd.f32 %v10365_v61, %v10360_v42 }
 0x467   : > { %vm3533_vm7 = vcmp.gt.f32.partialorder %v3500_v45, 0.0  ;;  %v3566_v37 = vmul.f32 %v10437_v59, %v3500_v45 }
 0x468   : > { %3854 = vst [vmem:[#allocation3 + $0x48] sm:$0xf] %v3821_v58  ;;  %v3396_v56 = vpop.f32.mrf.mxu1 }
 0x469   : > { %3981 = vst [vmem:[#allocation3 + $0x44] sm:$0xf] %v3949_v41  ;;  %v3598_v9 = vsel %vm3533_vm7, %v3500_v45, %v3566_v37  ;;  %v3397_v29 = vadd.f32 %v3396_v56, %v3308_v11  ;;  %v10545_v41 = vpop.f32.mrf.mxu2 }
 0x46a   : > { %v3630_v46 = vrot.slane %v3598_v9, 7  ;;  %v3726_v24 = vrot.slane %v3598_v9, 1  ;;  %v3887_v53 = vpack.c.bf16 %v3598_v9, %v3598_v9 }
 0x46b   : > { %v3467_v47 = vadd.f32 %v3397_v29, %v2616_v13  ;;  %3435 = vmatmul.bf16.gmra.mxu1 %v7637_v43  ;;  %v8978_v61 = vld [vmem:[#allocation3 + $0x4c] sm:$0xf] }
 0x46c   : > { %v3683_v1 = vsel %vm766_vm5, %v3629_v39, %v3630_v46  ;;  %v3779_v33 = vsel %vm863_vm6, %v3725_v30, %v3726_v24  ;;  %3919 = vst [vmem:[#allocation3 + $0x58] sm:$0xf] %v3887_v53  ;;  %v7805_v39 = vld [vmem:[#allocation3 + $0x38] sm:$0xf]  ;;  %v2618_v30 = vadd.f32 %v10215_v38, %v10309_v55  ;;  %v10549_v29 = vpop.f32.mrf.mxu0 }
 0x46d   : > { %v3822_v8 = vpack.c.bf16 %v3683_v1, %v3683_v1  ;;  %v3950_v17 = vpack.c.bf16 %v3779_v33, %v3779_v33  ;;  %v3501_v22 = vadd.f32 %v10433_v63, %v3467_v47 }
 0x46f   : > { %3855 = vst [vmem:[#allocation3 + $0x54] sm:$0xf] %v3822_v8  ;;  %vm3534_vm10 = vcmp.gt.f32.partialorder %v3501_v22, 0.0  ;;  %v3567_v35 = vmul.f32 %v10437_v59, %v3501_v22 }
 0x470   : > { %3982 = vst [vmem:[#allocation3 + $0x50] sm:$0xf] %v3950_v17  ;;  %v3398_v45 = vpop.f32.mrf.mxu1  ;;  %v8977_v58 = vld [vmem:[#allocation3 + $0x40] sm:$0xf0]  ;;  %v8866_v17 = vld [vmem:[#allocation2 + $0x160] sm:$0xf0] }
 0x471   : > { %v3599_v36 = vsel %vm3534_vm10, %v3501_v22, %v3567_v35  ;;  %v3399_v11 = vadd.f32 %v3398_v45, %v3310_v3  ;;  %v7806_v37 = vor.u32 %v8977_v58, %v7805_v39  ;;  %v10560_v22 = vpop.f32.mrf.mxu3  ;;  %v7648_v35 = vld [vmem:[#allocation2 + $0x158] sm:$0xf]  ;;  %v2621_v45 = vadd.f32 %v10457_v52, %v10314_v10 }
 0x472   : > { %v3631_v56 = vrot.slane %v3599_v36, 7  ;;  %v3727_v5 = vrot.slane %v3599_v36, 1  ;;  %v3888_v13 = vpack.c.bf16 %v3599_v36, %v3599_v36  ;;  %v9025_v36 = vld [vmem:[#allocation9 + $0x328] sm:$0xff] }
 0x473   : > { %v3468_v42 = vadd.f32 %v3399_v11, %v2618_v30  ;;  %4827 = vmatmul.bf16.gmra.mxu0 %v7806_v37  ;;  %v7811_v9 = vld [vmem:[#allocation3 + $0x54] sm:$0xf0]  ;;  %v7649_v30 = vor.u32 %v8866_v17, %v7648_v35  ;;  %4638 = vmatpush.bf16.msra.mxu2 %v9025_v36 }
 0x474   : > { %v3682_v43 = vsel %vm766_vm5, %v3630_v46, %v3631_v56  ;;  %v3778_v53 = vsel %vm863_vm6, %v3726_v24, %v3727_v5  ;;  %3920 = vst [vmem:[#allocation3 + $0x64] sm:$0xf] %v3888_v13  ;;  %v7814_v38 = vor.u32 %v8978_v61, %v7811_v9  ;;  %v3313_v46 = vadd.f32 %v10375_v26, %v10370_v40 }
 0x475   : > { %v3695_v55 = vsel %vm434_vm8, %v3682_v43, 0.0  ;;  %v3790_v47 = vsel %vm437_vm9, %v3778_v53, 0.0  ;;  %v3502_v1 = vadd.f32 %v10433_v63, %v3468_v42  ;;  %v10567_v42 = vpop.f32.mrf.mxu2  ;;  %v10574_v43 = vpop.f32.mrf.mxu0  ;;  %v3315_v53 = vadd.f32 %v10382_v60, %v10377_v20 }
 0x476   : > { %v3823_v33 = vpack.c.bf16 %v3695_v55, %v3695_v55  ;;  %v3951_v8 = vpack.c.bf16 %v3790_v47, %v3790_v47  ;;  %4743 = vmatmul.bf16.gmra.mxu3 %v7814_v38 }
 0x477   : > { %vm3535_vm2 = vcmp.gt.f32.partialorder %v3502_v1, 0.0  ;;  %v3568_v24 = vmul.f32 %v10437_v59, %v3502_v1 }
 0x478   : > { %3856 = vst [vmem:[#allocation3 + $0x60] sm:$0xf] %v3823_v33  ;;  %v3401_v3 = vpop.f32.mrf.mxu1 }
 0x479   : > { %3983 = vst [vmem:[#allocation3 + $0x5c] sm:$0xf] %v3951_v8  ;;  %v3600_v39 = vsel %vm3535_vm2, %v3502_v1, %v3568_v24  ;;  %v3402_v58 = vadd.f32 %v3401_v3, %v3313_v46  ;;  %v10579_v1 = vpop.f32.mrf.mxu3 }
 0x47a   : > { %v3632_v11 = vrot.slane %v3600_v39, 7  ;;  %v3728_v37 = vrot.slane %v3600_v39, 1  ;;  %v3889_v13 = vpack.c.bf16 %v3600_v39, %v3600_v39 }
 0x47b   : > { %v3469_v40 = vadd.f32 %v3402_v58, %v2621_v45  ;;  %3440 = vmatmul.bf16.gmra.mxu1 %v7649_v30  ;;  %v8981_v60 = vld [vmem:[#allocation3 + $0x64] sm:$0xf] }
 0x47c   : > { %v3681_v26 = vsel %vm766_vm5, %v3631_v56, %v3632_v11  ;;  %v3777_v61 = vsel %vm863_vm6, %v3727_v5, %v3728_v37  ;;  %3921 = vst [vmem:[#allocation3 + $0x70] sm:$0xf] %v3889_v13  ;;  %v7817_v56 = vld [vmem:[#allocation3 + $0x50] sm:$0xf]  ;;  %v2623_v5 = vadd.f32 %v10481_v25, %v10319_v0 }
 0x47d   : > { %v3824_v10 = vpack.c.bf16 %v3681_v26, %v3681_v26  ;;  %v3952_v52 = vpack.c.bf16 %v3777_v61, %v3777_v61  ;;  %v3503_v9 = vadd.f32 %v10433_v63, %v3469_v40  ;;  %v10587_v30 = vpop.f32.mrf.mxu2  ;;  %v8869_v26 = vld [vmem:[#allocation2 + $0x178] sm:$0xf0]  ;;  %v10597_v61 = vpop.f32.mrf.mxu0 }
 0x47f   : > { %3857 = vst [vmem:[#allocation3 + $0x6c] sm:$0xf] %v3824_v10  ;;  %vm3536_vm11 = vcmp.gt.f32.partialorder %v3503_v9, 0.0  ;;  %v3569_v38 = vmul.f32 %v10437_v59, %v3503_v9 }
 0x480   : > { %3984 = vst [vmem:[#allocation3 + $0x68] sm:$0xf] %v3952_v52  ;;  %v3403_v55 = vpop.f32.mrf.mxu1  ;;  %v8980_v47 = vld [vmem:[#allocation3 + $0x58] sm:$0xf0]  ;;  %v7660_v52 = vld [vmem:[#allocation2 + $0x170] sm:$0xf] }
 0x481   : > { %v3601_v33 = vsel %vm3536_vm11, %v3503_v9, %v3569_v38  ;;  %v3404_v8 = vadd.f32 %v3403_v55, %v3315_v53  ;;  %v7818_v17 = vor.u32 %v8980_v47, %v7817_v56  ;;  %v2626_v9 = vadd.f32 %v10505_v51, %v10322_v32 }
 0x482   : > { %v3633_v46 = vrot.slane %v3601_v33, 7  ;;  %v3729_v24 = vrot.slane %v3601_v33, 1  ;;  %v3890_v3 = vpack.c.bf16 %v3601_v33, %v3601_v33  ;;  %v7661_v55 = vor.u32 %v8869_v26, %v7660_v52  ;;  %v10601_v33 = vpop.f32.mrf.mxu3 }
 0x483   : > { %v3470_v20 = vadd.f32 %v3404_v8, %v2623_v5  ;;  %4832 = vmatmul.bf16.gmra.mxu0 %v7818_v17  ;;  %v7823_v35 = vld [vmem:[#allocation3 + $0x6c] sm:$0xf0] }
 0x484   : > { %v3680_v45 = vsel %vm766_vm5, %v3632_v11, %v3633_v46  ;;  %v3776_v39 = vsel %vm863_vm6, %v3728_v37, %v3729_v24  ;;  %3922 = vst [vmem:[#allocation3 + $0x7c] sm:$0xf] %v3890_v3  ;;  %v7826_v58 = vor.u32 %v8981_v60, %v7823_v35  ;;  %v3318_v11 = vadd.f32 %v10389_v31, %v10384_v19 }
 0x485   : > { %v3697_v0 = vsel %vm434_vm8, %v3680_v45, 0.0  ;;  %v3792_v25 = vsel %vm437_vm9, %v3776_v39, 0.0  ;;  %v3504_v36 = vadd.f32 %v10433_v63, %v3470_v20  ;;  %v10608_v3 = vpop.f32.mrf.mxu2  ;;  %v3320_v20 = vadd.f32 %v10396_v49, %v10391_v44 }
 0x486   : > { %v3825_v13 = vpack.c.bf16 %v3697_v0, %v3697_v0  ;;  %v3953_v40 = vpack.c.bf16 %v3792_v25, %v3792_v25  ;;  %4748 = vmatmul.bf16.gmra.mxu3 %v7826_v58  ;;  %v10615_v25 = vpop.f32.mrf.mxu0 }
 0x487   : > { %vm3537_vm12 = vcmp.gt.f32.partialorder %v3504_v36, 0.0  ;;  %v3570_v37 = vmul.f32 %v10437_v59, %v3504_v36 }
 0x488   : > { %3858 = vst [vmem:[#allocation3 + $0x78] sm:$0xf] %v3825_v13  ;;  %v3406_v10 = vpop.f32.mrf.mxu1 }
 0x489   : > { %3985 = vst [vmem:[#allocation3 + $0x74] sm:$0xf] %v3953_v40  ;;  %v3602_v53 = vsel %vm3537_vm12, %v3504_v36, %v3570_v37  ;;  %v3407_v38 = vadd.f32 %v3406_v10, %v3318_v11 }
 0x48a   : > { %v3634_v56 = vrot.slane %v3602_v53, 7  ;;  %v3730_v47 = vrot.slane %v3602_v53, 1  ;;  %v3891_v5 = vpack.c.bf16 %v3602_v53, %v3602_v53 }
 0x48b   : > { %v3471_v19 = vadd.f32 %v3407_v38, %v2626_v9  ;;  %3445 = vmatmul.bf16.gmra.mxu1 %v7661_v55  ;;  %v8984_v49 = vld [vmem:[#allocation3 + $0x7c] sm:$0xf]  ;;  %v7672_v55 = vld [vmem:[#allocation2 + $0x188] sm:$0xf] }
 0x48c   : > { %v3679_v31 = vsel %vm766_vm5, %v3633_v46, %v3634_v56  ;;  %v3775_v8 = vsel %vm863_vm6, %v3729_v24, %v3730_v47  ;;  %3923 = vst [vmem:[#allocation3 + $0x88] sm:$0xf] %v3891_v5  ;;  %v7829_v46 = vld [vmem:[#allocation3 + $0x68] sm:$0xf]  ;;  %v2628_v24 = vadd.f32 %v10526_v12, %v10327_v6  ;;  %v10621_v12 = vpop.f32.mrf.mxu3 }
 0x48d   : > { %v3826_v17 = vpack.c.bf16 %v3679_v31, %v3679_v31  ;;  %v3954_v32 = vpack.c.bf16 %v3775_v8, %v3775_v8  ;;  %v3505_v51 = vadd.f32 %v10433_v63, %v3471_v19  ;;  %v10631_v31 = vpop.f32.mrf.mxu2  ;;  %v2631_v8 = vadd.f32 %v10545_v41, %v10330_v2 }
 0x48f   : > { %3859 = vst [vmem:[#allocation3 + $0x84] sm:$0xf] %v3826_v17  ;;  %vm3538_vm13 = vcmp.gt.f32.partialorder %v3505_v51, 0.0  ;;  %v3571_v60 = vmul.f32 %v10437_v59, %v3505_v51 }
 0x490   : > { %3986 = vst [vmem:[#allocation3 + $0x80] sm:$0xf] %v3954_v32  ;;  %v3408_v35 = vpop.f32.mrf.mxu1  ;;  %v8983_v45 = vld [vmem:[#allocation3 + $0x70] sm:$0xf0] }
 0x491   : > { %v3603_v39 = vsel %vm3538_vm13, %v3505_v51, %v3571_v60  ;;  %v3409_v58 = vadd.f32 %v3408_v35, %v3320_v20  ;;  %v7830_v0 = vor.u32 %v8983_v45, %v7829_v46  ;;  %v9024_v20 = vld [vmem:[#allocation9 + $0x320] sm:$0xff] }
 0x492   : > { %v3635_v36 = vrot.slane %v3603_v39, 7  ;;  %v3731_v13 = vrot.slane %v3603_v39, 1  ;;  %v3892_v40 = vpack.c.bf16 %v3603_v39, %v3603_v39  ;;  %4639 = vmatpush.bf16.msra.mxu2 %v9024_v20 }
 0x493   : > { %v3472_v44 = vadd.f32 %v3409_v58, %v2628_v24  ;;  %4837 = vmatmul.bf16.gmra.mxu0 %v7830_v0  ;;  %v7835_v26 = vld [vmem:[#allocation3 + $0x84] sm:$0xf0]  ;;  %v3325_v0 = vadd.f32 %v10413_v18, %v10408_v50 }
 0x494   : > { %v3678_v11 = vsel %vm766_vm5, %v3634_v56, %v3635_v36  ;;  %v3774_v37 = vsel %vm863_vm6, %v3730_v47, %v3731_v13  ;;  %3924 = vst [vmem:[#allocation3 + $0x94] sm:$0xf] %v3892_v40  ;;  %v7838_v6 = vor.u32 %v8984_v49, %v7835_v26  ;;  %v8872_v56 = vld [vmem:[#allocation2 + $0x190] sm:$0xf0]  ;;  %v3323_v47 = vadd.f32 %v10406_v27, %v10401_v23  ;;  %v10635_v23 = vpop.f32.mrf.mxu0  ;;  %v10642_v58 = vpop.f32.mrf.mxu3 }
 0x495   : > { %v3699_v10 = vsel %vm434_vm8, %v3678_v11, 0.0  ;;  %v3794_v52 = vsel %vm437_vm9, %v3774_v37, 0.0  ;;  %v3506_v9 = vadd.f32 %v10433_v63, %v3472_v44  ;;  %v7673_v51 = vor.u32 %v8872_v56, %v7672_v55  ;;  %v8875_v56 = vld [vmem:[#allocation2 + $0x1a8] sm:$0xf0] }
 0x496   : > { %v3827_v53 = vpack.c.bf16 %v3699_v10, %v3699_v10  ;;  %v3955_v38 = vpack.c.bf16 %v3794_v52, %v3794_v52  ;;  %4753 = vmatmul.bf16.gmra.mxu3 %v7838_v6 }
 0x497   : > { %vm3539_vm14 = vcmp.gt.f32.partialorder %v3506_v9, 0.0  ;;  %v3572_v5 = vmul.f32 %v10437_v59, %v3506_v9 }
 0x498   : > { %3860 = vst [vmem:[#allocation3 + $0x90] sm:$0xf] %v3827_v53  ;;  %v3411_v19 = vpop.f32.mrf.mxu1 }
 0x499   : > { %3987 = vst [vmem:[#allocation3 + $0x8c] sm:$0xf] %v3955_v38  ;;  %v3604_v17 = vsel %vm3539_vm14, %v3506_v9, %v3572_v5  ;;  %v3412_v32 = vadd.f32 %v3411_v19, %v3323_v47  ;;  %v10649_v9 = vpop.f32.mrf.mxu2 }
 0x49a   : > { %v3636_v60 = vrot.slane %v3604_v17, 7  ;;  %v3732_v35 = vrot.slane %v3604_v17, 1  ;;  %v3893_v46 = vpack.c.bf16 %v3604_v17, %v3604_v17 }
 0x49b   : > { %v3473_v45 = vadd.f32 %v3412_v32, %v2631_v8  ;;  %3450 = vmatmul.bf16.gmra.mxu1 %v7673_v51  ;;  %v8987_v18 = vld [vmem:[#allocation3 + $0x94] sm:$0xf]  ;;  %v3328_v51 = vadd.f32 %v10420_v54, %v10415_v34 }
 0x49c   : > { %v3677_v27 = vsel %vm766_vm5, %v3635_v36, %v3636_v60  ;;  %v3773_v24 = vsel %vm863_vm6, %v3731_v13, %v3732_v35  ;;  %3925 = vst [vmem:[#allocation3 + $0xa0] sm:$0xf] %v3893_v46  ;;  %v7841_v36 = vld [vmem:[#allocation3 + $0x80] sm:$0xf]  ;;  %v2633_v13 = vadd.f32 %v10567_v42, %v10333_v57  ;;  %v7684_v42 = vld [vmem:[#allocation2 + $0x1a0] sm:$0xf]  ;;  %v10660_v8 = vpop.f32.mrf.mxu0  ;;  %v10665_v46 = vpop.f32.mrf.mxu3 }
 0x49d   : > { %v3828_v2 = vpack.c.bf16 %v3677_v27, %v3677_v27  ;;  %v3956_v41 = vpack.c.bf16 %v3773_v24, %v3773_v24  ;;  %v3507_v39 = vadd.f32 %v10433_v63, %v3473_v45  ;;  %v2636_v45 = vadd.f32 %v10587_v30, %v10336_v48  ;;  %v11720_v30 = vld [vmem:[#allocation44_spill] sm:$0xff] }
 0x49f   : > { %3861 = vst [vmem:[#allocation3 + $0x9c] sm:$0xf] %v3828_v2  ;;  %vm3540_vm15 = vcmp.gt.f32.partialorder %v3507_v39, 0.0  ;;  %v3573_v40 = vmul.f32 %v10437_v59, %v3507_v39 }
 0x4a0   : > { %3988 = vst [vmem:[#allocation3 + $0x98] sm:$0xf] %v3956_v41  ;;  %v3413_v44 = vpop.f32.mrf.mxu1  ;;  %v8986_v49 = vld [vmem:[#allocation3 + $0x88] sm:$0xf0] }
 0x4a1   : > { %v3605_v26 = vsel %vm3540_vm15, %v3507_v39, %v3573_v40  ;;  %v3414_v11 = vadd.f32 %v3413_v44, %v3325_v0  ;;  %v7842_v37 = vor.u32 %v8986_v49, %v7841_v36  ;;  %v10673_v40 = vpop.f32.mrf.mxu2  ;;  %v3330_v49 = vadd.f32 %v10429_v7, %v11720_v30 }
 0x4a2   : > { %v3637_v6 = vrot.slane %v3605_v26, 7  ;;  %v3733_v10 = vrot.slane %v3605_v26, 1  ;;  %v3894_v52 = vpack.c.bf16 %v3605_v26, %v3605_v26 }
 0x4a3   : > { %v3474_v50 = vadd.f32 %v3414_v11, %v2633_v13  ;;  %4842 = vmatmul.bf16.gmra.mxu0 %v7842_v37  ;;  %v7847_v53 = vld [vmem:[#allocation3 + $0x9c] sm:$0xf0] }
 0x4a4   : > { %v3676_v38 = vsel %vm766_vm5, %v3636_v60, %v3637_v6  ;;  %v3772_v55 = vsel %vm863_vm6, %v3732_v35, %v3733_v10  ;;  %3926 = vst [vmem:[#allocation3 + $0xac] sm:$0xf] %v3894_v52  ;;  %v7850_v57 = vor.u32 %v8987_v18, %v7847_v53  ;;  %v7685_v60 = vor.u32 %v8875_v56, %v7684_v42  ;;  %v10679_v26 = vpop.f32.mrf.mxu0  ;;  %v10683_v7 = vpop.f32.mrf.mxu3 }
 0x4a5   : > { %v3701_v47 = vsel %vm434_vm8, %v3676_v38, 0.0  ;;  %v3796_v5 = vsel %vm437_vm9, %v3772_v55, 0.0  ;;  %v3508_v19 = vadd.f32 %v10433_v63, %v3474_v50 }
 0x4a6   : > { %v3829_v17 = vpack.c.bf16 %v3701_v47, %v3701_v47  ;;  %v3957_v32 = vpack.c.bf16 %v3796_v5, %v3796_v5  ;;  %4758 = vmatmul.bf16.gmra.mxu3 %v7850_v57 }
 0x4a7   : > { %vm3541_vm0 = vcmp.gt.f32.partialorder %v3508_v19, 0.0  ;;  %v3574_v20 = vmul.f32 %v10437_v59, %v3508_v19  ;;  %v7853_v37 = vld [vmem:[#allocation3 + $0x98] sm:$0xf] }
 0x4a8   : > { %3862 = vst [vmem:[#allocation3 + $0xa8] sm:$0xf] %v3829_v17  ;;  %v3416_v35 = vpop.f32.mrf.mxu1 }
 0x4a9   : > { %3989 = vst [vmem:[#allocation3 + $0xa4] sm:$0xf] %v3957_v32  ;;  %v3606_v27 = vsel %vm3541_vm0, %v3508_v19, %v3574_v20  ;;  %v3417_v24 = vadd.f32 %v3416_v35, %v3328_v51  ;;  %v10694_v35 = vpop.f32.mrf.mxu2 }
 0x4aa   : > { %v3638_v2 = vrot.slane %v3606_v27, 7  ;;  %v3734_v41 = vrot.slane %v3606_v27, 1  ;;  %v3895_v39 = vpack.c.bf16 %v3606_v27, %v3606_v27  ;;  %v11723_v27 = vld [vmem:[#allocation46_spill] sm:$0xff] }
 0x4ab   : > { %v3475_v0 = vadd.f32 %v3417_v24, %v2636_v45  ;;  %3455 = vmatmul.bf16.gmra.mxu1 %v7685_v60  ;;  %v8990_v56 = vld [vmem:[#allocation3 + $0xac] sm:$0xf] }
 0x4ac   : > { %v3675_v54 = vsel %vm766_vm5, %v3637_v6, %v3638_v2  ;;  %v3771_v34 = vsel %vm863_vm6, %v3733_v10, %v3734_v41  ;;  %3927 = vst [vmem:[#allocation3 + $0xb8] sm:$0xf] %v3895_v39  ;;  %v11721_v10 = vld [vmem:[#allocation23_spill] sm:$0xff]  ;;  %v11724_v39 = vld [vmem:[#allocation25_spill] sm:$0xff] }
 0x4ad   : > { %v3830_v44 = vpack.c.bf16 %v3675_v54, %v3675_v54  ;;  %v3958_v36 = vpack.c.bf16 %v3771_v34, %v3771_v34  ;;  %v3509_v48 = vadd.f32 %v10433_v63, %v3475_v0  ;;  %v2638_v52 = vadd.f32 %v10608_v3, %v11721_v10  ;;  %v11722_v45 = vld [vmem:[#allocation35_spill] sm:$0xff] }
 0x4ae   : > { %v3333_v24 = vadd.f32 %v11723_v27, %v11722_v45  ;;  %v2641_v0 = vadd.f32 %v10631_v31, %v11724_v39 }
 0x4af   : > { %3863 = vst [vmem:[#allocation3 + $0xb4] sm:$0xf] %v3830_v44  ;;  %vm3542_vm1 = vcmp.gt.f32.partialorder %v3509_v48, 0.0  ;;  %v3575_v13 = vmul.f32 %v10437_v59, %v3509_v48  ;;  %v9023_v44 = vld [vmem:[#allocation9 + $0x318] sm:$0xff] }
 0x4b0   : > { %3990 = vst [vmem:[#allocation3 + $0xb0] sm:$0xf] %v3958_v36  ;;  %v3418_v11 = vpop.f32.mrf.mxu1  ;;  %v8989_v6 = vld [vmem:[#allocation3 + $0xa0] sm:$0xf0]  ;;  %v10701_v36 = vpop.f32.mrf.mxu0  ;;  %4640 = vmatpush.bf16.msra.mxu2 %v9023_v44  ;;  %v11727_v44 = vld [vmem:[#allocation37_spill] sm:$0xff] }
 0x4b1   : > { %v3607_v50 = vsel %vm3542_vm1, %v3509_v48, %v3575_v13  ;;  %v3419_v18 = vadd.f32 %v3418_v11, %v3330_v49  ;;  %v7854_v53 = vor.u32 %v8989_v6, %v7853_v37  ;;  %v10707_v6 = vpop.f32.mrf.mxu3 }
 0x4b2   : > { %v3639_v38 = vrot.slane %v3607_v50, 7  ;;  %v3735_v55 = vrot.slane %v3607_v50, 1  ;;  %v3896_v57 = vpack.c.bf16 %v3607_v50, %v3607_v50  ;;  %v11725_v50 = vld [vmem:[#allocation47_spill] sm:$0xff] }
 0x4b3   : > { %v3476_v42 = vadd.f32 %v3419_v18, %v2638_v52  ;;  %4847 = vmatmul.bf16.gmra.mxu0 %v7854_v53  ;;  %v7859_v47 = vld [vmem:[#allocation3 + $0xb4] sm:$0xf0]  ;;  %v3335_v18 = vadd.f32 %v10463_v62, %v11725_v50 }
 0x4b4   : > { %v3674_v5 = vsel %vm766_vm5, %v3638_v2, %v3639_v38  ;;  %v3770_v19 = vsel %vm863_vm6, %v3734_v41, %v3735_v55  ;;  %3928 = vst [vmem:[#allocation3 + $0xc4] sm:$0xf] %v3896_v57  ;;  %v7862_v3 = vor.u32 %v8990_v56, %v7859_v47  ;;  %v10713_v56 = vpop.f32.mrf.mxu2 }
 0x4b5   : > { %v3703_v17 = vsel %vm434_vm8, %v3674_v5, 0.0  ;;  %v3798_v32 = vsel %vm437_vm9, %v3770_v19, 0.0  ;;  %v3510_v51 = vadd.f32 %v10433_v63, %v3476_v42 }
 0x4b6   : > { %v3831_v20 = vpack.c.bf16 %v3703_v17, %v3703_v17  ;;  %v3959_v60 = vpack.c.bf16 %v3798_v32, %v3798_v32  ;;  %4763 = vmatmul.bf16.gmra.mxu3 %v7862_v3 }
 0x4b7   : > { %vm3543_vm3 = vcmp.gt.f32.partialorder %v3510_v51, 0.0  ;;  %v3576_v2 = vmul.f32 %v10437_v59, %v3510_v51 }
 0x4b8   : > { %3864 = vst [vmem:[#allocation3 + $0xc0] sm:$0xf] %v3831_v20  ;;  %v3421_v41 = vpop.f32.mrf.mxu1  ;;  %v10717_v45 = vpop.f32.mrf.mxu0 }
 0x4b9   : > { %3991 = vst [vmem:[#allocation3 + $0xbc] sm:$0xf] %v3959_v60  ;;  %v3608_v54 = vsel %vm3543_vm3, %v3510_v51, %v3576_v2  ;;  %v3422_v34 = vadd.f32 %v3421_v41, %v3333_v24 }
 0x4ba   : > { %v3640_v48 = vrot.slane %v3608_v54, 7  ;;  %v3736_v30 = vrot.slane %v3608_v54, 1  ;;  %v3897_v49 = vpack.c.bf16 %v3608_v54, %v3608_v54 }
 0x4bb   : > { %v3477_v13 = vadd.f32 %v3422_v34, %v2641_v0  ;;  %v8993_v20 = vld [vmem:[#allocation3 + $0xc4] sm:$0xf]  ;;  %v10728_v0 = vpop.f32.mrf.mxu3 }
 0x4bc   : > { %v3673_v11 = vsel %vm766_vm5, %v3639_v38, %v3640_v48  ;;  %v3769_v37 = vsel %vm863_vm6, %v3735_v55, %v3736_v30  ;;  %3929 = vst [vmem:[#allocation3 + $0xd0] sm:$0xf] %v3897_v49  ;;  %v7865_v38 = vld [vmem:[#allocation3 + $0xb0] sm:$0xf] }
 0x4bd   : > { %v3832_v31 = vpack.c.bf16 %v3673_v11, %v3673_v11  ;;  %v3960_v10 = vpack.c.bf16 %v3769_v37, %v3769_v37  ;;  %v3511_v52 = vadd.f32 %v10433_v63, %v3477_v13  ;;  %v11726_v55 = vld [vmem:[#allocation24_spill] sm:$0xff]  ;;  %v11729_v11 = vld [vmem:[#allocation27_spill] sm:$0xff] }
 0x4be   : > { %v2643_v47 = vadd.f32 %v10649_v9, %v11726_v55  ;;  %v2646_v37 = vadd.f32 %v10673_v40, %v11729_v11  ;;  %v10761_v11 = vld [vmem:[#allocation10] ss:$0 sm:$0xff] }
 0x4bf   : > { %3865 = vst [vmem:[#allocation3 + $0xcc] sm:$0xf] %v3832_v31  ;;  %vm3544_vm4 = vcmp.gt.f32.partialorder %v3511_v52, 0.0  ;;  %v3577_v53 = vmul.f32 %v10437_v59, %v3511_v52 }
 0x4c0   : > { %3992 = vst [vmem:[#allocation3 + $0xc8] sm:$0xf] %v3960_v10  ;;  %v3423_v57 = vpop.f32.mrf.mxu1  ;;  %v8992_v42 = vld [vmem:[#allocation3 + $0xb8] sm:$0xf0]  ;;  %v10741_v55 = vpop.f32.mrf.mxu0 }
 0x4c1   : > { %v3609_v5 = vsel %vm3544_vm4, %v3511_v52, %v3577_v53  ;;  %v3424_v19 = vadd.f32 %v3423_v57, %v3335_v18  ;;  %v7866_v3 = vor.u32 %v8992_v42, %v7865_v38  ;;  %v10735_v53 = vpop.f32.mrf.mxu2 }
 0x4c2   : > { %v3641_v17 = vrot.slane %v3609_v5, 7  ;;  %v3737_v32 = vrot.slane %v3609_v5, 1  ;;  %v3898_v51 = vpack.c.bf16 %v3609_v5, %v3609_v5 }
 0x4c3   : > { %v3478_v62 = vadd.f32 %v3424_v19, %v2643_v47  ;;  %4852 = vmatmul.bf16.gmra.mxu0 %v7866_v3  ;;  %v7871_v60 = vld [vmem:[#allocation3 + $0xcc] sm:$0xf0]  ;;  %v11730_v19 = vld [vmem:[#allocation38_spill] sm:$0xff] }
 0x4c4   : > { %v3672_v27 = vsel %vm766_vm5, %v3640_v48, %v3641_v17  ;;  %v3768_v24 = vsel %vm863_vm6, %v3736_v30, %v3737_v32  ;;  %3930 = vst [vmem:[#allocation3 + $0xdc] sm:$0xf] %v3898_v51  ;;  %v7874_v9 = vor.u32 %v8993_v20, %v7871_v60  ;;  %v11728_v48 = vld [vmem:[#allocation21_spill] sm:$0xff]  ;;  %v3340_v3 = vadd.f32 %v10511_v4, %v11730_v19  ;;  %v11731_v60 = vld [vmem:[#allocation26_spill] sm:$0xff] }
 0x4c5   : > { %v3705_v2 = vsel %vm434_vm8, %v3672_v27, 0.0  ;;  %v3800_v41 = vsel %vm437_vm9, %v3768_v24, 0.0  ;;  %v3512_v39 = vadd.f32 %v10433_v63, %v3478_v62  ;;  %v3338_v49 = vadd.f32 %v11728_v48, %v11727_v44  ;;  %v10747_v62 = vpop.f32.mrf.mxu3  ;;  %v9022_v19 = vld [vmem:[#allocation9 + $0x310] sm:$0xff] }
 0x4c6   : > { %v3833_v54 = vpack.c.bf16 %v3705_v2, %v3705_v2  ;;  %v3961_v34 = vpack.c.bf16 %v3800_v41, %v3800_v41  ;;  %4768 = vmatmul.bf16.gmra.mxu3 %v7874_v9  ;;  %v2648_v27 = vadd.f32 %v10694_v35, %v11731_v60  ;;  %4641 = vmatpush.bf16.msra.mxu2 %v9022_v19 }
 0x4c7   : > { %vm3545_vm7 = vcmp.gt.f32.partialorder %v3512_v39, 0.0  ;;  %v3578_v30 = vmul.f32 %v10437_v59, %v3512_v39  ;;  %v7877_v20 = vld [vmem:[#allocation3 + $0xc8] sm:$0xf] }
 0x4c8   : > { %3866 = vst [vmem:[#allocation3 + $0xd8] sm:$0xf] %v3833_v54  ;;  %v3426_v13 = vpop.f32.mrf.mxu1 }
 0x4c9   : > { %3993 = vst [vmem:[#allocation3 + $0xd4] sm:$0xf] %v3961_v34  ;;  %v3610_v31 = vsel %vm3545_vm7, %v3512_v39, %v3578_v30  ;;  %v3427_v10 = vadd.f32 %v3426_v13, %v3338_v49  ;;  %v10755_v30 = vpop.f32.mrf.mxu2 }
 0x4ca   : > { %v3642_v52 = vrot.slane %v3610_v31, 7  ;;  %v3738_v50 = vrot.slane %v3610_v31, 1  ;;  %v3899_v18 = vpack.c.bf16 %v3610_v31, %v3610_v31 }
 0x4cb   : > { %v3479_v57 = vadd.f32 %v3427_v10, %v2646_v37  ;;  %v8996_v54 = vld [vmem:[#allocation3 + $0xdc] sm:$0xf] }
 0x4cc   : > { %v3671_v38 = vsel %vm766_vm5, %v3641_v17, %v3642_v52  ;;  %v3767_v42 = vsel %vm863_vm6, %v3737_v32, %v3738_v50  ;;  %3931 = vst [vmem:[#allocation3 + $0xe8] sm:$0xf] %v3899_v18 }
 0x4cd   : > { %v3834_v47 = vpack.c.bf16 %v3671_v38, %v3671_v38  ;;  %v3962_v40 = vpack.c.bf16 %v3767_v42, %v3767_v42  ;;  %v3513_v5 = vadd.f32 %v10433_v63, %v3479_v57  ;;  %v11732_v38 = vld [vmem:[#allocation29_spill] sm:$0xff] }
 0x4ce   : > { %v2651_v42 = vadd.f32 %v10713_v56, %v11732_v38 }
 0x4cf   : > { %3867 = vst [vmem:[#allocation3 + $0xe4] sm:$0xf] %v3834_v47  ;;  %vm3546_vm10 = vcmp.gt.f32.partialorder %v3513_v5, 0.0  ;;  %v3579_v51 = vmul.f32 %v10437_v59, %v3513_v5 }
 0x4d0   : > { %3994 = vst [vmem:[#allocation3 + $0xe0] sm:$0xf] %v3962_v40  ;;  %v3428_v17 = vpop.f32.mrf.mxu1  ;;  %v8995_v32 = vld [vmem:[#allocation3 + $0xd0] sm:$0xf0] }
 0x4d1   : > { %v3611_v24 = vsel %vm3546_vm10, %v3513_v5, %v3579_v51  ;;  %v3429_v9 = vadd.f32 %v3428_v17, %v3340_v3  ;;  %v7878_v2 = vor.u32 %v8995_v32, %v7877_v20 }
 0x4d2   : > { %v3643_v63 = vrot.slane %v3611_v24, 7  ;;  %v3739_v41 = vrot.slane %v3611_v24, 1  ;;  %v3900_v39 = vpack.c.bf16 %v3611_v24, %v3611_v24  ;;  %v3345_v24 = vadd.f32 %v10549_v29, %v10539_v28 }
 0x4d3   : > { %v3480_v4 = vadd.f32 %v3429_v9, %v2648_v27  ;;  %4857 = vmatmul.bf16.gmra.mxu0 %v7878_v2  ;;  %v7883_v34 = vld [vmem:[#allocation3 + $0xe4] sm:$0xf0]  ;;  %v10778_v27 = vpop.f32.mrf.mxu2 }
 0x4d4   : > { %v3670_v44 = vsel %vm766_vm5, %v3642_v52, %v3643_v63  ;;  %v3766_v48 = vsel %vm863_vm6, %v3738_v50, %v3739_v41  ;;  %3932 = vst [vmem:[#allocation3 + $0xf4] sm:$0xf] %v3900_v39  ;;  %v7886_v49 = vor.u32 %v8996_v54, %v7883_v34  ;;  %v10764_v52 = vpop.f32.mrf.mxu0  ;;  %v3343_v50 = vadd.f32 %v10533_v16, %v10515_v14 }
 0x4d5   : > { %v3707_v35 = vsel %vm434_vm8, %v3670_v44, 0.0  ;;  %v3802_v13 = vsel %vm437_vm9, %v3766_v48, 0.0  ;;  %v3514_v37 = vadd.f32 %v10761_v11, %v3480_v4  ;;  %v11733_v4 = vld [vmem:[#allocation28_spill] sm:$0xff] }
 0x4d6   : > { %v3835_v31 = vpack.c.bf16 %v3707_v35, %v3707_v35  ;;  %v3963_v10 = vpack.c.bf16 %v3802_v13, %v3802_v13  ;;  %4773 = vmatmul.bf16.gmra.mxu3 %v7886_v49  ;;  %v2653_v54 = vadd.f32 %v10735_v53, %v11733_v4  ;;  %v3350_v4 = vadd.f32 %v10597_v61, %v10579_v1 }
 0x4d7   : > { %vm3547_vm2 = vcmp.gt.f32.partialorder %v3514_v37, 0.0  ;;  %v3580_v18 = vmul.f32 %v10437_v59, %v3514_v37  ;;  %v7889_v39 = vld [vmem:[#allocation3 + $0xe0] sm:$0xf] }
 0x4d8   : > { %3868 = vst [vmem:[#allocation3 + $0xf0] sm:$0xf] %v3835_v31  ;;  %v3431_v57 = vpop.f32.mrf.mxu1 }
 0x4d9   : > { %3995 = vst [vmem:[#allocation3 + $0xec] sm:$0xf] %v3963_v10  ;;  %v3612_v47 = vsel %vm3547_vm2, %v3514_v37, %v3580_v18  ;;  %v3432_v40 = vadd.f32 %v3431_v57, %v3343_v50  ;;  %v10771_v5 = vpop.f32.mrf.mxu3 }
 0x4da   : > { %v3644_v3 = vrot.slane %v3612_v47, 7  ;;  %v3740_v51 = vrot.slane %v3612_v47, 1  ;;  %v3901_v17 = vpack.c.bf16 %v3612_v47, %v3612_v47 }
 0x4db   : > { %v3481_v20 = vadd.f32 %v3432_v40, %v2651_v42  ;;  %v8999_v37 = vld [vmem:[#allocation3 + $0xf4] sm:$0xf]  ;;  %v3348_v40 = vadd.f32 %v10574_v43, %v10560_v22 }
 0x4dc   : > { %v3669_v14 = vsel %vm766_vm5, %v3643_v63, %v3644_v3  ;;  %v3765_v16 = vsel %vm863_vm6, %v3739_v41, %v3740_v51  ;;  %3933 = vst [vmem:[#allocation3 + $0x100] sm:$0xf] %v3901_v17  ;;  %v2660_v17 = vpop.f32.mrf.mxu2 }
 0x4dd   : > { %v3836_v32 = vpack.c.bf16 %v3669_v14, %v3669_v14  ;;  %v3964_v56 = vpack.c.bf16 %v3765_v16, %v3765_v16  ;;  %v3515_v60 = vadd.f32 %v10761_v11, %v3481_v20  ;;  %v11734_v20 = vld [vmem:[#allocation30_spill] sm:$0xff] }
 0x4de   : > { %v2656_v14 = vadd.f32 %v10755_v30, %v11734_v20 }
 0x4df   : > { %3869 = vst [vmem:[#allocation3 + $0xfc] sm:$0xf] %v3836_v32  ;;  %vm3548_vm11 = vcmp.gt.f32.partialorder %v3515_v60, 0.0  ;;  %v3581_v9 = vmul.f32 %v10437_v59, %v3515_v60 }
 0x4e0   : > { %3996 = vst [vmem:[#allocation3 + $0xf8] sm:$0xf] %v3964_v56  ;;  %v10783_v2 = vpop.f32.mrf.mxu0  ;;  %v3433_v63 = vpop.f32.mrf.mxu1  ;;  %v8998_v41 = vld [vmem:[#allocation3 + $0xe8] sm:$0xf0] }
 0x4e1   : > { %v3613_v34 = vsel %vm3548_vm11, %v3515_v60, %v3581_v9  ;;  %v3434_v44 = vadd.f32 %v3433_v63, %v3345_v24  ;;  %v10787_v48 = vpop.f32.mrf.mxu3  ;;  %v7890_v49 = vor.u32 %v8998_v41, %v7889_v39 }
 0x4e2   : > { %v3645_v35 = vrot.slane %v3613_v34, 7  ;;  %v3741_v28 = vrot.slane %v3613_v34, 1  ;;  %v3902_v29 = vpack.c.bf16 %v3613_v34, %v3613_v34 }
 0x4e3   : > { %v3482_v13 = vadd.f32 %v3434_v44, %v2653_v54  ;;  %4862 = vmatmul.bf16.gmra.mxu0 %v7890_v49  ;;  %v7895_v31 = vld [vmem:[#allocation3 + $0xfc] sm:$0xf0] }
 0x4e4   : > { %v3668_v10 = vsel %vm766_vm5, %v3644_v3, %v3645_v35  ;;  %v3764_v50 = vsel %vm863_vm6, %v3740_v51, %v3741_v28  ;;  %3934 = vst [vmem:[#allocation3 + $0x10c] sm:$0xf] %v3902_v29  ;;  %v7898_v53 = vor.u32 %v8999_v37, %v7895_v31  ;;  %v11735_v29 = vld [vmem:[#allocation32_spill] sm:$0xff] }
 0x4e5   : > { %v3709_v18 = vsel %vm434_vm8, %v3668_v10, 0.0  ;;  %v3804_v57 = vsel %vm437_vm9, %v3764_v50, 0.0  ;;  %v3516_v38 = vadd.f32 %v10761_v11, %v3482_v13 }
 0x4e6   : > { %v3837_v42 = vpack.c.bf16 %v3709_v18, %v3709_v18  ;;  %v3965_v47 = vpack.c.bf16 %v3804_v57, %v3804_v57  ;;  %4778 = vmatmul.bf16.gmra.mxu3 %v7898_v53  ;;  %v2662_v53 = vpop.f32.mrf.mxu2 }
 0x4e7   : > { %vm3549_vm12 = vcmp.gt.f32.partialorder %v3516_v38, 0.0  ;;  %v3582_v19 = vmul.f32 %v10437_v59, %v3516_v38  ;;  %v7901_v49 = vld [vmem:[#allocation3 + $0xf8] sm:$0xf] }
 0x4e8   : > { %3870 = vst [vmem:[#allocation3 + $0x108] sm:$0xf] %v3837_v42  ;;  %v10801_v3 = vpop.f32.mrf.mxu0  ;;  %v3436_v51 = vpop.f32.mrf.mxu1 }
 0x4e9   : > { %3997 = vst [vmem:[#allocation3 + $0x104] sm:$0xf] %v3965_v47  ;;  %v3614_v16 = vsel %vm3549_vm12, %v3516_v38, %v3582_v19  ;;  %v3437_v32 = vadd.f32 %v3436_v51, %v3348_v40  ;;  %v10805_v56 = vpop.f32.mrf.mxu3 }
 0x4ea   : > { %v3646_v60 = vrot.slane %v3614_v16, 7  ;;  %v3742_v24 = vrot.slane %v3614_v16, 1  ;;  %v3903_v9 = vpack.c.bf16 %v3614_v16, %v3614_v16  ;;  %v3353_v16 = vadd.f32 %v10615_v25, %v10601_v33 }
 0x4eb   : > { %v3483_v22 = vadd.f32 %v3437_v32, %v2656_v14  ;;  %v9002_v57 = vld [vmem:[#allocation3 + $0x10c] sm:$0xf] }
 0x4ec   : > { %v3667_v43 = vsel %vm766_vm5, %v3645_v35, %v3646_v60  ;;  %v3763_v63 = vsel %vm863_vm6, %v3741_v28, %v3742_v24  ;;  %3935 = vst [vmem:[#allocation3 + $0x118] sm:$0xf] %v3903_v9  ;;  %v2658_v28 = vadd.f32 %v10778_v27, %v11735_v29  ;;  %v11736_v9 = vld [vmem:[#allocation34_spill] sm:$0xff] }
 0x4ed   : > { %v3838_v39 = vpack.c.bf16 %v3667_v43, %v3667_v43  ;;  %v3966_v41 = vpack.c.bf16 %v3763_v63, %v3763_v63  ;;  %v3517_v30 = vadd.f32 %v10761_v11, %v3483_v22  ;;  %v2661_v22 = vadd.f32 %v2660_v17, %v11736_v9 }
 0x4ef   : > { %3871 = vst [vmem:[#allocation3 + $0x114] sm:$0xf] %v3838_v39  ;;  %vm3550_vm13 = vcmp.gt.f32.partialorder %v3517_v30, 0.0  ;;  %v3583_v54 = vmul.f32 %v10437_v59, %v3517_v30 }
 0x4f0   : > { %3998 = vst [vmem:[#allocation3 + $0x110] sm:$0xf] %v3966_v41  ;;  %v10815_v34 = vpop.f32.mrf.mxu0  ;;  %v3438_v44 = vpop.f32.mrf.mxu1  ;;  %v9001_v35 = vld [vmem:[#allocation3 + $0x100] sm:$0xf0]  ;;  %v9021_v41 = vld [vmem:[#allocation9 + $0x308] sm:$0xff] }
 0x4f1   : > { %v3615_v13 = vsel %vm3550_vm13, %v3517_v30, %v3583_v54  ;;  %v3439_v37 = vadd.f32 %v3438_v44, %v3350_v4  ;;  %v10819_v31 = vpop.f32.mrf.mxu3  ;;  %v7902_v10 = vor.u32 %v9001_v35, %v7901_v49  ;;  %4642 = vmatpush.bf16.msra.mxu2 %v9021_v41  ;;  %v2665_v49 = vpop.f32.mrf.mxu2  ;;  %v3358_v41 = vadd.f32 %v10660_v8, %v10642_v58  ;;  %v8953_v8 = vld [vmem:[#allocation9 + $0x268] sm:$0xff] }
 0x4f2   : > { %v3647_v50 = vrot.slane %v3615_v13, 7  ;;  %v3743_v1 = vrot.slane %v3615_v13, 1  ;;  %v3904_v61 = vpack.c.bf16 %v3615_v13, %v3615_v13 }
 0x4f3   : > { %v3484_v18 = vadd.f32 %v3439_v37, %v2658_v28  ;;  %4867 = vmatmul.bf16.gmra.mxu0 %v7902_v10  ;;  %v7907_v38 = vld [vmem:[#allocation3 + $0x114] sm:$0xf0]  ;;  %v3355_v28 = vadd.f32 %v10635_v23, %v10621_v12 }
 0x4f4   : > { %v3666_v42 = vsel %vm766_vm5, %v3646_v60, %v3647_v50  ;;  %v3762_v47 = vsel %vm863_vm6, %v3742_v24, %v3743_v1  ;;  %3936 = vst [vmem:[#allocation3 + $0x124] sm:$0xf] %v3904_v61  ;;  %v7910_v27 = vor.u32 %v9002_v57, %v7907_v38 }
 0x4f5   : > { %v3711_v40 = vsel %vm434_vm8, %v3666_v42, 0.0  ;;  %v3806_v19 = vsel %vm437_vm9, %v3762_v47, 0.0  ;;  %v3518_v51 = vadd.f32 %v10761_v11, %v3484_v18 }
 0x4f6   : > { %v3839_v20 = vpack.c.bf16 %v3711_v40, %v3711_v40  ;;  %v3967_v14 = vpack.c.bf16 %v3806_v19, %v3806_v19  ;;  %4783 = vmatmul.bf16.gmra.mxu3 %v7910_v27 }
 0x4f7   : > { %vm3551_vm14 = vcmp.gt.f32.partialorder %v3518_v51, 0.0  ;;  %v3584_v32 = vmul.f32 %v10437_v59, %v3518_v51 }
 0x4f8   : > { %3872 = vst [vmem:[#allocation3 + $0x120] sm:$0xf] %v3839_v20  ;;  %v10833_v60 = vpop.f32.mrf.mxu0  ;;  %v3441_v24 = vpop.f32.mrf.mxu1  ;;  %v8955_v20 = vld [vmem:[#allocation9 + $0x278] sm:$0xff] }
 0x4f9   : > { %3999 = vst [vmem:[#allocation3 + $0x11c] sm:$0xf] %v3967_v14  ;;  %v3616_v43 = vsel %vm3551_vm14, %v3518_v51, %v3584_v32  ;;  %v3442_v63 = vadd.f32 %v3441_v24, %v3353_v16  ;;  %v10836_v39 = vpop.f32.mrf.mxu3  ;;  %5303 = vmatpush.bf16.msrb.mxu1 %v8955_v20 }
 0x4fa   : > { %v3648_v30 = vrot.slane %v3616_v43, 7  ;;  %v3744_v4 = vrot.slane %v3616_v43, 1  ;;  %v3905_v54 = vpack.c.bf16 %v3616_v43, %v3616_v43 }
 0x4fb   : > { %v3485_v44 = vadd.f32 %v3442_v63, %v2661_v22  ;;  %v9005_v19 = vld [vmem:[#allocation3 + $0x124] sm:$0xf]  ;;  %v2667_v63 = vpop.f32.mrf.mxu2 }
 0x4fc   : > { %v3665_v33 = vsel %vm766_vm5, %v3647_v50, %v3648_v30  ;;  %v3761_v25 = vsel %vm863_vm6, %v3743_v1, %v3744_v4  ;;  %3937 = vst [vmem:[#allocation3 + $0x130] sm:$0xf] %v3905_v54  ;;  %v7913_v50 = vld [vmem:[#allocation3 + $0x110] sm:$0xf]  ;;  %v11737_v1 = vld [vmem:[#allocation31_spill] sm:$0xff] }
 0x4fd   : > { %v3840_v17 = vpack.c.bf16 %v3665_v33, %v3665_v33  ;;  %v3968_v35 = vpack.c.bf16 %v3761_v25, %v3761_v25  ;;  %v3519_v29 = vadd.f32 %v10761_v11, %v3485_v44  ;;  %v2663_v18 = vadd.f32 %v2662_v53, %v11737_v1  ;;  %v11738_v33 = vld [vmem:[#allocation33_spill] sm:$0xff] }
 0x4fe   : > { %v2666_v25 = vadd.f32 %v2665_v49, %v11738_v33 }
 0x4ff   : > { %3873 = vst [vmem:[#allocation3 + $0x12c] sm:$0xf] %v3840_v17  ;;  %vm3552_vm15 = vcmp.gt.f32.partialorder %v3519_v29, 0.0  ;;  %v3585_v13 = vmul.f32 %v10437_v59, %v3519_v29 }
 0x500   : > { %4000 = vst [vmem:[#allocation3 + $0x128] sm:$0xf] %v3968_v35  ;;  %v10846_v37 = vpop.f32.mrf.mxu0  ;;  %v3443_v10 = vpop.f32.mrf.mxu1  ;;  %v9004_v61 = vld [vmem:[#allocation3 + $0x118] sm:$0xf0] }
 0x501   : > { %v3617_v57 = vsel %vm3552_vm15, %v3519_v29, %v3585_v13  ;;  %v3444_v38 = vadd.f32 %v3443_v10, %v3355_v28  ;;  %v10849_v42 = vpop.f32.mrf.mxu3  ;;  %v7914_v47 = vor.u32 %v9004_v61, %v7913_v50 }
 0x502   : > { %v3649_v27 = vrot.slane %v3617_v57, 7  ;;  %v3745_v40 = vrot.slane %v3617_v57, 1  ;;  %v3906_v12 = vpack.c.bf16 %v3617_v57, %v3617_v57  ;;  %v3360_v57 = vadd.f32 %v10679_v26, %v10665_v46 }
 0x503   : > { %v3486_v23 = vadd.f32 %v3444_v38, %v2663_v18  ;;  %4872 = vmatmul.bf16.gmra.mxu0 %v7914_v47  ;;  %v7919_v51 = vld [vmem:[#allocation3 + $0x12c] sm:$0xf0]  ;;  %v8952_v47 = vld [vmem:[#allocation9 + $0x260] sm:$0xff]  ;;  %v2670_v46 = vpop.f32.mrf.mxu2 }
 0x504   : > { %v3664_v14 = vsel %vm766_vm5, %v3648_v30, %v3649_v27  ;;  %v3760_v16 = vsel %vm863_vm6, %v3744_v4, %v3745_v40  ;;  %3938 = vst [vmem:[#allocation3 + $0x13c] sm:$0xf] %v3906_v12  ;;  %v7922_v53 = vor.u32 %v9005_v19, %v7919_v51  ;;  %v8954_v4 = vld [vmem:[#allocation9 + $0x270] sm:$0xff]  ;;  %v11739_v19 = vld [vmem:[#allocation40_spill] sm:$0xff] }
 0x505   : > { %v3713_v32 = vsel %vm434_vm8, %v3664_v14, 0.0  ;;  %v3808_v24 = vsel %vm437_vm9, %v3760_v16, 0.0  ;;  %v3520_v9 = vadd.f32 %v10761_v11, %v3486_v23  ;;  %5304 = vmatpush.bf16.msrb.mxu1 %v8954_v4  ;;  %v2668_v51 = vadd.f32 %v2667_v63, %v11739_v19 }
 0x506   : > { %v3841_v22 = vpack.c.bf16 %v3713_v32, %v3713_v32  ;;  %v3969_v43 = vpack.c.bf16 %v3808_v24, %v3808_v24  ;;  %4788 = vmatmul.bf16.gmra.mxu3 %v7922_v53 }
 0x507   : > { %vm3553_vm0 = vcmp.gt.f32.partialorder %v3520_v9, 0.0  ;;  %v3586_v30 = vmul.f32 %v10437_v59, %v3520_v9  ;;  %v7925_v23 = vld [vmem:[#allocation3 + $0x128] sm:$0xf] }
 0x508   : > { %3874 = vst [vmem:[#allocation3 + $0x138] sm:$0xf] %v3841_v22  ;;  %v10863_v54 = vpop.f32.mrf.mxu0  ;;  %v3446_v44 = vpop.f32.mrf.mxu1 }
 0x509   : > { %4001 = vst [vmem:[#allocation3 + $0x134] sm:$0xf] %v3969_v43  ;;  %v3618_v17 = vsel %vm3553_vm0, %v3520_v9, %v3586_v30  ;;  %v3447_v35 = vadd.f32 %v3446_v44, %v3358_v41  ;;  %v10866_v29 = vpop.f32.mrf.mxu3  ;;  %5305 = vmatpush.bf16.msrb.mxu1 %v8953_v8  ;;  %v8951_v41 = vld [vmem:[#allocation9 + $0x258] sm:$0xff] }
 0x50a   : > { %v3650_v28 = vrot.slane %v3618_v17, 7  ;;  %v3746_v13 = vrot.slane %v3618_v17, 1  ;;  %v3907_v10 = vpack.c.bf16 %v3618_v17, %v3618_v17 }
 0x50b   : > { %v3487_v58 = vadd.f32 %v3447_v35, %v2666_v25  ;;  %v9008_v22 = vld [vmem:[#allocation3 + $0x13c] sm:$0xf] }
 0x50c   : > { %v3663_v50 = vsel %vm766_vm5, %v3649_v27, %v3650_v28  ;;  %v3759_v61 = vsel %vm863_vm6, %v3745_v40, %v3746_v13  ;;  %3939 = vst [vmem:[#allocation3 + $0x148] sm:$0xf] %v3907_v10  ;;  %v8950_v10 = vld [vmem:[#allocation9 + $0x250] sm:$0xff] }
 0x50d   : > { %v3842_v1 = vpack.c.bf16 %v3663_v50, %v3663_v50  ;;  %v3970_v49 = vpack.c.bf16 %v3759_v61, %v3759_v61  ;;  %v3521_v18 = vadd.f32 %v10761_v11, %v3487_v58  ;;  %5306 = vmatpush.bf16.msrb.mxu1 %v8952_v47  ;;  %v11740_v50 = vld [vmem:[#allocation41_spill] sm:$0xff] }
 0x50e   : > { %v2671_v61 = vadd.f32 %v2670_v46, %v11740_v50 }
 0x50f   : > { %3875 = vst [vmem:[#allocation3 + $0x144] sm:$0xf] %v3842_v1  ;;  %vm3554_vm1 = vcmp.gt.f32.partialorder %v3521_v18, 0.0  ;;  %v3587_v38 = vmul.f32 %v10437_v59, %v3521_v18 }
 0x510   : > { %4002 = vst [vmem:[#allocation3 + $0x140] sm:$0xf] %v3970_v49  ;;  %v10876_v12 = vpop.f32.mrf.mxu0  ;;  %v3448_v27 = vpop.f32.mrf.mxu1  ;;  %v9007_v40 = vld [vmem:[#allocation3 + $0x130] sm:$0xf0] }
 0x511   : > { %v3619_v20 = vsel %vm3554_vm1, %v3521_v18, %v3587_v38  ;;  %v3449_v14 = vadd.f32 %v3448_v27, %v3360_v57  ;;  %v10879_v16 = vpop.f32.mrf.mxu3  ;;  %v7926_v53 = vor.u32 %v9007_v40, %v7925_v23  ;;  %5307 = vmatpush.bf16.msrb.mxu1 %v8951_v41  ;;  %v9020_v57 = vld [vmem:[#allocation9 + $0x300] sm:$0xff]  ;;  %v8949_v27 = vld [vmem:[#allocation9 + $0x248] sm:$0xff]  ;;  %v2672_v23 = vpop.f32.mrf.mxu2 }
 0x512   : > { %v3651_v26 = vrot.slane %v3619_v20, 7  ;;  %v3747_v32 = vrot.slane %v3619_v20, 1  ;;  %v3908_v24 = vpack.c.bf16 %v3619_v20, %v3619_v20  ;;  %4643 = vmatpush.bf16.msra.mxu2 %v9020_v57 }
 0x513   : > { %v3488_v9 = vadd.f32 %v3449_v14, %v2668_v51  ;;  %4877 = vmatmul.bf16.gmra.mxu0 %v7926_v53  ;;  %v7931_v43 = vld [vmem:[#allocation3 + $0x144] sm:$0xf0]  ;;  %v3365_v53 = vadd.f32 %v10717_v45, %v10707_v6  ;;  %v8073_v6 = vld [vmem:[#allocation3] sm:$0xf]  ;;  %v8901_v45 = vld [vmem:[#allocation3 + $0x8] sm:$0xf0] }
 0x514   : > { %v3662_v30 = vsel %vm766_vm5, %v3650_v28, %v3651_v26  ;;  %v3758_v63 = vsel %vm863_vm6, %v3746_v13, %v3747_v32  ;;  %3940 = vst [vmem:[#allocation3 + $0x154] sm:$0xf] %v3908_v24  ;;  %v7934_v4 = vor.u32 %v9008_v22, %v7931_v43  ;;  %v3363_v28 = vadd.f32 %v10701_v36, %v10683_v7  ;;  %v8948_v24 = vld [vmem:[#allocation9 + $0x240] sm:$0xff]  ;;  %v11741_v22 = vld [vmem:[#allocation42_spill] sm:$0xff] }
 0x515   : > { %v3715_v44 = vsel %vm434_vm8, %v3662_v30, 0.0  ;;  %v3810_v33 = vsel %vm437_vm9, %v3758_v63, 0.0  ;;  %v3522_v25 = vadd.f32 %v10761_v11, %v3488_v9  ;;  %5308 = vmatpush.bf16.msrb.mxu1 %v8950_v10  ;;  %v8971_v9 = vld [vmem:[#allocation9 + $0x2f8] sm:$0xff] }
 0x516   : > { %v3843_v17 = vpack.c.bf16 %v3715_v44, %v3715_v44  ;;  %v3971_v35 = vpack.c.bf16 %v3810_v33, %v3810_v33  ;;  %4793 = vmatmul.bf16.gmra.mxu3 %v7934_v4 }
 0x517   : > { %vm3555_vm3 = vcmp.gt.f32.partialorder %v3522_v25, 0.0  ;;  %v3588_v13 = vmul.f32 %v10437_v59, %v3522_v25  ;;  %5481 = vmatpush.bf16.msrb.mxu3 %v8971_v9  ;;  %v8968_v9 = vld [vmem:[#allocation9 + $0x2e0] sm:$0xff] }
 0x518   : > { %3876 = vst [vmem:[#allocation3 + $0x150] sm:$0xf] %v3843_v17  ;;  %v10893_v58 = vpop.f32.mrf.mxu0  ;;  %v3451_v8 = vpop.f32.mrf.mxu1 }
 0x519   : > { %4003 = vst [vmem:[#allocation3 + $0x14c] sm:$0xf] %v3971_v35  ;;  %v3620_v1 = vsel %vm3555_vm3, %v3522_v25, %v3588_v13  ;;  %v3452_v49 = vadd.f32 %v3451_v8, %v3363_v28  ;;  %v10896_v18 = vpop.f32.mrf.mxu3  ;;  %5309 = vmatpush.bf16.msrb.mxu1 %v8949_v27  ;;  %v8074_v28 = vor.u32 %v8901_v45, %v8073_v6  ;;  %v8970_v13 = vld [vmem:[#allocation9 + $0x2f0] sm:$0xff] }
 0x51a   : > { %v3652_v38 = vrot.slane %v3620_v1, 7  ;;  %v3748_v47 = vrot.slane %v3620_v1, 1  ;;  %v3909_v7 = vpack.c.bf16 %v3620_v1, %v3620_v1 }
 0x51b   : > { %v3489_v36 = vadd.f32 %v3452_v49, %v2671_v61  ;;  %v9011_v8 = vld [vmem:[#allocation3 + $0x154] sm:$0xf]  ;;  %v9099_v61 = vld [vmem:[#allocation9 + $0x3f8] sm:$0xff]  ;;  %5482 = vmatpush.bf16.msrb.mxu3 %v8970_v13 }
 0x51c   : > { %v3661_v40 = vsel %vm766_vm5, %v3651_v26, %v3652_v38  ;;  %v3757_v19 = vsel %vm863_vm6, %v3747_v32, %v3748_v47  ;;  %3941 = vst [vmem:[#allocation3 + $0x160] sm:$0xf] %v3909_v7  ;;  %v2673_v26 = vadd.f32 %v2672_v23, %v11741_v22  ;;  %v7937_v32 = vld [vmem:[#allocation3 + $0x140] sm:$0xf]  ;;  %v3368_v7 = vadd.f32 %v10741_v55, %v10728_v0  ;;  %v9098_v55 = vld [vmem:[#allocation9 + $0x3f0] sm:$0xff]  ;;  %v8967_v13 = vld [vmem:[#allocation9 + $0x2d8] sm:$0xff] }
 0x51d   : > { %v3844_v51 = vpack.c.bf16 %v3661_v40, %v3661_v40  ;;  %v3972_v20 = vpack.c.bf16 %v3757_v19, %v3757_v19  ;;  %v3523_v14 = vadd.f32 %v10761_v11, %v3489_v36  ;;  %5310 = vmatpush.bf16.msrb.mxu1 %v8948_v24  ;;  %v8969_v40 = vld [vmem:[#allocation9 + $0x2e8] sm:$0xff]  ;;  %6084 = vmatpush.bf16.msra.mxu0 %v9099_v61 }
 0x51f   : > { %3877 = vst [vmem:[#allocation3 + $0x15c] sm:$0xf] %v3844_v51  ;;  %vm3556_vm4 = vcmp.gt.f32.partialorder %v3523_v14, 0.0  ;;  %v3589_v46 = vmul.f32 %v10437_v59, %v3523_v14  ;;  %5483 = vmatpush.bf16.msrb.mxu3 %v8969_v40  ;;  %v8966_v40 = vld [vmem:[#allocation9 + $0x2d0] sm:$0xff] }
 0x520   : > { %4004 = vst [vmem:[#allocation3 + $0x158] sm:$0xf] %v3972_v20  ;;  %v3453_v43 = vpop.f32.mrf.mxu1  ;;  %v9010_v41 = vld [vmem:[#allocation3 + $0x148] sm:$0xf0]  ;;  %v10907_v63 = vpop.f32.mrf.mxu0  ;;  %5311 = vmatmul.bf16.vlgmr.msrb.gmra.mxu1 %v8074_v28 }
 0x521   : > { %v3621_v30 = vsel %vm3556_vm4, %v3523_v14, %v3589_v46  ;;  %v3454_v4 = vadd.f32 %v3453_v43, %v3365_v53  ;;  %v10909_v44 = vpop.f32.mrf.mxu3  ;;  %v7938_v33 = vor.u32 %v9010_v41, %v7937_v32  ;;  %v11742_v20 = vld [vmem:[#allocation43_spill] sm:$0xff]  ;;  %6085 = vmatpush.bf16.msra.mxu0 %v9098_v55  ;;  %v9097_v41 = vld [vmem:[#allocation9 + $0x3e8] sm:$0xff] }
 0x522   : > { %v3653_v25 = vrot.slane %v3621_v30, 7  ;;  %v3749_v17 = vrot.slane %v3621_v30, 1  ;;  %v3910_v35 = vpack.c.bf16 %v3621_v30, %v3621_v30  ;;  %v8963_v32 = vld [vmem:[#allocation9 + $0x2b8] sm:$0xff] }
 0x523   : > { %v3490_v10 = vadd.f32 %v3454_v4, %v2673_v26  ;;  %4882 = vmatmul.bf16.gmra.mxu0 %v7938_v33  ;;  %v7943_v50 = vld [vmem:[#allocation3 + $0x15c] sm:$0xf0]  ;;  %5392 = vmatpush.bf16.msrb.mxu2 %v8963_v32 }
 0x524   : > { %v3660_v1 = vsel %vm766_vm5, %v3652_v38, %v3653_v25  ;;  %v3756_v49 = vsel %vm863_vm6, %v3748_v47, %v3749_v17  ;;  %3942 = vst [vmem:[#allocation3 + $0x16c] sm:$0xf] %v3910_v35  ;;  %v7946_v57 = vor.u32 %v9011_v8, %v7943_v50  ;;  %v2675_v38 = vpop.f32.mrf.mxu2  ;;  %5484 = vmatpush.bf16.msrb.mxu3 %v8968_v9  ;;  %v8965_v32 = vld [vmem:[#allocation9 + $0x2c8] sm:$0xff] }
 0x525   : > { %v3717_v36 = vsel %vm434_vm8, %v3660_v1, 0.0  ;;  %v3812_v27 = vsel %vm437_vm9, %v3756_v49, 0.0  ;;  %v3524_v23 = vadd.f32 %v10761_v11, %v3490_v10  ;;  %v2676_v14 = vadd.f32 %v2675_v38, %v11742_v20  ;;  %6086 = vmatpush.bf16.msra.mxu0 %v9097_v41  ;;  %v9096_v1 = vld [vmem:[#allocation9 + $0x3e0] sm:$0xff] }
 0x526   : > { %v3845_v19 = vpack.c.bf16 %v3717_v36, %v3717_v36  ;;  %v3973_v47 = vpack.c.bf16 %v3812_v27, %v3812_v27  ;;  %4798 = vmatmul.bf16.gmra.mxu3 %v7946_v57  ;;  %v3370_v10 = vadd.f32 %v10764_v52, %v10747_v62  ;;  %v11743_v49 = vld [vmem:[#allocation45_spill] sm:$0xff] }
 0x527   : > { %vm3557_vm7 = vcmp.gt.f32.partialorder %v3524_v23, 0.0  ;;  %v3590_v51 = vmul.f32 %v10437_v59, %v3524_v23 }
 0x528   : > { %3878 = vst [vmem:[#allocation3 + $0x168] sm:$0xf] %v3845_v19  ;;  %v3456_v0 = vpop.f32.mrf.mxu1  ;;  %v10926_v30 = vpop.f32.mrf.mxu0  ;;  %5485 = vmatpush.bf16.msrb.mxu3 %v8967_v13  ;;  %v9093_v13 = vld [vmem:[#allocation9 + $0x3c8] sm:$0xff] }
 0x529   : > { %4005 = vst [vmem:[#allocation3 + $0x164] sm:$0xf] %v3973_v47  ;;  %v3622_v53 = vsel %vm3557_vm7, %v3524_v23, %v3590_v51  ;;  %v3457_v46 = vadd.f32 %v3456_v0, %v3368_v7  ;;  %v10924_v24 = vpop.f32.mrf.mxu3  ;;  %6087 = vmatpush.bf16.msra.mxu0 %v9096_v1  ;;  %v9095_v0 = vld [vmem:[#allocation9 + $0x3d8] sm:$0xff] }
 0x52a   : > { %v3654_v22 = vrot.slane %v3622_v53, 7  ;;  %v3750_v26 = vrot.slane %v3622_v53, 1  ;;  %v3911_v43 = vpack.c.bf16 %v3622_v53, %v3622_v53 }
 0x52b   : > { %v3491_v4 = vadd.f32 %v3457_v46, %v2676_v14  ;;  %v9014_v47 = vld [vmem:[#allocation3 + $0x16c] sm:$0xf] }
 0x52c   : > { %v3659_v33 = vsel %vm766_vm5, %v3653_v25, %v3654_v22  ;;  %v3755_v6 = vsel %vm863_vm6, %v3749_v17, %v3750_v26  ;;  %3943 = vst [vmem:[#allocation3 + $0x178] sm:$0xf] %v3911_v43  ;;  %v7949_v25 = vld [vmem:[#allocation3 + $0x158] sm:$0xf]  ;;  %v2677_v50 = vpop.f32.mrf.mxu2  ;;  %5486 = vmatpush.bf16.msrb.mxu3 %v8966_v40 }
 0x52d   : > { %v3846_v45 = vpack.c.bf16 %v3659_v33, %v3659_v33  ;;  %v3974_v35 = vpack.c.bf16 %v3755_v6, %v3755_v6  ;;  %v3525_v28 = vadd.f32 %v10761_v11, %v3491_v4  ;;  %v2678_v57 = vadd.f32 %v2677_v50, %v11743_v49  ;;  %6088 = vmatpush.bf16.msra.mxu0 %v9095_v0  ;;  %v8973_v0 = vld [vmem:[#allocation3 + $0x20] sm:$0xf0] }
 0x52f   : > { %3879 = vst [vmem:[#allocation3 + $0x174] sm:$0xf] %v3846_v45  ;;  %vm3558_vm10 = vcmp.gt.f32.partialorder %v3525_v28, 0.0  ;;  %v3591_v8 = vmul.f32 %v10437_v59, %v3525_v28  ;;  %v8964_v45 = vld [vmem:[#allocation9 + $0x2c0] sm:$0xff] }
 0x530   : > { %4006 = vst [vmem:[#allocation3 + $0x170] sm:$0xf] %v3974_v35  ;;  %v3458_v17 = vpop.f32.mrf.mxu1  ;;  %v9013_v61 = vld [vmem:[#allocation3 + $0x160] sm:$0xf0]  ;;  %v10947_v9 = vpop.f32.mrf.mxu0  ;;  %5487 = vmatpush.bf16.msrb.mxu3 %v8965_v32 }
 0x531   : > { %v3623_v7 = vsel %vm3558_vm10, %v3525_v28, %v3591_v8  ;;  %v3459_v36 = vadd.f32 %v3458_v17, %v3370_v10  ;;  %v10937_v27 = vpop.f32.mrf.mxu3  ;;  %v7950_v23 = vor.u32 %v9013_v61, %v7949_v25  ;;  %v11744_v8 = vld [vmem:[#allocation36_spill] sm:$0xff]  ;;  %v8962_v32 = vld [vmem:[#allocation9 + $0x2b0] sm:$0xff] }
 0x532   : > { %v3655_v62 = vrot.slane %v3623_v7, 7  ;;  %v3751_v52 = vrot.slane %v3623_v7, 1  ;;  %v3912_v38 = vpack.c.bf16 %v3623_v7, %v3623_v7  ;;  %v11745_v25 = vrot.slane %v11744_v8, 7  ;;  %5393 = vmatpush.bf16.msrb.mxu2 %v8962_v32  ;;  %v8908_v32 = vld [vmem:[#allocation3 + $0x40] sm:$0xf0] }
 0x533   : > { %v3492_v19 = vadd.f32 %v3459_v36, %v2678_v57  ;;  %4887 = vmatmul.bf16.gmra.mxu0 %v7950_v23  ;;  %v7955_v51 = vld [vmem:[#allocation3 + $0x174] sm:$0xf0]  ;;  %v11746_v17 = vrot.slane %v11744_v8, 1  ;;  %v7797_v8 = vld [vmem:[#allocation3 + $0x30] sm:$0xf] }
 0x534   : > { %v3658_v55 = vsel %vm766_vm5, %v3654_v22, %v3655_v62  ;;  %v3754_v20 = vsel %vm863_vm6, %v3750_v26, %v3751_v52  ;;  %3944 = vst [vmem:[#allocation3 + $0x184] sm:$0xf] %v3912_v38  ;;  %v7958_v14 = vor.u32 %v9014_v47, %v7955_v51  ;;  %v9094_v26 = vld [vmem:[#allocation9 + $0x3d0] sm:$0xff]  ;;  %5488 = vmatpush.bf16.msrb.mxu3 %v8964_v45  ;;  %v9092_v38 = vld [vmem:[#allocation9 + $0x3c0] sm:$0xff] }
 0x535   : > { %v3719_v53 = vsel %vm434_vm8, %v3658_v55, 0.0  ;;  %v3814_v46 = vsel %vm437_vm9, %v3754_v20, 0.0  ;;  %v3526_v43 = vadd.f32 %v10761_v11, %v3492_v19  ;;  %6089 = vmatpush.bf16.msra.mxu0 %v9094_v26  ;;  %v8081_v26 = vld [vmem:[#allocation3 + $0x8] sm:$0xf] }
 0x536   : > { %v3847_v41 = vpack.c.bf16 %v3719_v53, %v3719_v53  ;;  %v3975_v4 = vpack.c.bf16 %v3814_v46, %v3814_v46  ;;  %4803 = vmatmul.bf16.gmra.mxu3 %v7958_v14  ;;  %v8904_v14 = vld [vmem:[#allocation3 + $0x20] sm:$0xf0] }
 0x537   : > { %vm3559_vm2 = vcmp.gt.f32.partialorder %v3526_v43, 0.0  ;;  %v3592_v22 = vmul.f32 %v10437_v59, %v3526_v43 }
 0x538   : > { %3880 = vst [vmem:[#allocation3 + $0x180] sm:$0xf] %v3847_v41  ;;  %v10969_v40 = vpop.f32.mrf.mxu0 }
 0x539   : > { %4007 = vst [vmem:[#allocation3 + $0x17c] sm:$0xf] %v3975_v4  ;;  %v3624_v33 = vsel %vm3559_vm2, %v3526_v43, %v3592_v22  ;;  %v10951_v6 = vpop.f32.mrf.mxu3  ;;  %6090 = vmatpush.bf16.msra.mxu0 %v9093_v13  ;;  %v8907_v13 = vld [vmem:[#allocation3 + $0x38] sm:$0xf0] }
 0x53a   : > { %v3656_v35 = vrot.slane %v3624_v33, 7  ;;  %v3752_v28 = vrot.slane %v3624_v33, 1  ;;  %v3913_v11 = vpack.c.bf16 %v3624_v33, %v3624_v33  ;;  %v8902_v33 = vld [vmem:[#allocation3 + $0x10] sm:$0xf0] }
 0x53b   : > { %v9017_v15 = vld [vmem:[#allocation3 + $0x184] sm:$0xf] }
 0x53c   : > { %v3657_v10 = vsel %vm766_vm5, %v3655_v62, %v3656_v35  ;;  %v3688_v59 = vsel %vm766_vm5, %v3656_v35, %v11745_v25  ;;  %v3753_v50 = vsel %vm863_vm6, %v3751_v52, %v3752_v28  ;;  %v3784_v61 = vsel %vm863_vm6, %v3752_v28, %v11746_v17  ;;  %3945 = vst [vmem:[#allocation3 + $0x190] sm:$0xf] %v3913_v11  ;;  %v7961_v62 = vld [vmem:[#allocation3 + $0x170] sm:$0xf]  ;;  %v8976_v11 = vld [vmem:[#allocation3 + $0x38] sm:$0xf0] }
 0x53d   : > { %v3689_v1 = vsel %vm434_vm8, %v3688_v59, 0.0  ;;  %v3816_v49 = vsel %vm437_vm9, %v3784_v61, 0.0  ;;  %v3848_v57 = vpack.c.bf16 %v3657_v10, %v3657_v10  ;;  %v3976_v7 = vpack.c.bf16 %v3753_v50, %v3753_v50  ;;  %6091 = vmatpush.bf16.msra.mxu0 %v9092_v38  ;;  %v8097_v25 = vld [vmem:[#allocation3 + $0x30] sm:$0xf]  ;;  %v9045_v61 = vld [vmem:[#allocation3 + $0x38] sm:$0xf0] }
 0x53e   : > { %v3817_v36 = vpack.c.bf16 %v3689_v1, %v3689_v1  ;;  %v3977_v23 = vpack.c.bf16 %v3816_v49, %v3816_v49  ;;  %v8082_v35 = vor.u32 %v8902_v33, %v8081_v26  ;;  %v7798_v59 = vor.u32 %v8976_v11, %v7797_v8  ;;  %v8361_v49 = vld [vmem:[#allocation3 + $0x30] sm:$0xf]  ;;  %v8982_v33 = vld [vmem:[#allocation3 + $0x68] sm:$0xf0]  ;;  %v8121_v11 = vld [vmem:[#allocation3 + $0x60] sm:$0xf] }
 0x53f   : > { %3881 = vst [vmem:[#allocation3 + $0x18c] sm:$0xf] %v3848_v57  ;;  %v8098_v50 = vor.u32 %v8907_v13, %v8097_v25  ;;  %v8362_v57 = vor.u32 %v9045_v61, %v8361_v49  ;;  %v8385_v61 = vld [vmem:[#allocation3 + $0x60] sm:$0xf] }
 0x540   : > { %3850 = vst [vmem:[#allocation3 + $0x18] sm:$0xf] %v3817_v36  ;;  %v9016_v52 = vld [vmem:[#allocation3 + $0x178] sm:$0xf0]  ;;  %v10973_v43 = vpop.f32.mrf.mxu0  ;;  %v8093_v36 = vld [vmem:[#allocation3 + $0x20] sm:$0xf] }
 0x541   : > { %4008 = vst [vmem:[#allocation3 + $0x188] sm:$0xf] %v3976_v7  ;;  %v7962_v19 = vor.u32 %v9016_v52, %v7961_v62  ;;  %v10971_v21 = vpop.f32.mrf.mxu3  ;;  %v8905_v7 = vld [vmem:[#allocation3 + $0x28] sm:$0xf0]  ;;  %v8979_v62 = vld [vmem:[#allocation3 + $0x50] sm:$0xf0] }
 0x542   : > { %4009 = vst [vmem:[#allocation3 + $0x194] sm:$0xf] %v3977_v23  ;;  %v8094_v23 = vor.u32 %v8905_v7, %v8093_v36  ;;  %v8910_v52 = vld [vmem:[#allocation3 + $0x50] sm:$0xf0]  ;;  %v8117_v7 = vld [vmem:[#allocation3 + $0x50] sm:$0xf] }
 0x543   : > { %4892 = vmatmul.bf16.gmra.mxu0 %v7962_v19  ;;  %v7967_v47 = vld [vmem:[#allocation3 + $0x18c] sm:$0xf0]  ;;  %v7809_v19 = vld [vmem:[#allocation3 + $0x48] sm:$0xf] }
 0x544   : > { %v7970_v51 = vor.u32 %v9017_v15, %v7967_v47  ;;  %v8109_v15 = vld [vmem:[#allocation3 + $0x48] sm:$0xf]  ;;  %v7810_v47 = vor.u32 %v8979_v62, %v7809_v19  ;;  %v8985_v62 = vld [vmem:[#allocation3 + $0x80] sm:$0xf0]  ;;  %v7833_v19 = vld [vmem:[#allocation3 + $0x78] sm:$0xf] }
 0x546   : > { %4808 = vmatmul.bf16.gmra.mxu3 %v7970_v51  ;;  %v8110_v51 = vor.u32 %v8910_v52, %v8109_v15  ;;  %v8916_v52 = vld [vmem:[#allocation3 + $0x80] sm:$0xf0]  ;;  %v8133_v15 = vld [vmem:[#allocation3 + $0x78] sm:$0xf] }
 0x547   : > { %v7785_v55 = vld [vmem:[#allocation3 + $0x18] sm:$0xf] }
 0x548   : > { %v8085_v20 = vld [vmem:[#allocation3 + $0x18] sm:$0xf]  ;;  %v7786_v53 = vor.u32 %v8973_v0, %v7785_v55  ;;  %v7973_v4 = vld [vmem:[#allocation3 + $0x188] sm:$0xf]  ;;  %v10977_v28 = vpop.f32.mrf.mxu0  ;;  %v8961_v55 = vld [vmem:[#allocation9 + $0x2a8] sm:$0xff] }
 0x549   : > { %v8086_v46 = vor.u32 %v8904_v14, %v8085_v20  ;;  %v10975_v41 = vpop.f32.mrf.mxu3  ;;  %v9019_v22 = vld [vmem:[#allocation3 + $0x190] sm:$0xf0]  ;;  %5394 = vmatpush.bf16.msrb.mxu2 %v8961_v55  ;;  %v8373_v14 = vld [vmem:[#allocation3 + $0x48] sm:$0xf]  ;;  %v8134_v55 = vor.u32 %v8916_v52, %v8133_v15 }
 0x54a   : > { %4644 = vmatmul.bf16.vlgmr.msra.gmra.mxu2 %v7786_v53  ;;  %v7974_v45 = vor.u32 %v9019_v22, %v7973_v4  ;;  %v9048_v20 = vld [vmem:[#allocation3 + $0x50] sm:$0xf0]  ;;  %v8105_v4 = vld [vmem:[#allocation3 + $0x38] sm:$0xf] }
 0x54b   : > { %5316 = vmatmul.bf16.gmra.mxu1 %v8086_v46  ;;  %v8374_v46 = vor.u32 %v9048_v20, %v8373_v14  ;;  %v8106_v26 = vor.u32 %v8908_v32, %v8105_v4  ;;  %v8960_v20 = vld [vmem:[#allocation9 + $0x2a0] sm:$0xff]  ;;  %v9054_v14 = vld [vmem:[#allocation3 + $0x80] sm:$0xf0] }
 0x54c   : > { %v8397_v32 = vld [vmem:[#allocation3 + $0x78] sm:$0xf] }
 0x54d   : > { %5395 = vmatpush.bf16.msrb.mxu2 %v8960_v20  ;;  %v8398_v4 = vor.u32 %v9054_v14, %v8397_v32  ;;  %v8991_v20 = vld [vmem:[#allocation3 + $0xb0] sm:$0xf0] }
 0x54e   : > { %v8922_v14 = vld [vmem:[#allocation3 + $0xb0] sm:$0xf0] }
 0x550   : > { %v10981_v17 = vpop.f32.mrf.mxu0 }
 0x551   : > { %v10979_v10 = vpop.f32.mrf.mxu3 }
 0x553   : > { %4897 = vmatmul.bf16.gmra.mxu0 %v7974_v45  ;;  %v8913_v45 = vld [vmem:[#allocation3 + $0x68] sm:$0xf0] }
 0x554   : > { %v8122_v8 = vor.u32 %v8913_v45, %v8121_v11  ;;  %v8129_v45 = vld [vmem:[#allocation3 + $0x68] sm:$0xf]  ;;  %v8988_v11 = vld [vmem:[#allocation3 + $0x98] sm:$0xf0] }
 0x556   : > { %5489 = vmatmul.bf16.vlgmr.msrb.gmra.mxu3 %v8082_v35  ;;  %v7821_v35 = vld [vmem:[#allocation3 + $0x60] sm:$0xf] }
 0x557   : > { %v7822_v13 = vor.u32 %v8982_v33, %v7821_v35 }
 0x558   : > { %v10985_v38 = vpop.f32.mrf.mxu0 }
 0x559   : > { %v10983_v1 = vpop.f32.mrf.mxu3 }
 0x55a   : > { %4649 = vmatmul.bf16.gmra.mxu2 %v7798_v59 }
 0x55b   : > { %5321 = vmatmul.bf16.gmra.mxu1 %v8098_v50  ;;  %v9051_v50 = vld [vmem:[#allocation3 + $0x68] sm:$0xf0] }
 0x55c   : > { %v8386_v49 = vor.u32 %v9051_v50, %v8385_v61  ;;  %v8145_v50 = vld [vmem:[#allocation3 + $0x90] sm:$0xf] }
 0x560   : > { %v10989_v53 = vpop.f32.mrf.mxu0 }
 0x561   : > { %v10987_v0 = vpop.f32.mrf.mxu3 }
 0x563   : > { %6092 = vmatmul.bf16.vlgmr.msra.gmra.mxu0 %v8362_v57  ;;  %v8911_v57 = vld [vmem:[#allocation3 + $0x58] sm:$0xf0] }
 0x564   : > { %v8118_v36 = vor.u32 %v8911_v57, %v8117_v7 }
 0x566   : > { %5494 = vmatmul.bf16.gmra.mxu3 %v8094_v23 }
 0x568   : > { %v10993_v25 = vpop.f32.mrf.mxu0 }
 0x569   : > { %v10991_v22 = vpop.f32.mrf.mxu3 }
 0x56a   : > { %4654 = vmatmul.bf16.gmra.mxu2 %v7810_v47 }
 0x56b   : > { %5326 = vmatmul.bf16.gmra.mxu1 %v8110_v51  ;;  %v7834_v51 = vor.u32 %v8985_v62, %v7833_v19  ;;  %v8409_v62 = vld [vmem:[#allocation3 + $0x90] sm:$0xf]  ;;  %v8917_v19 = vld [vmem:[#allocation3 + $0x88] sm:$0xf0] }
 0x570   : > { %v10997_v23 = vpop.f32.mrf.mxu0 }
 0x571   : > { %v10995_v59 = vpop.f32.mrf.mxu3 }
 0x573   : > { %6097 = vmatmul.bf16.gmra.mxu0 %v8374_v46 }
 0x576   : > { %5499 = vmatmul.bf16.gmra.mxu3 %v8106_v26  ;;  %v8914_v26 = vld [vmem:[#allocation3 + $0x70] sm:$0xf0] }
 0x577   : > { %v8130_v35 = vor.u32 %v8914_v26, %v8129_v45  ;;  %v8157_v26 = vld [vmem:[#allocation3 + $0xa8] sm:$0xf] }
 0x578   : > { %v11001_v46 = vpop.f32.mrf.mxu0 }
 0x579   : > { %v10999_v47 = vpop.f32.mrf.mxu3 }
 0x57a   : > { %4659 = vmatmul.bf16.gmra.mxu2 %v7822_v13  ;;  %v8919_v13 = vld [vmem:[#allocation3 + $0x98] sm:$0xf0] }
 0x57b   : > { %5331 = vmatmul.bf16.gmra.mxu1 %v8122_v8  ;;  %v7845_v8 = vld [vmem:[#allocation3 + $0x90] sm:$0xf] }
 0x57c   : > { %v7846_v61 = vor.u32 %v8988_v11, %v7845_v8  ;;  %v8959_v11 = vld [vmem:[#allocation9 + $0x298] sm:$0xff]  ;;  %v9060_v8 = vld [vmem:[#allocation3 + $0xb0] sm:$0xf0] }
 0x57d   : > { %5396 = vmatpush.bf16.msrb.mxu2 %v8959_v11 }
 0x580   : > { %v11005_v57 = vpop.f32.mrf.mxu0 }
 0x581   : > { %v11003_v33 = vpop.f32.mrf.mxu3 }
 0x583   : > { %6102 = vmatmul.bf16.gmra.mxu0 %v8386_v49  ;;  %v8146_v49 = vor.u32 %v8919_v13, %v8145_v50 }
 0x586   : > { %5504 = vmatmul.bf16.gmra.mxu3 %v8118_v36  ;;  %v9057_v36 = vld [vmem:[#allocation3 + $0x98] sm:$0xf0] }
 0x587   : > { %v8410_v52 = vor.u32 %v9057_v36, %v8409_v62  ;;  %v8920_v36 = vld [vmem:[#allocation3 + $0xa0] sm:$0xf0]  ;;  %v8153_v62 = vld [vmem:[#allocation3 + $0x98] sm:$0xf] }
 0x588   : > { %v11009_v15 = vpop.f32.mrf.mxu0 }
 0x589   : > { %v11007_v7 = vpop.f32.mrf.mxu3 }
 0x58a   : > { %4664 = vmatmul.bf16.gmra.mxu2 %v7834_v51  ;;  %11747 = vst [vmem:[#allocation22_spill] sm:$0xff] %v11007_v7  ;;  %v8141_v51 = vld [vmem:[#allocation3 + $0x80] sm:$0xf]  ;;  %v8926_v7 = vld [vmem:[#allocation3 + $0xd0] sm:$0xf0] }
 0x58b   : > { %5336 = vmatmul.bf16.gmra.mxu1 %v8134_v55  ;;  %v8142_v55 = vor.u32 %v8917_v19, %v8141_v51  ;;  %v8154_v19 = vor.u32 %v8920_v36, %v8153_v62  ;;  %v8994_v51 = vld [vmem:[#allocation3 + $0xc8] sm:$0xf0]  ;;  %v8923_v36 = vld [vmem:[#allocation3 + $0xb8] sm:$0xf0]  ;;  %v8165_v62 = vld [vmem:[#allocation3 + $0xb0] sm:$0xf] }
 0x590   : > { %v11013_v13 = vpop.f32.mrf.mxu0 }
 0x591   : > { %v11011_v32 = vpop.f32.mrf.mxu3  ;;  %11749 = vst [vmem:[#allocation44_spill] sm:$0xff] %v11013_v13  ;;  %v8928_v13 = vld [vmem:[#allocation3 + $0xe0] sm:$0xf0] }
 0x592   : > { %11748 = vst [vmem:[#allocation39_spill] sm:$0xff] %v11011_v32  ;;  %v8997_v32 = vld [vmem:[#allocation3 + $0xe0] sm:$0xf0] }
 0x593   : > { %6107 = vmatmul.bf16.gmra.mxu0 %v8398_v4  ;;  %v7857_v4 = vld [vmem:[#allocation3 + $0xa8] sm:$0xf] }
 0x594   : > { %v7858_v45 = vor.u32 %v8991_v20, %v7857_v4  ;;  %v8169_v4 = vld [vmem:[#allocation3 + $0xc0] sm:$0xf] }
 0x596   : > { %5509 = vmatmul.bf16.gmra.mxu3 %v8130_v35  ;;  %v8158_v35 = vor.u32 %v8922_v14, %v8157_v26  ;;  %v7869_v14 = vld [vmem:[#allocation3 + $0xc0] sm:$0xf] }
 0x597   : > { %v7870_v26 = vor.u32 %v8994_v51, %v7869_v14  ;;  %v8181_v14 = vld [vmem:[#allocation3 + $0xd8] sm:$0xf] }
 0x598   : > { %v11017_v20 = vpop.f32.mrf.mxu0 }
 0x599   : > { %v11015_v50 = vpop.f32.mrf.mxu3  ;;  %11751 = vst [vmem:[#allocation35_spill] sm:$0xff] %v11017_v20  ;;  %v8166_v20 = vor.u32 %v8923_v36, %v8165_v62  ;;  %v9066_v36 = vld [vmem:[#allocation3 + $0xe0] sm:$0xf0] }
 0x59a   : > { %4669 = vmatmul.bf16.gmra.mxu2 %v7846_v61  ;;  %11750 = vst [vmem:[#allocation23_spill] sm:$0xff] %v11015_v50  ;;  %v8421_v61 = vld [vmem:[#allocation3 + $0xa8] sm:$0xf] }
 0x59b   : > { %5341 = vmatmul.bf16.gmra.mxu1 %v8146_v49  ;;  %v8422_v49 = vor.u32 %v9060_v8, %v8421_v61  ;;  %v9063_v8 = vld [vmem:[#allocation3 + $0xc8] sm:$0xf0]  ;;  %v8433_v61 = vld [vmem:[#allocation3 + $0xc0] sm:$0xf] }
 0x59c   : > { %v8434_v50 = vor.u32 %v9063_v8, %v8433_v61 }
 0x5a3   : > { %6112 = vmatmul.bf16.gmra.mxu0 %v8410_v52  ;;  %v5312_v52 = vpop.f32.mrf.mxu1 }
 0x5a6   : > { %5514 = vmatmul.bf16.gmra.mxu3 %v8142_v55  ;;  %v8925_v55 = vld [vmem:[#allocation3 + $0xc8] sm:$0xf0] }
 0x5aa   : > { %4674 = vmatmul.bf16.gmra.mxu2 %v7858_v45  ;;  %v8170_v45 = vor.u32 %v8925_v55, %v8169_v4  ;;  %v7881_v55 = vld [vmem:[#allocation3 + $0xd8] sm:$0xf] }
 0x5ab   : > { %5346 = vmatmul.bf16.gmra.mxu1 %v8158_v35  ;;  %v11019_v35 = vpop.f32.mrf.mxu3  ;;  %v5314_v11 = vpop.f32.mrf.mxu1  ;;  %v7882_v4 = vor.u32 %v8997_v32, %v7881_v55 }
 0x5ac   : > { %11752 = vst [vmem:[#allocation46_spill] sm:$0xff] %v11019_v35 }
 0x5b3   : > { %6117 = vmatmul.bf16.gmra.mxu0 %v8422_v49  ;;  %v11021_v49 = vpop.f32.mrf.mxu0 }
 0x5b4   : > { %11753 = vst [vmem:[#allocation25_spill] sm:$0xff] %v11021_v49 }
 0x5b6   : > { %5519 = vmatmul.bf16.gmra.mxu3 %v8154_v19  ;;  %v11023_v19 = vpop.f32.mrf.mxu3 }
 0x5b7   : > { %11754 = vst [vmem:[#allocation47_spill] sm:$0xff] %v11023_v19  ;;  %v8445_v19 = vld [vmem:[#allocation3 + $0xd8] sm:$0xf] }
 0x5b8   : > { %v8446_v49 = vor.u32 %v9066_v36, %v8445_v19 }
 0x5ba   : > { %4679 = vmatmul.bf16.gmra.mxu2 %v7870_v26  ;;  %v8182_v26 = vor.u32 %v8928_v13, %v8181_v14  ;;  %v8177_v13 = vld [vmem:[#allocation3 + $0xc8] sm:$0xf] }
 0x5bb   : > { %5351 = vmatmul.bf16.gmra.mxu1 %v8170_v45  ;;  %v8958_v45 = vld [vmem:[#allocation9 + $0x290] sm:$0xff]  ;;  %v11025_v35 = vpop.f32.mrf.mxu0  ;;  %v8178_v55 = vor.u32 %v8926_v7, %v8177_v13 }
 0x5bc   : > { %11755 = vst [vmem:[#allocation24_spill] sm:$0xff] %v11025_v35  ;;  %5397 = vmatpush.bf16.msrb.mxu2 %v8958_v45  ;;  %v8931_v45 = vld [vmem:[#allocation3 + $0xf8] sm:$0xf0]  ;;  %v8193_v35 = vld [vmem:[#allocation3 + $0xf0] sm:$0xf] }
 0x5c3   : > { %6122 = vmatmul.bf16.gmra.mxu0 %v8434_v50  ;;  %v11027_v50 = vpop.f32.mrf.mxu3  ;;  %v11033_v14 = vpop.f32.mrf.mxu0 }
 0x5c4   : > { %11756 = vst [vmem:[#allocation37_spill] sm:$0xff] %v11027_v50 }
 0x5c5   : > { %11758 = vst [vmem:[#allocation27_spill] sm:$0xff] %v11033_v14 }
 0x5c6   : > { %5524 = vmatmul.bf16.gmra.mxu3 %v8166_v20 }
 0x5c8   : > { %v5317_v51 = vpop.f32.mrf.mxu1 }
 0x5ca   : > { %4684 = vmatmul.bf16.gmra.mxu2 %v7882_v4 }
 0x5cb   : > { %5356 = vmatmul.bf16.gmra.mxu1 %v8182_v26  ;;  %v9000_v26 = vld [vmem:[#allocation3 + $0xf8] sm:$0xf0]  ;;  %v11042_v13 = vpop.f32.mrf.mxu0 }
 0x5cd   : > { %v4645_v8 = vpop.f32.mrf.mxu2 }
 0x5ce   : > { %v4735_v61 = vadd.f32 %v10771_v5, %v4645_v8  ;;  %v7893_v8 = vld [vmem:[#allocation3 + $0xf0] sm:$0xf] }
 0x5d0   : > { %v5319_v62 = vpop.f32.mrf.mxu1  ;;  %v4824_v20 = vadd.f32 %v10783_v2, %v4735_v61  ;;  %v11036_v2 = vpop.f32.mrf.mxu3  ;;  %v8194_v61 = vor.u32 %v8931_v45, %v8193_v35  ;;  %v8189_v35 = vld [vmem:[#allocation3 + $0xe0] sm:$0xf]  ;;  %v8934_v45 = vld [vmem:[#allocation3 + $0x110] sm:$0xf0] }
 0x5d1   : > { %11759 = vst [vmem:[#allocation38_spill] sm:$0xff] %v11036_v2  ;;  %v8929_v2 = vld [vmem:[#allocation3 + $0xe8] sm:$0xf0] }
 0x5d2   : > { %v11031_v32 = vadd.f32 %v5312_v52, %v4824_v20  ;;  %v7894_v52 = vor.u32 %v9000_v26, %v7893_v8  ;;  %v9069_v20 = vld [vmem:[#allocation3 + $0xf8] sm:$0xf0]  ;;  %v9003_v26 = vld [vmem:[#allocation3 + $0x110] sm:$0xf0] }
 0x5d3   : > { %6127 = vmatmul.bf16.gmra.mxu0 %v8446_v49 }
 0x5d4   : > { %11757 = vst [vmem:[#allocation21_spill] sm:$0xff] %v11031_v32 }
 0x5d5   : > { %v4647_v4 = vpop.f32.mrf.mxu2 }
 0x5d6   : > { %v4737_v50 = vadd.f32 %v10787_v48, %v4647_v4  ;;  %5529 = vmatmul.bf16.gmra.mxu3 %v8178_v55  ;;  %v8457_v4 = vld [vmem:[#allocation3 + $0xf0] sm:$0xf] }
 0x5d7   : > { %v8458_v32 = vor.u32 %v9069_v20, %v8457_v4 }
 0x5d8   : > { %v5322_v5 = vpop.f32.mrf.mxu1  ;;  %v4826_v19 = vadd.f32 %v10801_v3, %v4737_v50  ;;  %v11045_v14 = vpop.f32.mrf.mxu3 }
 0x5da   : > { %4689 = vmatmul.bf16.gmra.mxu2 %v7894_v52  ;;  %v11039_v7 = vadd.f32 %v5314_v11, %v4826_v19  ;;  %v8190_v11 = vor.u32 %v8929_v2, %v8189_v35  ;;  %v7905_v19 = vld [vmem:[#allocation3 + $0x108] sm:$0xf] }
 0x5db   : > { %5361 = vmatmul.bf16.gmra.mxu1 %v8194_v61  ;;  %v8205_v52 = vld [vmem:[#allocation3 + $0x108] sm:$0xf]  ;;  %v7906_v61 = vor.u32 %v9003_v26, %v7905_v19 }
 0x5dd   : > { %v4650_v49 = vpop.f32.mrf.mxu2 }
 0x5de   : > { %v4740_v36 = vadd.f32 %v10805_v56, %v4650_v49  ;;  %v8206_v49 = vor.u32 %v8934_v45, %v8205_v52  ;;  %v9006_v52 = vld [vmem:[#allocation3 + $0x128] sm:$0xf0] }
 0x5e0   : > { %v5324_v48 = vpop.f32.mrf.mxu1  ;;  %v4829_v55 = vadd.f32 %v10815_v34, %v4740_v36  ;;  %v11051_v36 = vpop.f32.mrf.mxu0 }
 0x5e1   : > { %v11055_v2 = vpop.f32.mrf.mxu3 }
 0x5e2   : > { %v11047_v3 = vadd.f32 %v5317_v51, %v4829_v55  ;;  %v8957_v51 = vld [vmem:[#allocation9 + $0x288] sm:$0xff]  ;;  %v9072_v55 = vld [vmem:[#allocation3 + $0x110] sm:$0xf0] }
 0x5e3   : > { %6132 = vmatmul.bf16.gmra.mxu0 %v8458_v32  ;;  %5398 = vmatpush.bf16.msrb.mxu2 %v8957_v51  ;;  %v8217_v51 = vld [vmem:[#allocation3 + $0x120] sm:$0xf] }
 0x5e5   : > { %v4652_v50 = vpop.f32.mrf.mxu2 }
 0x5e6   : > { %v4742_v56 = vadd.f32 %v10819_v31, %v4652_v50  ;;  %5534 = vmatmul.bf16.gmra.mxu3 %v8190_v11  ;;  %v8932_v50 = vld [vmem:[#allocation3 + $0x100] sm:$0xf0] }
 0x5e8   : > { %v5327_v8 = vpop.f32.mrf.mxu1  ;;  %v4831_v34 = vadd.f32 %v10833_v60, %v4742_v56  ;;  %v8469_v60 = vld [vmem:[#allocation3 + $0x108] sm:$0xf]  ;;  %v11061_v45 = vpop.f32.mrf.mxu0 }
 0x5e9   : > { %v8470_v11 = vor.u32 %v9072_v55, %v8469_v60  ;;  %v9107_v55 = vld [vmem:[#allocation9 + $0x438] sm:$0xff] }
 0x5ea   : > { %4694 = vmatmul.bf16.gmra.mxu2 %v7906_v61  ;;  %v11053_v32 = vadd.f32 %v5319_v62, %v4831_v34  ;;  %v8201_v62 = vld [vmem:[#allocation3 + $0xf8] sm:$0xf]  ;;  %v8937_v34 = vld [vmem:[#allocation3 + $0x128] sm:$0xf0]  ;;  %v11063_v61 = vpop.f32.mrf.mxu3  ;;  %6173 = vmatpush.bf16.msra.mxu1 %v9107_v55 }
 0x5eb   : > { %5366 = vmatmul.bf16.gmra.mxu1 %v8206_v49  ;;  %v8202_v56 = vor.u32 %v8932_v50, %v8201_v62 }
 0x5ed   : > { %v4655_v20 = vpop.f32.mrf.mxu2 }
 0x5ee   : > { %v4745_v31 = vadd.f32 %v10836_v39, %v4655_v20 }
 0x5f0   : > { %v5329_v4 = vpop.f32.mrf.mxu1  ;;  %v4834_v35 = vadd.f32 %v10846_v37, %v4745_v31  ;;  %v7917_v37 = vld [vmem:[#allocation3 + $0x120] sm:$0xf]  ;;  %v8218_v31 = vor.u32 %v8937_v34, %v8217_v51  ;;  %v11069_v60 = vpop.f32.mrf.mxu0 }
 0x5f1   : > { %v9105_v51 = vld [vmem:[#allocation9 + $0x428] sm:$0xff] }
 0x5f2   : > { %v11059_v26 = vadd.f32 %v5322_v5, %v4834_v35  ;;  %v7918_v5 = vor.u32 %v9006_v52, %v7917_v37  ;;  %v9106_v52 = vld [vmem:[#allocation9 + $0x430] sm:$0xff]  ;;  %v8213_v37 = vld [vmem:[#allocation3 + $0x110] sm:$0xf] }
 0x5f3   : > { %6137 = vmatmul.bf16.gmra.mxu0 %v8470_v11  ;;  %6174 = vmatpush.bf16.msra.mxu1 %v9106_v52  ;;  %v9104_v52 = vld [vmem:[#allocation9 + $0x420] sm:$0xff] }
 0x5f5   : > { %v4657_v19 = vpop.f32.mrf.mxu2 }
 0x5f6   : > { %v4747_v39 = vadd.f32 %v10849_v42, %v4657_v19  ;;  %5539 = vmatmul.bf16.gmra.mxu3 %v8202_v56  ;;  %v9075_v42 = vld [vmem:[#allocation3 + $0x128] sm:$0xf0]  ;;  %v11074_v56 = vpop.f32.mrf.mxu3  ;;  %v8481_v19 = vld [vmem:[#allocation3 + $0x120] sm:$0xf] }
 0x5f7   : > { %11760 = vst [vmem:[#allocation26_spill] sm:$0xff] %v11074_v56  ;;  %v8482_v34 = vor.u32 %v9075_v42, %v8481_v19  ;;  %6175 = vmatpush.bf16.msra.mxu1 %v9105_v51  ;;  %v8229_v42 = vld [vmem:[#allocation3 + $0x138] sm:$0xf] }
 0x5f8   : > { %v5332_v49 = vpop.f32.mrf.mxu1  ;;  %v4836_v20 = vadd.f32 %v10863_v54, %v4747_v39  ;;  %v8935_v39 = vld [vmem:[#allocation3 + $0x118] sm:$0xf0] }
 0x5fa   : > { %4699 = vmatmul.bf16.gmra.mxu2 %v7918_v5  ;;  %v11067_v35 = vadd.f32 %v5324_v48, %v4836_v20  ;;  %v8214_v20 = vor.u32 %v8935_v39, %v8213_v37  ;;  %v8956_v39 = vld [vmem:[#allocation9 + $0x280] sm:$0xff] }
 0x5fb   : > { %5371 = vmatmul.bf16.gmra.mxu1 %v8218_v31  ;;  %v8940_v31 = vld [vmem:[#allocation3 + $0x140] sm:$0xf0]  ;;  %5399 = vmatpush.bf16.msrb.mxu2 %v8956_v39  ;;  %v9012_v39 = vld [vmem:[#allocation3 + $0x158] sm:$0xf0] }
 0x5fc   : > { %6176 = vmatpush.bf16.msra.mxu1 %v9104_v52 }
 0x5fd   : > { %v4660_v11 = vpop.f32.mrf.mxu2 }
 0x5fe   : > { %v4750_v50 = vadd.f32 %v10866_v29, %v4660_v11  ;;  %v9009_v29 = vld [vmem:[#allocation3 + $0x140] sm:$0xf0]  ;;  %v11080_v11 = vpop.f32.mrf.mxu0 }
 0x600   : > { %v11072_v62 = vpop.f32.mrf.mxu1  ;;  %v4839_v54 = vadd.f32 %v10876_v12, %v4750_v50  ;;  %v7929_v50 = vld [vmem:[#allocation3 + $0x138] sm:$0xf] }
 0x602   : > { %v11077_v48 = vadd.f32 %v5327_v8, %v4839_v54  ;;  %v7930_v8 = vor.u32 %v9009_v29, %v7929_v50  ;;  %v8230_v54 = vor.u32 %v8940_v31, %v8229_v42  ;;  %v8493_v29 = vld [vmem:[#allocation3 + $0x138] sm:$0xf]  ;;  %v9102_v31 = vld [vmem:[#allocation9 + $0x410] sm:$0xff]  ;;  %v8938_v42 = vld [vmem:[#allocation3 + $0x130] sm:$0xf0] }
 0x603   : > { %6142 = vmatmul.bf16.gmra.mxu0 %v8482_v34  ;;  %v11083_v34 = vpop.f32.mrf.mxu3 }
 0x604   : > { %11761 = vst [vmem:[#allocation29_spill] sm:$0xff] %v11083_v34  ;;  %v8241_v34 = vld [vmem:[#allocation3 + $0x150] sm:$0xf] }
 0x605   : > { %v4662_v5 = vpop.f32.mrf.mxu2 }
 0x606   : > { %v4752_v55 = vadd.f32 %v10879_v16, %v4662_v5  ;;  %5544 = vmatmul.bf16.gmra.mxu3 %v8214_v20  ;;  %v9103_v16 = vld [vmem:[#allocation9 + $0x418] sm:$0xff]  ;;  %v9078_v5 = vld [vmem:[#allocation3 + $0x140] sm:$0xf0] }
 0x607   : > { %6177 = vmatpush.bf16.msra.mxu1 %v9103_v16  ;;  %v8494_v50 = vor.u32 %v9078_v5, %v8493_v29  ;;  %v8943_v16 = vld [vmem:[#allocation3 + $0x158] sm:$0xf0]  ;;  %v9100_v29 = vld [vmem:[#allocation9 + $0x400] sm:$0xff] }
 0x608   : > { %v5337_v12 = vpop.f32.mrf.mxu1  ;;  %v4841_v19 = vadd.f32 %v10893_v58, %v4752_v55  ;;  %v11089_v55 = vpop.f32.mrf.mxu0 }
 0x60a   : > { %4704 = vmatmul.bf16.gmra.mxu2 %v7930_v8  ;;  %v11085_v37 = vadd.f32 %v5329_v4, %v4841_v19  ;;  %v8225_v4 = vld [vmem:[#allocation3 + $0x128] sm:$0xf]  ;;  %v9101_v19 = vld [vmem:[#allocation9 + $0x408] sm:$0xff] }
 0x60b   : > { %5376 = vmatmul.bf16.gmra.mxu1 %v8230_v54  ;;  %v11093_v54 = vpop.f32.mrf.mxu3 }
 0x60c   : > { %6178 = vmatpush.bf16.msra.mxu1 %v9102_v31  ;;  %11762 = vst [vmem:[#allocation28_spill] sm:$0xff] %v11093_v54 }
 0x60d   : > { %v4665_v51 = vpop.f32.mrf.mxu2 }
 0x60e   : > { %v4755_v20 = vadd.f32 %v10896_v18, %v4665_v51  ;;  %v8226_v18 = vor.u32 %v8938_v42, %v8225_v4 }
 0x610   : > { %v5339_v56 = vpop.f32.mrf.mxu1  ;;  %v4844_v58 = vadd.f32 %v10907_v63, %v4755_v20  ;;  %v7941_v20 = vld [vmem:[#allocation3 + $0x150] sm:$0xf]  ;;  %6179 = vmatpush.bf16.msra.mxu1 %v9101_v19 }
 0x611   : > { %v7942_v5 = vor.u32 %v9012_v39, %v7941_v20  ;;  %v8941_v39 = vld [vmem:[#allocation3 + $0x148] sm:$0xf0] }
 0x612   : > { %v11091_v8 = vadd.f32 %v5332_v49, %v4844_v58  ;;  %v8242_v58 = vor.u32 %v8943_v16, %v8241_v34 }
 0x613   : > { %6147 = vmatmul.bf16.gmra.mxu0 %v8494_v50  ;;  %v11100_v50 = vpop.f32.mrf.mxu0 }
 0x614   : > { %6180 = vmatpush.bf16.msra.mxu1 %v9100_v29 }
 0x615   : > { %v4667_v52 = vpop.f32.mrf.mxu2 }
 0x616   : > { %v4757_v63 = vadd.f32 %v10909_v44, %v4667_v52  ;;  %5549 = vmatmul.bf16.gmra.mxu3 %v8226_v18  ;;  %v11102_v44 = vpop.f32.mrf.mxu3  ;;  %v9081_v18 = vld [vmem:[#allocation3 + $0x158] sm:$0xf0]  ;;  %v8505_v52 = vld [vmem:[#allocation3 + $0x150] sm:$0xf] }
 0x617   : > { %11763 = vst [vmem:[#allocation30_spill] sm:$0xff] %v11102_v44  ;;  %v8506_v34 = vor.u32 %v9081_v18, %v8505_v52  ;;  %v8253_v44 = vld [vmem:[#allocation3 + $0x168] sm:$0xf] }
 0x618   : > { %v5342_v51 = vpop.f32.mrf.mxu1  ;;  %v4846_v49 = vadd.f32 %v10926_v30, %v4757_v63 }
 0x61a   : > { %4709 = vmatmul.bf16.gmra.mxu2 %v7942_v5  ;;  %v11098_v31 = vadd.f32 %v11072_v62, %v4846_v49  ;;  %v8237_v62 = vld [vmem:[#allocation3 + $0x140] sm:$0xf]  ;;  %v9015_v5 = vld [vmem:[#allocation3 + $0x170] sm:$0xf0] }
 0x61b   : > { %5381 = vmatmul.bf16.gmra.mxu1 %v8242_v58  ;;  %v8238_v63 = vor.u32 %v8941_v39, %v8237_v62  ;;  %v11108_v20 = vpop.f32.mrf.mxu0  ;;  %v8946_v58 = vld [vmem:[#allocation3 + $0x170] sm:$0xf0] }
 0x61c   : > { %v8254_v18 = vor.u32 %v8946_v58, %v8253_v44 }
 0x61d   : > { %v4670_v42 = vpop.f32.mrf.mxu2 }
 0x61e   : > { %v4760_v4 = vadd.f32 %v10924_v24, %v4670_v42  ;;  %v7953_v42 = vld [vmem:[#allocation3 + $0x168] sm:$0xf] }
 0x620   : > { %v5344_v19 = vpop.f32.mrf.mxu1  ;;  %v4849_v30 = vadd.f32 %v10947_v9, %v4760_v4  ;;  %v11111_v9 = vpop.f32.mrf.mxu3 }
 0x621   : > { %11764 = vst [vmem:[#allocation32_spill] sm:$0xff] %v11111_v9  ;;  %v8517_v9 = vld [vmem:[#allocation3 + $0x168] sm:$0xf] }
 0x622   : > { %v11106_v16 = vadd.f32 %v5337_v12, %v4849_v30  ;;  %v7954_v12 = vor.u32 %v9015_v5, %v7953_v42  ;;  %v9115_v30 = vld [vmem:[#allocation9 + $0x478] sm:$0xff] }
 0x623   : > { %6152 = vmatmul.bf16.gmra.mxu0 %v8506_v34  ;;  %6262 = vmatpush.bf16.msra.mxu2 %v9115_v30  ;;  %v11117_v62 = vpop.f32.mrf.mxu0  ;;  %v9018_v42 = vld [vmem:[#allocation3 + $0x188] sm:$0xf0]  ;;  %v9044_v30 = vld [vmem:[#allocation3 + $0x34] sm:$0xf] }
 0x625   : > { %v4672_v49 = vpop.f32.mrf.mxu2 }
 0x626   : > { %v4762_v29 = vadd.f32 %v10937_v27, %v4672_v49  ;;  %5554 = vmatmul.bf16.gmra.mxu3 %v8238_v63  ;;  %v9084_v27 = vld [vmem:[#allocation3 + $0x170] sm:$0xf0] }
 0x627   : > { %v8518_v54 = vor.u32 %v9084_v27, %v8517_v9 }
 0x628   : > { %v5347_v24 = vpop.f32.mrf.mxu1  ;;  %v4851_v4 = vadd.f32 %v10969_v40, %v4762_v29  ;;  %v8944_v40 = vld [vmem:[#allocation3 + $0x160] sm:$0xf0]  ;;  %v11120_v5 = vpop.f32.mrf.mxu3 }
 0x62a   : > { %4714 = vmatmul.bf16.gmra.mxu2 %v7954_v12  ;;  %v11114_v52 = vadd.f32 %v5339_v56, %v4851_v4  ;;  %v8249_v56 = vld [vmem:[#allocation3 + $0x158] sm:$0xf]  ;;  %v8363_v4 = vld [vmem:[#allocation3 + $0x3c] sm:$0xf0] }
 0x62b   : > { %5386 = vmatmul.bf16.gmra.mxu1 %v8254_v18  ;;  %v8250_v58 = vor.u32 %v8944_v40, %v8249_v56  ;;  %v7965_v18 = vld [vmem:[#allocation3 + $0x180] sm:$0xf] }
 0x62c   : > { %v7966_v9 = vor.u32 %v9018_v42, %v7965_v18  ;;  %v8075_v18 = vld [vmem:[#allocation3 + $0xc] sm:$0xf0] }
 0x62d   : > { %v4675_v34 = vpop.f32.mrf.mxu2 }
 0x62e   : > { %v4765_v39 = vadd.f32 %v10951_v6, %v4675_v34  ;;  %v8366_v34 = vor.u32 %v9044_v30, %v8363_v4 }
 0x630   : > { %v5349_v63 = vpop.f32.mrf.mxu1  ;;  %v4854_v49 = vadd.f32 %v10973_v43, %v4765_v39  ;;  %v11126_v39 = vpop.f32.mrf.mxu0 }
 0x632   : > { %v11122_v44 = vadd.f32 %v5342_v51, %v4854_v49  ;;  %v11130_v51 = vpop.f32.mrf.mxu3 }
 0x633   : > { %6157 = vmatmul.bf16.gmra.mxu0 %v8518_v54 }
 0x635   : > { %v4677_v29 = vpop.f32.mrf.mxu2 }
 0x636   : > { %v4767_v6 = vadd.f32 %v10971_v21, %v4677_v29  ;;  %5559 = vmatmul.bf16.gmra.mxu3 %v8250_v58  ;;  %v9087_v21 = vld [vmem:[#allocation3 + $0x188] sm:$0xf0]  ;;  %v8529_v58 = vld [vmem:[#allocation3 + $0x180] sm:$0xf] }
 0x637   : > { %v8530_v29 = vor.u32 %v9087_v21, %v8529_v58 }
 0x638   : > { %v5352_v12 = vpop.f32.mrf.mxu1  ;;  %v4856_v43 = vadd.f32 %v10977_v28, %v4767_v6  ;;  %v8947_v28 = vld [vmem:[#allocation3 + $0x178] sm:$0xf0]  ;;  %v11136_v4 = vpop.f32.mrf.mxu0  ;;  %v8261_v6 = vld [vmem:[#allocation3 + $0x170] sm:$0xf] }
 0x639   : > { %v8262_v30 = vor.u32 %v8947_v28, %v8261_v6 }
 0x63a   : > { %4719 = vmatmul.bf16.gmra.mxu2 %v7966_v9  ;;  %v11128_v54 = vadd.f32 %v5344_v19, %v4856_v43  ;;  %v8900_v19 = vld [vmem:[#allocation3 + $0x4] sm:$0xf]  ;;  %v8375_v9 = vld [vmem:[#allocation3 + $0x54] sm:$0xf0] }
 0x63b   : > { %6181 = vmatmul.bf16.vlgmr.msra.gmra.mxu1 %v8366_v34  ;;  %v11138_v34 = vpop.f32.mrf.mxu3 }
 0x63c   : > { %11765 = vst [vmem:[#allocation34_spill] sm:$0xff] %v11138_v34 }
 0x63d   : > { %v4680_v27 = vpop.f32.mrf.mxu2 }
 0x63e   : > { %v4770_v49 = vadd.f32 %v10975_v41, %v4680_v27 }
 0x640   : > { %v5354_v40 = vpop.f32.mrf.mxu1  ;;  %v4859_v56 = vadd.f32 %v10981_v17, %v4770_v49  ;;  %v8078_v17 = vor.u32 %v8900_v19, %v8075_v18  ;;  %v9047_v49 = vld [vmem:[#allocation3 + $0x4c] sm:$0xf]  ;;  %v8087_v18 = vld [vmem:[#allocation3 + $0x24] sm:$0xf0] }
 0x641   : > { %v8378_v21 = vor.u32 %v9047_v49, %v8375_v9  ;;  %v9050_v9 = vld [vmem:[#allocation3 + $0x64] sm:$0xf] }
 0x642   : > { %v11134_v42 = vadd.f32 %v5347_v24, %v4859_v56  ;;  %v9114_v56 = vld [vmem:[#allocation9 + $0x470] sm:$0xff] }
 0x643   : > { %6162 = vmatmul.bf16.gmra.mxu0 %v8530_v29  ;;  %6263 = vmatpush.bf16.msra.mxu2 %v9114_v56 }
 0x645   : > { %v4682_v43 = vpop.f32.mrf.mxu2 }
 0x646   : > { %v4772_v41 = vadd.f32 %v10979_v10, %v4682_v43  ;;  %5564 = vmatmul.bf16.gmra.mxu3 %v8262_v30  ;;  %v8387_v30 = vld [vmem:[#allocation3 + $0x6c] sm:$0xf0]  ;;  %v8903_v43 = vld [vmem:[#allocation3 + $0x1c] sm:$0xf] }
 0x648   : > { %v5357_v27 = vpop.f32.mrf.mxu1  ;;  %v4861_v24 = vadd.f32 %v10985_v38, %v4772_v41 }
 0x64a   : > { %5400 = vmatmul.bf16.vlgmr.msrb.gmra.mxu2 %v8078_v17  ;;  %v11142_v58 = vadd.f32 %v5349_v63, %v4861_v24  ;;  %v8090_v63 = vor.u32 %v8903_v43, %v8087_v18  ;;  %v8390_v17 = vor.u32 %v9050_v9, %v8387_v30 }
 0x64b   : > { %6186 = vmatmul.bf16.gmra.mxu1 %v8378_v21 }
 0x64d   : > { %v4685_v29 = vpop.f32.mrf.mxu2 }
 0x64e   : > { %v4775_v28 = vadd.f32 %v10983_v1, %v4685_v29  ;;  %v8099_v29 = vld [vmem:[#allocation3 + $0x3c] sm:$0xf0] }
 0x650   : > { %v4864_v6 = vadd.f32 %v10989_v53, %v4775_v28  ;;  %v5359_v34 = vpop.f32.mrf.mxu1  ;;  %v8399_v28 = vld [vmem:[#allocation3 + $0x84] sm:$0xf0] }
 0x652   : > { %v11146_v10 = vadd.f32 %v5352_v12, %v4864_v6  ;;  %v8906_v6 = vld [vmem:[#allocation3 + $0x34] sm:$0xf] }
 0x655   : > { %v4687_v19 = vpop.f32.mrf.mxu2 }
 0x656   : > { %v4777_v38 = vadd.f32 %v10987_v0, %v4687_v19  ;;  %v9053_v19 = vld [vmem:[#allocation3 + $0x7c] sm:$0xf] }
 0x657   : > { %v8402_v30 = vor.u32 %v9053_v19, %v8399_v28 }
 0x658   : > { %v4866_v41 = vadd.f32 %v10993_v25, %v4777_v38  ;;  %v5362_v1 = vpop.f32.mrf.mxu1  ;;  %v9113_v38 = vld [vmem:[#allocation9 + $0x468] sm:$0xff] }
 0x659   : > { %6264 = vmatpush.bf16.msra.mxu2 %v9113_v38  ;;  %v11768_v38 = vld [vmem:[#allocation39_spill] sm:$0xff] }
 0x65a   : > { %5405 = vmatmul.bf16.gmra.mxu2 %v8090_v63  ;;  %v11150_v49 = vadd.f32 %v5354_v40, %v4866_v41  ;;  %v8102_v40 = vor.u32 %v8906_v6, %v8099_v29  ;;  %v8111_v63 = vld [vmem:[#allocation3 + $0x54] sm:$0xf0] }
 0x65b   : > { %6191 = vmatmul.bf16.gmra.mxu1 %v8390_v17  ;;  %v8411_v17 = vld [vmem:[#allocation3 + $0x9c] sm:$0xf0] }
 0x65d   : > { %v4690_v53 = vpop.f32.mrf.mxu2 }
 0x65e   : > { %v4780_v12 = vadd.f32 %v10991_v22, %v4690_v53  ;;  %v8909_v53 = vld [vmem:[#allocation3 + $0x4c] sm:$0xf] }
 0x660   : > { %v4869_v24 = vadd.f32 %v10997_v23, %v4780_v12  ;;  %v5364_v56 = vpop.f32.mrf.mxu1  ;;  %v9056_v12 = vld [vmem:[#allocation3 + $0x94] sm:$0xf] }
 0x662   : > { %v11154_v21 = vadd.f32 %v5357_v27, %v4869_v24 }
 0x665   : > { %v4692_v0 = vpop.f32.mrf.mxu2 }
 0x666   : > { %v4782_v25 = vadd.f32 %v10995_v59, %v4692_v0  ;;  %v8414_v0 = vor.u32 %v9056_v12, %v8411_v17  ;;  %v9112_v17 = vld [vmem:[#allocation9 + $0x460] sm:$0xff]  ;;  %v11770_v12 = vld [vmem:[#allocation23_spill] sm:$0xff] }
 0x667   : > { %6265 = vmatpush.bf16.msra.mxu2 %v9112_v17 }
 0x668   : > { %v4871_v18 = vadd.f32 %v11001_v46, %v4782_v25  ;;  %v5367_v43 = vpop.f32.mrf.mxu1  ;;  %v11767_v25 = vld [vmem:[#allocation44_spill] sm:$0xff] }
 0x66a   : > { %5410 = vmatmul.bf16.gmra.mxu2 %v8102_v40  ;;  %v11158_v22 = vadd.f32 %v5359_v34, %v4871_v18  ;;  %v8114_v34 = vor.u32 %v8909_v53, %v8111_v63  ;;  %v8123_v40 = vld [vmem:[#allocation3 + $0x6c] sm:$0xf0] }
 0x66b   : > { %6196 = vmatmul.bf16.gmra.mxu1 %v8402_v30  ;;  %v8423_v30 = vld [vmem:[#allocation3 + $0xb4] sm:$0xf0] }
 0x66d   : > { %v4695_v23 = vpop.f32.mrf.mxu2 }
 0x66e   : > { %v4785_v27 = vadd.f32 %v10999_v47, %v4695_v23  ;;  %v8912_v23 = vld [vmem:[#allocation3 + $0x64] sm:$0xf] }
 0x66f   : > { %v8126_v63 = vor.u32 %v8912_v23, %v8123_v40 }
 0x670   : > { %v4874_v9 = vadd.f32 %v11005_v57, %v4785_v27  ;;  %v5369_v29 = vpop.f32.mrf.mxu1  ;;  %v11766_v57 = vld [vmem:[#allocation22_spill] sm:$0xff]  ;;  %v9059_v27 = vld [vmem:[#allocation3 + $0xac] sm:$0xf] }
 0x672   : > { %v11162_v41 = vadd.f32 %v5362_v1, %v4874_v9  ;;  %v11769_v9 = vld [vmem:[#allocation35_spill] sm:$0xff] }
 0x675   : > { %v4697_v59 = vpop.f32.mrf.mxu2 }
 0x676   : > { %v4787_v46 = vadd.f32 %v11003_v33, %v4697_v59 }
 0x678   : > { %v4876_v24 = vadd.f32 %v11009_v15, %v4787_v46  ;;  %v5372_v18 = vpop.f32.mrf.mxu1 }
 0x67a   : > { %5415 = vmatmul.bf16.gmra.mxu2 %v8114_v34  ;;  %v11166_v47 = vadd.f32 %v5364_v56, %v4876_v24  ;;  %v8426_v56 = vor.u32 %v9059_v27, %v8423_v30  ;;  %v11771_v34 = vld [vmem:[#allocation25_spill] sm:$0xff] }
 0x67b   : > { %6201 = vmatmul.bf16.gmra.mxu1 %v8414_v0  ;;  %v8915_v30 = vld [vmem:[#allocation3 + $0x7c] sm:$0xf] }
 0x67d   : > { %v4700_v28 = vpop.f32.mrf.mxu2 }
 0x67e   : > { %v4790_v1 = vadd.f32 %v11766_v57, %v4700_v28 }
 0x680   : > { %v4879_v6 = vadd.f32 %v11767_v25, %v4790_v1  ;;  %v8135_v1 = vld [vmem:[#allocation3 + $0x84] sm:$0xf0]  ;;  %v8435_v25 = vld [vmem:[#allocation3 + $0xcc] sm:$0xf0] }
 0x681   : > { %v8138_v23 = vor.u32 %v8915_v30, %v8135_v1  ;;  %v9065_v1 = vld [vmem:[#allocation3 + $0xdc] sm:$0xf] }
 0x682   : > { %v11170_v19 = vadd.f32 %v5367_v43, %v4879_v6  ;;  %v5374_v43 = vpop.f32.mrf.mxu1  ;;  %v11772_v6 = vld [vmem:[#allocation46_spill] sm:$0xff] }
 0x685   : > { %v4702_v33 = vpop.f32.mrf.mxu2 }
 0x686   : > { %v4792_v15 = vadd.f32 %v11768_v38, %v4702_v33  ;;  %v9062_v38 = vld [vmem:[#allocation3 + $0xc4] sm:$0xf] }
 0x687   : > { %v8438_v27 = vor.u32 %v9062_v38, %v8435_v25  ;;  %v9111_v38 = vld [vmem:[#allocation9 + $0x458] sm:$0xff] }
 0x688   : > { %v4881_v59 = vadd.f32 %v11769_v9, %v4792_v15  ;;  %v11773_v15 = vld [vmem:[#allocation24_spill] sm:$0xff]  ;;  %6266 = vmatpush.bf16.msra.mxu2 %v9111_v38 }
 0x68a   : > { %5420 = vmatmul.bf16.gmra.mxu2 %v8126_v63  ;;  %v11174_v46 = vadd.f32 %v5369_v29, %v4881_v59  ;;  %v5377_v40 = vpop.f32.mrf.mxu1  ;;  %v11774_v63 = vld [vmem:[#allocation47_spill] sm:$0xff] }
 0x68b   : > { %6206 = vmatmul.bf16.gmra.mxu1 %v8426_v56  ;;  %v11775_v56 = vld [vmem:[#allocation27_spill] sm:$0xff] }
 0x68d   : > { %v4705_v53 = vpop.f32.mrf.mxu2 }
 0x68e   : > { %v4795_v24 = vadd.f32 %v11770_v12, %v4705_v53 }
 0x690   : > { %v4884_v0 = vadd.f32 %v11771_v34, %v4795_v24  ;;  %v8147_v34 = vld [vmem:[#allocation3 + $0x9c] sm:$0xf0] }
 0x692   : > { %v11178_v28 = vadd.f32 %v5372_v18, %v4884_v0  ;;  %v5379_v53 = vpop.f32.mrf.mxu1  ;;  %v8447_v0 = vld [vmem:[#allocation3 + $0xe4] sm:$0xf0] }
 0x695   : > { %v4707_v57 = vpop.f32.mrf.mxu2 }
 0x696   : > { %v4797_v33 = vadd.f32 %v11772_v6, %v4707_v57  ;;  %v11776_v57 = vld [vmem:[#allocation37_spill] sm:$0xff] }
 0x698   : > { %v4886_v29 = vadd.f32 %v11773_v15, %v4797_v33  ;;  %v8918_v33 = vld [vmem:[#allocation3 + $0x94] sm:$0xf] }
 0x699   : > { %v8150_v30 = vor.u32 %v8918_v33, %v8147_v34  ;;  %v8921_v34 = vld [vmem:[#allocation3 + $0xac] sm:$0xf] }
 0x69a   : > { %5425 = vmatmul.bf16.gmra.mxu2 %v8138_v23  ;;  %v11182_v9 = vadd.f32 %v5374_v43, %v4886_v29  ;;  %v8450_v43 = vor.u32 %v9065_v1, %v8447_v0  ;;  %v5382_v29 = vpop.f32.mrf.mxu1  ;;  %v11777_v23 = vld [vmem:[#allocation38_spill] sm:$0xff]  ;;  %v9068_v0 = vld [vmem:[#allocation3 + $0xf4] sm:$0xf] }
 0x69b   : > { %6211 = vmatmul.bf16.gmra.mxu1 %v8438_v27 }
 0x69d   : > { %v4710_v59 = vpop.f32.mrf.mxu2 }
 0x69e   : > { %v4800_v18 = vadd.f32 %v11774_v63, %v4710_v59 }
 0x6a0   : > { %v4889_v17 = vadd.f32 %v11775_v56, %v4800_v18 }
 0x6a2   : > { %v11186_v12 = vadd.f32 %v5377_v40, %v4889_v17  ;;  %v5384_v18 = vpop.f32.mrf.mxu1  ;;  %v8159_v17 = vld [vmem:[#allocation3 + $0xb4] sm:$0xf0] }
 0x6a5   : > { %v4712_v24 = vpop.f32.mrf.mxu2 }
 0x6a6   : > { %v4802_v6 = vadd.f32 %v11776_v57, %v4712_v24  ;;  %v8162_v57 = vor.u32 %v8921_v34, %v8159_v17 }
 0x6a8   : > { %v4891_v25 = vadd.f32 %v11042_v13, %v4802_v6  ;;  %v8459_v13 = vld [vmem:[#allocation3 + $0xfc] sm:$0xf0] }
 0x6a9   : > { %v8462_v6 = vor.u32 %v9068_v0, %v8459_v13 }
 0x6aa   : > { %5430 = vmatmul.bf16.gmra.mxu2 %v8150_v30  ;;  %v11190_v15 = vadd.f32 %v5379_v53, %v4891_v25  ;;  %v5387_v25 = vpop.f32.mrf.mxu1 }
 0x6ab   : > { %6216 = vmatmul.bf16.gmra.mxu1 %v8450_v43  ;;  %v9123_v43 = vld [vmem:[#allocation12 + $0x38] sm:$0xff] }
 0x6ac   : > { %6599 = vmatpush.bf16.msra.mxu3 %v9123_v43  ;;  %v9122_v43 = vld [vmem:[#allocation12 + $0x30] sm:$0xff] }
 0x6ad   : > { %v4715_v40 = vpop.f32.mrf.mxu2 }
 0x6ae   : > { %v4805_v27 = vadd.f32 %v11777_v23, %v4715_v40  ;;  %v8471_v40 = vld [vmem:[#allocation3 + $0x114] sm:$0xf0]  ;;  %v8924_v23 = vld [vmem:[#allocation3 + $0xc4] sm:$0xf] }
 0x6b0   : > { %v4894_v59 = vadd.f32 %v11051_v36, %v4805_v27  ;;  %v9071_v27 = vld [vmem:[#allocation3 + $0x10c] sm:$0xf]  ;;  %6600 = vmatpush.bf16.msra.mxu3 %v9122_v43 }
 0x6b2   : > { %v11194_v63 = vadd.f32 %v5382_v29, %v4894_v59  ;;  %v8171_v29 = vld [vmem:[#allocation3 + $0xcc] sm:$0xf0]  ;;  %v5389_v17 = vpop.f32.mrf.mxu1 }
 0x6b5   : > { %v4717_v56 = vpop.f32.mrf.mxu2 }
 0x6b6   : > { %v4807_v24 = vadd.f32 %v11045_v14, %v4717_v56  ;;  %v8474_v56 = vor.u32 %v9071_v27, %v8471_v40  ;;  %v8495_v40 = vld [vmem:[#allocation3 + $0x144] sm:$0xf0] }
 0x6b8   : > { %v4896_v53 = vadd.f32 %v11061_v45, %v4807_v24  ;;  %v11778_v24 = vld [vmem:[#allocation21_spill] sm:$0xff] }
 0x6ba   : > { %5435 = vmatmul.bf16.gmra.mxu2 %v8162_v57  ;;  %v11198_v33 = vadd.f32 %v5384_v18, %v4896_v53  ;;  %v8174_v18 = vor.u32 %v8924_v23, %v8171_v29  ;;  %v8183_v53 = vld [vmem:[#allocation3 + $0xe4] sm:$0xf0]  ;;  %v8195_v29 = vld [vmem:[#allocation3 + $0xfc] sm:$0xf0]  ;;  %v9077_v23 = vld [vmem:[#allocation3 + $0x13c] sm:$0xf]  ;;  %v11220_v27 = vpop.f32.mrf.mxu1 }
 0x6bb   : > { %6221 = vmatmul.bf16.gmra.mxu1 %v8462_v6  ;;  %v9074_v6 = vld [vmem:[#allocation3 + $0x124] sm:$0xf] }
 0x6bd   : > { %v4720_v1 = vpop.f32.mrf.mxu2 }
 0x6be   : > { %v4810_v36 = vadd.f32 %v11055_v2, %v4720_v1  ;;  %v9110_v2 = vld [vmem:[#allocation9 + $0x450] sm:$0xff] }
 0x6bf   : > { %6267 = vmatpush.bf16.msra.mxu2 %v9110_v2 }
 0x6c0   : > { %v4899_v30 = vadd.f32 %v11069_v60, %v4810_v36 }
 0x6c2   : > { %v11202_v38 = vadd.f32 %v5387_v25, %v4899_v30  ;;  %v11225_v2 = vpop.f32.mrf.mxu1 }
 0x6c5   : > { %v4722_v14 = vpop.f32.mrf.mxu2 }
 0x6c6   : > { %v4812_v45 = vadd.f32 %v11063_v61, %v4722_v14  ;;  %v8483_v61 = vld [vmem:[#allocation3 + $0x12c] sm:$0xf0] }
 0x6c7   : > { %v8486_v36 = vor.u32 %v9074_v6, %v8483_v61  ;;  %v9080_v61 = vld [vmem:[#allocation3 + $0x154] sm:$0xf] }
 0x6c8   : > { %v4901_v59 = vadd.f32 %v11080_v11, %v4812_v45  ;;  %v8927_v11 = vld [vmem:[#allocation3 + $0xdc] sm:$0xf] }
 0x6c9   : > { %v8186_v1 = vor.u32 %v8927_v11, %v8183_v53  ;;  %v8933_v53 = vld [vmem:[#allocation3 + $0x10c] sm:$0xf] }
 0x6ca   : > { %5440 = vmatmul.bf16.gmra.mxu2 %v8174_v18  ;;  %v11206_v60 = vadd.f32 %v5389_v17, %v4901_v59  ;;  %v8498_v18 = vor.u32 %v9077_v23, %v8495_v40  ;;  %v9083_v23 = vld [vmem:[#allocation3 + $0x16c] sm:$0xf] }
 0x6cb   : > { %6226 = vmatmul.bf16.gmra.mxu1 %v8474_v56  ;;  %v9109_v56 = vld [vmem:[#allocation9 + $0x448] sm:$0xff] }
 0x6cc   : > { %6268 = vmatpush.bf16.msra.mxu2 %v9109_v56  ;;  %v9108_v56 = vld [vmem:[#allocation9 + $0x440] sm:$0xff] }
 0x6cd   : > { %v5401_v13 = vpop.f32.mrf.mxu2 }
 0x6ce   : > { %v11209_v34 = vadd.f32 %v5401_v13, %v11778_v24  ;;  %v8207_v24 = vld [vmem:[#allocation3 + $0x114] sm:$0xf0] }
 0x6cf   : > { %v8210_v11 = vor.u32 %v8933_v53, %v8207_v24  ;;  %v8531_v53 = vld [vmem:[#allocation3 + $0x18c] sm:$0xf0] }
 0x6d0   : > { %6269 = vmatpush.bf16.msra.mxu2 %v9108_v56 }
 0x6d5   : > { %v5403_v0 = vpop.f32.mrf.mxu2 }
 0x6d6   : > { %v11212_v57 = vadd.f32 %v5403_v0, %v11039_v7  ;;  %v8930_v7 = vld [vmem:[#allocation3 + $0xf4] sm:$0xf] }
 0x6d7   : > { %v8198_v59 = vor.u32 %v8930_v7, %v8195_v29  ;;  %v8519_v29 = vld [vmem:[#allocation3 + $0x174] sm:$0xf0]  ;;  %v8936_v7 = vld [vmem:[#allocation3 + $0x124] sm:$0xf] }
 0x6da   : > { %5445 = vmatmul.bf16.gmra.mxu2 %v8186_v1  ;;  %v11230_v1 = vpop.f32.mrf.mxu1 }
 0x6db   : > { %6231 = vmatmul.bf16.gmra.mxu1 %v8486_v36 }
 0x6dd   : > { %v5406_v25 = vpop.f32.mrf.mxu2 }
 0x6de   : > { %v11215_v30 = vadd.f32 %v5406_v25, %v11047_v3  ;;  %v9121_v25 = vld [vmem:[#allocation12 + $0x28] sm:$0xff] }
 0x6df   : > { %6601 = vmatpush.bf16.msra.mxu3 %v9121_v25 }
 0x6e2   : > { %v11235_v40 = vpop.f32.mrf.mxu1 }
 0x6e5   : > { %v5408_v14 = vpop.f32.mrf.mxu2 }
 0x6e6   : > { %v11218_v45 = vadd.f32 %v5408_v14, %v11053_v32  ;;  %v8507_v32 = vld [vmem:[#allocation3 + $0x15c] sm:$0xf0]  ;;  %v8219_v14 = vld [vmem:[#allocation3 + $0x12c] sm:$0xf0] }
 0x6e7   : > { %v8510_v6 = vor.u32 %v9080_v61, %v8507_v32  ;;  %v8231_v32 = vld [vmem:[#allocation3 + $0x144] sm:$0xf0]  ;;  %v8939_v61 = vld [vmem:[#allocation3 + $0x13c] sm:$0xf] }
 0x6ea   : > { %5450 = vmatmul.bf16.gmra.mxu2 %v8198_v59  ;;  %v8222_v59 = vor.u32 %v8936_v7, %v8219_v14  ;;  %v9120_v14 = vld [vmem:[#allocation12 + $0x20] sm:$0xff]  ;;  %v8243_v7 = vld [vmem:[#allocation3 + $0x15c] sm:$0xf0] }
 0x6eb   : > { %6236 = vmatmul.bf16.gmra.mxu1 %v8498_v18  ;;  %v8522_v18 = vor.u32 %v9083_v23, %v8519_v29  ;;  %6602 = vmatpush.bf16.msra.mxu3 %v9120_v14 }
 0x6ed   : > { %v5411_v3 = vpop.f32.mrf.mxu2 }
 0x6ee   : > { %v11223_v17 = vadd.f32 %v5411_v3, %v11059_v26 }
 0x6f5   : > { %v5413_v13 = vpop.f32.mrf.mxu2 }
 0x6f6   : > { %v11228_v0 = vadd.f32 %v5413_v13, %v11067_v35  ;;  %v11243_v13 = vpop.f32.mrf.mxu1 }
 0x6fa   : > { %5455 = vmatmul.bf16.gmra.mxu2 %v8210_v11  ;;  %v9086_v11 = vld [vmem:[#allocation3 + $0x184] sm:$0xf] }
 0x6fb   : > { %6241 = vmatmul.bf16.gmra.mxu1 %v8510_v6  ;;  %v8234_v6 = vor.u32 %v8939_v61, %v8231_v32 }
 0x6fd   : > { %v5416_v36 = vpop.f32.mrf.mxu2 }
 0x6fe   : > { %v11233_v26 = vadd.f32 %v5416_v36, %v11077_v48  ;;  %v8534_v36 = vor.u32 %v9086_v11, %v8531_v53  ;;  %v11248_v25 = vpop.f32.mrf.mxu1 }
 0x705   : > { %v5418_v43 = vpop.f32.mrf.mxu2 }
 0x706   : > { %v11238_v35 = vadd.f32 %v5418_v43, %v11085_v37 }
 0x70a   : > { %5460 = vmatmul.bf16.gmra.mxu2 %v8222_v59 }
 0x70b   : > { %6246 = vmatmul.bf16.gmra.mxu1 %v8522_v18 }
 0x70d   : > { %v5421_v48 = vpop.f32.mrf.mxu2 }
 0x70e   : > { %v11241_v3 = vadd.f32 %v5421_v48, %v11091_v8 }
 0x715   : > { %v5423_v24 = vpop.f32.mrf.mxu2 }
 0x716   : > { %v11246_v37 = vadd.f32 %v5423_v24, %v11098_v31  ;;  %v8942_v31 = vld [vmem:[#allocation3 + $0x154] sm:$0xf]  ;;  %v8255_v24 = vld [vmem:[#allocation3 + $0x174] sm:$0xf0] }
 0x717   : > { %v8246_v59 = vor.u32 %v8942_v31, %v8243_v7  ;;  %v9049_v31 = vld [vmem:[#allocation3 + $0x58] sm:$0xf0] }
 0x71a   : > { %5465 = vmatmul.bf16.gmra.mxu2 %v8234_v6 }
 0x71b   : > { %6251 = vmatmul.bf16.gmra.mxu1 %v8534_v36  ;;  %v9046_v36 = vld [vmem:[#allocation3 + $0x40] sm:$0xf0] }
 0x71d   : > { %v5426_v43 = vpop.f32.mrf.mxu2 }
 0x71e   : > { %v11251_v8 = vadd.f32 %v5426_v43, %v11106_v16  ;;  %v8945_v16 = vld [vmem:[#allocation3 + $0x16c] sm:$0xf] }
 0x71f   : > { %v8258_v53 = vor.u32 %v8945_v16, %v8255_v24 }
 0x725   : > { %v5428_v29 = vpop.f32.mrf.mxu2 }
 0x726   : > { %v11254_v23 = vadd.f32 %v5428_v29, %v11114_v52  ;;  %v9119_v52 = vld [vmem:[#allocation12 + $0x18] sm:$0xff] }
 0x727   : > { %6603 = vmatpush.bf16.msra.mxu3 %v9119_v52 }
 0x72a   : > { %5470 = vmatmul.bf16.gmra.mxu2 %v8246_v59 }
 0x72d   : > { %v5431_v18 = vpop.f32.mrf.mxu2 }
 0x72e   : > { %v11257_v56 = vadd.f32 %v5431_v18, %v11122_v44  ;;  %v8369_v44 = vld [vmem:[#allocation3 + $0x38] sm:$0xf] }
 0x72f   : > { %v8370_v14 = vor.u32 %v9046_v36, %v8369_v44  ;;  %v9055_v44 = vld [vmem:[#allocation3 + $0x88] sm:$0xf0] }
 0x735   : > { %v5433_v48 = vpop.f32.mrf.mxu2 }
 0x736   : > { %v11260_v32 = vadd.f32 %v5433_v48, %v11128_v54 }
 0x73a   : > { %5475 = vmatmul.bf16.gmra.mxu2 %v8258_v53  ;;  %v9052_v53 = vld [vmem:[#allocation3 + $0x70] sm:$0xf0] }
 0x73d   : > { %v5436_v61 = vpop.f32.mrf.mxu2 }
 0x73e   : > { %v11263_v11 = vadd.f32 %v5436_v61, %v11134_v42  ;;  %v8381_v42 = vld [vmem:[#allocation3 + $0x50] sm:$0xf] }
 0x73f   : > { %v8382_v18 = vor.u32 %v9049_v31, %v8381_v42 }
 0x745   : > { %v5438_v6 = vpop.f32.mrf.mxu2 }
 0x746   : > { %v11266_v43 = vadd.f32 %v5438_v6, %v11142_v58  ;;  %v9118_v58 = vld [vmem:[#allocation12 + $0x10] sm:$0xff] }
 0x747   : > { %6604 = vmatpush.bf16.msra.mxu3 %v9118_v58 }
 0x74a   : > { %6270 = vmatmul.bf16.vlgmr.msra.gmra.mxu2 %v8370_v14  ;;  %v11283_v14 = vpop.f32.mrf.mxu3 }
 0x74d   : > { %v5441_v29 = vpop.f32.mrf.mxu2 }
 0x74e   : > { %v11269_v54 = vadd.f32 %v5441_v29, %v11146_v10  ;;  %v8393_v10 = vld [vmem:[#allocation3 + $0x68] sm:$0xf]  ;;  %v8405_v29 = vld [vmem:[#allocation3 + $0x80] sm:$0xf] }
 0x74f   : > { %v8394_v52 = vor.u32 %v9052_v53, %v8393_v10 }
 0x752   : > { %v11291_v42 = vpop.f32.mrf.mxu3 }
 0x755   : > { %v5443_v7 = vpop.f32.mrf.mxu2 }
 0x756   : > { %v11272_v59 = vadd.f32 %v5443_v7, %v11150_v49  ;;  %v8406_v7 = vor.u32 %v9055_v44, %v8405_v29  ;;  %v8429_v29 = vld [vmem:[#allocation3 + $0xb0] sm:$0xf] }
 0x75a   : > { %6275 = vmatmul.bf16.gmra.mxu2 %v8382_v18  ;;  %v9117_v18 = vld [vmem:[#allocation12 + $0x8] sm:$0xff] }
 0x75b   : > { %6605 = vmatpush.bf16.msra.mxu3 %v9117_v18 }
 0x75d   : > { %v5446_v48 = vpop.f32.mrf.mxu2 }
 0x75e   : > { %v11275_v24 = vadd.f32 %v5446_v48, %v11154_v21  ;;  %v9058_v48 = vld [vmem:[#allocation3 + $0xa0] sm:$0xf0] }
 0x765   : > { %v5448_v16 = vpop.f32.mrf.mxu2 }
 0x766   : > { %v11278_v61 = vadd.f32 %v5448_v16, %v11158_v22  ;;  %v8417_v16 = vld [vmem:[#allocation3 + $0x98] sm:$0xf] }
 0x767   : > { %v8418_v53 = vor.u32 %v9058_v48, %v8417_v16  ;;  %v9064_v48 = vld [vmem:[#allocation3 + $0xd0] sm:$0xf0] }
 0x768   : > { %11779 = vst [vmem:[#allocation31_spill] sm:$0xff] %v11278_v61 }
 0x76a   : > { %6280 = vmatmul.bf16.gmra.mxu2 %v8394_v52 }
 0x76d   : > { %v5451_v6 = vpop.f32.mrf.mxu2 }
 0x76e   : > { %v11281_v49 = vadd.f32 %v5451_v6, %v11162_v41 }
 0x770   : > { %11780 = vst [vmem:[#allocation33_spill] sm:$0xff] %v11281_v49  ;;  %v11795_v49 = vld [vmem:[#allocation30_spill] sm:$0xff] }
 0x771   : > { %v5498_v61 = vadd.f32 %v11795_v49, %v11218_v45 }
 0x775   : > { %v5453_v36 = vpop.f32.mrf.mxu2 }
 0x776   : > { %v11286_v21 = vadd.f32 %v5453_v36, %v11166_v47  ;;  %v11296_v47 = vpop.f32.mrf.mxu3  ;;  %v9061_v36 = vld [vmem:[#allocation3 + $0xb8] sm:$0xf0] }
 0x778   : > { %11781 = vst [vmem:[#allocation40_spill] sm:$0xff] %v11286_v21 }
 0x77a   : > { %6285 = vmatmul.bf16.gmra.mxu2 %v8406_v7  ;;  %v8430_v7 = vor.u32 %v9061_v36, %v8429_v29 }
 0x77d   : > { %v5456_v31 = vpop.f32.mrf.mxu2 }
 0x77e   : > { %v11289_v22 = vadd.f32 %v5456_v31, %v11170_v19  ;;  %v11301_v19 = vpop.f32.mrf.mxu3 }
 0x780   : > { %11782 = vst [vmem:[#allocation41_spill] sm:$0xff] %v11289_v22  ;;  %v9076_v22 = vld [vmem:[#allocation3 + $0x130] sm:$0xf0] }
 0x785   : > { %v5458_v41 = vpop.f32.mrf.mxu2 }
 0x786   : > { %v11294_v58 = vadd.f32 %v5458_v41, %v11174_v46  ;;  %v11306_v31 = vpop.f32.mrf.mxu3  ;;  %v9116_v41 = vld [vmem:[#allocation12] sm:$0xff] }
 0x787   : > { %6606 = vmatpush.bf16.msra.mxu3 %v9116_v41  ;;  %v8453_v41 = vld [vmem:[#allocation3 + $0xe0] sm:$0xf] }
 0x788   : > { %11783 = vst [vmem:[#allocation42_spill] sm:$0xff] %v11294_v58 }
 0x78a   : > { %6290 = vmatmul.bf16.gmra.mxu2 %v8418_v53  ;;  %v8441_v53 = vld [vmem:[#allocation3 + $0xc8] sm:$0xf] }
 0x78d   : > { %v5461_v10 = vpop.f32.mrf.mxu2 }
 0x78e   : > { %v11299_v52 = vadd.f32 %v5461_v10, %v11178_v28  ;;  %v11314_v10 = vpop.f32.mrf.mxu3 }
 0x790   : > { %11784 = vst [vmem:[#allocation43_spill] sm:$0xff] %v11299_v52 }
 0x795   : > { %v5463_v6 = vpop.f32.mrf.mxu2 }
 0x796   : > { %v11304_v44 = vadd.f32 %v5463_v6, %v11182_v9  ;;  %v8442_v9 = vor.u32 %v9064_v48, %v8441_v53  ;;  %v11319_v29 = vpop.f32.mrf.mxu3 }
 0x798   : > { %11785 = vst [vmem:[#allocation45_spill] sm:$0xff] %v11304_v44 }
 0x79a   : > { %6295 = vmatmul.bf16.gmra.mxu2 %v8430_v7  ;;  %v9067_v7 = vld [vmem:[#allocation3 + $0xe8] sm:$0xf0] }
 0x79d   : > { %v5466_v46 = vpop.f32.mrf.mxu2 }
 0x79e   : > { %v11309_v18 = vadd.f32 %v5466_v46, %v11186_v12 }
 0x7a0   : > { %11786 = vst [vmem:[#allocation36_spill] sm:$0xff] %v11309_v18  ;;  %v8454_v18 = vor.u32 %v9067_v7, %v8453_v41 }
 0x7a5   : > { %v5468_v28 = vpop.f32.mrf.mxu2 }
 0x7a6   : > { %v11312_v16 = vadd.f32 %v5468_v28, %v11190_v15  ;;  %v11324_v15 = vpop.f32.mrf.mxu3 }
 0x7a8   : > { %11787 = vst [vmem:[#allocation22_spill] sm:$0xff] %v11312_v16  ;;  %v11334_v16 = vpop.f32.mrf.mxu0 }
 0x7aa   : > { %6300 = vmatmul.bf16.gmra.mxu2 %v8442_v9  ;;  %v9070_v9 = vld [vmem:[#allocation3 + $0x100] sm:$0xf0] }
 0x7ad   : > { %v5471_v6 = vpop.f32.mrf.mxu2 }
 0x7ae   : > { %v11317_v36 = vadd.f32 %v5471_v6, %v11194_v63  ;;  %v11329_v63 = vpop.f32.mrf.mxu3 }
 0x7b0   : > { %11788 = vst [vmem:[#allocation44_spill] sm:$0xff] %v11317_v36  ;;  %v8465_v36 = vld [vmem:[#allocation3 + $0xf8] sm:$0xf] }
 0x7b5   : > { %v5473_v12 = vpop.f32.mrf.mxu2 }
 0x7b6   : > { %v11322_v46 = vadd.f32 %v5473_v12, %v11198_v33  ;;  %v8466_v33 = vor.u32 %v9070_v9, %v8465_v36  ;;  %v11336_v12 = vpop.f32.mrf.mxu1  ;;  %v6185_v9 = vadd.f32 %v11225_v2, %v11100_v50 }
 0x7b8   : > { %11789 = vst [vmem:[#allocation39_spill] sm:$0xff] %v11322_v46 }
 0x7ba   : > { %6305 = vmatmul.bf16.gmra.mxu2 %v8454_v18  ;;  %v6183_v18 = vadd.f32 %v11220_v27, %v11089_v55  ;;  %v9073_v55 = vld [vmem:[#allocation3 + $0x118] sm:$0xf0] }
 0x7bb   : > { %v11793_v27 = vld [vmem:[#allocation29_spill] sm:$0xff] }
 0x7bc   : > { %v5493_v46 = vadd.f32 %v11793_v27, %v11212_v57  ;;  %v6188_v57 = vadd.f32 %v11230_v1, %v11108_v20  ;;  %v6190_v20 = vadd.f32 %v11235_v40, %v11117_v62  ;;  %v6193_v62 = vadd.f32 %v11243_v13, %v11126_v39 }
 0x7bd   : > { %v5476_v28 = vpop.f32.mrf.mxu2  ;;  %v6195_v39 = vadd.f32 %v11248_v25, %v11136_v4 }
 0x7be   : > { %v11327_v48 = vadd.f32 %v5476_v28, %v11202_v38  ;;  %v11792_v38 = vld [vmem:[#allocation26_spill] sm:$0xff]  ;;  %v11348_v36 = vpop.f32.mrf.mxu1 }
 0x7bf   : > { %v5491_v41 = vadd.f32 %v11792_v38, %v11209_v34  ;;  %v8477_v38 = vld [vmem:[#allocation3 + $0x110] sm:$0xf] }
 0x7c0   : > { %11790 = vst [vmem:[#allocation35_spill] sm:$0xff] %v11327_v48  ;;  %v11342_v48 = vpop.f32.mrf.mxu3 }
 0x7c5   : > { %v5478_v53 = vpop.f32.mrf.mxu2 }
 0x7c6   : > { %v11332_v6 = vadd.f32 %v5478_v53, %v11206_v60  ;;  %v11344_v53 = vpop.f32.mrf.mxu0 }
 0x7c8   : > { %11791 = vst [vmem:[#allocation23_spill] sm:$0xff] %v11332_v6  ;;  %v11346_v6 = vld [vmem:[#allocation10 + $0x1] ss:$0 sm:$0xff]  ;;  %v11357_v44 = vpop.f32.mrf.mxu3 }
 0x7ca   : > { %6310 = vmatmul.bf16.gmra.mxu2 %v8466_v33 }
 0x7cd   : > { %v6271_v7 = vpop.f32.mrf.mxu2 }
 0x7ce   : > { %v6272_v28 = vadd.f32 %v6271_v7, %v6183_v18  ;;  %v11355_v7 = vstv %s8647_s30  ;;  %v11361_v50 = vpop.f32.mrf.mxu0 }
 0x7d0   : > { %v6351_v60 = vadd.f32 %v6272_v28, %v5491_v41  ;;  %v8478_v28 = vor.u32 %v9073_v55, %v8477_v38 }
 0x7d2   : > { %v6385_v34 = vadd.f32 %v11346_v6, %v6351_v60  ;;  %v11366_v60 = vpop.f32.mrf.mxu1 }
 0x7d4   : > { %v6451_v52 = vmul.f32 %v11355_v7, %v6385_v34  ;;  %vm6418_vm5 = vcmp.gt.f32.partialorder %v6385_v34, 0.0 }
 0x7d5   : > { %v6273_v33 = vpop.f32.mrf.mxu2 }
 0x7d6   : > { %v6274_v18 = vadd.f32 %v6273_v33, %v6185_v9  ;;  %v11794_v9 = vld [vmem:[#allocation28_spill] sm:$0xff]  ;;  %v6483_v55 = vsel %vm6418_vm5, %v6385_v34, %v6451_v52  ;;  %v11374_v21 = vpop.f32.mrf.mxu0  ;;  %v8489_v34 = vld [vmem:[#allocation3 + $0x128] sm:$0xf] }
 0x7d7   : > { %v5496_v33 = vadd.f32 %v11794_v9, %v11215_v30 }
 0x7d8   : > { %v6352_v41 = vadd.f32 %v6274_v18, %v5493_v46 }
 0x7da   : > { %v6386_v58 = vadd.f32 %v11346_v6, %v6352_v41  ;;  %6315 = vmatmul.bf16.gmra.mxu2 %v8478_v28  ;;  %v11370_v28 = vpop.f32.mrf.mxu3 }
 0x7dc   : > { %vm6419_vm6 = vcmp.gt.f32.partialorder %v6386_v58, 0.0  ;;  %v6452_v2 = vmul.f32 %v11355_v7, %v6386_v58 }
 0x7dd   : > { %v6276_v46 = vpop.f32.mrf.mxu2 }
 0x7de   : > { %v6484_v27 = vsel %vm6419_vm6, %v6386_v58, %v6452_v2  ;;  %v6277_v18 = vadd.f32 %v6276_v46, %v6188_v57  ;;  %v11379_v58 = vpop.f32.mrf.mxu1  ;;  %v8490_v2 = vor.u32 %v9076_v22, %v8489_v34 }
 0x7df   : > { %v6515_v38 = vpack.c.bf16 %v6484_v27, %v6483_v55 }
 0x7e0   : > { %v6353_v41 = vadd.f32 %v6277_v18, %v5496_v33  ;;  %v11796_v33 = vld [vmem:[#allocation32_spill] sm:$0xff] }
 0x7e1   : > { %6607 = vmatmul.bf16.vlgmr.msra.gmra.mxu3 %v6515_v38  ;;  %v5501_v55 = vadd.f32 %v11796_v33, %v11223_v17  ;;  %v11390_v38 = vpop.f32.mrf.mxu0 }
 0x7e2   : > { %v6387_v30 = vadd.f32 %v11346_v6, %v6353_v41  ;;  %v11386_v49 = vpop.f32.mrf.mxu3 }
 0x7e4   : > { %v6453_v46 = vmul.f32 %v11355_v7, %v6387_v30  ;;  %vm6420_vm8 = vcmp.gt.f32.partialorder %v6387_v30, 0.0 }
 0x7e5   : > { %v6278_v1 = vpop.f32.mrf.mxu2 }
 0x7e6   : > { %v6279_v52 = vadd.f32 %v6278_v1, %v6190_v20  ;;  %v6485_v22 = vsel %vm6420_vm8, %v6387_v30, %v6453_v46  ;;  %v11392_v20 = vpop.f32.mrf.mxu1  ;;  %v9079_v1 = vld [vmem:[#allocation3 + $0x148] sm:$0xf0]  ;;  %v8501_v30 = vld [vmem:[#allocation3 + $0x140] sm:$0xf] }
 0x7e7   : > { %v8502_v46 = vor.u32 %v9079_v1, %v8501_v30  ;;  %v11797_v1 = vld [vmem:[#allocation34_spill] sm:$0xff] }
 0x7e8   : > { %v6354_v57 = vadd.f32 %v6279_v52, %v5498_v61  ;;  %v5503_v52 = vadd.f32 %v11120_v5, %v11228_v0  ;;  %v6198_v5 = vadd.f32 %v11336_v12, %v11334_v16  ;;  %v6200_v16 = vadd.f32 %v11348_v36, %v11344_v53 }
 0x7e9   : > { %v6203_v36 = vadd.f32 %v11366_v60, %v11361_v50  ;;  %v6205_v50 = vadd.f32 %v11379_v58, %v11374_v21  ;;  %v6208_v58 = vadd.f32 %v11392_v20, %v11390_v38  ;;  %v5516_v38 = vadd.f32 %v11296_v47, %v11251_v8 }
 0x7ea   : > { %v6388_v9 = vadd.f32 %v11346_v6, %v6354_v57  ;;  %6320 = vmatmul.bf16.gmra.mxu2 %v8490_v2  ;;  %v11399_v57 = vpop.f32.mrf.mxu3 }
 0x7ec   : > { %vm6421_vm9 = vcmp.gt.f32.partialorder %v6388_v9, 0.0  ;;  %v6454_v45 = vmul.f32 %v11355_v7, %v6388_v9 }
 0x7ed   : > { %v6281_v40 = vpop.f32.mrf.mxu2 }
 0x7ee   : > { %v6282_v61 = vadd.f32 %v6281_v40, %v6193_v62  ;;  %v6486_v27 = vsel %vm6421_vm9, %v6388_v9, %v6454_v45  ;;  %v11401_v9 = vpop.f32.mrf.mxu0  ;;  %v11405_v4 = vpop.f32.mrf.mxu1 }
 0x7ef   : > { %v6516_v18 = vpack.c.bf16 %v6486_v27, %v6485_v22  ;;  %v5506_v22 = vadd.f32 %v11130_v51, %v11233_v26  ;;  %v8513_v51 = vld [vmem:[#allocation3 + $0x158] sm:$0xf] }
 0x7f0   : > { %v6355_v41 = vadd.f32 %v6282_v61, %v5501_v55 }
 0x7f1   : > { %6612 = vmatmul.bf16.gmra.mxu3 %v6516_v18 }
 0x7f2   : > { %v6389_v17 = vadd.f32 %v11346_v6, %v6355_v41  ;;  %v11412_v27 = vpop.f32.mrf.mxu3 }
 0x7f4   : > { %v6455_v62 = vmul.f32 %v11355_v7, %v6389_v17  ;;  %vm6422_vm11 = vcmp.gt.f32.partialorder %v6389_v17, 0.0 }
 0x7f5   : > { %v6283_v13 = vpop.f32.mrf.mxu2 }
 0x7f6   : > { %v6284_v34 = vadd.f32 %v6283_v13, %v6195_v39  ;;  %v6487_v33 = vsel %vm6422_vm11, %v6389_v17, %v6455_v62  ;;  %v11414_v41 = vpop.f32.mrf.mxu0  ;;  %v11418_v12 = vpop.f32.mrf.mxu1  ;;  %v9082_v13 = vld [vmem:[#allocation3 + $0x160] sm:$0xf0] }
 0x7f7   : > { %v8514_v30 = vor.u32 %v9082_v13, %v8513_v51  ;;  %v9090_v51 = vld [vmem:[#allocation3 + $0x1a0] sm:$0xf0] }
 0x7f8   : > { %v6356_v2 = vadd.f32 %v6284_v34, %v5503_v52  ;;  %v5508_v52 = vadd.f32 %v11797_v1, %v11238_v35  ;;  %v8525_v1 = vld [vmem:[#allocation3 + $0x170] sm:$0xf] }
 0x7fa   : > { %v6390_v45 = vadd.f32 %v11346_v6, %v6356_v2  ;;  %6325 = vmatmul.bf16.gmra.mxu2 %v8502_v46  ;;  %v11425_v53 = vpop.f32.mrf.mxu3 }
 0x7fc   : > { %vm6423_vm12 = vcmp.gt.f32.partialorder %v6390_v45, 0.0  ;;  %v6456_v0 = vmul.f32 %v11355_v7, %v6390_v45 }
 0x7fd   : > { %v6286_v25 = vpop.f32.mrf.mxu2 }
 0x7fe   : > { %v6287_v40 = vadd.f32 %v6286_v25, %v6198_v5  ;;  %v6488_v55 = vsel %vm6423_vm12, %v6390_v45, %v6456_v0  ;;  %v11430_v45 = vpop.f32.mrf.mxu0 }
 0x7ff   : > { %v6517_v61 = vpack.c.bf16 %v6488_v55, %v6487_v33  ;;  %v5511_v55 = vadd.f32 %v11283_v14, %v11241_v3 }
 0x800   : > { %v6357_v18 = vadd.f32 %v6287_v40, %v5506_v22  ;;  %v11432_v40 = vpop.f32.mrf.mxu1  ;;  %v9085_v22 = vld [vmem:[#allocation3 + $0x178] sm:$0xf0] }
 0x801   : > { %6617 = vmatmul.bf16.gmra.mxu3 %v6517_v61  ;;  %v8526_v3 = vor.u32 %v9085_v22, %v8525_v1  ;;  %v9088_v22 = vld [vmem:[#allocation3 + $0x190] sm:$0xf0] }
 0x802   : > { %v6391_v17 = vadd.f32 %v11346_v6, %v6357_v18  ;;  %v11438_v18 = vpop.f32.mrf.mxu3 }
 0x804   : > { %v6457_v2 = vmul.f32 %v11355_v7, %v6391_v17  ;;  %vm6424_vm13 = vcmp.gt.f32.partialorder %v6391_v17, 0.0 }
 0x805   : > { %v6288_v39 = vpop.f32.mrf.mxu2 }
 0x806   : > { %v6289_v34 = vadd.f32 %v6288_v39, %v6200_v16  ;;  %v6489_v0 = vsel %vm6424_vm13, %v6391_v17, %v6457_v2  ;;  %v5513_v16 = vadd.f32 %v11291_v42, %v11246_v37  ;;  %v8541_v42 = vld [vmem:[#allocation3 + $0x198] sm:$0xf]  ;;  %v9089_v2 = vld [vmem:[#allocation3 + $0x19c] sm:$0xf] }
 0x808   : > { %v6358_v26 = vadd.f32 %v6289_v34, %v5508_v52  ;;  %v11443_v52 = vpop.f32.mrf.mxu0  ;;  %v11445_v14 = vpop.f32.mrf.mxu1 }
 0x80a   : > { %v6392_v46 = vadd.f32 %v11346_v6, %v6358_v26  ;;  %6330 = vmatmul.bf16.gmra.mxu2 %v8514_v30  ;;  %v8542_v30 = vor.u32 %v9090_v51, %v8541_v42  ;;  %v5521_v51 = vadd.f32 %v11306_v31, %v11257_v56 }
 0x80c   : > { %vm6425_vm14 = vcmp.gt.f32.partialorder %v6392_v46, 0.0  ;;  %v6458_v35 = vmul.f32 %v11355_v7, %v6392_v46  ;;  %6167 = vmatmul.bf16.gmra.mxu0 %v8542_v30  ;;  %v8549_v30 = vld [vmem:[#allocation3 + $0x1a0] sm:$0xf] }
 0x80d   : > { %v6291_v62 = vpop.f32.mrf.mxu2 }
 0x80e   : > { %v6292_v5 = vadd.f32 %v6291_v62, %v6203_v36  ;;  %v6490_v25 = vsel %vm6425_vm14, %v6392_v46, %v6458_v35  ;;  %v8543_v46 = vld [vmem:[#allocation3 + $0x1a4] sm:$0xf0] }
 0x80f   : > { %v6518_v33 = vpack.c.bf16 %v6490_v25, %v6489_v0  ;;  %v11452_v25 = vpop.f32.mrf.mxu3 }
 0x810   : > { %v6359_v61 = vadd.f32 %v6292_v5, %v5511_v55  ;;  %v8546_v5 = vor.u32 %v9089_v2, %v8543_v46  ;;  %v6130_v20 = vpop.f32.mrf.mxu0  ;;  %v6219_v55 = vpop.f32.mrf.mxu1  ;;  %v9091_v2 = vld [vmem:[#allocation3 + $0x1a8] sm:$0xf0] }
 0x811   : > { %6622 = vmatmul.bf16.gmra.mxu3 %v6518_v33 }
 0x812   : > { %v6393_v39 = vadd.f32 %v11346_v6, %v6359_v61  ;;  %6256 = vmatmul.bf16.gmra.mxu1 %v8546_v5  ;;  %v6210_v61 = vadd.f32 %v11405_v4, %v11401_v9  ;;  %v6213_v4 = vadd.f32 %v11418_v12, %v11414_v41  ;;  %v6215_v41 = vadd.f32 %v11432_v40, %v11430_v45 }
 0x813   : > { %v6218_v45 = vadd.f32 %v11445_v14, %v11443_v52  ;;  %v5528_v52 = vadd.f32 %v11324_v15, %v11266_v43 }
 0x814   : > { %v6459_v34 = vmul.f32 %v11355_v7, %v6393_v39  ;;  %vm6426_vm15 = vcmp.gt.f32.partialorder %v6393_v39, 0.0 }
 0x815   : > { %v6293_v60 = vpop.f32.mrf.mxu2 }
 0x816   : > { %v6294_v13 = vadd.f32 %v6293_v60, %v6205_v50  ;;  %v6491_v35 = vsel %vm6426_vm15, %v6393_v39, %v6459_v34  ;;  %v8537_v60 = vld [vmem:[#allocation3 + $0x188] sm:$0xf] }
 0x817   : > { %v11461_v8 = vpop.f32.mrf.mxu3 }
 0x818   : > { %v6360_v17 = vadd.f32 %v6294_v13, %v5513_v16  ;;  %v5518_v16 = vadd.f32 %v11301_v19, %v11254_v23  ;;  %v6133_v9 = vpop.f32.mrf.mxu0  ;;  %v6222_v23 = vpop.f32.mrf.mxu1 }
 0x81a   : > { %v6394_v21 = vadd.f32 %v11346_v6, %v6360_v17  ;;  %6335 = vmatmul.bf16.gmra.mxu2 %v8526_v3  ;;  %v8538_v17 = vor.u32 %v9088_v22, %v8537_v60 }
 0x81c   : > { %v6460_v37 = vmul.f32 %v11355_v7, %v6394_v21  ;;  %vm6427_vm0 = vcmp.gt.f32.partialorder %v6394_v21, 0.0 }
 0x81d   : > { %v6296_v26 = vpop.f32.mrf.mxu2 }
 0x81e   : > { %v6297_v36 = vadd.f32 %v6296_v26, %v6208_v58  ;;  %v6492_v62 = vsel %vm6427_vm0, %v6394_v21, %v6460_v37 }
 0x81f   : > { %v6519_v0 = vpack.c.bf16 %v6492_v62, %v6491_v35  ;;  %v11470_v46 = vpop.f32.mrf.mxu3  ;;  %v5523_v35 = vadd.f32 %v11314_v10, %v11260_v32 }
 0x820   : > { %v6361_v33 = vadd.f32 %v6297_v36, %v5516_v38  ;;  %v6135_v36 = vpop.f32.mrf.mxu0  ;;  %v6224_v38 = vpop.f32.mrf.mxu1 }
 0x821   : > { %6627 = vmatmul.bf16.gmra.mxu3 %v6519_v0  ;;  %v8550_v0 = vor.u32 %v9091_v2, %v8549_v30 }
 0x822   : > { %v6395_v39 = vadd.f32 %v11346_v6, %v6361_v33 }
 0x824   : > { %v6461_v47 = vmul.f32 %v11355_v7, %v6395_v39  ;;  %vm6428_vm1 = vcmp.gt.f32.partialorder %v6395_v39, 0.0 }
 0x825   : > { %v6298_v50 = vpop.f32.mrf.mxu2 }
 0x826   : > { %v6299_v13 = vadd.f32 %v6298_v50, %v6210_v61  ;;  %v6493_v58 = vsel %vm6428_vm1, %v6395_v39, %v6461_v47  ;;  %v5526_v39 = vadd.f32 %v11319_v29, %v11263_v11  ;;  %v6223_v29 = vadd.f32 %v6222_v23, %v6133_v9 }
 0x827   : > { %v11482_v32 = vpop.f32.mrf.mxu3  ;;  %v5533_v9 = vadd.f32 %v11342_v48, %v11272_v59 }
 0x828   : > { %v6362_v1 = vadd.f32 %v6299_v13, %v5518_v16  ;;  %v6138_v16 = vpop.f32.mrf.mxu0  ;;  %v6227_v13 = vpop.f32.mrf.mxu1 }
 0x82a   : > { %v6396_v3 = vadd.f32 %v11346_v6, %v6362_v1  ;;  %6340 = vmatmul.bf16.gmra.mxu2 %v8538_v17  ;;  %v6220_v17 = vadd.f32 %v6219_v55, %v6130_v20 }
 0x82c   : > { %v6462_v34 = vmul.f32 %v11355_v7, %v6396_v3  ;;  %vm6429_vm3 = vcmp.gt.f32.partialorder %v6396_v3, 0.0 }
 0x82d   : > { %v6301_v19 = vpop.f32.mrf.mxu2 }
 0x82e   : > { %v6302_v21 = vadd.f32 %v6301_v19, %v6213_v4  ;;  %v6494_v37 = vsel %vm6429_vm3, %v6396_v3, %v6462_v34 }
 0x82f   : > { %v6520_v42 = vpack.c.bf16 %v6494_v37, %v6493_v58  ;;  %v11489_v4 = vpop.f32.mrf.mxu3 }
 0x830   : > { %v6363_v26 = vadd.f32 %v6302_v21, %v5521_v51  ;;  %v6140_v19 = vpop.f32.mrf.mxu0  ;;  %v6229_v11 = vpop.f32.mrf.mxu1  ;;  %v5531_v51 = vadd.f32 %v11329_v63, %v11269_v54  ;;  %v6228_v63 = vadd.f32 %v6227_v13, %v6138_v16  ;;  %v11798_v13 = vld [vmem:[#allocation31_spill] sm:$0xff] }
 0x831   : > { %6632 = vmatmul.bf16.gmra.mxu3 %v6520_v42 }
 0x832   : > { %v6397_v62 = vadd.f32 %v11346_v6, %v6363_v26 }
 0x834   : > { %v6463_v31 = vmul.f32 %v11355_v7, %v6397_v62  ;;  %vm6430_vm4 = vcmp.gt.f32.partialorder %v6397_v62, 0.0 }
 0x835   : > { %v6303_v12 = vpop.f32.mrf.mxu2 }
 0x836   : > { %v6304_v5 = vadd.f32 %v6303_v12, %v6215_v41  ;;  %v6495_v50 = vsel %vm6430_vm4, %v6397_v62, %v6463_v31  ;;  %v6225_v41 = vadd.f32 %v6224_v38, %v6135_v36 }
 0x837   : > { %v11496_v26 = vpop.f32.mrf.mxu3 }
 0x838   : > { %v6364_v56 = vadd.f32 %v6304_v5, %v5523_v35  ;;  %v6143_v2 = vpop.f32.mrf.mxu0  ;;  %v6232_v12 = vpop.f32.mrf.mxu1 }
 0x83a   : > { %v6398_v33 = vadd.f32 %v11346_v6, %v6364_v56  ;;  %6345 = vmatmul.bf16.gmra.mxu2 %v8550_v0 }
 0x83c   : > { %v6464_v40 = vmul.f32 %v11355_v7, %v6398_v33  ;;  %vm6431_vm7 = vcmp.gt.f32.partialorder %v6398_v33, 0.0 }
 0x83d   : > { %v6306_v61 = vpop.f32.mrf.mxu2 }
 0x83e   : > { %v6307_v10 = vadd.f32 %v6306_v61, %v6218_v45  ;;  %v6496_v60 = vsel %vm6431_vm7, %v6398_v33, %v6464_v40  ;;  %v5536_v61 = vadd.f32 %v11357_v44, %v11275_v24 }
 0x83f   : > { %v6521_v22 = vpack.c.bf16 %v6496_v60, %v6495_v50  ;;  %v11503_v54 = vpop.f32.mrf.mxu3  ;;  %v6230_v60 = vadd.f32 %v6229_v11, %v6140_v19 }
 0x840   : > { %v6365_v1 = vadd.f32 %v6307_v10, %v5526_v39  ;;  %v6145_v38 = vpop.f32.mrf.mxu0  ;;  %v6234_v48 = vpop.f32.mrf.mxu1  ;;  %v11508_v10 = vld [vmem:[#allocation13] ss:$0 sm:$0xff] }
 0x841   : > { %6637 = vmatmul.bf16.gmra.mxu3 %v6521_v22 }
 0x842   : > { %v6399_v14 = vadd.f32 %v11346_v6, %v6365_v1  ;;  %v5538_v1 = vadd.f32 %v11370_v28, %v11798_v13  ;;  %v6233_v28 = vadd.f32 %v6232_v12, %v6143_v2  ;;  %v6235_v2 = vadd.f32 %v6234_v48, %v6145_v38 }
 0x844   : > { %v6465_v21 = vmul.f32 %v11355_v7, %v6399_v14  ;;  %vm6432_vm10 = vcmp.gt.f32.partialorder %v6399_v14, 0.0 }
 0x845   : > { %v6308_v47 = vpop.f32.mrf.mxu2 }
 0x846   : > { %v6309_v3 = vadd.f32 %v6308_v47, %v6220_v17  ;;  %v6497_v43 = vsel %vm6432_vm10, %v6399_v14, %v6465_v21 }
 0x848   : > { %v6366_v34 = vadd.f32 %v6309_v3, %v5528_v52  ;;  %v6148_v52 = vpop.f32.mrf.mxu0  ;;  %v6237_v24 = vpop.f32.mrf.mxu1 }
 0x84a   : > { %v6400_v58 = vadd.f32 %v11346_v6, %v6366_v34 }
 0x84c   : > { %v6466_v20 = vmul.f32 %v11355_v7, %v6400_v58  ;;  %vm6433_vm2 = vcmp.gt.f32.partialorder %v6400_v58, 0.0 }
 0x84d   : > { %v6311_v55 = vpop.f32.mrf.mxu2 }
 0x84e   : > { %v6312_v37 = vadd.f32 %v6311_v55, %v6223_v29  ;;  %v6498_v15 = vsel %vm6433_vm2, %v6400_v58, %v6466_v20 }
 0x84f   : > { %v6522_v42 = vpack.c.bf16 %v6498_v15, %v6497_v43  ;;  %v11799_v43 = vld [vmem:[#allocation33_spill] sm:$0xff] }
 0x850   : > { %v6367_v30 = vadd.f32 %v6312_v37, %v5531_v51  ;;  %v5541_v15 = vadd.f32 %v11386_v49, %v11799_v43 }
 0x851   : > { %6642 = vmatmul.bf16.gmra.mxu3 %v6522_v42  ;;  %v6150_v42 = vpop.f32.mrf.mxu0 }
 0x852   : > { %v6401_v23 = vadd.f32 %v11346_v6, %v6367_v30  ;;  %v6239_v30 = vpop.f32.mrf.mxu1 }
 0x853   : > { %v6240_v13 = vadd.f32 %v6239_v30, %v6150_v42  ;;  %v11803_v30 = vld [vmem:[#allocation43_spill] sm:$0xff] }
 0x854   : > { %v6467_v0 = vmul.f32 %v11355_v7, %v6401_v23  ;;  %vm6434_vm5 = vcmp.gt.f32.partialorder %v6401_v23, 0.0 }
 0x855   : > { %v6313_v35 = vpop.f32.mrf.mxu2 }
 0x856   : > { %v6314_v62 = vadd.f32 %v6313_v35, %v6225_v41  ;;  %v6499_v45 = vsel %vm6434_vm5, %v6401_v23, %v6467_v0  ;;  %v11800_v23 = vld [vmem:[#allocation40_spill] sm:$0xff] }
 0x858   : > { %v6368_v5 = vadd.f32 %v6314_v62, %v5533_v9  ;;  %v5543_v62 = vadd.f32 %v11399_v57, %v11800_v23 }
 0x85a   : > { %v6402_v56 = vadd.f32 %v11346_v6, %v6368_v5  ;;  %v6242_v57 = vpop.f32.mrf.mxu1 }
 0x85c   : > { %v6468_v31 = vmul.f32 %v11355_v7, %v6402_v56  ;;  %vm6435_vm6 = vcmp.gt.f32.partialorder %v6402_v56, 0.0 }
 0x85d   : > { %v6316_v36 = vpop.f32.mrf.mxu2 }
 0x85e   : > { %v6317_v33 = vadd.f32 %v6316_v36, %v6228_v63  ;;  %v6500_v59 = vsel %vm6435_vm6, %v6402_v56, %v6468_v31  ;;  %v6153_v31 = vpop.f32.mrf.mxu0  ;;  %v6238_v36 = vadd.f32 %v6237_v24, %v6148_v52  ;;  %v11802_v24 = vld [vmem:[#allocation42_spill] sm:$0xff] }
 0x85f   : > { %v6523_v40 = vpack.c.bf16 %v6500_v59, %v6499_v45 }
 0x860   : > { %v6369_v50 = vadd.f32 %v6317_v33, %v5536_v61 }
 0x861   : > { %6647 = vmatmul.bf16.gmra.mxu3 %v6523_v40 }
 0x862   : > { %v6403_v17 = vadd.f32 %v11346_v6, %v6369_v50 }
 0x864   : > { %v6608_v22 = vpop.f32.mrf.mxu3  ;;  %v6469_v44 = vmul.f32 %v11355_v7, %v6403_v17  ;;  %vm6436_vm8 = vcmp.gt.f32.partialorder %v6403_v17, 0.0 }
 0x865   : > { %v6609_v16 = vadd.f32 %v11508_v10, %v6608_v22  ;;  %v6318_v39 = vpop.f32.mrf.mxu2  ;;  %v11801_v22 = vld [vmem:[#allocation41_spill] sm:$0xff] }
 0x866   : > { %v6319_v47 = vadd.f32 %v6318_v39, %v6230_v60  ;;  %v6501_v20 = vsel %vm6436_vm8, %v6403_v17, %v6469_v44  ;;  %v5548_v44 = vadd.f32 %v11425_v53, %v11802_v24 }
 0x867   : > { %9211 = vtanh.f32 %v6609_v16  ;;  %v5546_v16 = vadd.f32 %v11412_v27, %v11801_v22 }
 0x868   : > { %v6370_v14 = vadd.f32 %v6319_v47, %v5538_v1 }
 0x86a   : > { %v6404_v3 = vadd.f32 %v11346_v6, %v6370_v14  ;;  %v6155_v14 = vpop.f32.mrf.mxu0 }
 0x86c   : > { %v6470_v34 = vmul.f32 %v11355_v7, %v6404_v3  ;;  %v6610_v19 = vpop.f32.mrf.mxu3  ;;  %vm6437_vm9 = vcmp.gt.f32.partialorder %v6404_v3, 0.0 }
 0x86d   : > { %v9212_v21 = vpop.eup %9211  ;;  %v6611_v58 = vadd.f32 %v11508_v10, %v6610_v19  ;;  %v6321_v11 = vpop.f32.mrf.mxu2 }
 0x86e   : > { %6720 = vst [vmem:[%s11521_s15] sm:$0xff] %v9212_v21  ;;  %v6322_v29 = vadd.f32 %v6321_v11, %v6233_v28  ;;  %v6502_v55 = vsel %vm6437_vm9, %v6404_v3, %v6470_v34  ;;  %v6244_v34 = vpop.f32.mrf.mxu1 }
 0x86f   : > { %9213 = vtanh.f32 %v6611_v58  ;;  %v6524_v37 = vpack.c.bf16 %v6502_v55, %v6501_v20  ;;  %v6243_v58 = vadd.f32 %v6242_v57, %v6153_v31 }
 0x870   : > { %v6371_v51 = vadd.f32 %v6322_v29, %v5541_v15 }
 0x871   : > { %6652 = vmatmul.bf16.gmra.mxu3 %v6524_v37 }
 0x872   : > { %v6405_v5 = vadd.f32 %v11346_v6, %v6371_v51  ;;  %v6158_v51 = vpop.f32.mrf.mxu0 }
 0x874   : > { %v6613_v41 = vpop.f32.mrf.mxu3  ;;  %v6471_v56 = vmul.f32 %v11355_v7, %v6405_v5  ;;  %vm6438_vm11 = vcmp.gt.f32.partialorder %v6405_v5, 0.0 }
 0x875   : > { %v9214_v12 = vpop.eup %9213  ;;  %v6614_v35 = vadd.f32 %v11508_v10, %v6613_v41  ;;  %v6323_v9 = vpop.f32.mrf.mxu2 }
 0x876   : > { %6721 = vst [vmem:[%s11521_s15 + $0x8] sm:$0xff] %v9214_v12  ;;  %v6324_v0 = vadd.f32 %v6323_v9, %v6235_v2  ;;  %v6503_v61 = vsel %vm6438_vm11, %v6405_v5, %v6471_v56  ;;  %v5551_v2 = vadd.f32 %v11438_v18, %v11803_v30  ;;  %v6247_v41 = vpop.f32.mrf.mxu1  ;;  %v11807_v30 = vld [vmem:[#allocation44_spill] sm:$0xff] }
 0x877   : > { %9215 = vtanh.f32 %v6614_v35  ;;  %v6245_v35 = vadd.f32 %v6244_v34, %v6155_v14 }
 0x878   : > { %v6372_v49 = vadd.f32 %v6324_v0, %v5543_v62  ;;  %v11804_v0 = vld [vmem:[#allocation45_spill] sm:$0xff] }
 0x87a   : > { %v6406_v63 = vadd.f32 %v11346_v6, %v6372_v49  ;;  %v5553_v49 = vadd.f32 %v11452_v25, %v11804_v0  ;;  %v6160_v18 = vpop.f32.mrf.mxu0 }
 0x87c   : > { %v6472_v38 = vmul.f32 %v11355_v7, %v6406_v63  ;;  %v6615_v33 = vpop.f32.mrf.mxu3  ;;  %vm6439_vm12 = vcmp.gt.f32.partialorder %v6406_v63, 0.0 }
 0x87d   : > { %v9216_v45 = vpop.eup %9215  ;;  %v6616_v59 = vadd.f32 %v11508_v10, %v6615_v33  ;;  %v6326_v48 = vpop.f32.mrf.mxu2 }
 0x87e   : > { %6722 = vst [vmem:[%s11521_s15 + $0x10] sm:$0xff] %v9216_v45  ;;  %v6327_v40 = vadd.f32 %v6326_v48, %v6238_v36  ;;  %v6504_v50 = vsel %vm6439_vm12, %v6406_v63, %v6472_v38  ;;  %v6249_v33 = vpop.f32.mrf.mxu1  ;;  %v6248_v45 = vadd.f32 %v6247_v41, %v6158_v51 }
 0x87f   : > { %9217 = vtanh.f32 %v6616_v59  ;;  %v6525_v60 = vpack.c.bf16 %v6504_v50, %v6503_v61 }
 0x880   : > { %v6373_v39 = vadd.f32 %v6327_v40, %v5546_v16  ;;  %v11805_v16 = vld [vmem:[#allocation36_spill] sm:$0xff] }
 0x881   : > { %6657 = vmatmul.bf16.gmra.mxu3 %v6525_v60 }
 0x882   : > { %v6407_v3 = vadd.f32 %v11346_v6, %v6373_v39  ;;  %v5556_v39 = vadd.f32 %v11461_v8, %v11805_v16 }
 0x884   : > { %v6618_v1 = vpop.f32.mrf.mxu3  ;;  %v6473_v19 = vmul.f32 %v11355_v7, %v6407_v3  ;;  %vm6440_vm13 = vcmp.gt.f32.partialorder %v6407_v3, 0.0 }
 0x885   : > { %v9218_v17 = vpop.eup %9217  ;;  %v6619_v47 = vadd.f32 %v11508_v10, %v6618_v1  ;;  %v6328_v52 = vpop.f32.mrf.mxu2 }
 0x886   : > { %6723 = vst [vmem:[%s11521_s15 + $0x18] sm:$0xff] %v9218_v17  ;;  %v6329_v28 = vadd.f32 %v6328_v52, %v6240_v13  ;;  %v6505_v43 = vsel %vm6440_vm13, %v6407_v3, %v6473_v19  ;;  %v6163_v1 = vpop.f32.mrf.mxu0  ;;  %v6250_v17 = vadd.f32 %v6249_v33, %v6160_v18  ;;  %v6252_v14 = vpop.f32.mrf.mxu1  ;;  %v11806_v3 = vld [vmem:[#allocation22_spill] sm:$0xff] }
 0x887   : > { %9219 = vtanh.f32 %v6619_v47 }
 0x888   : > { %v6374_v27 = vadd.f32 %v6329_v28, %v5548_v44  ;;  %v5558_v28 = vadd.f32 %v11470_v46, %v11806_v3 }
 0x88a   : > { %v6408_v21 = vadd.f32 %v11346_v6, %v6374_v27 }
 0x88c   : > { %v6474_v11 = vmul.f32 %v11355_v7, %v6408_v21  ;;  %v6620_v29 = vpop.f32.mrf.mxu3  ;;  %vm6441_vm14 = vcmp.gt.f32.partialorder %v6408_v21, 0.0 }
 0x88d   : > { %v9220_v20 = vpop.eup %9219  ;;  %v6621_v53 = vadd.f32 %v11508_v10, %v6620_v29  ;;  %v6331_v55 = vpop.f32.mrf.mxu2 }
 0x88e   : > { %6724 = vst [vmem:[%s11521_s15 + $0x20] sm:$0xff] %v9220_v20  ;;  %v6332_v37 = vadd.f32 %v6331_v55, %v6243_v58  ;;  %v6506_v15 = vsel %vm6441_vm14, %v6408_v21, %v6474_v11  ;;  %v6253_v58 = vadd.f32 %v6252_v14, %v6163_v1  ;;  %v11810_v14 = vld [vmem:[#allocation23_spill] sm:$0xff] }
 0x88f   : > { %9221 = vtanh.f32 %v6621_v53  ;;  %v6526_v42 = vpack.c.bf16 %v6506_v15, %v6505_v43  ;;  %v6165_v15 = vpop.f32.mrf.mxu0 }
 0x890   : > { %v6375_v12 = vadd.f32 %v6332_v37, %v5551_v2  ;;  %v5561_v2 = vadd.f32 %v11482_v32, %v11807_v30 }
 0x891   : > { %6662 = vmatmul.bf16.gmra.mxu3 %v6526_v42  ;;  %v6254_v42 = vpop.f32.mrf.mxu1 }
 0x892   : > { %v6409_v56 = vadd.f32 %v11346_v6, %v6375_v12  ;;  %v6255_v12 = vadd.f32 %v6254_v42, %v6165_v15 }
 0x894   : > { %v6623_v9 = vpop.f32.mrf.mxu3  ;;  %v6475_v36 = vmul.f32 %v11355_v7, %v6409_v56  ;;  %vm6442_vm15 = vcmp.gt.f32.partialorder %v6409_v56, 0.0 }
 0x895   : > { %v9222_v23 = vpop.eup %9221  ;;  %v6624_v62 = vadd.f32 %v11508_v10, %v6623_v9  ;;  %v6333_v5 = vpop.f32.mrf.mxu2 }
 0x896   : > { %6725 = vst [vmem:[%s11521_s15 + $0x28] sm:$0xff] %v9222_v23  ;;  %v6334_v63 = vadd.f32 %v6333_v5, %v6245_v35  ;;  %v6507_v50 = vsel %vm6442_vm15, %v6409_v56, %v6475_v36  ;;  %v11808_v5 = vld [vmem:[#allocation39_spill] sm:$0xff] }
 0x897   : > { %9223 = vtanh.f32 %v6624_v62  ;;  %v5563_v0 = vadd.f32 %v11489_v4, %v11808_v5 }
 0x898   : > { %v6376_v31 = vadd.f32 %v6334_v63, %v5553_v49  ;;  %v6168_v63 = vpop.f32.mrf.mxu0 }
 0x89a   : > { %v6410_v38 = vadd.f32 %v11346_v6, %v6376_v31  ;;  %v6257_v31 = vpop.f32.mrf.mxu1 }
 0x89b   : > { %v6258_v36 = vadd.f32 %v6257_v31, %v6168_v63 }
 0x89c   : > { %v6476_v57 = vmul.f32 %v11355_v7, %v6410_v38  ;;  %v6625_v59 = vpop.f32.mrf.mxu3  ;;  %vm6443_vm0 = vcmp.gt.f32.partialorder %v6410_v38, 0.0 }
 0x89d   : > { %v9224_v25 = vpop.eup %9223  ;;  %v6626_v48 = vadd.f32 %v11508_v10, %v6625_v59  ;;  %v6336_v40 = vpop.f32.mrf.mxu2 }
 0x89e   : > { %6726 = vst [vmem:[%s11521_s15 + $0x30] sm:$0xff] %v9224_v25  ;;  %v6337_v61 = vadd.f32 %v6336_v40, %v6248_v45  ;;  %v6508_v60 = vsel %vm6443_vm0, %v6410_v38, %v6476_v57 }
 0x89f   : > { %9225 = vtanh.f32 %v6626_v48  ;;  %v6527_v22 = vpack.c.bf16 %v6508_v60, %v6507_v50  ;;  %v11809_v50 = vld [vmem:[#allocation35_spill] sm:$0xff] }
 0x8a0   : > { %v6377_v13 = vadd.f32 %v6337_v61, %v5556_v39  ;;  %v5566_v60 = vadd.f32 %v11496_v26, %v11809_v50 }
 0x8a1   : > { %6667 = vmatmul.bf16.gmra.mxu3 %v6527_v22  ;;  %v6170_v22 = vpop.f32.mrf.mxu0 }
 0x8a2   : > { %v6411_v34 = vadd.f32 %v11346_v6, %v6377_v13  ;;  %v6259_v16 = vpop.f32.mrf.mxu1 }
 0x8a3   : > { %v6260_v13 = vadd.f32 %v6259_v16, %v6170_v22 }
 0x8a4   : > { %v6628_v47 = vpop.f32.mrf.mxu3  ;;  %v6477_v19 = vmul.f32 %v11355_v7, %v6411_v34  ;;  %vm6444_vm1 = vcmp.gt.f32.partialorder %v6411_v34, 0.0 }
 0x8a5   : > { %v9226_v52 = vpop.eup %9225  ;;  %v6629_v24 = vadd.f32 %v11508_v10, %v6628_v47  ;;  %v6338_v44 = vpop.f32.mrf.mxu2 }
 0x8a6   : > { %6727 = vst [vmem:[%s11521_s15 + $0x38] sm:$0xff] %v9226_v52  ;;  %v6339_v27 = vadd.f32 %v6338_v44, %v6250_v17  ;;  %v6509_v37 = vsel %vm6444_vm1, %v6411_v34, %v6477_v19 }
 0x8a7   : > { %9227 = vtanh.f32 %v6629_v24  ;;  %v5568_v24 = vadd.f32 %v11503_v54, %v11810_v14 }
 0x8a8   : > { %v6378_v8 = vadd.f32 %v6339_v27, %v5558_v28 }
 0x8aa   : > { %v6412_v21 = vadd.f32 %v11346_v6, %v6378_v8 }
 0x8ac   : > { %v6478_v11 = vmul.f32 %v11355_v7, %v6412_v21  ;;  %v6630_v29 = vpop.f32.mrf.mxu3  ;;  %vm6445_vm3 = vcmp.gt.f32.partialorder %v6412_v21, 0.0 }
 0x8ad   : > { %v9228_v20 = vpop.eup %9227  ;;  %v6631_v46 = vadd.f32 %v11508_v10, %v6630_v29  ;;  %v6341_v53 = vpop.f32.mrf.mxu2 }
 0x8ae   : > { %6728 = vst [vmem:[%s11521_s15 + $0x40] sm:$0xff] %v9228_v20  ;;  %v6342_v55 = vadd.f32 %v6341_v53, %v6253_v58  ;;  %v6510_v43 = vsel %vm6445_vm3, %v6412_v21, %v6478_v11 }
 0x8af   : > { %9229 = vtanh.f32 %v6631_v46  ;;  %v6528_v51 = vpack.c.bf16 %v6510_v43, %v6509_v37 }
 0x8b0   : > { %v6379_v41 = vadd.f32 %v6342_v55, %v5561_v2 }
 0x8b1   : > { %6672 = vmatmul.bf16.gmra.mxu3 %v6528_v51 }
 0x8b2   : > { %v6413_v49 = vadd.f32 %v11346_v6, %v6379_v41 }
 0x8b4   : > { %v6633_v35 = vpop.f32.mrf.mxu3  ;;  %v6479_v18 = vmul.f32 %v11355_v7, %v6413_v49  ;;  %vm6446_vm4 = vcmp.gt.f32.partialorder %v6413_v49, 0.0 }
 0x8b5   : > { %v9230_v9 = vpop.eup %9229  ;;  %v6634_v23 = vadd.f32 %v11508_v10, %v6633_v35  ;;  %v6343_v62 = vpop.f32.mrf.mxu2 }
 0x8b6   : > { %6729 = vst [vmem:[%s11521_s15 + $0x48] sm:$0xff] %v9230_v9  ;;  %v6344_v56 = vadd.f32 %v6343_v62, %v6255_v12  ;;  %v6511_v48 = vsel %vm6446_vm4, %v6413_v49, %v6479_v18 }
 0x8b7   : > { %9231 = vtanh.f32 %v6634_v23 }
 0x8b8   : > { %v6380_v32 = vadd.f32 %v6344_v56, %v5563_v0 }
 0x8ba   : > { %v6414_v38 = vadd.f32 %v11346_v6, %v6380_v32 }
 0x8bc   : > { %v6480_v33 = vmul.f32 %v11355_v7, %v6414_v38  ;;  %v6635_v45 = vpop.f32.mrf.mxu3  ;;  %vm6447_vm7 = vcmp.gt.f32.partialorder %v6414_v38, 0.0 }
 0x8bd   : > { %v9232_v4 = vpop.eup %9231  ;;  %v6636_v57 = vadd.f32 %v11508_v10, %v6635_v45  ;;  %v6346_v59 = vpop.f32.mrf.mxu2 }
 0x8be   : > { %6730 = vst [vmem:[%s11521_s15 + $0x50] sm:$0xff] %v9232_v4  ;;  %v6347_v25 = vadd.f32 %v6346_v59, %v6258_v36  ;;  %v6512_v40 = vsel %vm6447_vm7, %v6414_v38, %v6480_v33 }
 0x8bf   : > { %9233 = vtanh.f32 %v6636_v57  ;;  %v6529_v61 = vpack.c.bf16 %v6512_v40, %v6511_v48 }
 0x8c0   : > { %v6381_v39 = vadd.f32 %v6347_v25, %v5566_v60 }
 0x8c1   : > { %6677 = vmatmul.bf16.gmra.mxu3 %v6529_v61 }
 0x8c2   : > { %v6415_v44 = vadd.f32 %v11346_v6, %v6381_v39 }
 0x8c4   : > { %v6638_v1 = vpop.f32.mrf.mxu3  ;;  %v6481_v28 = vmul.f32 %v11355_v7, %v6415_v44  ;;  %vm6448_vm10 = vcmp.gt.f32.partialorder %v6415_v44, 0.0 }
 0x8c5   : > { %v9234_v17 = vpop.eup %9233  ;;  %v6639_v47 = vadd.f32 %v11508_v10, %v6638_v1  ;;  %v6348_v52 = vpop.f32.mrf.mxu2 }
 0x8c6   : > { %6731 = vst [vmem:[%s11521_s15 + $0x58] sm:$0xff] %v9234_v17  ;;  %v6349_v3 = vadd.f32 %v6348_v52, %v6260_v13  ;;  %v6513_v21 = vsel %vm6448_vm10, %v6415_v44, %v6481_v28 }
 0x8c7   : > { %9235 = vtanh.f32 %v6639_v47 }
 0x8c8   : > { %v6382_v26 = vadd.f32 %v6349_v3, %v5568_v24 }
 0x8ca   : > { %v6416_v34 = vadd.f32 %v11346_v6, %v6382_v26 }
 0x8cc   : > { %v6482_v27 = vmul.f32 %v11355_v7, %v6416_v34  ;;  %v6640_v8 = vpop.f32.mrf.mxu3  ;;  %vm6449_vm2 = vcmp.gt.f32.partialorder %v6416_v34, 0.0 }
 0x8cd   : > { %v9236_v19 = vpop.eup %9235  ;;  %v6641_v54 = vadd.f32 %v11508_v10, %v6640_v8 }
 0x8ce   : > { %6732 = vst [vmem:[%s11521_s15 + $0x60] sm:$0xff] %v9236_v19  ;;  %v6514_v58 = vsel %vm6449_vm2, %v6416_v34, %v6482_v27 }
 0x8cf   : > { %9237 = vtanh.f32 %v6641_v54  ;;  %v6530_v11 = vpack.c.bf16 %v6514_v58, %v6513_v21 }
 0x8d1   : > { %6682 = vmatmul.bf16.gmra.mxu3 %v6530_v11 }
 0x8d4   : > { %v6643_v29 = vpop.f32.mrf.mxu3 }
 0x8d5   : > { %v9238_v20 = vpop.eup %9237  ;;  %v6644_v6 = vadd.f32 %v11508_v10, %v6643_v29 }
 0x8d6   : > { %6733 = vst [vmem:[%s11521_s15 + $0x68] sm:$0xff] %v9238_v20 }
 0x8d7   : > { %9239 = vtanh.f32 %v6644_v6 }
 0x8dc   : > { %v6645_v7 = vpop.f32.mrf.mxu3 }
 0x8dd   : > { %v9240_v46 = vpop.eup %9239  ;;  %v6646_v53 = vadd.f32 %v11508_v10, %v6645_v7 }
 0x8de   : > { %6734 = vst [vmem:[%s11521_s15 + $0x70] sm:$0xff] %v9240_v46 }
 0x8df   : > { %9241 = vtanh.f32 %v6646_v53 }
 0x8e4   : > { %v6648_v55 = vpop.f32.mrf.mxu3 }
 0x8e5   : > { %v9242_v37 = vpop.eup %9241  ;;  %v6649_v43 = vadd.f32 %v11508_v10, %v6648_v55 }
 0x8e6   : > { %6735 = vst [vmem:[%s11521_s15 + $0x78] sm:$0xff] %v9242_v37 }
 0x8e7   : > { %9243 = vtanh.f32 %v6649_v43 }
 0x8ec   : > { %v6650_v15 = vpop.f32.mrf.mxu3 }
 0x8ed   : > { %v9244_v42 = vpop.eup %9243  ;;  %v6651_v51 = vadd.f32 %v11508_v10, %v6650_v15 }
 0x8ee   : > { %6736 = vst [vmem:[%s11521_s15 + $0x80] sm:$0xff] %v9244_v42 }
 0x8ef   : > { %9245 = vtanh.f32 %v6651_v51 }
 0x8f4   : > { %v6653_v30 = vpop.f32.mrf.mxu3 }
 0x8f5   : > { %v9246_v2 = vpop.eup %9245  ;;  %v6654_v41 = vadd.f32 %v11508_v10, %v6653_v30 }
 0x8f6   : > { %6737 = vst [vmem:[%s11521_s15 + $0x88] sm:$0xff] %v9246_v2 }
 0x8f7   : > { %9247 = vtanh.f32 %v6654_v41 }
 0x8fc   : > { %v6655_v12 = vpop.f32.mrf.mxu3 }
 0x8fd   : > { %v9248_v35 = vpop.eup %9247  ;;  %v6656_v9 = vadd.f32 %v11508_v10, %v6655_v12 }
 0x8fe   : > { %6738 = vst [vmem:[%s11521_s15 + $0x90] sm:$0xff] %v9248_v35 }
 0x8ff   : > { %9249 = vtanh.f32 %v6656_v9 }
 0x904   : > { %v6658_v23 = vpop.f32.mrf.mxu3 }
 0x905   : > { %v9250_v62 = vpop.eup %9249  ;;  %v6659_v5 = vadd.f32 %v11508_v10, %v6658_v23 }
 0x906   : > { %6739 = vst [vmem:[%s11521_s15 + $0x98] sm:$0xff] %v9250_v62 }
 0x907   : > { %9251 = vtanh.f32 %v6659_v5 }
 0x90c   : > { %v6660_v0 = vpop.f32.mrf.mxu3 }
 0x90d   : > { %v9252_v49 = vpop.eup %9251  ;;  %v6661_v56 = vadd.f32 %v11508_v10, %v6660_v0 }
 0x90e   : > { %6740 = vst [vmem:[%s11521_s15 + $0xa0] sm:$0xff] %v9252_v49 }
 0x90f   : > { %9253 = vtanh.f32 %v6661_v56 }
 0x914   : > { %v6663_v63 = vpop.f32.mrf.mxu3 }
 0x915   : > { %v9254_v31 = vpop.eup %9253  ;;  %v6664_v32 = vadd.f32 %v11508_v10, %v6663_v63 }
 0x916   : > { %6741 = vst [vmem:[%s11521_s15 + $0xa8] sm:$0xff] %v9254_v31 }
 0x917   : > { %9255 = vtanh.f32 %v6664_v32 }
 0x91c   : > { %v6665_v18 = vpop.f32.mrf.mxu3 }
 0x91d   : > { %v9256_v36 = vpop.eup %9255  ;;  %v6666_v38 = vadd.f32 %v11508_v10, %v6665_v18 }
 0x91e   : > { %6742 = vst [vmem:[%s11521_s15 + $0xb0] sm:$0xff] %v9256_v36 }
 0x91f   : > { %9257 = vtanh.f32 %v6666_v38 }
 0x924   : > { %v6668_v33 = vpop.f32.mrf.mxu3 }
 0x925   : > { %v9258_v45 = vpop.eup %9257  ;;  %v6669_v4 = vadd.f32 %v11508_v10, %v6668_v33 }
 0x926   : > { %6743 = vst [vmem:[%s11521_s15 + $0xb8] sm:$0xff] %v9258_v45 }
 0x927   : > { %9259 = vtanh.f32 %v6669_v4 }
 0x92c   : > { %v6670_v57 = vpop.f32.mrf.mxu3 }
 0x92d   : > { %v9260_v59 = vpop.eup %9259  ;;  %v6671_v25 = vadd.f32 %v11508_v10, %v6670_v57 }
 0x92e   : > { %6744 = vst [vmem:[%s11521_s15 + $0xc0] sm:$0xff] %v9260_v59 }
 0x92f   : > { %9261 = vtanh.f32 %v6671_v25 }
 0x934   : > { %v6673_v48 = vpop.f32.mrf.mxu3 }
 0x935   : > { %v9262_v40 = vpop.eup %9261  ;;  %v6674_v61 = vadd.f32 %v11508_v10, %v6673_v48 }
 0x936   : > { %6745 = vst [vmem:[%s11521_s15 + $0xc8] sm:$0xff] %v9262_v40 }
 0x937   : > { %9263 = vtanh.f32 %v6674_v61 }
 0x93c   : > { %v6675_v50 = vpop.f32.mrf.mxu3 }
 0x93d   : > { %v9264_v60 = vpop.eup %9263  ;;  %v6676_v22 = vadd.f32 %v11508_v10, %v6675_v50 }
 0x93e   : > { %6746 = vst [vmem:[%s11521_s15 + $0xd0] sm:$0xff] %v9264_v60 }
 0x93f   : > { %9265 = vtanh.f32 %v6676_v22 }
 0x944   : > { %v6678_v16 = vpop.f32.mrf.mxu3 }
 0x945   : > { %v9266_v39 = vpop.eup %9265  ;;  %v6679_v13 = vadd.f32 %v11508_v10, %v6678_v16 }
 0x946   : > { %6747 = vst [vmem:[%s11521_s15 + $0xd8] sm:$0xff] %v9266_v39 }
 0x947   : > { %9267 = vtanh.f32 %v6679_v13 }
 0x94c   : > { %v6680_v1 = vpop.f32.mrf.mxu3 }
 0x94d   : > { %v9268_v17 = vpop.eup %9267  ;;  %v6681_v47 = vadd.f32 %v11508_v10, %v6680_v1 }
 0x94e   : > { %6748 = vst [vmem:[%s11521_s15 + $0xe0] sm:$0xff] %v9268_v17 }
 0x94f   : > { %9269 = vtanh.f32 %v6681_v47 }
 0x954   : > { %v6683_v52 = vpop.f32.mrf.mxu3 }
 0x955   : > { %v9270_v14 = vpop.eup %9269  ;;  %v6684_v24 = vadd.f32 %v11508_v10, %v6683_v52 }
 0x956   : > { %6749 = vst [vmem:[%s11521_s15 + $0xe8] sm:$0xff] %v9270_v14 }
 0x957   : > { %9271 = vtanh.f32 %v6684_v24 }
 0x95c   : > { %v6685_v44 = vpop.f32.mrf.mxu3 }
 0x95d   : > { %v9272_v3 = vpop.eup %9271  ;;  %v6686_v26 = vadd.f32 %v11508_v10, %v6685_v44 }
 0x95e   : > { %6750 = vst [vmem:[%s11521_s15 + $0xf0] sm:$0xff] %v9272_v3 }
 0x95f   : > { %9273 = vtanh.f32 %v6686_v26 }
 0x965   : > { %v9274_v28 = vpop.eup %9273 }
 0x966   : > { %6751 = vst [vmem:[%s11521_s15 + $0xf8] sm:$0xff] %v9274_v28 }
 0x967 PF: > { %s23_s27 = sadd.s32 1, %s9498_s27  }
 0x968   : > { %p20_p7 = scmp.ge.s32.totalorder %s23_s27, 4  }
 0x96a   :  { %22 = sbr.rel (!%p20_p7) target bundleno = 5 (0x5), region = 123 }
 0x96f   :  { %6773 = vsyncpa [#allocation5], 1 }
 0x970   :  { %6775 = vsyncpa [#allocation5 + $0x1], 1 }
 0x971   :  { %6776 = vsyncpa [#allocation8], 1 }
 0x972   :  { %6777 = vsyncpa [#allocation11], 1 }
 0x973   :  { %6778 = vsyncpa [#allocation14], 1 }
 0x974   :  { %6779 = vsyncpa [#allocation6], 1 }
 0x975   :  { %6781 = vsyncpa [#allocation6 + $0x1], 1 }

</bundles_post_ra>
